<compile_context>
chip_gen: v7x
topology: tpu7x:2x2x1
jax: 0.10.0
libtpu: 0.0.40
codegen_flags: <defaults>
</compile_context>

<pallas_src>
import math
from functools import partial

import jax
import jax.numpy as jnp
from jax.experimental import pallas as pl
from jax.experimental.pallas import tpu as pltpu


# --------------------------------------------------------------------------
# tiling helpers
# --------------------------------------------------------------------------
_ROW_TILES = (256, 128, 64, 32, 16, 8)     # sublane-side (rows of x)
_COL_TILES = (512, 384, 256, 128)          # lane-side (output features)
_SEQ_TILES = (128, 64, 32, 16, 8)          # attention q/kv tiles

_VMEM_LIMIT = 48 * 1024 * 1024             # safe on v7x (64 MiB) with headroom


def _pick_tile(dim, candidates):
    """Largest candidate tile that evenly divides `dim` (else the full dim)."""
    for c in candidates:
        if dim >= c and dim % c == 0:
            return c
    return dim


def _cparams(sem):
    return pltpu.CompilerParams(dimension_semantics=sem,
                                vmem_limit_bytes=_VMEM_LIMIT)


# --------------------------------------------------------------------------
# fused LayerNorm -> matmul (+bias) (+gelu) kernel
# --------------------------------------------------------------------------
_GELU_C = math.sqrt(2.0 / math.pi)


def _layernorm_f32(x_ref, g_ref, b_ref):
    x = x_ref[...].astype(jnp.float32)
    mean = jnp.mean(x, axis=-1, keepdims=True)
    xc = x - mean
    var = jnp.mean(xc * xc, axis=-1, keepdims=True)
    xhat = xc * jax.lax.rsqrt(var + 1e-5)
    return xhat * g_ref[...].astype(jnp.float32) + b_ref[...].astype(jnp.float32)


def _ln_matmul_bias_kernel(x_ref, g_ref, bln_ref, w_ref, b_ref, o_ref, *, act):
    # LayerNorm stats in f32, MXU matmul in bf16 with f32 accumulation.
    h = _layernorm_f32(x_ref, g_ref, bln_ref).astype(jnp.bfloat16)
    acc = jnp.dot(h, w_ref[...], preferred_element_type=jnp.float32)
    acc = acc + b_ref[...].astype(jnp.float32)
    if act == "gelu":  # tanh-approx GELU (matches nn.GELU(approximate='tanh'))
        acc = 0.5 * acc * (1.0 + jnp.tanh(_GELU_C * (acc + 0.044715 * acc * acc * acc)))
    o_ref[...] = acc.astype(o_ref.dtype)


def _ln_matmul_kernel(x_ref, g_ref, bln_ref, w_ref, o_ref):
    # No-bias variant (tied lm_head): LN(x) @ W
    h = _layernorm_f32(x_ref, g_ref, bln_ref).astype(jnp.bfloat16)
    o_ref[...] = jnp.dot(h, w_ref[...],
                         preferred_element_type=jnp.float32).astype(o_ref.dtype)


def ln_linear(x2d, ln_g, ln_b, w, b=None, *, act=None, out_dtype=jnp.bfloat16):
    """out = act(LayerNorm(x2d) @ w (+ b)).  Tiled (M, N) grid, K = C kept whole."""
    M, C = x2d.shape
    Cw, N = w.shape
    assert Cw == C
    tm = _pick_tile(M, _ROW_TILES)
    tn = _pick_tile(N, _COL_TILES)
    grid = (M // tm, N // tn)

    x_spec = pl.BlockSpec((tm, C), lambda m, n: (m, 0))
    v_spec = pl.BlockSpec((1, C), lambda m, n: (0, 0))
    w_spec = pl.BlockSpec((C, tn), lambda m, n: (0, n))
    b_spec = pl.BlockSpec((1, tn), lambda m, n: (0, n))
    o_spec = pl.BlockSpec((tm, tn), lambda m, n: (m, n))

    if b is not None:
        kernel = partial(_ln_matmul_bias_kernel, act=act)
        in_specs = [x_spec, v_spec, v_spec, w_spec, b_spec]
        args = (x2d, ln_g, ln_b, w, b)
    else:
        assert act is None
        kernel = _ln_matmul_kernel
        in_specs = [x_spec, v_spec, v_spec, w_spec]
        args = (x2d, ln_g, ln_b, w)

    return pl.pallas_call(
        kernel,
        out_shape=jax.ShapeDtypeStruct((M, N), out_dtype),
        grid=grid,
        in_specs=in_specs,
        out_specs=o_spec,
        compiler_params=_cparams(("parallel", "parallel")),
    )(*args)


# --------------------------------------------------------------------------
# matmul + bias + residual-add kernel (projection layers)
# --------------------------------------------------------------------------
def _matmul_bias_res_kernel(x_ref, w_ref, b_ref, r_ref, o_ref):
    acc = jnp.dot(x_ref[...].astype(jnp.bfloat16), w_ref[...],
                  preferred_element_type=jnp.float32)
    acc = acc + b_ref[...].astype(jnp.float32) + r_ref[...].astype(jnp.float32)
    o_ref[...] = acc.astype(o_ref.dtype)


def linear_bias_residual(x2d, w, b, res):
    """out = x2d @ w + b + res   (residual add fused into the matmul epilogue)."""
    M, K = x2d.shape
    Kw, N = w.shape
    assert Kw == K and res.shape == (M, N)
    tm = _pick_tile(M, _ROW_TILES)
    tn = _pick_tile(N, _COL_TILES)
    grid = (M // tm, N // tn)
    return pl.pallas_call(
        _matmul_bias_res_kernel,
        out_shape=jax.ShapeDtypeStruct((M, N), res.dtype),
        grid=grid,
        in_specs=[pl.BlockSpec((tm, K), lambda m, n: (m, 0)),
                  pl.BlockSpec((K, tn), lambda m, n: (0, n)),
                  pl.BlockSpec((1, tn), lambda m, n: (0, n)),
                  pl.BlockSpec((tm, tn), lambda m, n: (m, n))],
        out_specs=pl.BlockSpec((tm, tn), lambda m, n: (m, n)),
        compiler_params=_cparams(("parallel", "parallel")),
    )(x2d, w, b, res)


# --------------------------------------------------------------------------
# flash-style causal attention: grid (B*H, q_tile, kv_tile), online softmax
# --------------------------------------------------------------------------
def _flash_attn_kernel(q_ref, k_ref, v_ref, o_ref, m_sc, l_sc, acc_sc,
                       *, scale, tq, tk):
    qi = pl.program_id(1)
    ki = pl.program_id(2)

    @pl.when(ki == 0)
    def _():
        m_sc[...] = jnp.full((tq, 1), -jnp.inf, jnp.float32)
        l_sc[...] = jnp.zeros((tq, 1), jnp.float32)
        acc_sc[...] = jnp.zeros_like(acc_sc[...])

    # Causal block skipping: kv tiles entirely above the diagonal do no work.
    @pl.when(ki <= qi)
    def _():
        q = (q_ref[0].astype(jnp.float32) * scale).astype(jnp.bfloat16)  # (tq, D)
        k = k_ref[0]                                                      # (tk, D)
        s = jax.lax.dot_general(q, k, (((1,), (1,)), ((), ())),
                                preferred_element_type=jnp.float32)       # (tq, tk)
        row = qi * tq + jax.lax.broadcasted_iota(jnp.int32, (tq, tk), 0)
        col = ki * tk + jax.lax.broadcasted_iota(jnp.int32, (tq, tk), 1)
        s = jnp.where(col <= row, s, -1e30)

        m_prev = m_sc[...]
        m_new = jnp.maximum(m_prev, jnp.max(s, axis=-1, keepdims=True))
        alpha = jnp.exp(m_prev - m_new)
        p = jnp.exp(s - m_new)
        l_sc[...] = alpha * l_sc[...] + jnp.sum(p, axis=-1, keepdims=True)
        acc_sc[...] = alpha * acc_sc[...] + jnp.dot(
            p.astype(jnp.bfloat16), v_ref[0], preferred_element_type=jnp.float32)
        m_sc[...] = m_new

    @pl.when(ki == pl.num_programs(2) - 1)
    def _():
        inv_l = pl.reciprocal(l_sc[...], approx=True)
        o_ref[0] = (acc_sc[...] * inv_l).astype(o_ref.dtype)


def flash_causal_attention(q, k, v):
    """q, k, v: (B*H, T, D) bf16 -> (B*H, T, D) bf16."""
    BH, T, D = q.shape
    tq = _pick_tile(T, _SEQ_TILES)
    tk = tq
    grid = (BH, T // tq, T // tk)
    q_spec = pl.BlockSpec((1, tq, D), lambda bh, qi, ki: (bh, qi, 0))
    k_spec = pl.BlockSpec((1, tk, D), lambda bh, qi, ki: (bh, ki, 0))
    o_spec = pl.BlockSpec((1, tq, D), lambda bh, qi, ki: (bh, qi, 0))
    scale = 1.0 / math.sqrt(D)
    return pl.pallas_call(
        partial(_flash_attn_kernel, scale=scale, tq=tq, tk=tk),
        out_shape=jax.ShapeDtypeStruct((BH, T, D), q.dtype),
        grid=grid,
        in_specs=[q_spec, k_spec, k_spec],
        out_specs=o_spec,
        scratch_shapes=[pltpu.VMEM((tq, 1), jnp.float32),   # running max
                        pltpu.VMEM((tq, 1), jnp.float32),   # running denom
                        pltpu.VMEM((tq, D), jnp.float32)],  # output accumulator
        compiler_params=_cparams(("parallel", "parallel", "arbitrary")),
    )(q, k, v)


# --------------------------------------------------------------------------
# Parameter initialization (mirrors GPT._init_weights; weights pre-cast bf16)
# --------------------------------------------------------------------------
def init_params(key, cfg):
    V, Tmax, L, C = (cfg["vocab_size"], cfg["block_size"],
                     cfg["n_layer"], cfg["n_embd"])
    std = 0.02
    proj_std = std * (2 * L) ** -0.5  # NANOGPT_SCALE_INIT
    keys = iter(jax.random.split(key, 2 + 4 * L))

    wte = jax.random.normal(next(keys), (V, C), jnp.float32) * std
    params = {
        "wte": wte,                                    # (V, C) f32 for embedding gather
        "wte_T": wte.T.astype(jnp.bfloat16),           # (C, V) bf16, tied lm_head (built once)
        "wpe": jax.random.normal(next(keys), (Tmax, C), jnp.float32) * std,
        "ln_f_g": jnp.ones((1, C), jnp.float32),
        "ln_f_b": jnp.zeros((1, C), jnp.float32),
        "blocks": [],
    }
    for _ in range(L):
        blk = {
            "ln1_g": jnp.ones((1, C), jnp.float32),
            "ln1_b": jnp.zeros((1, C), jnp.float32),
            "attn_w": (jax.random.normal(next(keys), (C, 3 * C), jnp.float32) * std
                       ).astype(jnp.bfloat16),
            "attn_b": jnp.zeros((1, 3 * C), jnp.float32),
            "attn_proj_w": (jax.random.normal(next(keys), (C, C), jnp.float32) * proj_std
                            ).astype(jnp.bfloat16),
            "attn_proj_b": jnp.zeros((1, C), jnp.float32),
            "ln2_g": jnp.ones((1, C), jnp.float32),
            "ln2_b": jnp.zeros((1, C), jnp.float32),
            "fc_w": (jax.random.normal(next(keys), (C, 4 * C), jnp.float32) * std
                     ).astype(jnp.bfloat16),
            "fc_b": jnp.zeros((1, 4 * C), jnp.float32),
            "mlp_proj_w": (jax.random.normal(next(keys), (4 * C, C), jnp.float32) * proj_std
                           ).astype(jnp.bfloat16),
            "mlp_proj_b": jnp.zeros((1, C), jnp.float32),
        }
        params["blocks"].append(blk)
    return params


# --------------------------------------------------------------------------
# Forward pass (glue in plain JAX, hot paths in fused Pallas kernels)
# --------------------------------------------------------------------------
def gpt_forward(params, idx, cfg):
    B, T = idx.shape
    C, H = cfg["n_embd"], cfg["n_head"]
    D = C // H
    assert T <= cfg["block_size"]

    # token + position embeddings (gather stays in XLA glue)
    tok_emb = jnp.take(params["wte"], idx, axis=0)        # (B, T, C)
    pos_emb = params["wpe"][:T]                            # (T, C)
    x = (tok_emb + pos_emb[None, :, :]).reshape(B * T, C)  # residual stream, f32

    for blk in params["blocks"]:
        # --- attention branch: fused LN1+QKV, flash attention, fused proj+bias+residual
        qkv = ln_linear(x, blk["ln1_g"], blk["ln1_b"], blk["attn_w"], blk["attn_b"],
                        act=None, out_dtype=jnp.bfloat16)            # (B*T, 3C) bf16
        qkv = qkv.reshape(B, T, 3, H, D).transpose(2, 0, 3, 1, 4)    # (3, B, H, T, D)
        q = qkv[0].reshape(B * H, T, D)
        k = qkv[1].reshape(B * H, T, D)
        v = qkv[2].reshape(B * H, T, D)
        y = flash_causal_attention(q, k, v)                          # (B*H, T, D) bf16
        y = y.reshape(B, H, T, D).transpose(0, 2, 1, 3).reshape(B * T, C)
        # TODO(synk): the (B,H,T,D) head-layout transposes above are still XLA copies;
        # a head-packed attention kernel reading (B, T, 3C) directly would remove them.
        x = linear_bias_residual(y, blk["attn_proj_w"], blk["attn_proj_b"], x)

        # --- MLP branch: fused LN2+fc+bias+GELU, fused proj+bias+residual
        h = ln_linear(x, blk["ln2_g"], blk["ln2_b"], blk["fc_w"], blk["fc_b"],
                      act="gelu", out_dtype=jnp.bfloat16)            # (B*T, 4C) bf16
        x = linear_bias_residual(h, blk["mlp_proj_w"], blk["mlp_proj_b"], x)

    # final LN + tied lm_head (no bias), tiled over the vocab dim
    logits = ln_linear(x, params["ln_f_g"], params["ln_f_b"], params["wte_T"],
                       b=None, act=None, out_dtype=jnp.float32)      # (B*T, V)
    V = params["wte"].shape[0]
    logits = logits.reshape(B, T, V)
    # TODO(synk): cross-entropy loss path (targets != None) not implemented;
    # forward returns (logits, None) exactly as the PyTorch default call.
    return logits, None


# --------------------------------------------------------------------------
if __name__ == "__main__":
    cfg = dict(block_size=256, vocab_size=512, n_layer=2, n_head=4, n_embd=128)
    B, T = 2, 256   # exercises multiple q/kv tiles (causal skip) and M/N tiling

    key = jax.random.PRNGKey(0)
    k_param, k_idx = jax.random.split(key)
    params = init_params(k_param, cfg)
    idx = jax.random.randint(k_idx, (B, T), 0, cfg["vocab_size"], dtype=jnp.int32)

    fwd = jax.jit(partial(gpt_forward, cfg=cfg))
    logits, loss = fwd(params, idx)
    jax.block_until_ready(logits)

    assert logits.shape == (B, T, cfg["vocab_size"])
    assert logits.dtype == jnp.float32
    assert bool(jnp.all(jnp.isfinite(logits)))
    print("KERNEL_OK")
</pallas_src>

<mosaic_0001>
module attributes {stable_mosaic.version = 11 : i64} {
  func.func @_ln_matmul_bias_kernel(%arg0: i32, %arg1: i32, %arg2: memref<256x128xf32, #tpu.memory_space<vmem>>, %arg3: memref<1x128xf32, #tpu.memory_space<vmem>>, %arg4: memref<1x128xf32, #tpu.memory_space<vmem>>, %arg5: memref<128x384xbf16, #tpu.memory_space<vmem>>, %arg6: memref<1x384xf32, #tpu.memory_space<vmem>>, %arg7: memref<256x384xbf16, #tpu.memory_space<vmem>>) attributes {dimension_semantics = [#tpu.dimension_semantics<parallel>, #tpu.dimension_semantics<parallel>], iteration_bounds = array<i64: 2, 1>, scalar_prefetch = 0 : i64, scratch_operands = 0 : i64, tpu.core_type = #tpu.core_type<tc>, window_params = [{transform_indices = @transform_0, window_bounds = array<i64: 256, 128>}, {pipeline_mode = #tpu.pipeline_mode<synchronous>, transform_indices = @transform_1, window_bounds = array<i64: 1, 128>}, {pipeline_mode = #tpu.pipeline_mode<synchronous>, transform_indices = @transform_2, window_bounds = array<i64: 1, 128>}, {transform_indices = @transform_3, window_bounds = array<i64: 128, 384>}, {transform_indices = @transform_4, window_bounds = array<i64: 1, 384>}, {transform_indices = @transform_5, window_bounds = array<i64: 256, 384>}]} {
    %c0 = arith.constant 0 : index
    %c0_0 = arith.constant 0 : index
    %0 = vector.load %arg2[%c0, %c0_0] : memref<256x128xf32, #tpu.memory_space<vmem>>, vector<256x128xf32>
    %cst = arith.constant dense<0.000000e+00> : vector<256xf32>
    %1 = vector.multi_reduction <add>, %0, %cst [1] : vector<256x128xf32> to vector<256xf32>
    %2 = vector.shape_cast %1 : vector<256xf32> to vector<256x1xf32>
    %cst_1 = arith.constant 1.280000e+02 : f32
    %3 = vector.broadcast %cst_1 : f32 to vector<256x1xf32>
    %4 = arith.divf %2, %3 : vector<256x1xf32>
    %5 = vector.broadcast %4 : vector<256x1xf32> to vector<256x128xf32>
    %6 = arith.subf %0, %5 : vector<256x128xf32>
    %7 = arith.mulf %6, %6 : vector<256x128xf32>
    %cst_2 = arith.constant dense<0.000000e+00> : vector<256xf32>
    %8 = vector.multi_reduction <add>, %7, %cst_2 [1] : vector<256x128xf32> to vector<256xf32>
    %9 = vector.shape_cast %8 : vector<256xf32> to vector<256x1xf32>
    %cst_3 = arith.constant 1.280000e+02 : f32
    %10 = vector.broadcast %cst_3 : f32 to vector<256x1xf32>
    %11 = arith.divf %9, %10 : vector<256x1xf32>
    %cst_4 = arith.constant 9.99999974E-6 : f32
    %12 = vector.broadcast %cst_4 : f32 to vector<256x1xf32>
    %13 = arith.addf %11, %12 : vector<256x1xf32>
    %14 = math.rsqrt %13 : vector<256x1xf32>
    %15 = vector.broadcast %14 : vector<256x1xf32> to vector<256x128xf32>
    %16 = arith.mulf %6, %15 : vector<256x128xf32>
    %c0_5 = arith.constant 0 : index
    %c0_6 = arith.constant 0 : index
    %17 = vector.load %arg3[%c0_5, %c0_6] : memref<1x128xf32, #tpu.memory_space<vmem>>, vector<1x128xf32>
    %18 = vector.broadcast %17 : vector<1x128xf32> to vector<256x128xf32>
    %19 = arith.mulf %16, %18 : vector<256x128xf32>
    %c0_7 = arith.constant 0 : index
    %c0_8 = arith.constant 0 : index
    %20 = vector.load %arg4[%c0_7, %c0_8] : memref<1x128xf32, #tpu.memory_space<vmem>>, vector<1x128xf32>
    %21 = vector.broadcast %20 : vector<1x128xf32> to vector<256x128xf32>
    %22 = arith.addf %19, %21 : vector<256x128xf32>
    %23 = arith.truncf %22 : vector<256x128xf32> to vector<256x128xbf16>
    %c0_9 = arith.constant 0 : index
    %c0_10 = arith.constant 0 : index
    %24 = vector.load %arg5[%c0_9, %c0_10] : memref<128x384xbf16, #tpu.memory_space<vmem>>, vector<128x384xbf16>
    %cst_11 = arith.constant dense<0.000000e+00> : vector<256x384xf32>
    %25 = tpu.matmul %23, %24, %cst_11 {dimension_numbers = #tpu.dot_dimension_numbers<[1], [0], [0], [1], [0, 0, 1, 1], [], []>} : vector<256x128xbf16>, vector<128x384xbf16>, vector<256x384xf32> -> vector<256x384xf32>
    %c0_12 = arith.constant 0 : index
    %c0_13 = arith.constant 0 : index
    %26 = vector.load %arg6[%c0_12, %c0_13] : memref<1x384xf32, #tpu.memory_space<vmem>>, vector<1x384xf32>
    %27 = vector.broadcast %26 : vector<1x384xf32> to vector<256x384xf32>
    %28 = arith.addf %25, %27 : vector<256x384xf32>
    %29 = arith.truncf %28 : vector<256x384xf32> to vector<256x384xbf16>
    %c0_14 = arith.constant 0 : index
    %c0_15 = arith.constant 0 : index
    %30 = vector.load %arg7[%c0_14, %c0_15] : memref<256x384xbf16, #tpu.memory_space<vmem>>, vector<256x384xbf16>
    tpu.vector_store %arg7[%c0_14, %c0_15], %29 {strides = array<i32>} : memref<256x384xbf16, #tpu.memory_space<vmem>>, vector<256x384xbf16>,
    return
  }
  func.func @transform_0(%arg0: i32, %arg1: i32) -> (i32, i32) {
    %c0_i32 = arith.constant 0 : i32
    %c0_i32_0 = arith.constant 0 : i32
    return %arg0, %c0_i32 : i32, i32
  }
  func.func @transform_1(%arg0: i32, %arg1: i32) -> (i32, i32) {
    %c0_i32 = arith.constant 0 : i32
    %c0_i32_0 = arith.constant 0 : i32
    %c0_i32_1 = arith.constant 0 : i32
    return %c0_i32, %c0_i32_0 : i32, i32
  }
  func.func @transform_2(%arg0: i32, %arg1: i32) -> (i32, i32) {
    %c0_i32 = arith.constant 0 : i32
    %c0_i32_0 = arith.constant 0 : i32
    %c0_i32_1 = arith.constant 0 : i32
    return %c0_i32, %c0_i32_0 : i32, i32
  }
  func.func @transform_3(%arg0: i32, %arg1: i32) -> (i32, i32) {
    %c0_i32 = arith.constant 0 : i32
    %c0_i32_0 = arith.constant 0 : i32
    return %c0_i32, %arg1 : i32, i32
  }
  func.func @transform_4(%arg0: i32, %arg1: i32) -> (i32, i32) {
    %c0_i32 = arith.constant 0 : i32
    %c0_i32_0 = arith.constant 0 : i32
    return %c0_i32, %arg1 : i32, i32
  }
  func.func @transform_5(%arg0: i32, %arg1: i32) -> (i32, i32) {
    %c0_i32 = arith.constant 0 : i32
    return %arg0, %arg1 : i32, i32
  }
}

module attributes {stable_mosaic.version = 11 : i64} {
  func.func @_flash_attn_kernel(%arg0: i32, %arg1: i32, %arg2: i32, %arg3: memref<1x128x32xbf16, #tpu.memory_space<vmem>>, %arg4: memref<1x128x32xbf16, #tpu.memory_space<vmem>>, %arg5: memref<1x128x32xbf16, #tpu.memory_space<vmem>>, %arg6: memref<1x128x32xbf16, #tpu.memory_space<vmem>>, %arg7: memref<128x1xf32, #tpu.memory_space<vmem>>, %arg8: memref<128x1xf32, #tpu.memory_space<vmem>>, %arg9: memref<128x32xf32, #tpu.memory_space<vmem>>) attributes {dimension_semantics = [#tpu.dimension_semantics<parallel>, #tpu.dimension_semantics<parallel>, #tpu.dimension_semantics<arbitrary>], iteration_bounds = array<i64: 8, 2, 2>, scalar_prefetch = 0 : i64, scratch_operands = 3 : i64, tpu.core_type = #tpu.core_type<tc>, window_params = [{transform_indices = @transform_0, window_bounds = array<i64: 1, 128, 32>}, {transform_indices = @transform_1, window_bounds = array<i64: 1, 128, 32>}, {transform_indices = @transform_2, window_bounds = array<i64: 1, 128, 32>}, {transform_indices = @transform_3, window_bounds = array<i64: 1, 128, 32>}]} {
    %c0_i32 = arith.constant 0 : i32
    %0 = arith.cmpi eq, %arg2, %c0_i32 : i32
    %1 = arith.extui %0 : i1 to i32
    %c0_i32_0 = arith.constant 0 : i32
    %2 = arith.cmpi ne, %1, %c0_i32_0 : i32
    scf.if %2 {
      %cst = arith.constant 0xFF800000 : f32
      %9 = vector.broadcast %cst : f32 to vector<128x1xf32>
      %c0 = arith.constant 0 : index
      %c0_3 = arith.constant 0 : index
      %10 = vector.load %arg7[%c0, %c0_3] : memref<128x1xf32, #tpu.memory_space<vmem>>, vector<128x1xf32>
      tpu.vector_store %arg7[%c0, %c0_3], %9 {strides = array<i32>} : memref<128x1xf32, #tpu.memory_space<vmem>>, vector<128x1xf32>,
      %cst_4 = arith.constant 0.000000e+00 : f32
      %11 = vector.broadcast %cst_4 : f32 to vector<128x1xf32>
      %c0_5 = arith.constant 0 : index
      %c0_6 = arith.constant 0 : index
      %12 = vector.load %arg8[%c0_5, %c0_6] : memref<128x1xf32, #tpu.memory_space<vmem>>, vector<128x1xf32>
      tpu.vector_store %arg8[%c0_5, %c0_6], %11 {strides = array<i32>} : memref<128x1xf32, #tpu.memory_space<vmem>>, vector<128x1xf32>,
      %cst_7 = arith.constant 0.000000e+00 : f32
      %13 = vector.broadcast %cst_7 : f32 to vector<128x32xf32>
      %c0_8 = arith.constant 0 : index
      %c0_9 = arith.constant 0 : index
      %14 = vector.load %arg9[%c0_8, %c0_9] : memref<128x32xf32, #tpu.memory_space<vmem>>, vector<128x32xf32>
      tpu.vector_store %arg9[%c0_8, %c0_9], %13 {strides = array<i32>} : memref<128x32xf32, #tpu.memory_space<vmem>>, vector<128x32xf32>,
    } else {
    }
    %3 = arith.cmpi sle, %arg2, %arg1 : i32
    %4 = arith.extui %3 : i1 to i32
    %c0_i32_1 = arith.constant 0 : i32
    %5 = arith.cmpi ne, %4, %c0_i32_1 : i32
    scf.if %5 {
      %c0 = arith.constant 0 : index
      %c0_3 = arith.constant 0 : index
      %c0_4 = arith.constant 0 : index
      %9 = vector.load %arg3[%c0, %c0_3, %c0_4] : memref<1x128x32xbf16, #tpu.memory_space<vmem>>, vector<1x128x32xbf16>
      %10 = vector.shape_cast %9 : vector<1x128x32xbf16> to vector<128x32xbf16>
      %11 = arith.extf %10 : vector<128x32xbf16> to vector<128x32xf32>
      %cst = arith.constant 0.176776692 : f32
      %12 = vector.broadcast %cst : f32 to vector<128x32xf32>
      %13 = arith.mulf %11, %12 : vector<128x32xf32>
      %14 = arith.truncf %13 : vector<128x32xf32> to vector<128x32xbf16>
      %c0_5 = arith.constant 0 : index
      %c0_6 = arith.constant 0 : index
      %c0_7 = arith.constant 0 : index
      %15 = vector.load %arg4[%c0_5, %c0_6, %c0_7] : memref<1x128x32xbf16, #tpu.memory_space<vmem>>, vector<1x128x32xbf16>
      %16 = vector.shape_cast %15 : vector<1x128x32xbf16> to vector<128x32xbf16>
      %cst_8 = arith.constant dense<0.000000e+00> : vector<128x128xf32>
      %17 = tpu.matmul %14, %16, %cst_8 {dimension_numbers = #tpu.dot_dimension_numbers<[1], [1], [0], [0], [0, 0, 1, 0], [], []>} : vector<128x32xbf16>, vector<128x32xbf16>, vector<128x128xf32> -> vector<128x128xf32>
      %c128_i32 = arith.constant 128 : i32
      %18 = arith.muli %arg1, %c128_i32 : i32
      %19 = tpu.iota {dimensions = array<i32: 0>} : vector<128x128xi32>
      %20 = vector.broadcast %18 : i32 to vector<128x128xi32>
      %21 = arith.addi %20, %19 : vector<128x128xi32>
      %c128_i32_9 = arith.constant 128 : i32
      %22 = arith.muli %arg2, %c128_i32_9 : i32
      %23 = tpu.iota {dimensions = array<i32: 1>} : vector<128x128xi32>
      %24 = vector.broadcast %22 : i32 to vector<128x128xi32>
      %25 = arith.addi %24, %23 : vector<128x128xi32>
      %26 = arith.cmpi sle, %25, %21 : vector<128x128xi32>
      %cst_10 = arith.constant -1.000000e+30 : f32
      %27 = vector.broadcast %cst_10 : f32 to vector<128x128xf32>
      %28 = arith.select %26, %17, %27 : vector<128x128xi1>, vector<128x128xf32>
      %c0_11 = arith.constant 0 : index
      %c0_12 = arith.constant 0 : index
      %29 = vector.load %arg7[%c0_11, %c0_12] : memref<128x1xf32, #tpu.memory_space<vmem>>, vector<128x1xf32>
      %cst_13 = arith.constant dense<0xFF800000> : vector<128xf32>
      %30 = vector.multi_reduction <maximumf>, %28, %cst_13 [1] : vector<128x128xf32> to vector<128xf32>
      %31 = vector.shape_cast %30 : vector<128xf32> to vector<128x1xf32>
      %32 = arith.maximumf %29, %31 : vector<128x1xf32>
      %33 = arith.subf %29, %32 : vector<128x1xf32>
      %34 = math.exp %33 : vector<128x1xf32>
      %35 = vector.broadcast %32 : vector<128x1xf32> to vector<128x128xf32>
      %36 = arith.subf %28, %35 : vector<128x128xf32>
      %37 = math.exp %36 : vector<128x128xf32>
      %c0_14 = arith.constant 0 : index
      %c0_15 = arith.constant 0 : index
      %38 = vector.load %arg8[%c0_14, %c0_15] : memref<128x1xf32, #tpu.memory_space<vmem>>, vector<128x1xf32>
      %39 = arith.mulf %34, %38 : vector<128x1xf32>
      %cst_16 = arith.constant dense<0.000000e+00> : vector<128xf32>
      %40 = vector.multi_reduction <add>, %37, %cst_16 [1] : vector<128x128xf32> to vector<128xf32>
      %41 = vector.shape_cast %40 : vector<128xf32> to vector<128x1xf32>
      %42 = arith.addf %39, %41 : vector<128x1xf32>
      %c0_17 = arith.constant 0 : index
      %c0_18 = arith.constant 0 : index
      %43 = vector.load %arg8[%c0_17, %c0_18] : memref<128x1xf32, #tpu.memory_space<vmem>>, vector<128x1xf32>
      tpu.vector_store %arg8[%c0_17, %c0_18], %42 {strides = array<i32>} : memref<128x1xf32, #tpu.memory_space<vmem>>, vector<128x1xf32>,
      %c0_19 = arith.constant 0 : index
      %c0_20 = arith.constant 0 : index
      %44 = vector.load %arg9[%c0_19, %c0_20] : memref<128x32xf32, #tpu.memory_space<vmem>>, vector<128x32xf32>
      %45 = vector.broadcast %34 : vector<128x1xf32> to vector<128x32xf32>
      %46 = arith.mulf %45, %44 : vector<128x32xf32>
      %47 = arith.truncf %37 : vector<128x128xf32> to vector<128x128xbf16>
      %c0_21 = arith.constant 0 : index
      %c0_22 = arith.constant 0 : index
      %c0_23 = arith.constant 0 : index
      %48 = vector.load %arg5[%c0_21, %c0_22, %c0_23] : memref<1x128x32xbf16, #tpu.memory_space<vmem>>, vector<1x128x32xbf16>
      %49 = vector.shape_cast %48 : vector<1x128x32xbf16> to vector<128x32xbf16>
      %cst_24 = arith.constant dense<0.000000e+00> : vector<128x32xf32>
      %50 = tpu.matmul %47, %49, %cst_24 {dimension_numbers = #tpu.dot_dimension_numbers<[1], [0], [0], [1], [0, 0, 1, 1], [], []>} : vector<128x128xbf16>, vector<128x32xbf16>, vector<128x32xf32> -> vector<128x32xf32>
      %51 = arith.addf %46, %50 : vector<128x32xf32>
      %c0_25 = arith.constant 0 : index
      %c0_26 = arith.constant 0 : index
      %52 = vector.load %arg9[%c0_25, %c0_26] : memref<128x32xf32, #tpu.memory_space<vmem>>, vector<128x32xf32>
      tpu.vector_store %arg9[%c0_25, %c0_26], %51 {strides = array<i32>} : memref<128x32xf32, #tpu.memory_space<vmem>>, vector<128x32xf32>,
      %c0_27 = arith.constant 0 : index
      %c0_28 = arith.constant 0 : index
      %53 = vector.load %arg7[%c0_27, %c0_28] : memref<128x1xf32, #tpu.memory_space<vmem>>, vector<128x1xf32>
      tpu.vector_store %arg7[%c0_27, %c0_28], %32 {strides = array<i32>} : memref<128x1xf32, #tpu.memory_space<vmem>>, vector<128x1xf32>,
    } else {
    }
    %c1_i32 = arith.constant 1 : i32
    %6 = arith.cmpi eq, %arg2, %c1_i32 : i32
    %7 = arith.extui %6 : i1 to i32
    %c0_i32_2 = arith.constant 0 : i32
    %8 = arith.cmpi ne, %7, %c0_i32_2 : i32
    scf.if %8 {
      %c0 = arith.constant 0 : index
      %c0_3 = arith.constant 0 : index
      %9 = vector.load %arg8[%c0, %c0_3] : memref<128x1xf32, #tpu.memory_space<vmem>>, vector<128x1xf32>
      %10 = tpu.reciprocal %9 {approx = true} : vector<128x1xf32> -> vector<128x1xf32>
      %c0_4 = arith.constant 0 : index
      %c0_5 = arith.constant 0 : index
      %11 = vector.load %arg9[%c0_4, %c0_5] : memref<128x32xf32, #tpu.memory_space<vmem>>, vector<128x32xf32>
      %12 = vector.broadcast %10 : vector<128x1xf32> to vector<128x32xf32>
      %13 = arith.mulf %11, %12 : vector<128x32xf32>
      %14 = arith.truncf %13 : vector<128x32xf32> to vector<128x32xbf16>
      %c0_6 = arith.constant 0 : index
      %c0_7 = arith.constant 0 : index
      %c0_8 = arith.constant 0 : index
      %15 = vector.load %arg6[%c0_6, %c0_7, %c0_8] : memref<1x128x32xbf16, #tpu.memory_space<vmem>>, vector<1x128x32xbf16>
      %16 = vector.shape_cast %15 : vector<1x128x32xbf16> to vector<128x32xbf16>
      %17 = vector.shape_cast %14 : vector<128x32xbf16> to vector<1x128x32xbf16>
      tpu.vector_store %arg6[%c0_6, %c0_7, %c0_8], %17 {strides = array<i32>} : memref<1x128x32xbf16, #tpu.memory_space<vmem>>, vector<1x128x32xbf16>,
    } else {
    }
    return
  }
  func.func @transform_0(%arg0: i32, %arg1: i32, %arg2: i32) -> (i32, i32, i32) {
    %c0_i32 = arith.constant 0 : i32
    %c0_i32_0 = arith.constant 0 : i32
    return %arg0, %arg1, %c0_i32 : i32, i32, i32
  }
  func.func @transform_1(%arg0: i32, %arg1: i32, %arg2: i32) -> (i32, i32, i32) {
    %c0_i32 = arith.constant 0 : i32
    %c0_i32_0 = arith.constant 0 : i32
    return %arg0, %arg2, %c0_i32 : i32, i32, i32
  }
  func.func @transform_2(%arg0: i32, %arg1: i32, %arg2: i32) -> (i32, i32, i32) {
    %c0_i32 = arith.constant 0 : i32
    %c0_i32_0 = arith.constant 0 : i32
    return %arg0, %arg2, %c0_i32 : i32, i32, i32
  }
  func.func @transform_3(%arg0: i32, %arg1: i32, %arg2: i32) -> (i32, i32, i32) {
    %c0_i32 = arith.constant 0 : i32
    %c0_i32_0 = arith.constant 0 : i32
    return %arg0, %arg1, %c0_i32 : i32, i32, i32
  }
}

module attributes {stable_mosaic.version = 11 : i64} {
  func.func @_matmul_bias_res_kernel(%arg0: i32, %arg1: i32, %arg2: memref<256x128xbf16, #tpu.memory_space<vmem>>, %arg3: memref<128x128xbf16, #tpu.memory_space<vmem>>, %arg4: memref<1x128xf32, #tpu.memory_space<vmem>>, %arg5: memref<256x128xf32, #tpu.memory_space<vmem>>, %arg6: memref<256x128xf32, #tpu.memory_space<vmem>>) attributes {dimension_semantics = [#tpu.dimension_semantics<parallel>, #tpu.dimension_semantics<parallel>], iteration_bounds = array<i64: 2, 1>, scalar_prefetch = 0 : i64, scratch_operands = 0 : i64, tpu.core_type = #tpu.core_type<tc>, window_params = [{transform_indices = @transform_0, window_bounds = array<i64: 256, 128>}, {transform_indices = @transform_1, window_bounds = array<i64: 128, 128>}, {transform_indices = @transform_2, window_bounds = array<i64: 1, 128>}, {transform_indices = @transform_3, window_bounds = array<i64: 256, 128>}, {transform_indices = @transform_4, window_bounds = array<i64: 256, 128>}]} {
    %c0 = arith.constant 0 : index
    %c0_0 = arith.constant 0 : index
    %0 = vector.load %arg2[%c0, %c0_0] : memref<256x128xbf16, #tpu.memory_space<vmem>>, vector<256x128xbf16>
    %c0_1 = arith.constant 0 : index
    %c0_2 = arith.constant 0 : index
    %1 = vector.load %arg3[%c0_1, %c0_2] : memref<128x128xbf16, #tpu.memory_space<vmem>>, vector<128x128xbf16>
    %cst = arith.constant dense<0.000000e+00> : vector<256x128xf32>
    %2 = tpu.matmul %0, %1, %cst {dimension_numbers = #tpu.dot_dimension_numbers<[1], [0], [0], [1], [0, 0, 1, 1], [], []>} : vector<256x128xbf16>, vector<128x128xbf16>, vector<256x128xf32> -> vector<256x128xf32>
    %c0_3 = arith.constant 0 : index
    %c0_4 = arith.constant 0 : index
    %3 = vector.load %arg4[%c0_3, %c0_4] : memref<1x128xf32, #tpu.memory_space<vmem>>, vector<1x128xf32>
    %4 = vector.broadcast %3 : vector<1x128xf32> to vector<256x128xf32>
    %5 = arith.addf %2, %4 : vector<256x128xf32>
    %c0_5 = arith.constant 0 : index
    %c0_6 = arith.constant 0 : index
    %6 = vector.load %arg5[%c0_5, %c0_6] : memref<256x128xf32, #tpu.memory_space<vmem>>, vector<256x128xf32>
    %7 = arith.addf %5, %6 : vector<256x128xf32>
    %c0_7 = arith.constant 0 : index
    %c0_8 = arith.constant 0 : index
    %8 = vector.load %arg6[%c0_7, %c0_8] : memref<256x128xf32, #tpu.memory_space<vmem>>, vector<256x128xf32>
    tpu.vector_store %arg6[%c0_7, %c0_8], %7 {strides = array<i32>} : memref<256x128xf32, #tpu.memory_space<vmem>>, vector<256x128xf32>,
    return
  }
  func.func @transform_0(%arg0: i32, %arg1: i32) -> (i32, i32) {
    %c0_i32 = arith.constant 0 : i32
    %c0_i32_0 = arith.constant 0 : i32
    return %arg0, %c0_i32 : i32, i32
  }
  func.func @transform_1(%arg0: i32, %arg1: i32) -> (i32, i32) {
    %c0_i32 = arith.constant 0 : i32
    %c0_i32_0 = arith.constant 0 : i32
    return %c0_i32, %arg1 : i32, i32
  }
  func.func @transform_2(%arg0: i32, %arg1: i32) -> (i32, i32) {
    %c0_i32 = arith.constant 0 : i32
    %c0_i32_0 = arith.constant 0 : i32
    return %c0_i32, %arg1 : i32, i32
  }
  func.func @transform_3(%arg0: i32, %arg1: i32) -> (i32, i32) {
    %c0_i32 = arith.constant 0 : i32
    return %arg0, %arg1 : i32, i32
  }
  func.func @transform_4(%arg0: i32, %arg1: i32) -> (i32, i32) {
    %c0_i32 = arith.constant 0 : i32
    return %arg0, %arg1 : i32, i32
  }
}

module attributes {stable_mosaic.version = 11 : i64} {
  func.func @_ln_matmul_bias_kernel(%arg0: i32, %arg1: i32, %arg2: memref<256x128xf32, #tpu.memory_space<vmem>>, %arg3: memref<1x128xf32, #tpu.memory_space<vmem>>, %arg4: memref<1x128xf32, #tpu.memory_space<vmem>>, %arg5: memref<128x512xbf16, #tpu.memory_space<vmem>>, %arg6: memref<1x512xf32, #tpu.memory_space<vmem>>, %arg7: memref<256x512xbf16, #tpu.memory_space<vmem>>) attributes {dimension_semantics = [#tpu.dimension_semantics<parallel>, #tpu.dimension_semantics<parallel>], iteration_bounds = array<i64: 2, 1>, scalar_prefetch = 0 : i64, scratch_operands = 0 : i64, tpu.core_type = #tpu.core_type<tc>, window_params = [{transform_indices = @transform_0, window_bounds = array<i64: 256, 128>}, {pipeline_mode = #tpu.pipeline_mode<synchronous>, transform_indices = @transform_1, window_bounds = array<i64: 1, 128>}, {pipeline_mode = #tpu.pipeline_mode<synchronous>, transform_indices = @transform_2, window_bounds = array<i64: 1, 128>}, {transform_indices = @transform_3, window_bounds = array<i64: 128, 512>}, {transform_indices = @transform_4, window_bounds = array<i64: 1, 512>}, {transform_indices = @transform_5, window_bounds = array<i64: 256, 512>}]} {
    %c0 = arith.constant 0 : index
    %c0_0 = arith.constant 0 : index
    %0 = vector.load %arg2[%c0, %c0_0] : memref<256x128xf32, #tpu.memory_space<vmem>>, vector<256x128xf32>
    %cst = arith.constant dense<0.000000e+00> : vector<256xf32>
    %1 = vector.multi_reduction <add>, %0, %cst [1] : vector<256x128xf32> to vector<256xf32>
    %2 = vector.shape_cast %1 : vector<256xf32> to vector<256x1xf32>
    %cst_1 = arith.constant 1.280000e+02 : f32
    %3 = vector.broadcast %cst_1 : f32 to vector<256x1xf32>
    %4 = arith.divf %2, %3 : vector<256x1xf32>
    %5 = vector.broadcast %4 : vector<256x1xf32> to vector<256x128xf32>
    %6 = arith.subf %0, %5 : vector<256x128xf32>
    %7 = arith.mulf %6, %6 : vector<256x128xf32>
    %cst_2 = arith.constant dense<0.000000e+00> : vector<256xf32>
    %8 = vector.multi_reduction <add>, %7, %cst_2 [1] : vector<256x128xf32> to vector<256xf32>
    %9 = vector.shape_cast %8 : vector<256xf32> to vector<256x1xf32>
    %cst_3 = arith.constant 1.280000e+02 : f32
    %10 = vector.broadcast %cst_3 : f32 to vector<256x1xf32>
    %11 = arith.divf %9, %10 : vector<256x1xf32>
    %cst_4 = arith.constant 9.99999974E-6 : f32
    %12 = vector.broadcast %cst_4 : f32 to vector<256x1xf32>
    %13 = arith.addf %11, %12 : vector<256x1xf32>
    %14 = math.rsqrt %13 : vector<256x1xf32>
    %15 = vector.broadcast %14 : vector<256x1xf32> to vector<256x128xf32>
    %16 = arith.mulf %6, %15 : vector<256x128xf32>
    %c0_5 = arith.constant 0 : index
    %c0_6 = arith.constant 0 : index
    %17 = vector.load %arg3[%c0_5, %c0_6] : memref<1x128xf32, #tpu.memory_space<vmem>>, vector<1x128xf32>
    %18 = vector.broadcast %17 : vector<1x128xf32> to vector<256x128xf32>
    %19 = arith.mulf %16, %18 : vector<256x128xf32>
    %c0_7 = arith.constant 0 : index
    %c0_8 = arith.constant 0 : index
    %20 = vector.load %arg4[%c0_7, %c0_8] : memref<1x128xf32, #tpu.memory_space<vmem>>, vector<1x128xf32>
    %21 = vector.broadcast %20 : vector<1x128xf32> to vector<256x128xf32>
    %22 = arith.addf %19, %21 : vector<256x128xf32>
    %23 = arith.truncf %22 : vector<256x128xf32> to vector<256x128xbf16>
    %c0_9 = arith.constant 0 : index
    %c0_10 = arith.constant 0 : index
    %24 = vector.load %arg5[%c0_9, %c0_10] : memref<128x512xbf16, #tpu.memory_space<vmem>>, vector<128x512xbf16>
    %cst_11 = arith.constant dense<0.000000e+00> : vector<256x512xf32>
    %25 = tpu.matmul %23, %24, %cst_11 {dimension_numbers = #tpu.dot_dimension_numbers<[1], [0], [0], [1], [0, 0, 1, 1], [], []>} : vector<256x128xbf16>, vector<128x512xbf16>, vector<256x512xf32> -> vector<256x512xf32>
    %c0_12 = arith.constant 0 : index
    %c0_13 = arith.constant 0 : index
    %26 = vector.load %arg6[%c0_12, %c0_13] : memref<1x512xf32, #tpu.memory_space<vmem>>, vector<1x512xf32>
    %27 = vector.broadcast %26 : vector<1x512xf32> to vector<256x512xf32>
    %28 = arith.addf %25, %27 : vector<256x512xf32>
    %cst_14 = arith.constant 5.000000e-01 : f32
    %29 = vector.broadcast %cst_14 : f32 to vector<256x512xf32>
    %30 = arith.mulf %29, %28 : vector<256x512xf32>
    %cst_15 = arith.constant 4.471500e-02 : f32
    %31 = vector.broadcast %cst_15 : f32 to vector<256x512xf32>
    %32 = arith.mulf %31, %28 : vector<256x512xf32>
    %33 = arith.mulf %32, %28 : vector<256x512xf32>
    %34 = arith.mulf %33, %28 : vector<256x512xf32>
    %35 = arith.addf %28, %34 : vector<256x512xf32>
    %cst_16 = arith.constant 0.797884583 : f32
    %36 = vector.broadcast %cst_16 : f32 to vector<256x512xf32>
    %37 = arith.mulf %36, %35 : vector<256x512xf32>
    %38 = math.tanh %37 : vector<256x512xf32>
    %cst_17 = arith.constant 1.000000e+00 : f32
    %39 = vector.broadcast %cst_17 : f32 to vector<256x512xf32>
    %40 = arith.addf %39, %38 : vector<256x512xf32>
    %41 = arith.mulf %30, %40 : vector<256x512xf32>
    %42 = arith.truncf %41 : vector<256x512xf32> to vector<256x512xbf16>
    %c0_18 = arith.constant 0 : index
    %c0_19 = arith.constant 0 : index
    %43 = vector.load %arg7[%c0_18, %c0_19] : memref<256x512xbf16, #tpu.memory_space<vmem>>, vector<256x512xbf16>
    tpu.vector_store %arg7[%c0_18, %c0_19], %42 {strides = array<i32>} : memref<256x512xbf16, #tpu.memory_space<vmem>>, vector<256x512xbf16>,
    return
  }
  func.func @transform_0(%arg0: i32, %arg1: i32) -> (i32, i32) {
    %c0_i32 = arith.constant 0 : i32
    %c0_i32_0 = arith.constant 0 : i32
    return %arg0, %c0_i32 : i32, i32
  }
  func.func @transform_1(%arg0: i32, %arg1: i32) -> (i32, i32) {
    %c0_i32 = arith.constant 0 : i32
    %c0_i32_0 = arith.constant 0 : i32
    %c0_i32_1 = arith.constant 0 : i32
    return %c0_i32, %c0_i32_0 : i32, i32
  }
  func.func @transform_2(%arg0: i32, %arg1: i32) -> (i32, i32) {
    %c0_i32 = arith.constant 0 : i32
    %c0_i32_0 = arith.constant 0 : i32
    %c0_i32_1 = arith.constant 0 : i32
    return %c0_i32, %c0_i32_0 : i32, i32
  }
  func.func @transform_3(%arg0: i32, %arg1: i32) -> (i32, i32) {
    %c0_i32 = arith.constant 0 : i32
    %c0_i32_0 = arith.constant 0 : i32
    return %c0_i32, %arg1 : i32, i32
  }
  func.func @transform_4(%arg0: i32, %arg1: i32) -> (i32, i32) {
    %c0_i32 = arith.constant 0 : i32
    %c0_i32_0 = arith.constant 0 : i32
    return %c0_i32, %arg1 : i32, i32
  }
  func.func @transform_5(%arg0: i32, %arg1: i32) -> (i32, i32) {
    %c0_i32 = arith.constant 0 : i32
    return %arg0, %arg1 : i32, i32
  }
}

module attributes {stable_mosaic.version = 11 : i64} {
  func.func @_matmul_bias_res_kernel(%arg0: i32, %arg1: i32, %arg2: memref<256x512xbf16, #tpu.memory_space<vmem>>, %arg3: memref<512x128xbf16, #tpu.memory_space<vmem>>, %arg4: memref<1x128xf32, #tpu.memory_space<vmem>>, %arg5: memref<256x128xf32, #tpu.memory_space<vmem>>, %arg6: memref<256x128xf32, #tpu.memory_space<vmem>>) attributes {dimension_semantics = [#tpu.dimension_semantics<parallel>, #tpu.dimension_semantics<parallel>], iteration_bounds = array<i64: 2, 1>, scalar_prefetch = 0 : i64, scratch_operands = 0 : i64, tpu.core_type = #tpu.core_type<tc>, window_params = [{transform_indices = @transform_0, window_bounds = array<i64: 256, 512>}, {transform_indices = @transform_1, window_bounds = array<i64: 512, 128>}, {transform_indices = @transform_2, window_bounds = array<i64: 1, 128>}, {transform_indices = @transform_3, window_bounds = array<i64: 256, 128>}, {transform_indices = @transform_4, window_bounds = array<i64: 256, 128>}]} {
    %c0 = arith.constant 0 : index
    %c0_0 = arith.constant 0 : index
    %0 = vector.load %arg2[%c0, %c0_0] : memref<256x512xbf16, #tpu.memory_space<vmem>>, vector<256x512xbf16>
    %c0_1 = arith.constant 0 : index
    %c0_2 = arith.constant 0 : index
    %1 = vector.load %arg3[%c0_1, %c0_2] : memref<512x128xbf16, #tpu.memory_space<vmem>>, vector<512x128xbf16>
    %cst = arith.constant dense<0.000000e+00> : vector<256x128xf32>
    %2 = tpu.matmul %0, %1, %cst {dimension_numbers = #tpu.dot_dimension_numbers<[1], [0], [0], [1], [0, 0, 1, 1], [], []>} : vector<256x512xbf16>, vector<512x128xbf16>, vector<256x128xf32> -> vector<256x128xf32>
    %c0_3 = arith.constant 0 : index
    %c0_4 = arith.constant 0 : index
    %3 = vector.load %arg4[%c0_3, %c0_4] : memref<1x128xf32, #tpu.memory_space<vmem>>, vector<1x128xf32>
    %4 = vector.broadcast %3 : vector<1x128xf32> to vector<256x128xf32>
    %5 = arith.addf %2, %4 : vector<256x128xf32>
    %c0_5 = arith.constant 0 : index
    %c0_6 = arith.constant 0 : index
    %6 = vector.load %arg5[%c0_5, %c0_6] : memref<256x128xf32, #tpu.memory_space<vmem>>, vector<256x128xf32>
    %7 = arith.addf %5, %6 : vector<256x128xf32>
    %c0_7 = arith.constant 0 : index
    %c0_8 = arith.constant 0 : index
    %8 = vector.load %arg6[%c0_7, %c0_8] : memref<256x128xf32, #tpu.memory_space<vmem>>, vector<256x128xf32>
    tpu.vector_store %arg6[%c0_7, %c0_8], %7 {strides = array<i32>} : memref<256x128xf32, #tpu.memory_space<vmem>>, vector<256x128xf32>,
    return
  }
  func.func @transform_0(%arg0: i32, %arg1: i32) -> (i32, i32) {
    %c0_i32 = arith.constant 0 : i32
    %c0_i32_0 = arith.constant 0 : i32
    return %arg0, %c0_i32 : i32, i32
  }
  func.func @transform_1(%arg0: i32, %arg1: i32) -> (i32, i32) {
    %c0_i32 = arith.constant 0 : i32
    %c0_i32_0 = arith.constant 0 : i32
    return %c0_i32, %arg1 : i32, i32
  }
  func.func @transform_2(%arg0: i32, %arg1: i32) -> (i32, i32) {
    %c0_i32 = arith.constant 0 : i32
    %c0_i32_0 = arith.constant 0 : i32
    return %c0_i32, %arg1 : i32, i32
  }
  func.func @transform_3(%arg0: i32, %arg1: i32) -> (i32, i32) {
    %c0_i32 = arith.constant 0 : i32
    return %arg0, %arg1 : i32, i32
  }
  func.func @transform_4(%arg0: i32, %arg1: i32) -> (i32, i32) {
    %c0_i32 = arith.constant 0 : i32
    return %arg0, %arg1 : i32, i32
  }
}

module attributes {stable_mosaic.version = 11 : i64} {
  func.func @_ln_matmul_kernel(%arg0: i32, %arg1: i32, %arg2: memref<256x128xf32, #tpu.memory_space<vmem>>, %arg3: memref<1x128xf32, #tpu.memory_space<vmem>>, %arg4: memref<1x128xf32, #tpu.memory_space<vmem>>, %arg5: memref<128x512xbf16, #tpu.memory_space<vmem>>, %arg6: memref<256x512xf32, #tpu.memory_space<vmem>>) attributes {dimension_semantics = [#tpu.dimension_semantics<parallel>, #tpu.dimension_semantics<parallel>], iteration_bounds = array<i64: 2, 1>, scalar_prefetch = 0 : i64, scratch_operands = 0 : i64, tpu.core_type = #tpu.core_type<tc>, window_params = [{transform_indices = @transform_0, window_bounds = array<i64: 256, 128>}, {pipeline_mode = #tpu.pipeline_mode<synchronous>, transform_indices = @transform_1, window_bounds = array<i64: 1, 128>}, {pipeline_mode = #tpu.pipeline_mode<synchronous>, transform_indices = @transform_2, window_bounds = array<i64: 1, 128>}, {transform_indices = @transform_3, window_bounds = array<i64: 128, 512>}, {transform_indices = @transform_4, window_bounds = array<i64: 256, 512>}]} {
    %c0 = arith.constant 0 : index
    %c0_0 = arith.constant 0 : index
    %0 = vector.load %arg2[%c0, %c0_0] : memref<256x128xf32, #tpu.memory_space<vmem>>, vector<256x128xf32>
    %cst = arith.constant dense<0.000000e+00> : vector<256xf32>
    %1 = vector.multi_reduction <add>, %0, %cst [1] : vector<256x128xf32> to vector<256xf32>
    %2 = vector.shape_cast %1 : vector<256xf32> to vector<256x1xf32>
    %cst_1 = arith.constant 1.280000e+02 : f32
    %3 = vector.broadcast %cst_1 : f32 to vector<256x1xf32>
    %4 = arith.divf %2, %3 : vector<256x1xf32>
    %5 = vector.broadcast %4 : vector<256x1xf32> to vector<256x128xf32>
    %6 = arith.subf %0, %5 : vector<256x128xf32>
    %7 = arith.mulf %6, %6 : vector<256x128xf32>
    %cst_2 = arith.constant dense<0.000000e+00> : vector<256xf32>
    %8 = vector.multi_reduction <add>, %7, %cst_2 [1] : vector<256x128xf32> to vector<256xf32>
    %9 = vector.shape_cast %8 : vector<256xf32> to vector<256x1xf32>
    %cst_3 = arith.constant 1.280000e+02 : f32
    %10 = vector.broadcast %cst_3 : f32 to vector<256x1xf32>
    %11 = arith.divf %9, %10 : vector<256x1xf32>
    %cst_4 = arith.constant 9.99999974E-6 : f32
    %12 = vector.broadcast %cst_4 : f32 to vector<256x1xf32>
    %13 = arith.addf %11, %12 : vector<256x1xf32>
    %14 = math.rsqrt %13 : vector<256x1xf32>
    %15 = vector.broadcast %14 : vector<256x1xf32> to vector<256x128xf32>
    %16 = arith.mulf %6, %15 : vector<256x128xf32>
    %c0_5 = arith.constant 0 : index
    %c0_6 = arith.constant 0 : index
    %17 = vector.load %arg3[%c0_5, %c0_6] : memref<1x128xf32, #tpu.memory_space<vmem>>, vector<1x128xf32>
    %18 = vector.broadcast %17 : vector<1x128xf32> to vector<256x128xf32>
    %19 = arith.mulf %16, %18 : vector<256x128xf32>
    %c0_7 = arith.constant 0 : index
    %c0_8 = arith.constant 0 : index
    %20 = vector.load %arg4[%c0_7, %c0_8] : memref<1x128xf32, #tpu.memory_space<vmem>>, vector<1x128xf32>
    %21 = vector.broadcast %20 : vector<1x128xf32> to vector<256x128xf32>
    %22 = arith.addf %19, %21 : vector<256x128xf32>
    %23 = arith.truncf %22 : vector<256x128xf32> to vector<256x128xbf16>
    %c0_9 = arith.constant 0 : index
    %c0_10 = arith.constant 0 : index
    %24 = vector.load %arg5[%c0_9, %c0_10] : memref<128x512xbf16, #tpu.memory_space<vmem>>, vector<128x512xbf16>
    %cst_11 = arith.constant dense<0.000000e+00> : vector<256x512xf32>
    %25 = tpu.matmul %23, %24, %cst_11 {dimension_numbers = #tpu.dot_dimension_numbers<[1], [0], [0], [1], [0, 0, 1, 1], [], []>} : vector<256x128xbf16>, vector<128x512xbf16>, vector<256x512xf32> -> vector<256x512xf32>
    %c0_12 = arith.constant 0 : index
    %c0_13 = arith.constant 0 : index
    %26 = vector.load %arg6[%c0_12, %c0_13] : memref<256x512xf32, #tpu.memory_space<vmem>>, vector<256x512xf32>
    tpu.vector_store %arg6[%c0_12, %c0_13], %25 {strides = array<i32>} : memref<256x512xf32, #tpu.memory_space<vmem>>, vector<256x512xf32>,
    return
  }
  func.func @transform_0(%arg0: i32, %arg1: i32) -> (i32, i32) {
    %c0_i32 = arith.constant 0 : i32
    %c0_i32_0 = arith.constant 0 : i32
    return %arg0, %c0_i32 : i32, i32
  }
  func.func @transform_1(%arg0: i32, %arg1: i32) -> (i32, i32) {
    %c0_i32 = arith.constant 0 : i32
    %c0_i32_0 = arith.constant 0 : i32
    %c0_i32_1 = arith.constant 0 : i32
    return %c0_i32, %c0_i32_0 : i32, i32
  }
  func.func @transform_2(%arg0: i32, %arg1: i32) -> (i32, i32) {
    %c0_i32 = arith.constant 0 : i32
    %c0_i32_0 = arith.constant 0 : i32
    %c0_i32_1 = arith.constant 0 : i32
    return %c0_i32, %c0_i32_0 : i32, i32
  }
  func.func @transform_3(%arg0: i32, %arg1: i32) -> (i32, i32) {
    %c0_i32 = arith.constant 0 : i32
    %c0_i32_0 = arith.constant 0 : i32
    return %c0_i32, %arg1 : i32, i32
  }
  func.func @transform_4(%arg0: i32, %arg1: i32) -> (i32, i32) {
    %c0_i32 = arith.constant 0 : i32
    return %arg0, %arg1 : i32, i32
  }
}

</mosaic_0001>

<bundles_post_ra>
// kernel: gpt_forward.11
= control target key start
LH: loop header
LB: loop body
LE: loop exit
PB: predicated region body
PF: predicated region fallthrough
CT: control target
= control target key end

     0   :  { %s2232_s18 = smov 0   ;;  %s2234_s19 = smov 0   ;;  %s2970_s0 = inlined_call_operand.vmem [shape: f32[512,128], index: 0, kind: input, shape index: {}]   ;;  %s2971_s1 = inlined_call_operand.vmem [shape: f32[1,128], index: 1, kind: input, shape index: {}]   ;;  %s2972_s2 = inlined_call_operand.vmem [shape: f32[1,128], index: 2, kind: input, shape index: {}]   ;;  %s2973_s3 = inlined_call_operand.vmem [shape: bf16[128,384], index: 3, kind: input, shape index: {}]   ;;  %s2974_s4 = inlined_call_operand.vmem [shape: f32[1,384], index: 4, kind: input, shape index: {}]   ;;  %s2975_s5 = inlined_call_operand.vmem [shape: bf16[512,384], index: 5, kind: output, shape index: {}]  }
   0x1   :  { %s2236_s20 = smov 0  }
   0x2 LB: > { %s27_s21 = sadd.s32 1, %s2195_s19  ;;  %p1806_p0 = scmp.ge.s32.totalorder %s2199_s20, 1  ;;  %s2199_s20 = sphi %s2236_s20, %s15_s20   ;;  %s2195_s19 = sphi %s2234_s19, %s2977_s19   ;;  %s2191_s18 = sphi %s2232_s18, %s2976_s18  }
   0x3   : > { %p29_p1 = scmp.ge.s32.totalorder %s27_s21, 2  ;;  %p223_p2 = scmp.lt.s32.totalorder %s2199_s20, 3 }
   0x5   : > { %s2979_s21 = smov (%p29_p1, %s27_s21), 0  ;;  %p224_p3 = pnand %p1806_p0, %p223_p2 }
   0x6   : > { %s1807_s22 = sshll.u32 (!%p224_p3), %s2191_s18, 5  ;;  %v2081_v32 = vld [vmem:[%s2973_s3 + $0x4] ss:$12 sps:$4 sm:$0xff] (!%p224_p3)   ;;  %v2083_v33 = vld [vmem:[%s2973_s3] ss:$12 sps:$4 sm:$0xff] (!%p224_p3)  }
   0x7   : > { %227 = sbr.rel (%p224_p3) target bundleno = 647 (0x287), region = 40  ;;  %p266_p4 = scmp.lt.s32.totalorder (!%p224_p3), %s1807_s22, 63  ;;  %v2084_v34 = vld [vmem:[%s2973_s3 + $0x1c] ss:$12 sps:$4 sm:$0xff] (!%p224_p3)   ;;  %951 = vmatprep.subr.bf16.mxu0 (!%p224_p3), %v2081_v32  ;;  %2039 = vmatprep.subr.bf16.mxu1 (!%p224_p3), %v2081_v32 }
   0x8   : > { %952 = vmatpush1.bf16.msra.mxu0 (!%p224_p3), %v2083_v33  ;;  %2047 = vmatpush1.bf16.msra.mxu1 (!%p224_p3), %v2083_v33  ;;  %v2086_v33 = vld [vmem:[%s2973_s3 + $0x18] ss:$12 sps:$4 sm:$0xff] (!%p224_p3)  }
   0x9   : > { %953 = vmatprep.subr.bf16.mxu0 (!%p224_p3), %v2084_v34  ;;  %2040 = vmatprep.subr.bf16.mxu1 (!%p224_p3), %v2084_v34 }
   0xc   : > { %954 = vmatpush1.bf16.msra.mxu0 (!%p224_p3), %v2086_v33  ;;  %2048 = vmatpush1.bf16.msra.mxu1 (!%p224_p3), %v2086_v33 }
   0xe   : > { %s2981_s22 = smov (!%p266_p4, %s1807_s22), 63 }
   0xf   : > { %s1808_s23 = sshll.u32 %s2981_s22, 3  ;;  %s2055_s14 = smul.u32 12, %s2981_s22 }
  0x10   : > { %s2256_s26 = scalar_lea.vmem %s2970_s0, %s1808_s23 }
  0x11   : > { %v2259_v0 = vld [vmem:[%s2256_s26] sm:$0xff]  ;;  %v2267_v2 = vld [vmem:[%s2256_s26 + $0x8] sm:$0xff]  ;;  %v2275_v4 = vld [vmem:[%s2256_s26 + $0x10] sm:$0xff]  ;;  %s2797_s17 = scalar_lea.vmem %s2975_s5, %s2055_s14 }
  0x12   : > { %v2262_v1 = vld [vmem:[%s2256_s26 + $0xc0] sm:$0xff]  ;;  %327 = vadd.xlane.f32.xlu0 %v2259_v0  ;;  %v2270_v3 = vld [vmem:[%s2256_s26 + $0xc8] sm:$0xff]  ;;  %v2278_v5 = vld [vmem:[%s2256_s26 + $0x18] sm:$0xff] }
  0x13   : > { %375 = vadd.xlane.f32.xlu1 %v2262_v1  ;;  %v2283_v6 = vld [vmem:[%s2256_s26 + $0xd0] sm:$0xff]  ;;  %v2286_v7 = vld [vmem:[%s2256_s26 + $0xd8] sm:$0xff]  ;;  %v2289_v8 = vld [vmem:[%s2256_s26 + $0x20] sm:$0xff] }
  0x14   : > { %v2294_v9 = vld [vmem:[%s2256_s26 + $0x28] sm:$0xff]  ;;  %v2299_v10 = vld [vmem:[%s2256_s26 + $0xe0] sm:$0xff]  ;;  %v2307_v12 = vld [vmem:[%s2256_s26 + $0x30] sm:$0xff] }
  0x15   : > { %v2302_v11 = vld [vmem:[%s2256_s26 + $0xe8] sm:$0xff]  ;;  %v2310_v13 = vld [vmem:[%s2256_s26 + $0x38] sm:$0xff]  ;;  %v2315_v14 = vld [vmem:[%s2256_s26 + $0xf0] sm:$0xff] }
  0x16   : > { %329 = vadd.xlane.f32.xlu0 %v2267_v2  ;;  %v2318_v15 = vld [vmem:[%s2256_s26 + $0xf8] sm:$0xff]  ;;  %v2323_v16 = vld [vmem:[%s2256_s26 + $0x40] sm:$0xff]  ;;  %v2326_v17 = vld [vmem:[%s2256_s26 + $0x48] sm:$0xff] }
  0x17   : > { %377 = vadd.xlane.f32.xlu1 %v2270_v3  ;;  %v2331_v18 = vld [vmem:[%s2256_s26 + $0x50] sm:$0xff]  ;;  %v2334_v19 = vld [vmem:[%s2256_s26 + $0x58] sm:$0xff]  ;;  %v2339_v20 = vld [vmem:[%s2256_s26 + $0x60] sm:$0xff] }
  0x18   : > { %v2342_v21 = vld [vmem:[%s2256_s26 + $0x68] sm:$0xff]  ;;  %v2347_v22 = vld [vmem:[%s2256_s26 + $0x70] sm:$0xff]  ;;  %v2350_v23 = vld [vmem:[%s2256_s26 + $0x78] sm:$0xff] }
  0x19   : > { %v2355_v24 = vld [vmem:[%s2256_s26 + $0x80] sm:$0xff]  ;;  %v2358_v25 = vld [vmem:[%s2256_s26 + $0x88] sm:$0xff]  ;;  %v2363_v26 = vld [vmem:[%s2256_s26 + $0x90] sm:$0xff] }
  0x1a   : > { %331 = vadd.xlane.f32.xlu0 %v2275_v4  ;;  %v2366_v27 = vld [vmem:[%s2256_s26 + $0x98] sm:$0xff]  ;;  %v2371_v28 = vld [vmem:[%s2256_s26 + $0xa0] sm:$0xff]  ;;  %v2374_v29 = vld [vmem:[%s2256_s26 + $0xa8] sm:$0xff] }
  0x1b   : > { %333 = vadd.xlane.f32.xlu1 %v2278_v5  ;;  %v2379_v30 = vld [vmem:[%s2256_s26 + $0xb0] sm:$0xff]  ;;  %v2382_v31 = vld [vmem:[%s2256_s26 + $0xb8] sm:$0xff] }
  0x1e   : > { %379 = vadd.xlane.f32.xlu0 %v2283_v6 }
  0x1f   : > { %381 = vadd.xlane.f32.xlu1 %v2286_v7 }
  0x22   : > { %335 = vadd.xlane.f32.xlu0 %v2289_v8 }
  0x23   : > { %337 = vadd.xlane.f32.xlu1 %v2294_v9 }
  0x26   : > { %383 = vadd.xlane.f32.xlu0 %v2299_v10 }
  0x27   : > { %385 = vadd.xlane.f32.xlu1 %v2302_v11 }
  0x2a   : > { %339 = vadd.xlane.f32.xlu0 %v2307_v12 }
  0x2b   : > { %341 = vadd.xlane.f32.xlu1 %v2310_v13 }
  0x2e   : > { %387 = vadd.xlane.f32.xlu0 %v2315_v14 }
  0x2f   : > { %389 = vadd.xlane.f32.xlu1 %v2318_v15 }
  0x32   : > { %343 = vadd.xlane.f32.xlu0 %v2323_v16 }
  0x33   : > { %345 = vadd.xlane.f32.xlu1 %v2326_v17 }
  0x36   : > { %347 = vadd.xlane.f32.xlu0 %v2331_v18 }
  0x37   : > { %349 = vadd.xlane.f32.xlu1 %v2334_v19 }
  0x3a   : > { %351 = vadd.xlane.f32.xlu0 %v2339_v20 }
  0x3b   : > { %353 = vadd.xlane.f32.xlu1 %v2342_v21 }
  0x3e   : > { %355 = vadd.xlane.f32.xlu0 %v2347_v22 }
  0x3f   : > { %357 = vadd.xlane.f32.xlu1 %v2350_v23 }
  0x42   : > { %359 = vadd.xlane.f32.xlu0 %v2355_v24 }
  0x43   : > { %361 = vadd.xlane.f32.xlu1 %v2358_v25 }
  0x46   : > { %363 = vadd.xlane.f32.xlu0 %v2363_v26 }
  0x47   : > { %365 = vadd.xlane.f32.xlu1 %v2366_v27 }
  0x4a   : > { %367 = vadd.xlane.f32.xlu0 %v2371_v28 }
  0x4b   : > { %369 = vadd.xlane.f32.xlu1 %v2374_v29 }
  0x4e   : > { %371 = vadd.xlane.f32.xlu0 %v2379_v30 }
  0x4f   : > { %373 = vadd.xlane.f32.xlu1 %v2382_v31 }
  0x9f   : > { %v328_v35 = vpop.xlane.xlu0 %327 }
  0xa0   : > { %v376_v36 = vpop.xlane.xlu1 %375  ;;  %v392_v37 = vmul.f32 0.0078125, %v328_v35 }
  0xa1   : > { %v416_v38 = vmul.f32 0.0078125, %v376_v36 }
  0xa2   : > { %v2396_v39 = vsub.f32 %v2259_v0, %v392_v37 }
  0xa3   : > { %v2399_v40 = vsub.f32 %v2262_v1, %v416_v38  ;;  %v330_v41 = vpop.xlane.xlu0 %329 }
  0xa4   : > { %v378_v42 = vpop.xlane.xlu1 %377  ;;  %v393_v43 = vmul.f32 0.0078125, %v330_v41  ;;  %v456_v44 = vmul.f32 %v2396_v39, %v2396_v39 }
  0xa5   : > { %v417_v45 = vmul.f32 0.0078125, %v378_v42  ;;  %v480_v48 = vmul.f32 %v2399_v40, %v2399_v40 }
  0xa6   : > { %v2404_v46 = vsub.f32 %v2267_v2, %v393_v43  ;;  %488 = vadd.xlane.f32.xlu0 %v456_v44 }
  0xa7   : > { %v2407_v47 = vsub.f32 %v2270_v3, %v417_v45  ;;  %v332_v49 = vpop.xlane.xlu0 %331  ;;  %v2089_v45 = vld [vmem:[%s2973_s3 + $0x30] ss:$12 sps:$4 sm:$0xff]  }
  0xa8   : > { %v334_v50 = vpop.xlane.xlu1 %333  ;;  %v394_v51 = vmul.f32 0.0078125, %v332_v49  ;;  %v457_v52 = vmul.f32 %v2404_v46, %v2404_v46 }
  0xa9   : > { %v395_v53 = vmul.f32 0.0078125, %v334_v50  ;;  %v481_v56 = vmul.f32 %v2407_v47, %v2407_v47 }
  0xaa   : > { %v2414_v54 = vsub.f32 %v2275_v4, %v394_v51  ;;  %536 = vadd.xlane.f32.xlu0 %v480_v48  ;;  %490 = vadd.xlane.f32.xlu1 %v457_v52  ;;  %v2090_v52 = vld [vmem:[%s2973_s3 + $0x4c] ss:$12 sps:$4 sm:$0xff]  }
  0xab   : > { %v2417_v55 = vsub.f32 %v2278_v5, %v395_v53  ;;  %v380_v57 = vpop.xlane.xlu0 %379 }
  0xac   : > { %v382_v58 = vpop.xlane.xlu1 %381  ;;  %v418_v59 = vmul.f32 0.0078125, %v380_v57  ;;  %v458_v60 = vmul.f32 %v2414_v54, %v2414_v54  ;;  %v2092_v57 = vld [vmem:[%s2973_s3 + $0x48] ss:$12 sps:$4 sm:$0xff]  }
  0xad   : > { %v419_v61 = vmul.f32 0.0078125, %v382_v58  ;;  %v459_v0 = vmul.f32 %v2417_v55, %v2417_v55 }
  0xae   : > { %v2424_v62 = vsub.f32 %v2283_v6, %v418_v59  ;;  %538 = vadd.xlane.f32.xlu1 %v481_v56  ;;  %492 = vadd.xlane.f32.xlu0 %v458_v60 }
  0xaf   : > { %v2427_v63 = vsub.f32 %v2286_v7, %v419_v61  ;;  %v336_v1 = vpop.xlane.xlu0 %335 }
  0xb0   : > { %v338_v2 = vpop.xlane.xlu1 %337  ;;  %v396_v3 = vmul.f32 0.0078125, %v336_v1  ;;  %v482_v4 = vmul.f32 %v2424_v62, %v2424_v62 }
  0xb1   : > { %v397_v5 = vmul.f32 0.0078125, %v338_v2  ;;  %v483_v7 = vmul.f32 %v2427_v63, %v2427_v63 }
  0xb2   : > { %v2434_v32 = vsub.f32 %v2289_v8, %v396_v3  ;;  %494 = vadd.xlane.f32.xlu1 %v459_v0  ;;  %540 = vadd.xlane.f32.xlu0 %v482_v4  ;;  %v2093_v0 = vld [vmem:[%s2973_s3 + $0x64] ss:$12 sps:$4 sm:$0xff]   ;;  %v2095_v3 = vld [vmem:[%s2973_s3 + $0x60] ss:$12 sps:$4 sm:$0xff]  }
  0xb3   : > { %v2437_v6 = vsub.f32 %v2294_v9, %v397_v5  ;;  %v384_v34 = vpop.xlane.xlu0 %383  ;;  %v2087_v9 = vld [vmem:[%s2973_s3 + $0x34] ss:$12 sps:$4 sm:$0xff]  }
  0xb4   : > { %v386_v35 = vpop.xlane.xlu1 %385  ;;  %v420_v36 = vmul.f32 0.0078125, %v384_v34  ;;  %v460_v37 = vmul.f32 %v2434_v32, %v2434_v32  ;;  %955 = vmatprep.subr.bf16.mxu0 %v2087_v9  ;;  %2041 = vmatprep.subr.bf16.mxu1 %v2087_v9  ;;  %v2096_v34 = vld [vmem:[%s2973_s3 + $0x7c] ss:$12 sps:$4 sm:$0xff]  }
  0xb5   : > { %v421_v8 = vmul.f32 0.0078125, %v386_v35  ;;  %v461_v42 = vmul.f32 %v2437_v6, %v2437_v6  ;;  %956 = vmatpush1.bf16.msra.mxu0 %v2089_v45  ;;  %2049 = vmatpush1.bf16.msra.mxu1 %v2089_v45 }
  0xb6   : > { %v2450_v38 = vsub.f32 %v2299_v10, %v420_v36  ;;  %542 = vadd.xlane.f32.xlu1 %v483_v7  ;;  %496 = vadd.xlane.f32.xlu0 %v460_v37  ;;  %v2098_v37 = vld [vmem:[%s2973_s3 + $0x78] ss:$12 sps:$4 sm:$0xff]  }
  0xb7   : > { %v2453_v41 = vsub.f32 %v2302_v11, %v421_v8  ;;  %v340_v43 = vpop.xlane.xlu0 %339  ;;  %957 = vmatprep.subr.bf16.mxu0 %v2090_v52  ;;  %2042 = vmatprep.subr.bf16.mxu1 %v2090_v52 }
  0xb8   : > { %v342_v44 = vpop.xlane.xlu1 %341  ;;  %v398_v48 = vmul.f32 0.0078125, %v340_v43  ;;  %v484_v10 = vmul.f32 %v2450_v38, %v2450_v38 }
  0xb9   : > { %v399_v49 = vmul.f32 0.0078125, %v342_v44  ;;  %v485_v51 = vmul.f32 %v2453_v41, %v2453_v41  ;;  %958 = vmatpush1.bf16.msra.mxu0 %v2092_v57  ;;  %2050 = vmatpush1.bf16.msra.mxu1 %v2092_v57  ;;  %v2099_v44 = vld [vmem:[%s2973_s3 + $0x94] ss:$12 sps:$4 sm:$0xff]  }
  0xba   : > { %v2463_v11 = vsub.f32 %v2307_v12, %v398_v48  ;;  %498 = vadd.xlane.f32.xlu1 %v461_v42  ;;  %544 = vadd.xlane.f32.xlu0 %v484_v10  ;;  %v2101_v10 = vld [vmem:[%s2973_s3 + $0x90] ss:$12 sps:$4 sm:$0xff]  }
  0xbb   : > { %v2466_v50 = vsub.f32 %v2310_v13, %v399_v49  ;;  %v388_v53 = vpop.xlane.xlu0 %387  ;;  %959 = vmatprep.subr.bf16.mxu0 %v2093_v0  ;;  %2043 = vmatprep.subr.bf16.mxu1 %v2093_v0 }
  0xbc   : > { %v390_v56 = vpop.xlane.xlu1 %389  ;;  %v422_v12 = vmul.f32 0.0078125, %v388_v53  ;;  %v462_v58 = vmul.f32 %v2463_v11, %v2463_v11 }
  0xbd   : > { %v423_v59 = vmul.f32 0.0078125, %v390_v56  ;;  %v463_v61 = vmul.f32 %v2466_v50, %v2466_v50  ;;  %960 = vmatpush1.bf16.msra.mxu0 %v2095_v3  ;;  %2051 = vmatpush1.bf16.msra.mxu1 %v2095_v3  ;;  %v2102_v56 = vld [vmem:[%s2973_s3 + $0xac] ss:$12 sps:$4 sm:$0xff]  }
  0xbe   : > { %v2479_v13 = vsub.f32 %v2315_v14, %v422_v12  ;;  %546 = vadd.xlane.f32.xlu1 %v485_v51  ;;  %500 = vadd.xlane.f32.xlu0 %v462_v58  ;;  %v2104_v58 = vld [vmem:[%s2973_s3 + $0xa8] ss:$12 sps:$4 sm:$0xff]  }
  0xbf   : > { %v2482_v60 = vsub.f32 %v2318_v15, %v423_v59  ;;  %v344_v1 = vpop.xlane.xlu0 %343  ;;  %961 = vmatprep.subr.bf16.mxu0 %v2096_v34  ;;  %2044 = vmatprep.subr.bf16.mxu1 %v2096_v34 }
  0xc0   : > { %v346_v2 = vpop.xlane.xlu1 %345  ;;  %v400_v14 = vmul.f32 0.0078125, %v344_v1  ;;  %v486_v4 = vmul.f32 %v2479_v13, %v2479_v13 }
  0xc1   : > { %v401_v5 = vmul.f32 0.0078125, %v346_v2  ;;  %v487_v33 = vmul.f32 %v2482_v60, %v2482_v60  ;;  %962 = vmatpush1.bf16.msra.mxu0 %v2098_v37  ;;  %2052 = vmatpush1.bf16.msra.mxu1 %v2098_v37 }
  0xc2   : > { %v2495_v15 = vsub.f32 %v2323_v16, %v400_v14  ;;  %502 = vadd.xlane.f32.xlu1 %v463_v61  ;;  %548 = vadd.xlane.f32.xlu0 %v486_v4  ;;  %v2201_v14 = vmov 0  }
  0xc3   : > { %v2498_v7 = vsub.f32 %v2326_v17, %v401_v5  ;;  %v348_v35 = vpop.xlane.xlu0 %347  ;;  %963 = vmatprep.subr.bf16.mxu0 %v2099_v44  ;;  %2045 = vmatprep.subr.bf16.mxu1 %v2099_v44 }
  0xc4   : > { %v350_v36 = vpop.xlane.xlu1 %349  ;;  %v402_v16 = vmul.f32 0.0078125, %v348_v35  ;;  %v464_v8 = vmul.f32 %v2495_v15, %v2495_v15  ;;  %983 = vmatprep.mubr.bf16.mxu0 %v2201_v14  ;;  %1103 = vmatprep.mubr.bf16.mxu1 %v2201_v14  ;;  %v2565_v35 = vld [vmem:[%s2973_s3 + $0x8] ss:$12 sps:$4 sm:$0xff]  }
  0xc5   : > { %v403_v9 = vmul.f32 0.0078125, %v350_v36  ;;  %v465_v43 = vmul.f32 %v2498_v7, %v2498_v7  ;;  %964 = vmatpush1.bf16.msra.mxu0 %v2101_v10  ;;  %2053 = vmatpush1.bf16.msra.mxu1 %v2101_v10 }
  0xc6   : > { %v2511_v17 = vsub.f32 %v2331_v18, %v402_v16  ;;  %550 = vadd.xlane.f32.xlu1 %v487_v33  ;;  %504 = vadd.xlane.f32.xlu0 %v464_v8 }
  0xc7   : > { %v2514_v42 = vsub.f32 %v2334_v19, %v403_v9  ;;  %v352_v45 = vpop.xlane.xlu0 %351  ;;  %965 = vmatprep.subr.bf16.mxu0 %v2102_v56  ;;  %2046 = vmatprep.subr.bf16.mxu1 %v2102_v56 }
  0xc8   : > { %v354_v48 = vpop.xlane.xlu1 %353  ;;  %v404_v18 = vmul.f32 0.0078125, %v352_v45  ;;  %v466_v49 = vmul.f32 %v2511_v17, %v2511_v17 }
  0xc9   : > { %v405_v51 = vmul.f32 0.0078125, %v354_v48  ;;  %v467_v53 = vmul.f32 %v2514_v42, %v2514_v42  ;;  %966 = vmatpush1.bf16.msra.mxu0 %v2104_v58  ;;  %2054 = vmatpush1.bf16.msra.mxu1 %v2104_v58 }
  0xca   : > { %v2527_v19 = vsub.f32 %v2339_v20, %v404_v18  ;;  %506 = vadd.xlane.f32.xlu1 %v465_v43  ;;  %508 = vadd.xlane.f32.xlu0 %v466_v49 }
  0xcb   : > { %v2530_v52 = vsub.f32 %v2342_v21, %v405_v51  ;;  %v356_v57 = vpop.xlane.xlu0 %355  ;;  %1991 = vmatprep.subr.bf16.mxu1 %v2565_v35 }
  0xcc   : > { %v358_v12 = vpop.xlane.xlu1 %357  ;;  %v406_v20 = vmul.f32 0.0078125, %v356_v57  ;;  %v468_v59 = vmul.f32 %v2527_v19, %v2527_v19 }
  0xcd   : > { %v407_v61 = vmul.f32 0.0078125, %v358_v12  ;;  %v469_v1 = vmul.f32 %v2530_v52, %v2530_v52 }
  0xce   : > { %v2543_v21 = vsub.f32 %v2347_v22, %v406_v20  ;;  %510 = vadd.xlane.f32.xlu1 %v467_v53  ;;  %512 = vadd.xlane.f32.xlu0 %v468_v59 }
  0xcf   : > { %v2546_v0 = vsub.f32 %v2350_v23, %v407_v61  ;;  %v360_v2 = vpop.xlane.xlu0 %359 }
  0xd0   : > { %v362_v3 = vpop.xlane.xlu1 %361  ;;  %v408_v4 = vmul.f32 0.0078125, %v360_v2  ;;  %v470_v22 = vmul.f32 %v2543_v21, %v2543_v21 }
  0xd1   : > { %v409_v5 = vmul.f32 0.0078125, %v362_v3  ;;  %v471_v34 = vmul.f32 %v2546_v0, %v2546_v0 }
  0xd2   : > { %v2555_v33 = vsub.f32 %v2355_v24, %v408_v4  ;;  %514 = vadd.xlane.f32.xlu1 %v469_v1  ;;  %516 = vadd.xlane.f32.xlu0 %v470_v22 }
  0xd3   : > { %v2558_v23 = vsub.f32 %v2358_v25, %v409_v5  ;;  %v364_v36 = vpop.xlane.xlu0 %363 }
  0xd4   : > { %v366_v37 = vpop.xlane.xlu1 %365  ;;  %v410_v16 = vmul.f32 0.0078125, %v364_v36  ;;  %v472_v24 = vmul.f32 %v2555_v33, %v2555_v33 }
  0xd5   : > { %v411_v8 = vmul.f32 0.0078125, %v366_v37  ;;  %v473_v43 = vmul.f32 %v2558_v23, %v2558_v23 }
  0xd6   : > { %v2571_v25 = vsub.f32 %v2363_v26, %v410_v16  ;;  %518 = vadd.xlane.f32.xlu1 %v471_v34  ;;  %520 = vadd.xlane.f32.xlu0 %v472_v24 }
  0xd7   : > { %v2574_v9 = vsub.f32 %v2366_v27, %v411_v8  ;;  %v368_v44 = vpop.xlane.xlu0 %367 }
  0xd8   : > { %v370_v45 = vpop.xlane.xlu1 %369  ;;  %v412_v48 = vmul.f32 0.0078125, %v368_v44  ;;  %v474_v10 = vmul.f32 %v2571_v25, %v2571_v25 }
  0xd9   : > { %v413_v18 = vmul.f32 0.0078125, %v370_v45  ;;  %v475_v27 = vmul.f32 %v2574_v9, %v2574_v9 }
  0xda   : > { %v2581_v49 = vsub.f32 %v2371_v28, %v412_v48  ;;  %522 = vadd.xlane.f32.xlu1 %v473_v43  ;;  %524 = vadd.xlane.f32.xlu0 %v474_v10 }
  0xdb   : > { %v2584_v26 = vsub.f32 %v2374_v29, %v413_v18  ;;  %v372_v51 = vpop.xlane.xlu0 %371 }
  0xdc   : > { %v374_v53 = vpop.xlane.xlu1 %373  ;;  %v414_v56 = vmul.f32 0.0078125, %v372_v51  ;;  %v476_v57 = vmul.f32 %v2581_v49, %v2581_v49 }
  0xdd   : > { %v415_v12 = vmul.f32 0.0078125, %v374_v53  ;;  %v477_v29 = vmul.f32 %v2584_v26, %v2584_v26 }
  0xde   : > { %v2591_v58 = vsub.f32 %v2379_v30, %v414_v56  ;;  %526 = vadd.xlane.f32.xlu1 %v475_v27  ;;  %528 = vadd.xlane.f32.xlu0 %v476_v57 }
  0xdf   : > { %v2594_v28 = vsub.f32 %v2382_v31, %v415_v12 }
  0xe0   : > { %v478_v20 = vmul.f32 %v2591_v58, %v2591_v58 }
  0xe1   : > { %v479_v59 = vmul.f32 %v2594_v28, %v2594_v28 }
  0xe2   : > { %530 = vadd.xlane.f32.xlu1 %v477_v29  ;;  %532 = vadd.xlane.f32.xlu0 %v478_v20  ;;  %v2606_v29 = vld [vmem:[%s2971_s1] ss:$0 sm:$0xff] }
  0xe6   : > { %534 = vadd.xlane.f32.xlu1 %v479_v59 }
 0x133   : > { %v489_v61 = vpop.xlane.xlu0 %488 }
 0x134   : > { %v552_v30 = vmul.f32 0.0078125, %v489_v61 }
 0x136   : > { %v584_v1 = vadd.f32 1e-05, %v552_v30 }
 0x137   : > { %v491_v2 = vpop.xlane.xlu1 %490  ;;  %v537_v3 = vpop.xlane.xlu0 %536 }
 0x138   : > { %2113 = vrsqrt.f32 %v584_v1  ;;  %v553_v31 = vmul.f32 0.0078125, %v491_v2  ;;  %v576_v4 = vmul.f32 0.0078125, %v537_v3 }
 0x13a   : > { %v585_v22 = vadd.f32 1e-05, %v553_v31  ;;  %v608_v5 = vadd.f32 1e-05, %v576_v4 }
 0x13b   : > { %v539_v34 = vpop.xlane.xlu1 %538  ;;  %v493_v36 = vpop.xlane.xlu0 %492 }
 0x13c   : > { %2115 = vrsqrt.f32 %v585_v22  ;;  %v577_v37 = vmul.f32 0.0078125, %v539_v34  ;;  %v554_v16 = vmul.f32 0.0078125, %v493_v36  ;;  %v2613_v22 = vld [vmem:[%s2972_s2] ss:$0 sm:$0xff] }
 0x13d   : > { %2117 = vrsqrt.f32 %v608_v5 }
 0x13e   : > { %v609_v24 = vadd.f32 1e-05, %v577_v37  ;;  %v586_v8 = vadd.f32 1e-05, %v554_v16 }
 0x13f   : > { %v495_v43 = vpop.xlane.xlu1 %494  ;;  %v541_v44 = vpop.xlane.xlu0 %540 }
 0x140   : > { %2119 = vrsqrt.f32 %v609_v24  ;;  %v555_v45 = vmul.f32 0.0078125, %v495_v43  ;;  %v578_v48 = vmul.f32 0.0078125, %v541_v44 }
 0x141   : > { %2121 = vrsqrt.f32 %v586_v8 }
 0x142   : > { %v2114_v10 = vpop.eup %2113  ;;  %v587_v18 = vadd.f32 1e-05, %v555_v45  ;;  %v610_v27 = vadd.f32 1e-05, %v578_v48 }
 0x143   : > { %v543_v51 = vpop.xlane.xlu1 %542  ;;  %v497_v53 = vpop.xlane.xlu0 %496  ;;  %v648_v56 = vmul.f32 %v2114_v10, %v2396_v39 }
 0x144   : > { %2123 = vrsqrt.f32 %v587_v18  ;;  %v579_v57 = vmul.f32 0.0078125, %v543_v51  ;;  %v556_v12 = vmul.f32 0.0078125, %v497_v53 }
 0x145   : > { %2125 = vrsqrt.f32 %v610_v27  ;;  %v687_v31 = vmul.f32 %v2606_v29, %v648_v56 }
 0x146   : > { %v2116_v20 = vpop.eup %2115  ;;  %v611_v59 = vadd.f32 1e-05, %v579_v57  ;;  %v588_v61 = vadd.f32 1e-05, %v556_v12 }
 0x147   : > { %v2118_v30 = vpop.eup %2117  ;;  %v499_v1 = vpop.xlane.xlu1 %498  ;;  %v649_v3 = vmul.f32 %v2116_v20, %v2404_v46  ;;  %v726_v43 = vadd.f32 %v2613_v22, %v687_v31 }
 0x148   : > { %v545_v2 = vpop.xlane.xlu0 %544  ;;  %2127 = vrsqrt.f32 %v611_v59  ;;  %v557_v39 = vmul.f32 0.0078125, %v499_v1  ;;  %v672_v5 = vmul.f32 %v2118_v30, %v2399_v40 }
 0x149   : > { %v580_v4 = vmul.f32 0.0078125, %v545_v2  ;;  %2129 = vrsqrt.f32 %v588_v61  ;;  %v688_v34 = vmul.f32 %v2606_v29, %v649_v3 }
 0x14a   : > { %v2120_v36 = vpop.eup %2119  ;;  %v589_v37 = vadd.f32 1e-05, %v557_v39  ;;  %v711_v48 = vmul.f32 %v2606_v29, %v672_v5  ;;  %v2106_v39 = vld [vmem:[%s2973_s3 + $0x20] ss:$12 sps:$4 sm:$0xff]  }
 0x14b   : > { %v612_v16 = vadd.f32 1e-05, %v580_v4  ;;  %v2122_v24 = vpop.eup %2121  ;;  %v547_v46 = vpop.xlane.xlu1 %546  ;;  %v727_v44 = vadd.f32 %v2613_v22, %v688_v34  ;;  %v673_v45 = vmul.f32 %v2120_v36, %v2407_v47 }
 0x14c   : > { %v501_v8 = vpop.xlane.xlu0 %500  ;;  %2131 = vrsqrt.f32 %v589_v37  ;;  %v581_v10 = vmul.f32 0.0078125, %v547_v46  ;;  %v650_v51 = vmul.f32 %v2122_v24, %v2414_v54  ;;  %v750_v59 = vadd.f32 %v2613_v22, %v711_v48  ;;  %v2107_v48 = vld [vmem:[%s2973_s3 + $0x38] ss:$12 sps:$4 sm:$0xff]  }
 0x14d   : > { %v558_v40 = vmul.f32 0.0078125, %v501_v8  ;;  %2133 = vrsqrt.f32 %v612_v16  ;;  %v2621_v18 = vpack.c.bf16 %v727_v44, %v726_v43  ;;  %v712_v27 = vmul.f32 %v2606_v29, %v673_v45 }
 0x14e   : > { %v2124_v53 = vpop.eup %2123  ;;  %v613_v56 = vadd.f32 1e-05, %v581_v10  ;;  %v689_v1 = vmul.f32 %v2606_v29, %v650_v51 }
 0x14f   : > { %v590_v57 = vadd.f32 1e-05, %v558_v40  ;;  %v2126_v12 = vpop.eup %2125  ;;  %v503_v20 = vpop.xlane.xlu1 %502  ;;  %984 = vmatmul.mubr.bf16.vlgmr.msra.gmra.mrb[0].mxu0 %v2621_v18  ;;  %v751_v61 = vadd.f32 %v2613_v22, %v712_v27  ;;  %v651_v30 = vmul.f32 %v2124_v53, %v2417_v55 }
 0x150   : > { %v549_v47 = vpop.xlane.xlu0 %548  ;;  %2135 = vrsqrt.f32 %v613_v56  ;;  %v559_v2 = vmul.f32 0.0078125, %v503_v20  ;;  %993 = vmatprep.mubr.bf16.mxu0 %v2201_v14  ;;  %v674_v54 = vmul.f32 %v2126_v12, %v2424_v62  ;;  %v728_v24 = vadd.f32 %v2613_v22, %v689_v1  ;;  %v2108_v1 = vld [vmem:[%s2973_s3 + $0x50] ss:$12 sps:$4 sm:$0xff]  }
 0x151   : > { %v582_v3 = vmul.f32 0.0078125, %v549_v47  ;;  %2137 = vrsqrt.f32 %v590_v57  ;;  %v2632_v31 = vpack.c.bf16 %v751_v61, %v750_v59  ;;  %v690_v4 = vmul.f32 %v2606_v29, %v651_v30 }
 0x152   : > { %v2128_v5 = vpop.eup %2127  ;;  %v591_v55 = vadd.f32 1e-05, %v559_v2  ;;  %v713_v8 = vmul.f32 %v2606_v29, %v674_v54 }
 0x153   : > { %v614_v34 = vadd.f32 1e-05, %v582_v3  ;;  %v2130_v36 = vpop.eup %2129  ;;  %v551_v37 = vpop.xlane.xlu1 %550  ;;  %1104 = vmatmul.mubr.bf16.vlgmr.msra.gmra.mrb[0].mxu1 %v2632_v31  ;;  %v729_v62 = vadd.f32 %v2613_v22, %v690_v4  ;;  %v675_v46 = vmul.f32 %v2128_v5, %v2427_v63 }
 0x154   : > { %v505_v16 = vpop.xlane.xlu0 %504  ;;  %2139 = vrsqrt.f32 %v591_v55  ;;  %v583_v43 = vmul.f32 0.0078125, %v551_v37  ;;  %1992 = vmatpush3.bf16.msra.mxu1 %v2565_v35  ;;  %1113 = vmatprep.mubr.bf16.mxu1 %v2201_v14  ;;  %v652_v63 = vmul.f32 %v2130_v36, %v2434_v32  ;;  %v752_v57 = vadd.f32 %v2613_v22, %v713_v8 }
 0x155   : > { %v560_v44 = vmul.f32 0.0078125, %v505_v16  ;;  %2141 = vrsqrt.f32 %v614_v34  ;;  %1993 = vmatprep.subr.bf16.mxu1 %v2106_v39  ;;  %v2645_v45 = vpack.c.bf16 %v729_v62, %v728_v24  ;;  %v714_v10 = vmul.f32 %v2606_v29, %v675_v46  ;;  %v2109_v24 = vld [vmem:[%s2973_s3 + $0x68] ss:$12 sps:$4 sm:$0xff]  }
 0x156   : > { %v2132_v40 = vpop.eup %2131  ;;  %v615_v27 = vadd.f32 1e-05, %v583_v43  ;;  %v691_v47 = vmul.f32 %v2606_v29, %v652_v63 }
 0x157   : > { %v592_v51 = vadd.f32 1e-05, %v560_v44  ;;  %v2134_v53 = vpop.eup %2133  ;;  %v507_v35 = vpop.xlane.xlu1 %506  ;;  %994 = vmatmul.mubr.bf16.gmra.mrb[4].mxu0 %v2645_v45  ;;  %v753_v12 = vadd.f32 %v2613_v22, %v714_v10  ;;  %v653_v20 = vmul.f32 %v2132_v40, %v2437_v6 }
 0x158   : > { %v509_v56 = vpop.xlane.xlu0 %508  ;;  %2143 = vrsqrt.f32 %v615_v27  ;;  %v561_v59 = vmul.f32 0.0078125, %v507_v35  ;;  %1994 = vmatpush3.bf16.msra.mxu1 %v2106_v39  ;;  %1003 = vmatprep.mubr.bf16.mxu0 %v2201_v14  ;;  %v676_v61 = vmul.f32 %v2134_v53, %v2450_v38  ;;  %v730_v38 = vadd.f32 %v2613_v22, %v691_v47 }
 0x159   : > { %v562_v32 = vmul.f32 0.0078125, %v509_v56  ;;  %2145 = vrsqrt.f32 %v592_v51  ;;  %1995 = vmatprep.subr.bf16.mxu1 %v2107_v48  ;;  %v2659_v30 = vpack.c.bf16 %v753_v12, %v752_v57  ;;  %v692_v6 = vmul.f32 %v2606_v29, %v653_v20  ;;  %v2110_v56 = vld [vmem:[%s2973_s3 + $0x80] ss:$12 sps:$4 sm:$0xff]  }
 0x15a   : > { %v2136_v2 = vpop.eup %2135  ;;  %v593_v3 = vadd.f32 1e-05, %v561_v59  ;;  %v715_v36 = vmul.f32 %v2606_v29, %v676_v61 }
 0x15b   : > { %v594_v54 = vadd.f32 1e-05, %v562_v32  ;;  %v2138_v4 = vpop.eup %2137  ;;  %v511_v39 = vpop.xlane.xlu1 %510  ;;  %1114 = vmatmul.mubr.bf16.gmra.mrb[4].mxu1 %v2659_v30  ;;  %v731_v55 = vadd.f32 %v2613_v22, %v692_v6  ;;  %v677_v34 = vmul.f32 %v2136_v2, %v2453_v41 }
 0x15c   : > { %v513_v5 = vpop.xlane.xlu0 %512  ;;  %2147 = vrsqrt.f32 %v593_v3  ;;  %v563_v37 = vmul.f32 0.0078125, %v511_v39  ;;  %1996 = vmatpush3.bf16.msra.mxu1 %v2107_v48  ;;  %1123 = vmatprep.mubr.bf16.mxu1 %v2201_v14  ;;  %v654_v46 = vmul.f32 %v2138_v4, %v2463_v11  ;;  %v754_v63 = vadd.f32 %v2613_v22, %v715_v36 }
 0x15d   : > { %2149 = vrsqrt.f32 %v594_v54  ;;  %1997 = vmatprep.subr.bf16.mxu1 %v2108_v1  ;;  %v2671_v16 = vpack.c.bf16 %v731_v55, %v730_v38  ;;  %v716_v62 = vmul.f32 %v2606_v29, %v677_v34  ;;  %v564_v43 = vmul.f32 0.0078125, %v513_v5  ;;  %v2111_v54 = vld [vmem:[%s2973_s3 + $0x98] ss:$12 sps:$4 sm:$0xff]  }
 0x15e   : > { %v2140_v41 = vpop.eup %2139  ;;  %v595_v8 = vadd.f32 1e-05, %v563_v37  ;;  %v693_v51 = vmul.f32 %v2606_v29, %v654_v46 }
 0x15f   : > { %v2142_v44 = vpop.eup %2141  ;;  %v515_v10 = vpop.xlane.xlu1 %514  ;;  %1004 = vmatmul.mubr.bf16.gmra.mrb[8].mxu0 %v2671_v16  ;;  %v755_v40 = vadd.f32 %v2613_v22, %v716_v62  ;;  %v655_v27 = vmul.f32 %v2140_v41, %v2466_v50  ;;  %v596_v50 = vadd.f32 1e-05, %v564_v43  ;;  %v2112_v43 = vld [vmem:[%s2973_s3 + $0xb0] ss:$12 sps:$4 sm:$0xff]  }
 0x160   : > { %v517_v48 = vpop.xlane.xlu0 %516  ;;  %2151 = vrsqrt.f32 %v595_v8  ;;  %v565_v53 = vmul.f32 0.0078125, %v515_v10  ;;  %1998 = vmatpush3.bf16.msra.mxu1 %v2108_v1  ;;  %1013 = vmatprep.mubr.bf16.mxu0 %v2201_v14  ;;  %v678_v11 = vmul.f32 %v2142_v44, %v2479_v13  ;;  %v732_v61 = vadd.f32 %v2613_v22, %v693_v51 }
 0x161   : > { %1999 = vmatprep.subr.bf16.mxu1 %v2109_v24  ;;  %v2685_v35 = vpack.c.bf16 %v755_v40, %v754_v63  ;;  %v694_v57 = vmul.f32 %v2606_v29, %v655_v27 }
 0x162   : > { %v2144_v12 = vpop.eup %2143  ;;  %v597_v20 = vadd.f32 1e-05, %v565_v53  ;;  %v717_v6 = vmul.f32 %v2606_v29, %v678_v11 }
 0x163   : > { %v2146_v47 = vpop.eup %2145  ;;  %v519_v59 = vpop.xlane.xlu1 %518  ;;  %1124 = vmatmul.mubr.bf16.gmra.mrb[8].mxu1 %v2685_v35  ;;  %v733_v13 = vadd.f32 %v2613_v22, %v694_v57  ;;  %v679_v1 = vmul.f32 %v2144_v12, %v2482_v60  ;;  %v566_v60 = vmul.f32 0.0078125, %v517_v48 }
 0x164   : > { %v521_v32 = vpop.xlane.xlu0 %520  ;;  %2153 = vrsqrt.f32 %v597_v20  ;;  %v567_v2 = vmul.f32 0.0078125, %v519_v59  ;;  %2000 = vmatpush3.bf16.msra.mxu1 %v2109_v24  ;;  %1133 = vmatprep.mubr.bf16.mxu1 %v2201_v14  ;;  %v656_v39 = vmul.f32 %v2146_v47, %v2495_v15  ;;  %v756_v36 = vadd.f32 %v2613_v22, %v717_v6 }
 0x165   : > { %2001 = vmatprep.subr.bf16.mxu1 %v2110_v56  ;;  %v2697_v3 = vpack.c.bf16 %v733_v13, %v732_v61  ;;  %v718_v4 = vmul.f32 %v2606_v29, %v679_v1  ;;  %2155 = vrsqrt.f32 %v596_v50  ;;  %v598_v48 = vadd.f32 1e-05, %v566_v60 }
 0x166   : > { %v2148_v5 = vpop.eup %2147  ;;  %v695_v62 = vmul.f32 %v2606_v29, %v656_v39  ;;  %v599_v46 = vadd.f32 1e-05, %v567_v2 }
 0x167   : > { %v2150_v38 = vpop.eup %2149  ;;  %v523_v55 = vpop.xlane.xlu1 %522  ;;  %1014 = vmatmul.mubr.bf16.gmra.mrb[12].mxu0 %v2697_v3  ;;  %v757_v37 = vadd.f32 %v2613_v22, %v718_v4  ;;  %v657_v24 = vmul.f32 %v2148_v5, %v2498_v7  ;;  %v568_v7 = vmul.f32 0.0078125, %v521_v32 }
 0x168   : > { %v525_v34 = vpop.xlane.xlu0 %524  ;;  %v569_v41 = vmul.f32 0.0078125, %v523_v55  ;;  %2002 = vmatpush3.bf16.msra.mxu1 %v2110_v56  ;;  %1023 = vmatprep.mubr.bf16.mxu0 %v2201_v14  ;;  %v658_v40 = vmul.f32 %v2150_v38, %v2511_v17  ;;  %v734_v11 = vadd.f32 %v2613_v22, %v695_v62  ;;  %2157 = vrsqrt.f32 %v599_v46 }
 0x169   : > { %v570_v15 = vmul.f32 0.0078125, %v525_v34  ;;  %2003 = vmatprep.subr.bf16.mxu1 %v2111_v54  ;;  %v2710_v8 = vpack.c.bf16 %v757_v37, %v756_v36  ;;  %v696_v44 = vmul.f32 %v2606_v29, %v657_v24  ;;  %v600_v61 = vadd.f32 1e-05, %v568_v7 }
 0x16a   : > { %v2152_v10 = vpop.eup %2151  ;;  %v601_v27 = vadd.f32 1e-05, %v569_v41  ;;  %v697_v1 = vmul.f32 %v2606_v29, %v658_v40 }
 0x16b   : > { %v602_v63 = vadd.f32 1e-05, %v570_v15  ;;  %v527_v51 = vpop.xlane.xlu1 %526  ;;  %1134 = vmatmul.mubr.bf16.gmra.mrb[12].mxu1 %v2710_v8  ;;  %v735_v56 = vadd.f32 %v2613_v22, %v696_v44  ;;  %v659_v57 = vmul.f32 %v2152_v10, %v2514_v42 }
 0x16c   : > { %v529_v53 = vpop.xlane.xlu0 %528  ;;  %v571_v12 = vmul.f32 0.0078125, %v527_v51  ;;  %2004 = vmatpush3.bf16.msra.mxu1 %v2111_v54  ;;  %2007 = vmatprep.mubr.bf16.mxu1 %v2621_v18  ;;  %v736_v38 = vadd.f32 %v2613_v22, %v697_v1 }
 0x16d   : > { %v572_v50 = vmul.f32 0.0078125, %v529_v53  ;;  %2159 = vrsqrt.f32 %v602_v63  ;;  %2005 = vmatprep.subr.bf16.mxu1 %v2112_v43  ;;  %v762_v17 = vpack.c.bf16 %v735_v56, %v734_v11  ;;  %v698_v20 = vmul.f32 %v2606_v29, %v659_v57 }
 0x16e   : > { %v2154_v47 = vpop.eup %2153  ;;  %2161 = vrsqrt.f32 %v598_v48  ;;  %v603_v59 = vadd.f32 1e-05, %v571_v12 }
 0x16f   : > { %v604_v32 = vadd.f32 1e-05, %v572_v50  ;;  %2163 = vrsqrt.f32 %v601_v27  ;;  %v531_v13 = vpop.xlane.xlu1 %530  ;;  %1024 = vmatmul.mubr.bf16.gmra.mrb[16].mxu0 %v762_v17  ;;  %v2156_v6 = vpop.eup %2155  ;;  %v737_v54 = vadd.f32 %v2613_v22, %v698_v20  ;;  %v661_v4 = vmul.f32 %v2154_v47, %v2530_v52 }
 0x170   : > { %v533_v42 = vpop.xlane.xlu0 %532  ;;  %2165 = vrsqrt.f32 %v603_v59  ;;  %v573_v2 = vmul.f32 0.0078125, %v531_v13  ;;  %2006 = vmatpush3.bf16.msra.mxu1 %v2112_v43  ;;  %1033 = vmatprep.mubr.bf16.mxu0 %v2201_v14  ;;  %v660_v55 = vmul.f32 %v2156_v6, %v2527_v19 }
 0x171   : > { %v574_v18 = vmul.f32 0.0078125, %v533_v42  ;;  %2167 = vrsqrt.f32 %v604_v32  ;;  %v763_v36 = vpack.c.bf16 %v737_v54, %v736_v38  ;;  %v700_v37 = vmul.f32 %v2606_v29, %v661_v4 }
 0x172   : > { %v605_v39 = vadd.f32 1e-05, %v573_v2  ;;  %2169 = vrsqrt.f32 %v600_v61  ;;  %v2158_v24 = vpop.eup %2157  ;;  %v699_v46 = vmul.f32 %v2606_v29, %v660_v55 }
 0x173   : > { %v606_v5 = vadd.f32 1e-05, %v574_v18  ;;  %v535_v60 = vpop.xlane.xlu1 %534  ;;  %2008 = vmatmul.mubr.bf16.vlgmr.msra.gmra.mrb[16].mxu1 %v2645_v45  ;;  %v739_v15 = vadd.f32 %v2613_v22, %v700_v37 }
 0x174   : > { %2171 = vrsqrt.f32 %v605_v39  ;;  %v575_v34 = vmul.f32 0.0078125, %v535_v60  ;;  %2011 = vmatprep.mubr.bf16.mxu1 %v2671_v16  ;;  %v663_v16 = vmul.f32 %v2158_v24, %v2546_v0  ;;  %v738_v48 = vadd.f32 %v2613_v22, %v699_v46  ;;  %v2782_v60 = vld [vmem:[%s2974_s4] sm:$0x7] }
 0x175   : > { %2173 = vrsqrt.f32 %v606_v5 }
 0x176   : > { %v607_v52 = vadd.f32 1e-05, %v575_v34  ;;  %v764_v51 = vpack.c.bf16 %v739_v15, %v738_v48  ;;  %v702_v0 = vmul.f32 %v2606_v29, %v663_v16 }
 0x177   : > { %v2160_v62 = vpop.eup %2159  ;;  %1034 = vmatmul.mubr.bf16.gmra.mrb[20].mxu0 %v763_v36 }
 0x178   : > { %v2162_v41 = vpop.eup %2161  ;;  %2175 = vrsqrt.f32 %v607_v52  ;;  %1043 = vmatprep.mubr.bf16.mxu0 %v2201_v14  ;;  %v666_v19 = vmul.f32 %v2160_v62, %v2571_v25 }
 0x179   : > { %v2164_v45 = vpop.eup %2163  ;;  %v662_v7 = vmul.f32 %v2162_v41, %v2543_v21 }
 0x17a   : > { %v2166_v43 = vpop.eup %2165  ;;  %v705_v44 = vmul.f32 %v2606_v29, %v666_v19 }
 0x17b   : > { %v2168_v10 = vpop.eup %2167  ;;  %2012 = vmatmul.mubr.bf16.gmra.mrb[20].mxu1 %v2697_v3  ;;  %v667_v63 = vmul.f32 %v2166_v43, %v2574_v9  ;;  %v665_v3 = vmul.f32 %v2164_v45, %v2558_v23  ;;  %v701_v21 = vmul.f32 %v2606_v29, %v662_v7  ;;  %v741_v23 = vadd.f32 %v2613_v22, %v702_v0 }
 0x17c   : > { %2015 = vmatprep.mubr.bf16.mxu1 %v762_v17  ;;  %v744_v25 = vadd.f32 %v2613_v22, %v705_v44  ;;  %v668_v40 = vmul.f32 %v2168_v10, %v2581_v49  ;;  %v2170_v27 = vpop.eup %2169 }
 0x17d   : > { %v706_v53 = vmul.f32 %v2606_v29, %v667_v63  ;;  %v664_v49 = vmul.f32 %v2170_v27, %v2555_v33  ;;  %v704_v32 = vmul.f32 %v2606_v29, %v665_v3 }
 0x17e   : > { %v2172_v11 = vpop.eup %2171  ;;  %v707_v56 = vmul.f32 %v2606_v29, %v668_v40 }
 0x17f   : > { %v2174_v57 = vpop.eup %2173  ;;  %1044 = vmatmul.mubr.bf16.gmra.mrb[24].mxu0 %v764_v51  ;;  %v745_v9 = vadd.f32 %v2613_v22, %v706_v53  ;;  %v669_v12 = vmul.f32 %v2172_v11, %v2584_v26  ;;  %v740_v26 = vadd.f32 %v2613_v22, %v701_v21  ;;  %v743_v18 = vadd.f32 %v2613_v22, %v704_v32 }
 0x180   : > { %1053 = vmatprep.mubr.bf16.mxu0 %v2201_v14  ;;  %v746_v50 = vadd.f32 %v2613_v22, %v707_v56  ;;  %v670_v17 = vmul.f32 %v2174_v57, %v2591_v58  ;;  %v703_v58 = vmul.f32 %v2606_v29, %v664_v49 }
 0x181   : > { %v767_v20 = vpack.c.bf16 %v745_v9, %v744_v25  ;;  %v708_v47 = vmul.f32 %v2606_v29, %v669_v12  ;;  %v765_v1 = vpack.c.bf16 %v741_v23, %v740_v26 }
 0x182   : > { %v2176_v59 = vpop.eup %2175  ;;  %v709_v61 = vmul.f32 %v2606_v29, %v670_v17  ;;  %v742_v4 = vadd.f32 %v2613_v22, %v703_v58 }
 0x183   : > { %2016 = vmatmul.mubr.bf16.gmra.mrb[24].mxu1 %v763_v36  ;;  %v747_v13 = vadd.f32 %v2613_v22, %v708_v47  ;;  %v671_v33 = vmul.f32 %v2176_v59, %v2594_v28 }
 0x184   : > { %2019 = vmatprep.mubr.bf16.mxu1 %v764_v51  ;;  %v748_v42 = vadd.f32 %v2613_v22, %v709_v61  ;;  %v766_v28 = vpack.c.bf16 %v743_v18, %v742_v4 }
 0x185   : > { %v768_v6 = vpack.c.bf16 %v747_v13, %v746_v50  ;;  %v710_v2 = vmul.f32 %v2606_v29, %v671_v33  ;;  %v808_v29 = vlaneseq }
 0x187   : > { %1054 = vmatmul.mubr.bf16.gmra.mrb[28].mxu0 %v765_v1  ;;  %v749_v54 = vadd.f32 %v2613_v22, %v710_v2  ;;  %v2776_v22 = vshrl.u32 %v808_v29, 7 }
 0x188   : > { %1063 = vmatprep.mubr.bf16.mxu0 %v2201_v14 }
 0x189   : > { %v769_v39 = vpack.c.bf16 %v749_v54, %v748_v42  ;;  %v810_v5 = vsub.s32 0, %v2776_v22 }
 0x18b   : > { %2020 = vmatmul.mubr.bf16.gmra.mrb[28].mxu1 %v765_v1 }
 0x18c   : > { %2023 = vmatprep.mubr.bf16.mxu1 %v766_v28 }
 0x18f   : > { %1064 = vmatmul.mubr.bf16.gmra.mrb[32].mxu0 %v766_v28 }
 0x190   : > { %1073 = vmatprep.mubr.bf16.mxu0 %v2201_v14 }
 0x193   : > { %2024 = vmatmul.mubr.bf16.gmra.mrb[32].mxu1 %v767_v20 }
 0x194   : > { %2027 = vmatprep.mubr.bf16.mxu1 %v768_v6 }
 0x197   : > { %1074 = vmatmul.mubr.bf16.gmra.mrb[36].mxu0 %v767_v20 }
 0x198   : > { %1083 = vmatprep.mubr.bf16.mxu0 %v2201_v14 }
 0x19b   : > { %2028 = vmatmul.mubr.bf16.gmra.mrb[36].mxu1 %v769_v39 }
 0x19c   : > { %2031 = vmatprep.mubr.bf16.mxu1 %v2632_v31  ;;  %v814_v31 = vsub.s32 1, %v2776_v22 }
 0x19f   : > { %1084 = vmatmul.mubr.bf16.gmra.mrb[40].mxu0 %v768_v6 }
 0x1a0   : > { %1093 = vmatprep.mubr.bf16.mxu0 %v2201_v14  ;;  %v2786_v14 = vrot.slane %v2782_v60, %v810_v5 }
 0x1a3   : > { %2032 = vmatmul.mubr.bf16.gmra.mrb[40].mxu1 %v2659_v30  ;;  %v2789_v30 = vrot.slane %v2782_v60, %v814_v31 }
 0x1a4   : > { %2035 = vmatprep.mubr.bf16.mxu1 %v2685_v35 }
 0x1a7   : > { %1094 = vmatmul.mubr.bf16.gmra.mrb[44].mxu0 %v769_v39 }
 0x1ab   : > { %2036 = vmatmul.mubr.bf16.gmra.mrb[44].mxu1 %v2710_v8 }
 0x222   : > { %v985_v35 = vpop.f32.mrb[0].mxu0 }
 0x223   : > { %v986_v8 = vadd.f32 %v985_v35, %v2786_v14  ;;  %v987_v38 = vpop.f32.mrb[1].mxu0 }
 0x224   : > { %v988_v55 = vadd.f32 %v987_v38, %v2789_v30  ;;  %v989_v34 = vpop.f32.mrb[2].mxu0 }
 0x225   : > { %v990_v36 = vadd.f32 %v989_v34, %v2786_v14  ;;  %v991_v37 = vpop.f32.mrb[3].mxu0 }
 0x226   : > { %v1903_v24 = vpack.c.bf16 %v988_v55, %v986_v8  ;;  %v992_v52 = vadd.f32 %v991_v37, %v2789_v30  ;;  %v1105_v62 = vpop.f32.mrb[0].mxu1 }
 0x227   : > { %v1106_v46 = vadd.f32 %v1105_v62, %v2786_v14  ;;  %v1107_v41 = vpop.f32.mrb[1].mxu1 }
 0x228   : > { %1625 = vst [vmem:[%s2797_s17] sm:$0xff] %v1903_v24  ;;  %v1905_v19 = vpack.c.bf16 %v992_v52, %v990_v36  ;;  %v1108_v45 = vadd.f32 %v1107_v41, %v2789_v30  ;;  %v1109_v15 = vpop.f32.mrb[2].mxu1 }
 0x229   : > { %v1110_v16 = vadd.f32 %v1109_v15, %v2786_v14  ;;  %v1111_v43 = vpop.f32.mrb[3].mxu1 }
 0x22a   : > { %1627 = vst [vmem:[%s2797_s17 + $0xc] sm:$0xff] %v1905_v19  ;;  %v1951_v44 = vpack.c.bf16 %v1108_v45, %v1106_v46  ;;  %v1112_v10 = vadd.f32 %v1111_v43, %v2789_v30  ;;  %v995_v48 = vpop.f32.mrb[4].mxu0  ;;  %v818_v19 = vsub.s32 2, %v2776_v22 }
 0x22b   : > { %v996_v7 = vadd.f32 %v995_v48, %v2786_v14  ;;  %v997_v63 = vpop.f32.mrb[5].mxu0 }
 0x22c   : > { %1673 = vst [vmem:[%s2797_s17 + $0x120] sm:$0xff] %v1951_v44  ;;  %v1953_v25 = vpack.c.bf16 %v1112_v10, %v1110_v16  ;;  %v998_v40 = vadd.f32 %v997_v63, %v2789_v30  ;;  %v999_v27 = vpop.f32.mrb[6].mxu0  ;;  %v2846_v22 = vrot.slane %v2782_v60, %v818_v19 }
 0x22d   : > { %v1000_v51 = vadd.f32 %v999_v27, %v2786_v14  ;;  %v1001_v0 = vpop.f32.mrb[7].mxu0 }
 0x22e   : > { %1675 = vst [vmem:[%s2797_s17 + $0x12c] sm:$0xff] %v1953_v25  ;;  %v1907_v53 = vpack.c.bf16 %v998_v40, %v996_v7  ;;  %v1002_v11 = vadd.f32 %v1001_v0, %v2789_v30  ;;  %v1115_v3 = vpop.f32.mrb[4].mxu1 }
 0x22f   : > { %v1116_v56 = vadd.f32 %v1115_v3, %v2786_v14  ;;  %v1117_v57 = vpop.f32.mrb[5].mxu1 }
 0x230   : > { %1629 = vst [vmem:[%s2797_s17 + $0x18] sm:$0xff] %v1907_v53  ;;  %v1909_v21 = vpack.c.bf16 %v1002_v11, %v1000_v51  ;;  %v1118_v9 = vadd.f32 %v1117_v57, %v2789_v30  ;;  %v1119_v12 = vpop.f32.mrb[6].mxu1 }
 0x231   : > { %v1120_v49 = vadd.f32 %v1119_v12, %v2786_v14  ;;  %v1121_v50 = vpop.f32.mrb[7].mxu1 }
 0x232   : > { %1631 = vst [vmem:[%s2797_s17 + $0x24] sm:$0xff] %v1909_v21  ;;  %v1955_v17 = vpack.c.bf16 %v1118_v9, %v1116_v56  ;;  %v1122_v23 = vadd.f32 %v1121_v50, %v2789_v30  ;;  %v1005_v20 = vpop.f32.mrb[8].mxu0 }
 0x233   : > { %v1006_v47 = vadd.f32 %v1005_v20, %v2786_v14  ;;  %v1007_v59 = vpop.f32.mrb[9].mxu0 }
 0x234   : > { %1677 = vst [vmem:[%s2797_s17 + $0x138] sm:$0xff] %v1955_v17  ;;  %v1957_v32 = vpack.c.bf16 %v1122_v23, %v1120_v49  ;;  %v1008_v61 = vadd.f32 %v1007_v59, %v2789_v30  ;;  %v1009_v26 = vpop.f32.mrb[10].mxu0 }
 0x235   : > { %v1010_v13 = vadd.f32 %v1009_v26, %v2786_v14  ;;  %v1011_v33 = vpop.f32.mrb[11].mxu0 }
 0x236   : > { %1679 = vst [vmem:[%s2797_s17 + $0x144] sm:$0xff] %v1957_v32  ;;  %v1911_v58 = vpack.c.bf16 %v1008_v61, %v1006_v47  ;;  %v1012_v42 = vadd.f32 %v1011_v33, %v2789_v30  ;;  %v1125_v1 = vpop.f32.mrb[8].mxu1 }
 0x237   : > { %v1126_v6 = vadd.f32 %v1125_v1, %v2786_v14  ;;  %v1127_v2 = vpop.f32.mrb[9].mxu1 }
 0x238   : > { %1633 = vst [vmem:[%s2797_s17 + $0x30] sm:$0xff] %v1911_v58  ;;  %v1913_v18 = vpack.c.bf16 %v1012_v42, %v1010_v13  ;;  %v1128_v54 = vadd.f32 %v1127_v2, %v2789_v30  ;;  %v1129_v4 = vpop.f32.mrb[10].mxu1 }
 0x239   : > { %v1130_v39 = vadd.f32 %v1129_v4, %v2786_v14  ;;  %v1131_v28 = vpop.f32.mrb[11].mxu1 }
 0x23a   : > { %1635 = vst [vmem:[%s2797_s17 + $0x3c] sm:$0xff] %v1913_v18  ;;  %v1959_v29 = vpack.c.bf16 %v1128_v54, %v1126_v6  ;;  %v1132_v5 = vadd.f32 %v1131_v28, %v2789_v30  ;;  %v1015_v31 = vpop.f32.mrb[12].mxu0 }
 0x23b   : > { %v1016_v35 = vadd.f32 %v1015_v31, %v2786_v14  ;;  %v1017_v8 = vpop.f32.mrb[13].mxu0 }
 0x23c   : > { %1681 = vst [vmem:[%s2797_s17 + $0x150] sm:$0xff] %v1959_v29  ;;  %v1961_v38 = vpack.c.bf16 %v1132_v5, %v1130_v39  ;;  %v1018_v55 = vadd.f32 %v1017_v8, %v2789_v30  ;;  %v1019_v34 = vpop.f32.mrb[14].mxu0 }
 0x23d   : > { %v1020_v36 = vadd.f32 %v1019_v34, %v2786_v14  ;;  %v1021_v37 = vpop.f32.mrb[15].mxu0 }
 0x23e   : > { %1683 = vst [vmem:[%s2797_s17 + $0x15c] sm:$0xff] %v1961_v38  ;;  %v1915_v24 = vpack.c.bf16 %v1018_v55, %v1016_v35  ;;  %v1022_v52 = vadd.f32 %v1021_v37, %v2789_v30  ;;  %v1135_v62 = vpop.f32.mrb[12].mxu1 }
 0x23f   : > { %v1136_v46 = vadd.f32 %v1135_v62, %v2786_v14  ;;  %v1137_v41 = vpop.f32.mrb[13].mxu1 }
 0x240   : > { %1637 = vst [vmem:[%s2797_s17 + $0x48] sm:$0xff] %v1915_v24  ;;  %v1917_v45 = vpack.c.bf16 %v1022_v52, %v1020_v36  ;;  %v1138_v15 = vadd.f32 %v1137_v41, %v2789_v30  ;;  %v1139_v16 = vpop.f32.mrb[14].mxu1 }
 0x241   : > { %v1140_v43 = vadd.f32 %v1139_v16, %v2786_v14  ;;  %v1141_v44 = vpop.f32.mrb[15].mxu1 }
 0x242   : > { %1639 = vst [vmem:[%s2797_s17 + $0x54] sm:$0xff] %v1917_v45  ;;  %v1963_v10 = vpack.c.bf16 %v1138_v15, %v1136_v46  ;;  %v1142_v48 = vadd.f32 %v1141_v44, %v2789_v30  ;;  %v1025_v7 = vpop.f32.mrb[16].mxu0 }
 0x243   : > { %v1026_v63 = vadd.f32 %v1025_v7, %v2786_v14  ;;  %v1027_v25 = vpop.f32.mrb[17].mxu0 }
 0x244   : > { %1685 = vst [vmem:[%s2797_s17 + $0x168] sm:$0xff] %v1963_v10  ;;  %v1965_v40 = vpack.c.bf16 %v1142_v48, %v1140_v43  ;;  %v1028_v27 = vadd.f32 %v1027_v25, %v2789_v30  ;;  %v1029_v51 = vpop.f32.mrb[18].mxu0 }
 0x245   : > { %v1030_v0 = vadd.f32 %v1029_v51, %v2786_v14  ;;  %v1031_v53 = vpop.f32.mrb[19].mxu0 }
 0x246   : > { %1687 = vst [vmem:[%s2797_s17 + $0x174] sm:$0xff] %v1965_v40  ;;  %v1919_v11 = vpack.c.bf16 %v1028_v27, %v1026_v63  ;;  %v1032_v3 = vadd.f32 %v1031_v53, %v2789_v30  ;;  %v2009_v56 = vpop.f32.mrb[16].mxu1 }
 0x247   : > { %v1187_v57 = vadd.f32 %v2009_v56, %v2846_v22  ;;  %v1178_v21 = vpop.f32.mrb[17].mxu1 }
 0x248   : > { %1641 = vst [vmem:[%s2797_s17 + $0x60] sm:$0xff] %v1919_v11  ;;  %v1921_v60 = vpack.c.bf16 %v1032_v3, %v1030_v0  ;;  %v1179_v9 = vadd.f32 %v1178_v21, %v2846_v22  ;;  %v2010_v12 = vpop.f32.mrb[18].mxu1 }
 0x249   : > { %v1908_v49 = vpack.c.bf16 %v1187_v57, %v1187_v57  ;;  %v1190_v50 = vadd.f32 %v2010_v12, %v2846_v22  ;;  %v1181_v17 = vpop.f32.mrb[19].mxu1 }
 0x24a   : > { %1643 = vst [vmem:[%s2797_s17 + $0x6c] sm:$0xff] %v1921_v60  ;;  %v1904_v23 = vpack.c.bf16 %v1179_v9, %v1179_v9  ;;  %v1182_v20 = vadd.f32 %v1181_v17, %v2846_v22  ;;  %v1035_v47 = vpop.f32.mrb[20].mxu0 }
 0x24b   : > { %1630 = vst [vmem:[%s2797_s17 + $0x20] sm:$0xf] %v1908_v49  ;;  %v1910_v59 = vpack.c.bf16 %v1190_v50, %v1190_v50  ;;  %v1036_v32 = vadd.f32 %v1035_v47, %v2786_v14  ;;  %v1037_v61 = vpop.f32.mrb[21].mxu0 }
 0x24c   : > { %1626 = vst [vmem:[%s2797_s17 + $0x8] sm:$0xf] %v1904_v23  ;;  %v1906_v26 = vpack.c.bf16 %v1182_v20, %v1182_v20  ;;  %v1038_v13 = vadd.f32 %v1037_v61, %v2789_v30  ;;  %v1039_v33 = vpop.f32.mrb[22].mxu0 }
 0x24d   : > { %1632 = vst [vmem:[%s2797_s17 + $0x2c] sm:$0xf] %v1910_v59  ;;  %v1040_v58 = vadd.f32 %v1039_v33, %v2786_v14  ;;  %v1041_v42 = vpop.f32.mrb[23].mxu0 }
 0x24e   : > { %1628 = vst [vmem:[%s2797_s17 + $0x14] sm:$0xf] %v1906_v26  ;;  %v1923_v1 = vpack.c.bf16 %v1038_v13, %v1036_v32  ;;  %v1042_v6 = vadd.f32 %v1041_v42, %v2789_v30  ;;  %v2013_v2 = vpop.f32.mrb[20].mxu1 }
 0x24f   : > { %v1203_v18 = vadd.f32 %v2013_v2, %v2846_v22  ;;  %v1194_v54 = vpop.f32.mrb[21].mxu1 }
 0x250   : > { %1645 = vst [vmem:[%s2797_s17 + $0x78] sm:$0xff] %v1923_v1  ;;  %v1925_v4 = vpack.c.bf16 %v1042_v6, %v1040_v58  ;;  %v1195_v39 = vadd.f32 %v1194_v54, %v2846_v22  ;;  %v2014_v28 = vpop.f32.mrb[22].mxu1 }
 0x251   : > { %v1916_v29 = vpack.c.bf16 %v1203_v18, %v1203_v18  ;;  %v1206_v5 = vadd.f32 %v2014_v28, %v2846_v22  ;;  %v1197_v31 = vpop.f32.mrb[23].mxu1 }
 0x252   : > { %1647 = vst [vmem:[%s2797_s17 + $0x84] sm:$0xff] %v1925_v4  ;;  %v1912_v35 = vpack.c.bf16 %v1195_v39, %v1195_v39  ;;  %v1198_v8 = vadd.f32 %v1197_v31, %v2846_v22  ;;  %v1045_v38 = vpop.f32.mrb[24].mxu0 }
 0x253   : > { %1638 = vst [vmem:[%s2797_s17 + $0x50] sm:$0xf] %v1916_v29  ;;  %v1918_v55 = vpack.c.bf16 %v1206_v5, %v1206_v5  ;;  %v1046_v34 = vadd.f32 %v1045_v38, %v2786_v14  ;;  %v1047_v36 = vpop.f32.mrb[25].mxu0 }
 0x254   : > { %1634 = vst [vmem:[%s2797_s17 + $0x38] sm:$0xf] %v1912_v35  ;;  %v1914_v37 = vpack.c.bf16 %v1198_v8, %v1198_v8  ;;  %v1048_v24 = vadd.f32 %v1047_v36, %v2789_v30  ;;  %v1049_v52 = vpop.f32.mrb[26].mxu0 }
 0x255   : > { %1640 = vst [vmem:[%s2797_s17 + $0x5c] sm:$0xf] %v1918_v55  ;;  %v1050_v62 = vadd.f32 %v1049_v52, %v2786_v14  ;;  %v1051_v46 = vpop.f32.mrb[27].mxu0 }
 0x256   : > { %1636 = vst [vmem:[%s2797_s17 + $0x44] sm:$0xf] %v1914_v37  ;;  %v1927_v41 = vpack.c.bf16 %v1048_v24, %v1046_v34  ;;  %v1052_v19 = vadd.f32 %v1051_v46, %v2789_v30  ;;  %v2017_v45 = vpop.f32.mrb[24].mxu1 }
 0x257   : > { %v1219_v15 = vadd.f32 %v2017_v45, %v2846_v22  ;;  %v1210_v16 = vpop.f32.mrb[25].mxu1 }
 0x258   : > { %1649 = vst [vmem:[%s2797_s17 + $0x90] sm:$0xff] %v1927_v41  ;;  %v1929_v43 = vpack.c.bf16 %v1052_v19, %v1050_v62  ;;  %v1211_v44 = vadd.f32 %v1210_v16, %v2846_v22  ;;  %v2018_v10 = vpop.f32.mrb[26].mxu1 }
 0x259   : > { %v1924_v48 = vpack.c.bf16 %v1219_v15, %v1219_v15  ;;  %v1222_v7 = vadd.f32 %v2018_v10, %v2846_v22  ;;  %v1213_v63 = vpop.f32.mrb[27].mxu1 }
 0x25a   : > { %1651 = vst [vmem:[%s2797_s17 + $0x9c] sm:$0xff] %v1929_v43  ;;  %v1920_v25 = vpack.c.bf16 %v1211_v44, %v1211_v44  ;;  %v1214_v40 = vadd.f32 %v1213_v63, %v2846_v22  ;;  %v1055_v27 = vpop.f32.mrb[28].mxu0 }
 0x25b   : > { %1646 = vst [vmem:[%s2797_s17 + $0x80] sm:$0xf] %v1924_v48  ;;  %v1926_v51 = vpack.c.bf16 %v1222_v7, %v1222_v7  ;;  %v1056_v0 = vadd.f32 %v1055_v27, %v2786_v14  ;;  %v1057_v53 = vpop.f32.mrb[29].mxu0 }
 0x25c   : > { %1642 = vst [vmem:[%s2797_s17 + $0x68] sm:$0xf] %v1920_v25  ;;  %v1922_v11 = vpack.c.bf16 %v1214_v40, %v1214_v40  ;;  %v1058_v3 = vadd.f32 %v1057_v53, %v2789_v30  ;;  %v1059_v56 = vpop.f32.mrb[30].mxu0 }
 0x25d   : > { %1648 = vst [vmem:[%s2797_s17 + $0x8c] sm:$0xf] %v1926_v51  ;;  %v1060_v57 = vadd.f32 %v1059_v56, %v2786_v14  ;;  %v1061_v21 = vpop.f32.mrb[31].mxu0 }
 0x25e   : > { %1644 = vst [vmem:[%s2797_s17 + $0x74] sm:$0xf] %v1922_v11  ;;  %v1931_v60 = vpack.c.bf16 %v1058_v3, %v1056_v0  ;;  %v1062_v9 = vadd.f32 %v1061_v21, %v2789_v30  ;;  %v2021_v12 = vpop.f32.mrb[28].mxu1 }
 0x25f   : > { %v1235_v49 = vadd.f32 %v2021_v12, %v2846_v22  ;;  %v1226_v50 = vpop.f32.mrb[29].mxu1 }
 0x260   : > { %1653 = vst [vmem:[%s2797_s17 + $0xa8] sm:$0xff] %v1931_v60  ;;  %v1933_v17 = vpack.c.bf16 %v1062_v9, %v1060_v57  ;;  %v1227_v23 = vadd.f32 %v1226_v50, %v2846_v22  ;;  %v2022_v20 = vpop.f32.mrb[30].mxu1 }
 0x261   : > { %v1932_v47 = vpack.c.bf16 %v1235_v49, %v1235_v49  ;;  %v1238_v59 = vadd.f32 %v2022_v20, %v2846_v22  ;;  %v1229_v32 = vpop.f32.mrb[31].mxu1 }
 0x262   : > { %1655 = vst [vmem:[%s2797_s17 + $0xb4] sm:$0xff] %v1933_v17  ;;  %v1928_v61 = vpack.c.bf16 %v1227_v23, %v1227_v23  ;;  %v1230_v26 = vadd.f32 %v1229_v32, %v2846_v22  ;;  %v1065_v13 = vpop.f32.mrb[32].mxu0 }
 0x263   : > { %1654 = vst [vmem:[%s2797_s17 + $0xb0] sm:$0xf] %v1932_v47  ;;  %v1934_v33 = vpack.c.bf16 %v1238_v59, %v1238_v59  ;;  %v1066_v58 = vadd.f32 %v1065_v13, %v2786_v14  ;;  %v1067_v42 = vpop.f32.mrb[33].mxu0 }
 0x264   : > { %1650 = vst [vmem:[%s2797_s17 + $0x98] sm:$0xf] %v1928_v61  ;;  %v1930_v1 = vpack.c.bf16 %v1230_v26, %v1230_v26  ;;  %v1068_v6 = vadd.f32 %v1067_v42, %v2789_v30  ;;  %v1069_v2 = vpop.f32.mrb[34].mxu0 }
 0x265   : > { %1656 = vst [vmem:[%s2797_s17 + $0xbc] sm:$0xf] %v1934_v33  ;;  %v1070_v18 = vadd.f32 %v1069_v2, %v2786_v14  ;;  %v1071_v54 = vpop.f32.mrb[35].mxu0 }
 0x266   : > { %1652 = vst [vmem:[%s2797_s17 + $0xa4] sm:$0xf] %v1930_v1  ;;  %v1935_v4 = vpack.c.bf16 %v1068_v6, %v1066_v58  ;;  %v1072_v39 = vadd.f32 %v1071_v54, %v2789_v30  ;;  %v2025_v28 = vpop.f32.mrb[32].mxu1 }
 0x267   : > { %v1251_v29 = vadd.f32 %v2025_v28, %v2846_v22  ;;  %v1242_v5 = vpop.f32.mrb[33].mxu1 }
 0x268   : > { %1657 = vst [vmem:[%s2797_s17 + $0xc0] sm:$0xff] %v1935_v4  ;;  %v1937_v31 = vpack.c.bf16 %v1072_v39, %v1070_v18  ;;  %v1243_v35 = vadd.f32 %v1242_v5, %v2846_v22  ;;  %v2026_v8 = vpop.f32.mrb[34].mxu1 }
 0x269   : > { %v1940_v38 = vpack.c.bf16 %v1251_v29, %v1251_v29  ;;  %v1254_v55 = vadd.f32 %v2026_v8, %v2846_v22  ;;  %v1245_v34 = vpop.f32.mrb[35].mxu1 }
 0x26a   : > { %1659 = vst [vmem:[%s2797_s17 + $0xcc] sm:$0xff] %v1937_v31  ;;  %v1936_v36 = vpack.c.bf16 %v1243_v35, %v1243_v35  ;;  %v1246_v37 = vadd.f32 %v1245_v34, %v2846_v22  ;;  %v1075_v24 = vpop.f32.mrb[36].mxu0 }
 0x26b   : > { %1662 = vst [vmem:[%s2797_s17 + $0xe0] sm:$0xf] %v1940_v38  ;;  %v1942_v52 = vpack.c.bf16 %v1254_v55, %v1254_v55  ;;  %v1076_v62 = vadd.f32 %v1075_v24, %v2786_v14  ;;  %v1077_v46 = vpop.f32.mrb[37].mxu0 }
 0x26c   : > { %1658 = vst [vmem:[%s2797_s17 + $0xc8] sm:$0xf] %v1936_v36  ;;  %v1938_v41 = vpack.c.bf16 %v1246_v37, %v1246_v37  ;;  %v1078_v19 = vadd.f32 %v1077_v46, %v2789_v30  ;;  %v1079_v45 = vpop.f32.mrb[38].mxu0 }
 0x26d   : > { %1664 = vst [vmem:[%s2797_s17 + $0xec] sm:$0xf] %v1942_v52  ;;  %v1080_v15 = vadd.f32 %v1079_v45, %v2786_v14  ;;  %v1081_v16 = vpop.f32.mrb[39].mxu0 }
 0x26e   : > { %1660 = vst [vmem:[%s2797_s17 + $0xd4] sm:$0xf] %v1938_v41  ;;  %v1939_v43 = vpack.c.bf16 %v1078_v19, %v1076_v62  ;;  %v1082_v44 = vadd.f32 %v1081_v16, %v2789_v30  ;;  %v2029_v10 = vpop.f32.mrb[36].mxu1 }
 0x26f   : > { %v1267_v48 = vadd.f32 %v2029_v10, %v2846_v22  ;;  %v1258_v7 = vpop.f32.mrb[37].mxu1 }
 0x270   : > { %1661 = vst [vmem:[%s2797_s17 + $0xd8] sm:$0xff] %v1939_v43  ;;  %v1941_v63 = vpack.c.bf16 %v1082_v44, %v1080_v15  ;;  %v1259_v25 = vadd.f32 %v1258_v7, %v2846_v22  ;;  %v2030_v40 = vpop.f32.mrb[38].mxu1 }
 0x271   : > { %v1948_v27 = vpack.c.bf16 %v1267_v48, %v1267_v48  ;;  %v1270_v51 = vadd.f32 %v2030_v40, %v2846_v22  ;;  %v1261_v0 = vpop.f32.mrb[39].mxu1 }
 0x272   : > { %1663 = vst [vmem:[%s2797_s17 + $0xe4] sm:$0xff] %v1941_v63  ;;  %v1944_v53 = vpack.c.bf16 %v1259_v25, %v1259_v25  ;;  %v1262_v11 = vadd.f32 %v1261_v0, %v2846_v22  ;;  %v1085_v3 = vpop.f32.mrb[40].mxu0 }
 0x273   : > { %1670 = vst [vmem:[%s2797_s17 + $0x110] sm:$0xf] %v1948_v27  ;;  %v1950_v56 = vpack.c.bf16 %v1270_v51, %v1270_v51  ;;  %v1086_v57 = vadd.f32 %v1085_v3, %v2786_v14  ;;  %v1087_v21 = vpop.f32.mrb[41].mxu0 }
 0x274   : > { %1666 = vst [vmem:[%s2797_s17 + $0xf8] sm:$0xf] %v1944_v53  ;;  %v1946_v60 = vpack.c.bf16 %v1262_v11, %v1262_v11  ;;  %v1088_v9 = vadd.f32 %v1087_v21, %v2789_v30  ;;  %v1089_v12 = vpop.f32.mrb[42].mxu0 }
 0x275   : > { %1672 = vst [vmem:[%s2797_s17 + $0x11c] sm:$0xf] %v1950_v56  ;;  %v1090_v49 = vadd.f32 %v1089_v12, %v2786_v14  ;;  %v1091_v50 = vpop.f32.mrb[43].mxu0 }
 0x276   : > { %1668 = vst [vmem:[%s2797_s17 + $0x104] sm:$0xf] %v1946_v60  ;;  %v1943_v17 = vpack.c.bf16 %v1088_v9, %v1086_v57  ;;  %v1092_v23 = vadd.f32 %v1091_v50, %v2789_v30  ;;  %v2033_v20 = vpop.f32.mrb[40].mxu1 }
 0x277   : > { %v1283_v47 = vadd.f32 %v2033_v20, %v2846_v22  ;;  %v1274_v59 = vpop.f32.mrb[41].mxu1 }
 0x278   : > { %1665 = vst [vmem:[%s2797_s17 + $0xf0] sm:$0xff] %v1943_v17  ;;  %v1945_v32 = vpack.c.bf16 %v1092_v23, %v1090_v49  ;;  %v1275_v61 = vadd.f32 %v1274_v59, %v2846_v22  ;;  %v2034_v26 = vpop.f32.mrb[42].mxu1 }
 0x279   : > { %v1956_v13 = vpack.c.bf16 %v1283_v47, %v1283_v47  ;;  %v1286_v33 = vadd.f32 %v2034_v26, %v2846_v22  ;;  %v1277_v58 = vpop.f32.mrb[43].mxu1 }
 0x27a   : > { %1667 = vst [vmem:[%s2797_s17 + $0xfc] sm:$0xff] %v1945_v32  ;;  %v1952_v42 = vpack.c.bf16 %v1275_v61, %v1275_v61  ;;  %v1278_v1 = vadd.f32 %v1277_v58, %v2846_v22  ;;  %v1095_v6 = vpop.f32.mrb[44].mxu0 }
 0x27b   : > { %1678 = vst [vmem:[%s2797_s17 + $0x140] sm:$0xf] %v1956_v13  ;;  %v1958_v2 = vpack.c.bf16 %v1286_v33, %v1286_v33  ;;  %v1096_v18 = vadd.f32 %v1095_v6, %v2786_v14  ;;  %v1097_v54 = vpop.f32.mrb[45].mxu0 }
 0x27c   : > { %1674 = vst [vmem:[%s2797_s17 + $0x128] sm:$0xf] %v1952_v42  ;;  %v1954_v4 = vpack.c.bf16 %v1278_v1, %v1278_v1  ;;  %v1098_v39 = vadd.f32 %v1097_v54, %v2789_v30  ;;  %v1099_v28 = vpop.f32.mrb[46].mxu0 }
 0x27d   : > { %1680 = vst [vmem:[%s2797_s17 + $0x14c] sm:$0xf] %v1958_v2  ;;  %v1100_v29 = vadd.f32 %v1099_v28, %v2786_v14  ;;  %v1101_v5 = vpop.f32.mrb[47].mxu0 }
 0x27e   : > { %1676 = vst [vmem:[%s2797_s17 + $0x134] sm:$0xf] %v1954_v4  ;;  %v1947_v31 = vpack.c.bf16 %v1098_v39, %v1096_v18  ;;  %v1102_v35 = vadd.f32 %v1101_v5, %v2789_v30  ;;  %v2037_v8 = vpop.f32.mrb[44].mxu1 }
 0x27f   : > { %v1299_v38 = vadd.f32 %v2037_v8, %v2846_v22  ;;  %v1290_v55 = vpop.f32.mrb[45].mxu1 }
 0x280   : > { %1669 = vst [vmem:[%s2797_s17 + $0x108] sm:$0xff] %v1947_v31  ;;  %v1949_v34 = vpack.c.bf16 %v1102_v35, %v1100_v29  ;;  %v1291_v36 = vadd.f32 %v1290_v55, %v2846_v22  ;;  %v2038_v37 = vpop.f32.mrb[46].mxu1 }
 0x281   : > { %v1964_v24 = vpack.c.bf16 %v1299_v38, %v1299_v38  ;;  %v1302_v14 = vadd.f32 %v2038_v37, %v2846_v22  ;;  %v1293_v52 = vpop.f32.mrb[47].mxu1 }
 0x282   : > { %1671 = vst [vmem:[%s2797_s17 + $0x114] sm:$0xff] %v1949_v34  ;;  %v1960_v62 = vpack.c.bf16 %v1291_v36, %v1291_v36  ;;  %v1294_v30 = vadd.f32 %v1293_v52, %v2846_v22 }
 0x283   : > { %1686 = vst [vmem:[%s2797_s17 + $0x170] sm:$0xf] %v1964_v24  ;;  %v1966_v46 = vpack.c.bf16 %v1302_v14, %v1302_v14 }
 0x284   : > { %1682 = vst [vmem:[%s2797_s17 + $0x158] sm:$0xf] %v1960_v62  ;;  %v1962_v41 = vpack.c.bf16 %v1294_v30, %v1294_v30 }
 0x285   : > { %1688 = vst [vmem:[%s2797_s17 + $0x17c] sm:$0xf] %v1966_v46 }
 0x286   : > { %1684 = vst [vmem:[%s2797_s17 + $0x164] sm:$0xf] %v1962_v41 }
 0x287 PF: > { %s15_s20 = sadd.s32 1, %s2199_s20   ;;  %s2976_s18 = smov %s2195_s19 }
 0x288   : > { %p12_p5 = scmp.ge.s32.totalorder %s15_s20, 4   ;;  %s2977_s19 = smov %s2979_s21 }
 0x28a   :  { %14 = sbr.rel (!%p12_p5) target bundleno = 2 (0x2), region = 76 }

// kernel: gpt_forward.12
= control target key start
LH: loop header
LB: loop body
LE: loop exit
PB: predicated region body
PF: predicated region fallthrough
CT: control target
= control target key end

     0   :  { %s2184_s12 = smov 0   ;;  %s2186_s13 = smov 0   ;;  %s2820_s0 = inlined_call_operand.vmem [shape: bf16[8,256,32], index: 0, kind: input, shape index: {}]   ;;  %s2821_s1 = inlined_call_operand.vmem [shape: bf16[8,256,32], index: 1, kind: input, shape index: {}]   ;;  %s2822_s2 = inlined_call_operand.vmem [shape: bf16[8,256,32], index: 2, kind: input, shape index: {}]   ;;  %s2823_s3 = inlined_call_operand.vmem [shape: bf16[8,256,32], index: 3, kind: output, shape index: {}]  }
   0x1   :  { %s2188_s14 = smov 0   ;;  %s2190_s15 = smov 0  }
   0x2   :  { %s2192_s16 = smov 0   ;;  %s2194_s17 = smov 0  }
   0x3   :  { %s2196_s18 = smov 0  }
   0x4 LB: > { %s25_s19 = sadd.s32 1, %s2146_s15  ;;  %s28_s20 = sadd.s32 1, %s2150_s16  ;;  %s2158_s18 = sphi %s2196_s18, %s13_s18   ;;  %s2154_s17 = sphi %s2194_s17, %s2829_s17   ;;  %s2150_s16 = sphi %s2192_s16, %s2828_s16   ;;  %s2146_s15 = sphi %s2190_s15, %s2827_s15   ;;  %s2142_s14 = sphi %s2188_s14, %s2826_s14   ;;  %s2138_s13 = sphi %s2186_s13, %s2825_s13   ;;  %s2134_s12 = sphi %s2184_s12, %s2824_s12  }
   0x5   : > { %p26_p0 = scmp.ge.s32.totalorder %s25_s19, 2  ;;  %p1709_p1 = scmp.ge.s32.totalorder %s2158_s18, 1 }
   0x6   : > { %p199_p2 = scmp.lt.s32.totalorder %s2158_s18, 33  ;;  %s32_s21 = sadd.s32 1, %s2154_s17 }
   0x7   : > { %s2831_s19 = smov (%p26_p0, %s25_s19), 0  ;;  %s2833_s20 = smov (!%p26_p0, %s28_s20), %s2150_s16 }
   0x8   : > { %p200_p3 = pnand %p1709_p1, %p199_p2  ;;  %p30_p4 = scmp.ge.s32.totalorder %s2833_s20, 2 }
   0x9   : > { %s1710_s22 = sshll.u32 (!%p200_p3), %s2138_s13, 4  ;;  %p250_p6 = scmp.lt.s32.totalorder (!%p200_p3), %s2142_s14, 7 }
   0xa   : > { %s2835_s20 = smov (%p30_p4, %s2833_s20), 0  ;;  %s2837_s21 = smov (!%p30_p4, %s32_s21), %s2154_s17 }
   0xb   : > { %p34_p5 = scmp.ge.s32.totalorder %s2837_s21, 8  ;;  %203 = sbr.rel (%p200_p3) target bundleno = 1046 (0x416), region = 32 }
   0xc   : > { %p252_p7 = scmp.lt.s32.totalorder (!%p200_p3), %s1710_s22, 31  ;;  %s1713_s23 = sshll.u32 (!%p200_p3), %s2134_s12, 4 }
   0xd   : > { %s2839_s21 = smov (%p34_p5, %s2837_s21), 0  ;;  %p262_p8 = scmp.lt.s32.totalorder (!%p200_p3), %s1713_s23, 31 }
   0xe   : > { %p1722_p9 = scmp.ne.s32.totalorder (!%p200_p3), %s2134_s12, 0 }
  0x12   : > { %s2841_s14 = smov (!%p250_p6, %s2142_s14), 7  ;;  %s2843_s22 = smov (!%p252_p7, %s1710_s22), 31 }
  0x13   : > { %s1711_s24 = sshll.u32 %s2841_s14, 5  ;;  %s2845_s23 = smov (!%p262_p8, %s1713_s23), 31  ;;  %vm294_vm0 = vcmask (!%p1722_p9), 7168   ;;  %vm327_vm1 = vcmask (!%p1722_p9), 261120   ;;  %v2160_v0 = vmov (!%p1722_p9), -inf   ;;  %v2161_v1 = vmov (!%p1722_p9), 0.0  }
  0x14   : > { %s255_s25 = sadd.s32 %s1711_s24, %s2843_s22  ;;  %s265_s6 = sadd.s32 %s1711_s24, %s2845_s23  ;;  %295 = vst.msk [vmem:[#allocation2] sm:$0xff] (!%p1722_p9), %vm294_vm0, %v2160_v0  ;;  %296 = vst.msk [vmem:[#allocation2 + $0x8] sm:$0xff] (!%p1722_p9), %vm294_vm0, %v2160_v0 }
  0x15   : > { %s1712_s26 = sshll.u32 %s255_s25, 2  ;;  %s1715_s7 = sshll.u32 %s265_s6, 2  ;;  %297 = vst.msk [vmem:[#allocation2 + $0x10] sm:$0xff] (!%p1722_p9), %vm294_vm0, %v2160_v0  ;;  %298 = vst.msk [vmem:[#allocation2 + $0x18] sm:$0xff] (!%p1722_p9), %vm294_vm0, %v2160_v0 }
  0x16   : > { %s2235_s29 = scalar_lea.vmem %s2820_s0, %s1712_s26  ;;  %s2240_s5 = scalar_lea.vmem %s2823_s3, %s1712_s26  ;;  %299 = vst.msk [vmem:[#allocation2 + $0x20] sm:$0xff] (!%p1722_p9), %vm294_vm0, %v2160_v0  ;;  %300 = vst.msk [vmem:[#allocation2 + $0x28] sm:$0xff] (!%p1722_p9), %vm294_vm0, %v2160_v0 }
  0x17   : > { %s2245_s10 = scalar_lea.vmem %s2821_s1, %s1715_s7  ;;  %s2250_s22 = scalar_lea.vmem %s2822_s2, %s1715_s7  ;;  %301 = vst.msk [vmem:[#allocation2 + $0x30] sm:$0xff] (!%p1722_p9), %vm294_vm0, %v2160_v0  ;;  %302 = vst.msk [vmem:[#allocation2 + $0x38] sm:$0xff] (!%p1722_p9), %vm294_vm0, %v2160_v0 }
  0x18   : > { %293 = sbr.rel (%p1722_p9) target bundleno = 44 (0x2c), region = 36  ;;  %303 = vst.msk [vmem:[#allocation2 + $0x40] sm:$0xff] (!%p1722_p9), %vm294_vm0, %v2160_v0  ;;  %304 = vst.msk [vmem:[#allocation2 + $0x48] sm:$0xff] (!%p1722_p9), %vm294_vm0, %v2160_v0 }
  0x19   : > { %305 = vst.msk [vmem:[#allocation2 + $0x50] sm:$0xff] (!%p1722_p9), %vm294_vm0, %v2160_v0  ;;  %306 = vst.msk [vmem:[#allocation2 + $0x58] sm:$0xff] (!%p1722_p9), %vm294_vm0, %v2160_v0 }
  0x1a   : > { %307 = vst.msk [vmem:[#allocation2 + $0x60] sm:$0xff] (!%p1722_p9), %vm294_vm0, %v2160_v0  ;;  %308 = vst.msk [vmem:[#allocation2 + $0x68] sm:$0xff] (!%p1722_p9), %vm294_vm0, %v2160_v0 }
  0x1b   : > { %309 = vst.msk [vmem:[#allocation2 + $0x70] sm:$0xff] (!%p1722_p9), %vm294_vm0, %v2160_v0  ;;  %310 = vst.msk [vmem:[#allocation2 + $0x78] sm:$0xff] (!%p1722_p9), %vm294_vm0, %v2160_v0 }
  0x1c   : > { %311 = vst.msk [vmem:[#allocation3] sm:$0xff] (!%p1722_p9), %vm294_vm0, %v2161_v1  ;;  %312 = vst.msk [vmem:[#allocation3 + $0x8] sm:$0xff] (!%p1722_p9), %vm294_vm0, %v2161_v1 }
  0x1d   : > { %313 = vst.msk [vmem:[#allocation3 + $0x10] sm:$0xff] (!%p1722_p9), %vm294_vm0, %v2161_v1  ;;  %314 = vst.msk [vmem:[#allocation3 + $0x18] sm:$0xff] (!%p1722_p9), %vm294_vm0, %v2161_v1 }
  0x1e   : > { %315 = vst.msk [vmem:[#allocation3 + $0x20] sm:$0xff] (!%p1722_p9), %vm294_vm0, %v2161_v1  ;;  %316 = vst.msk [vmem:[#allocation3 + $0x28] sm:$0xff] (!%p1722_p9), %vm294_vm0, %v2161_v1 }
  0x1f   : > { %317 = vst.msk [vmem:[#allocation3 + $0x30] sm:$0xff] %vm294_vm0, %v2161_v1  ;;  %318 = vst.msk [vmem:[#allocation3 + $0x38] sm:$0xff] %vm294_vm0, %v2161_v1 }
  0x20   : > { %319 = vst.msk [vmem:[#allocation3 + $0x40] sm:$0xff] %vm294_vm0, %v2161_v1  ;;  %320 = vst.msk [vmem:[#allocation3 + $0x48] sm:$0xff] %vm294_vm0, %v2161_v1 }
  0x21   : > { %321 = vst.msk [vmem:[#allocation3 + $0x50] sm:$0xff] %vm294_vm0, %v2161_v1  ;;  %322 = vst.msk [vmem:[#allocation3 + $0x58] sm:$0xff] %vm294_vm0, %v2161_v1 }
  0x22   : > { %323 = vst.msk [vmem:[#allocation3 + $0x60] sm:$0xff] %vm294_vm0, %v2161_v1  ;;  %324 = vst.msk [vmem:[#allocation3 + $0x68] sm:$0xff] %vm294_vm0, %v2161_v1 }
  0x23   : > { %325 = vst.msk [vmem:[#allocation3 + $0x70] sm:$0xff] %vm294_vm0, %v2161_v1  ;;  %326 = vst.msk [vmem:[#allocation3 + $0x78] sm:$0xff] %vm294_vm0, %v2161_v1 }
  0x24   : > { %328 = vst.msk [vmem:[#allocation4] sm:$0xff] %vm327_vm1, %v2161_v1  ;;  %329 = vst.msk [vmem:[#allocation4 + $0x8] sm:$0xff] %vm327_vm1, %v2161_v1 }
  0x25   : > { %330 = vst.msk [vmem:[#allocation4 + $0x10] sm:$0xff] %vm327_vm1, %v2161_v1  ;;  %331 = vst.msk [vmem:[#allocation4 + $0x18] sm:$0xff] %vm327_vm1, %v2161_v1 }
  0x26   : > { %332 = vst.msk [vmem:[#allocation4 + $0x20] sm:$0xff] %vm327_vm1, %v2161_v1  ;;  %333 = vst.msk [vmem:[#allocation4 + $0x28] sm:$0xff] %vm327_vm1, %v2161_v1 }
  0x27   : > { %334 = vst.msk [vmem:[#allocation4 + $0x30] sm:$0xff] %vm327_vm1, %v2161_v1  ;;  %335 = vst.msk [vmem:[#allocation4 + $0x38] sm:$0xff] %vm327_vm1, %v2161_v1 }
  0x28   : > { %336 = vst.msk [vmem:[#allocation4 + $0x40] sm:$0xff] %vm327_vm1, %v2161_v1  ;;  %337 = vst.msk [vmem:[#allocation4 + $0x48] sm:$0xff] %vm327_vm1, %v2161_v1 }
  0x29   : > { %338 = vst.msk [vmem:[#allocation4 + $0x50] sm:$0xff] %vm327_vm1, %v2161_v1  ;;  %339 = vst.msk [vmem:[#allocation4 + $0x58] sm:$0xff] %vm327_vm1, %v2161_v1 }
  0x2a   : > { %340 = vst.msk [vmem:[#allocation4 + $0x60] sm:$0xff] %vm327_vm1, %v2161_v1  ;;  %341 = vst.msk [vmem:[#allocation4 + $0x68] sm:$0xff] %vm327_vm1, %v2161_v1 }
  0x2b   : > { %342 = vst.msk [vmem:[#allocation4 + $0x70] sm:$0xff] %vm327_vm1, %v2161_v1  ;;  %343 = vst.msk [vmem:[#allocation4 + $0x78] sm:$0xff] %vm327_vm1, %v2161_v1 }
  0x2c PF: > { %p1723_p10 = scmp.gt.s32.totalorder %s2134_s12, %s2138_s13 }
  0x2d   : > { %v1990_v2 = vld [vmem:[%s2245_s10] sm:$0xff] (!%p1723_p10)   ;;  %vm460_vm2 = vcmask (!%p1723_p10), 261120   ;;  %v1991_v3 = vld [vmem:[%s2245_s10 + $0x8] sm:$0xff] (!%p1723_p10)   ;;  %v1992_v6 = vld [vmem:[%s2245_s10 + $0x10] sm:$0xff] (!%p1723_p10)   ;;  %s1740_s23 = sshll.u32 (!%p1723_p10), %s2138_s13, 7  ;;  %s1741_s24 = sshll.u32 (!%p1723_p10), %s2134_s12, 7 }
  0x2e   : > { %347 = sbr.rel (%p1723_p10) target bundleno = 871 (0x367), region = 40  ;;  %1920 = vmatprep.subr.msk.bf16.mxu0 (!%p1723_p10), %vm460_vm2, %v1990_v2  ;;  %v486_v4 = vsel (!%p1723_p10), %vm460_vm2, %v1990_v2, 0  ;;  %v489_v5 = vsel (!%p1723_p10), %vm460_vm2, %v1991_v3, 0  ;;  %v1786_v7 = vld [vmem:[%s2235_s29] sm:$0xff] (!%p1723_p10)   ;;  %v492_v13 = vsel (!%p1723_p10), %vm460_vm2, %v1992_v6, 0  ;;  %v1993_v14 = vld [vmem:[%s2245_s10 + $0x18] sm:$0xff] (!%p1723_p10)   ;;  %v607_v2 = vlaneseq (!%p1723_p10) }
  0x2f   : > { %1857 = vmatpush3.bf16.xpose.msra.mxu0 (!%p1723_p10), %v486_v4  ;;  %v1787_v8 = vunpack.c.l.bf16 (!%p1723_p10), %v1786_v7  ;;  %v1788_v9 = vunpack.c.h.bf16 (!%p1723_p10), %v1786_v7  ;;  %v495_v15 = vsel (!%p1723_p10), %vm460_vm2, %v1993_v14, 0  ;;  %v1994_v16 = vld [vmem:[%s2245_s10 + $0x20] sm:$0xff] (!%p1723_p10)   ;;  %v1995_v18 = vld [vmem:[%s2245_s10 + $0x28] sm:$0xff] (!%p1723_p10)   ;;  %v1996_v20 = vld [vmem:[%s2245_s10 + $0x30] sm:$0xff] (!%p1723_p10)   ;;  %v644_v7 = vstv (!%p1723_p10), %s1741_s24 }
  0x30   : > { %1921 = vmatprep.subr.msk.bf16.mxu0 (!%p1723_p10), %vm460_vm2, %v1991_v3  ;;  %v498_v17 = vsel (!%p1723_p10), %vm460_vm2, %v1994_v16, 0  ;;  %v501_v19 = vsel (!%p1723_p10), %vm460_vm2, %v1995_v18, 0  ;;  %v504_v21 = vsel (!%p1723_p10), %vm460_vm2, %v1996_v20, 0  ;;  %v1997_v22 = vld [vmem:[%s2245_s10 + $0x38] sm:$0xff] (!%p1723_p10)   ;;  %v1817_v23 = vld [vmem:[%s2235_s29 + $0x8] sm:$0xff] (!%p1723_p10)   ;;  %v1818_v24 = vld [vmem:[%s2235_s29 + $0x10] sm:$0xff] (!%p1723_p10)  }
  0x31   : > { %v380_v10 = vmul.f32 (!%p1723_p10), 0.17677669, %v1787_v8  ;;  %v381_v11 = vmul.f32 (!%p1723_p10), 0.17677669, %v1788_v9  ;;  %v1791_v25 = vunpack.c.l.bf16 (!%p1723_p10), %v1817_v23  ;;  %v1792_v26 = vunpack.c.h.bf16 (!%p1723_p10), %v1817_v23  ;;  %v1819_v34 = vld [vmem:[%s2235_s29 + $0x18] sm:$0xff] (!%p1723_p10)   ;;  %v1820_v35 = vld [vmem:[%s2235_s29 + $0x20] sm:$0xff] (!%p1723_p10)  }
  0x32   : > { %v1795_v27 = vunpack.c.l.bf16 (!%p1723_p10), %v1818_v24  ;;  %v1796_v28 = vunpack.c.h.bf16 (!%p1723_p10), %v1818_v24  ;;  %v507_v29 = vsel (!%p1723_p10), %vm460_vm2, %v1997_v22, 0  ;;  %v1799_v37 = vunpack.c.l.bf16 (!%p1723_p10), %v1819_v34  ;;  %v1821_v46 = vld [vmem:[%s2235_s29 + $0x28] sm:$0xff] (!%p1723_p10)   ;;  %v1822_v47 = vld [vmem:[%s2235_s29 + $0x30] sm:$0xff] (!%p1723_p10)   ;;  %v1823_v58 = vld [vmem:[%s2235_s29 + $0x38] sm:$0xff] (!%p1723_p10)  }
  0x33   : > { %v396_v12 = vpack.c.bf16 (!%p1723_p10), %v381_v11, %v380_v10  ;;  %v382_v30 = vmul.f32 (!%p1723_p10), 0.17677669, %v1791_v25  ;;  %v383_v31 = vmul.f32 (!%p1723_p10), 0.17677669, %v1792_v26  ;;  %v1800_v38 = vunpack.c.h.bf16 (!%p1723_p10), %v1819_v34 }
  0x34   : > { %v384_v32 = vmul.f32 (!%p1723_p10), 0.17677669, %v1795_v27  ;;  %v385_v33 = vmul.f32 (!%p1723_p10), 0.17677669, %v1796_v28  ;;  %v1803_v40 = vunpack.c.l.bf16 (!%p1723_p10), %v1820_v35  ;;  %v1804_v41 = vunpack.c.h.bf16 (!%p1723_p10), %v1820_v35 }
  0x35   : > { %1872 = vmatprep.mubr.msk.bf16.mxu0 %vm460_vm2, %v396_v12  ;;  %v397_v36 = vpack.c.bf16 %v383_v31, %v382_v30  ;;  %v386_v42 = vmul.f32 0.17677669, %v1799_v37  ;;  %v387_v43 = vmul.f32 0.17677669, %v1800_v38  ;;  %v1807_v49 = vunpack.c.l.bf16 %v1821_v46 }
  0x36   : > { %v398_v39 = vpack.c.bf16 %v385_v33, %v384_v32  ;;  %v388_v44 = vmul.f32 0.17677669, %v1803_v40  ;;  %v389_v45 = vmul.f32 0.17677669, %v1804_v41  ;;  %v1808_v50 = vunpack.c.h.bf16 %v1821_v46 }
  0x37   : > { %1859 = vmatpush3.bf16.xpose.msra.mxu0 %v489_v5  ;;  %v399_v48 = vpack.c.bf16 %v387_v43, %v386_v42  ;;  %v1811_v52 = vunpack.c.l.bf16 %v1822_v47  ;;  %v1812_v53 = vunpack.c.h.bf16 %v1822_v47  ;;  %v390_v54 = vmul.f32 0.17677669, %v1807_v49 }
  0x38   : > { %1922 = vmatprep.subr.msk.bf16.mxu0 %vm460_vm2, %v1992_v6  ;;  %v400_v51 = vpack.c.bf16 %v389_v45, %v388_v44  ;;  %v391_v55 = vmul.f32 0.17677669, %v1808_v50  ;;  %v1815_v60 = vunpack.c.l.bf16 %v1823_v58  ;;  %v1816_v61 = vunpack.c.h.bf16 %v1823_v58 }
  0x39   : > { %v392_v56 = vmul.f32 0.17677669, %v1811_v52  ;;  %v393_v57 = vmul.f32 0.17677669, %v1812_v53  ;;  %v2343_v3 = vshrl.u32 %v607_v2, 7  ;;  %v643_v5 = vand.u32 127, %v607_v2 }
  0x3a   : > { %v401_v59 = vpack.c.bf16 %v391_v55, %v390_v54  ;;  %v394_v63 = vmul.f32 0.17677669, %v1815_v60  ;;  %v395_v0 = vmul.f32 0.17677669, %v1816_v61  ;;  %v2348_v6 = vstv %s1740_s23 }
  0x3b   : > { %v402_v62 = vpack.c.bf16 %v393_v57, %v392_v56  ;;  %v610_v4 = vadd.s32 16, %v2343_v3  ;;  %v2351_v9 = vadd.s32 %v644_v7, %v643_v5  ;;  %v611_v10 = vadd.s32 24, %v2343_v3 }
  0x3c   : > { %v403_v1 = vpack.c.bf16 %v395_v0, %v394_v63  ;;  %v625_v11 = vadd.s32 %v2348_v6, %v2343_v3  ;;  %v609_v12 = vadd.s32 8, %v2343_v3  ;;  %v614_v24 = vadd.s32 48, %v2343_v3 }
  0x3d   : > { %v627_v8 = vadd.s32 %v2348_v6, %v610_v4  ;;  %v613_v26 = vadd.s32 40, %v2343_v3  ;;  %v616_v30 = vadd.s32 64, %v2343_v3  ;;  %v619_v33 = vadd.s32 88, %v2343_v3 }
  0x3e   : > { %vm646_vm4 = vcmp.le.s32.totalorder %v2351_v9, %v625_v11  ;;  %v618_v35 = vadd.s32 80, %v2343_v3  ;;  %v617_v38 = vadd.s32 72, %v2343_v3  ;;  %v620_v47 = vadd.s32 96, %v2343_v3  ;;  %v2451_v11 = vld [vmem:[#allocation2] sm:$0xff] }
  0x3f   : > { %1861 = vmatpush3.bf16.xpose.msra.mxu0 %v492_v13  ;;  %vm648_vm3 = vcmp.le.s32.totalorder %v2351_v9, %v627_v8  ;;  %v628_v13 = vadd.s32 %v2348_v6, %v611_v10  ;;  %v630_v32 = vadd.s32 %v2348_v6, %v613_v26  ;;  %v633_v41 = vadd.s32 %v2348_v6, %v616_v30  ;;  %v1998_v8 = vld [vmem:[%s2250_s22] sm:$0xff]   ;;  %v1999_v10 = vld [vmem:[%s2250_s22 + $0x8] sm:$0xff]   ;;  %v2001_v26 = vld [vmem:[%s2250_s22 + $0x18] sm:$0xff]  }
  0x40   : > { %1923 = vmatprep.subr.msk.bf16.mxu0 %vm460_vm2, %v1993_v14  ;;  %v626_v14 = vadd.s32 %v2348_v6, %v609_v12  ;;  %v636_v42 = vadd.s32 %v2348_v6, %v619_v33  ;;  %v635_v43 = vadd.s32 %v2348_v6, %v618_v35  ;;  %v634_v45 = vadd.s32 %v2348_v6, %v617_v38  ;;  %v2002_v35 = vld [vmem:[%s2250_s22 + $0x20] sm:$0xff]  }
  0x41   : > { %vm649_vm5 = vcmp.le.s32.totalorder %v2351_v9, %v628_v13  ;;  %vm651_vm10 = vcmp.le.s32.totalorder %v2351_v9, %v630_v32  ;;  %vm654_vm11 = vcmp.le.s32.totalorder %v2351_v9, %v633_v41  ;;  %v623_v49 = vadd.s32 120, %v2343_v3  ;;  %1888 = vmatprep.subr.bf16.mxu1 %v1998_v8 }
  0x42   : > { %vm647_vm6 = vcmp.le.s32.totalorder %v2351_v9, %v626_v14  ;;  %vm657_vm12 = vcmp.le.s32.totalorder %v2351_v9, %v636_v42  ;;  %vm656_vm13 = vcmp.le.s32.totalorder %v2351_v9, %v635_v43  ;;  %v2162_v52 = vmov 0   ;;  %1889 = vmatpush3.bf16.msra.mxu1 %v1998_v8  ;;  %v2508_v43 = vld [vmem:[#allocation2 + $0x40] sm:$0xff] }
  0x43   : > { %1989 = vset.pattern.permute.xlu1 %v2162_v52  ;;  %1988 = vset.pattern.permute.xlu0 %v2162_v52  ;;  %vm655_vm14 = vcmp.le.s32.totalorder %v2351_v9, %v634_v45  ;;  %v621_v55 = vadd.s32 104, %v2343_v3  ;;  %v637_v58 = vadd.s32 %v2348_v6, %v620_v47  ;;  %v640_v60 = vadd.s32 %v2348_v6, %v623_v49  ;;  %v2003_v45 = vld [vmem:[%s2250_s22 + $0x28] sm:$0xff]   ;;  %v2514_v47 = vld [vmem:[#allocation2 + $0x58] sm:$0xff]  ;;  %v2524_v52 = vld [vmem:[#allocation2 + $0x50] sm:$0xff] }
  0x44   : > { %1890 = vmatprep.subr.bf16.mxu1 %v1999_v10 }
  0x45   : > { %v638_v63 = vadd.s32 %v2348_v6, %v621_v55  ;;  %vm658_vm15 = vcmp.le.s32.totalorder %v2351_v9, %v637_v58  ;;  %vm661_vm0 = vcmp.le.s32.totalorder %v2351_v9, %v640_v60  ;;  %v2530_v55 = vld [vmem:[#allocation2 + $0x48] sm:$0xff] }
  0x46   : > { %1891 = vmatpush3.bf16.msra.mxu1 %v1999_v10 }
  0x47   : > { %1863 = vmatpush3.bf16.xpose.msra.mxu0 %v495_v15  ;;  %v612_v15 = vadd.s32 32, %v2343_v3 }
  0x48   : > { %1924 = vmatprep.subr.msk.bf16.mxu0 %vm460_vm2, %v1994_v16 }
  0x49   : > { %v629_v23 = vadd.s32 %v2348_v6, %v612_v15 }
  0x4b   : > { %vm650_vm7 = vcmp.le.s32.totalorder %v2351_v9, %v629_v23 }
  0x4f   : > { %1865 = vmatpush3.bf16.xpose.msra.mxu0 %v498_v17  ;;  %v615_v17 = vadd.s32 56, %v2343_v3 }
  0x50   : > { %1925 = vmatprep.subr.msk.bf16.mxu0 %vm460_vm2, %v1995_v18 }
  0x51   : > { %v632_v25 = vadd.s32 %v2348_v6, %v615_v17  ;;  %v2464_v17 = vld [vmem:[#allocation2 + $0x8] sm:$0xff] }
  0x53   : > { %vm653_vm8 = vcmp.le.s32.totalorder %v2351_v9, %v632_v25  ;;  %v2479_v25 = vld [vmem:[#allocation2 + $0x20] sm:$0xff] }
  0x57   : > { %1867 = vmatpush3.bf16.xpose.msra.mxu0 %v501_v19 }
  0x58   : > { %1926 = vmatprep.subr.msk.bf16.mxu0 %vm460_vm2, %v1996_v20 }
  0x5f   : > { %1869 = vmatpush3.bf16.xpose.msra.mxu0 %v504_v21 }
  0x60   : > { %1927 = vmatprep.subr.msk.bf16.mxu0 %vm460_vm2, %v1997_v22 }
  0x67   : > { %1871 = vmatpush3.bf16.xpose.msra.mxu0 %v507_v29  ;;  %v631_v29 = vadd.s32 %v2348_v6, %v614_v24 }
  0x69   : > { %vm652_vm9 = vcmp.le.s32.totalorder %v2351_v9, %v631_v29  ;;  %v2484_v29 = vld [vmem:[#allocation2 + $0x38] sm:$0xff] }
  0x6e   : > { %1873 = vmatmul.mubr.msk.bf16.vlgmr.msra.gmra.mrb[0].mxu0 %vm460_vm2, %v397_v36 }
  0x6f   : > { %1876 = vmatprep.mubr.msk.bf16.mxu0 %vm460_vm2, %v398_v39 }
  0x76   : > { %1877 = vmatmul.mubr.msk.bf16.gmra.mrb[4].mxu0 %vm460_vm2, %v399_v48 }
  0x77   : > { %1880 = vmatprep.mubr.msk.bf16.mxu0 %vm460_vm2, %v400_v51  ;;  %v622_v51 = vadd.s32 112, %v2343_v3 }
  0x7e   : > { %1881 = vmatmul.mubr.msk.bf16.gmra.mrb[8].mxu0 %vm460_vm2, %v401_v59 }
  0x7f   : > { %1884 = vmatprep.mubr.msk.bf16.mxu0 %vm460_vm2, %v402_v62  ;;  %v639_v62 = vadd.s32 %v2348_v6, %v622_v51 }
  0x81   : > { %vm660_vm1 = vcmp.le.s32.totalorder %v2351_v9, %v639_v62 }
  0x86   : > { %1885 = vmatmul.mubr.msk.bf16.gmra.mrb[12].mxu0 %vm460_vm2, %v403_v1 }
 0x141   : > { %v1874_v16 = vpop.f32.mrb[0].mxu0 }
 0x142   : > { %v543_v18 = vpop.f32.mrb[1].mxu0  ;;  %v2363_v19 = vsel %vm648_vm3, %v1874_v16, -1e+30  ;;  %vm659_vm3 = vcmp.le.s32.totalorder %v2351_v9, %v638_v63  ;;  %v2449_v9 = vld [vmem:[#allocation2 + $0x10] sm:$0xff]  ;;  %v2459_v16 = vld [vmem:[#allocation2 + $0x18] sm:$0xff] }
 0x143   : > { %698 = vmax.xlane.f32.xlu1 %v2363_v19  ;;  %v1875_v20 = vpop.f32.mrb[2].mxu0  ;;  %v2366_v21 = vsel %vm646_vm4, %v543_v18, -1e+30  ;;  %vm998_vm4 = vcmask 7168   ;;  %v2000_v18 = vld [vmem:[%s2250_s22 + $0x10] sm:$0xff]  }
 0x144   : > { %694 = vmax.xlane.f32.xlu0 %v2366_v21  ;;  %v546_v22 = vpop.f32.mrb[3].mxu0  ;;  %v2375_v27 = vsel %vm649_vm5, %v1875_v20, -1e+30  ;;  %1892 = vmatprep.subr.bf16.mxu1 %v2000_v18 }
 0x145   : > { %v2378_v28 = vsel %vm647_vm6, %v546_v22, -1e+30  ;;  %1893 = vmatpush3.bf16.msra.mxu1 %v2000_v18  ;;  %v691_v18 = vld [vmem:[#allocation2 + $0x68] sm:$0xff] }
 0x146   : > { %1894 = vmatprep.subr.bf16.mxu1 %v2001_v26 }
 0x147   : > { %700 = vmax.xlane.f32.xlu1 %v2375_v27 }
 0x148   : > { %696 = vmax.xlane.f32.xlu0 %v2378_v28 }
 0x149   : > { %v1878_v31 = vpop.f32.mrb[4].mxu0  ;;  %1895 = vmatpush3.bf16.msra.mxu1 %v2001_v26 }
 0x14a   : > { %v559_v34 = vpop.f32.mrb[5].mxu0  ;;  %v2400_v44 = vsel %vm652_vm9, %v1878_v31, -1e+30  ;;  %1896 = vmatprep.subr.bf16.mxu1 %v2002_v35 }
 0x14b   : > { %v1879_v36 = vpop.f32.mrb[6].mxu0  ;;  %v2388_v37 = vsel %vm650_vm7, %v559_v34, -1e+30  ;;  %v2493_v34 = vld [vmem:[#allocation2 + $0x30] sm:$0xff] }
 0x14c   : > { %702 = vmax.xlane.f32.xlu0 %v2388_v37  ;;  %v562_v39 = vpop.f32.mrb[7].mxu0  ;;  %v2392_v40 = vsel %vm653_vm8, %v1879_v36, -1e+30  ;;  %v2498_v36 = vld [vmem:[#allocation2 + $0x28] sm:$0xff] }
 0x14d   : > { %708 = vmax.xlane.f32.xlu1 %v2392_v40  ;;  %v2404_v46 = vsel %vm651_vm10, %v562_v39, -1e+30  ;;  %1897 = vmatpush3.bf16.msra.mxu1 %v2002_v35 }
 0x14e   : > { %1898 = vmatprep.subr.bf16.mxu1 %v2003_v45 }
 0x150   : > { %706 = vmax.xlane.f32.xlu0 %v2400_v44 }
 0x151   : > { %704 = vmax.xlane.f32.xlu1 %v2404_v46  ;;  %v1882_v48 = vpop.f32.mrb[8].mxu0  ;;  %1899 = vmatpush3.bf16.msra.mxu1 %v2003_v45 }
 0x152   : > { %v575_v50 = vpop.f32.mrb[9].mxu0  ;;  %v2422_v59 = vsel %vm656_vm13, %v1882_v48, -1e+30 }
 0x153   : > { %v1883_v53 = vpop.f32.mrb[10].mxu0  ;;  %v2413_v54 = vsel %vm654_vm11, %v575_v50, -1e+30 }
 0x154   : > { %v2417_v56 = vsel %vm657_vm12, %v1883_v53, -1e+30  ;;  %710 = vmax.xlane.f32.xlu0 %v2413_v54  ;;  %v578_v57 = vpop.f32.mrb[11].mxu0  ;;  %v2004_v53 = vld [vmem:[%s2250_s22 + $0x30] sm:$0xff]  }
 0x155   : > { %716 = vmax.xlane.f32.xlu1 %v2417_v56  ;;  %v2425_v61 = vsel %vm655_vm14, %v578_v57, -1e+30  ;;  %1900 = vmatprep.subr.bf16.mxu1 %v2004_v53 }
 0x156   : > { %1901 = vmatpush3.bf16.msra.mxu1 %v2004_v53 }
 0x158   : > { %714 = vmax.xlane.f32.xlu0 %v2422_v59 }
 0x159   : > { %712 = vmax.xlane.f32.xlu1 %v2425_v61  ;;  %v1886_v0 = vpop.f32.mrb[12].mxu0 }
 0x15a   : > { %v591_v1 = vpop.f32.mrb[13].mxu0  ;;  %v2441_v6 = vsel %vm660_vm1, %v1886_v0, -1e+30  ;;  %v2542_v0 = vld [vmem:[#allocation2 + $0x60] sm:$0xff] }
 0x15b   : > { %v1887_v2 = vpop.f32.mrb[14].mxu0  ;;  %v2434_v3 = vsel %vm658_vm15, %v591_v1, -1e+30  ;;  %v2005_v1 = vld [vmem:[%s2250_s22 + $0x38] sm:$0xff]  }
 0x15c   : > { %v2437_v4 = vsel %vm661_vm0, %v1887_v2, -1e+30  ;;  %718 = vmax.xlane.f32.xlu0 %v2434_v3  ;;  %v594_v5 = vpop.f32.mrb[15].mxu0  ;;  %v2548_v2 = vld [vmem:[#allocation2 + $0x78] sm:$0xff]  ;;  %1902 = vmatprep.subr.bf16.mxu1 %v2005_v1 }
 0x15d   : > { %724 = vmax.xlane.f32.xlu1 %v2437_v4  ;;  %v2443_v7 = vsel %vm659_vm3, %v594_v5, -1e+30  ;;  %1903 = vmatpush3.bf16.msra.mxu1 %v2005_v1 }
 0x160   : > { %722 = vmax.xlane.f32.xlu0 %v2441_v6 }
 0x161   : > { %720 = vmax.xlane.f32.xlu1 %v2443_v7 }
 0x1d0   : > { %v699_v12 = vpop.xlane.xlu1 %698 }
 0x1d1   : > { %v2454_v13 = vmax.f32 %v2449_v9, %v699_v12  ;;  %v695_v14 = vpop.xlane.xlu0 %694 }
 0x1d2   : > { %v2457_v15 = vmax.f32 %v2451_v11, %v695_v14 }
 0x1d3   : > { %1330 = vst.msk [vmem:[#allocation2 + $0x10] sm:$0xff] %vm998_vm4, %v2454_v13  ;;  %802 = vperm.xlu1 %1989, %v2454_v13  }
 0x1d4   : > { %1328 = vst.msk [vmem:[#allocation2] sm:$0xff] %vm998_vm4, %v2457_v15  ;;  %v701_v20 = vpop.xlane.xlu1 %700  ;;  %792 = vperm.xlu0 %1988, %v2457_v15   ;;  %v742_v58 = vsub.f32 %v2451_v11, %v2457_v15  ;;  %v2561_v15 = vld [vmem:[#allocation2 + $0x70] sm:$0xff] }
 0x1d5   : > { %v2471_v22 = vmax.f32 %v2459_v16, %v701_v20  ;;  %v697_v23 = vpop.xlane.xlu0 %696 }
 0x1d6   : > { %v2474_v24 = vmax.f32 %v2464_v17, %v697_v23  ;;  %v758_v8 = vmul.f32 1.442695, %v742_v58 }
 0x1d7   : > { %1331 = vst.msk [vmem:[#allocation2 + $0x18] sm:$0xff] %vm998_vm4, %v2471_v22  ;;  %807 = vperm.xlu1 %1989, %v2471_v22   ;;  %v745_v10 = vsub.f32 %v2459_v16, %v2471_v22 }
 0x1d8   : > { %1329 = vst.msk [vmem:[#allocation2 + $0x8] sm:$0xff] %vm998_vm4, %v2474_v24  ;;  %v743_v20 = vsub.f32 %v2464_v17, %v2474_v24  ;;  %2006 = vpow2.f32 %v758_v8 }
 0x1d9   : > { %v703_v30 = vpop.xlane.xlu0 %702  ;;  %v764_v23 = vmul.f32 1.442695, %v745_v10 }
 0x1da   : > { %v2487_v31 = vmax.f32 %v2479_v25, %v703_v30  ;;  %v709_v32 = vpop.xlane.xlu1 %708 }
 0x1db   : > { %v2490_v33 = vmax.f32 %v2484_v29, %v709_v32  ;;  %797 = vperm.xlu1 %1989, %v2474_v24   ;;  %v744_v24 = vsub.f32 %v2449_v9, %v2454_v13  ;;  %2008 = vpow2.f32 %v764_v23 }
 0x1dc   : > { %1332 = vst.msk [vmem:[#allocation2 + $0x20] sm:$0xff] %vm998_vm4, %v2487_v31  ;;  %v746_v45 = vsub.f32 %v2479_v25, %v2487_v31 }
 0x1dd   : > { %1335 = vst.msk [vmem:[#allocation2 + $0x38] sm:$0xff] %vm998_vm4, %v2490_v33  ;;  %v707_v38 = vpop.xlane.xlu0 %706 }
 0x1de   : > { %v2503_v39 = vmax.f32 %v2493_v34, %v707_v38  ;;  %v705_v41 = vpop.xlane.xlu1 %704  ;;  %v760_v38 = vmul.f32 1.442695, %v743_v20 }
 0x1df   : > { %v2506_v42 = vmax.f32 %v2498_v36, %v705_v41 }
 0x1e0   : > { %1334 = vst.msk [vmem:[#allocation2 + $0x30] sm:$0xff] %vm998_vm4, %v2503_v39  ;;  %822 = vperm.xlu1 %1989, %v2503_v39   ;;  %2010 = vpow2.f32 %v760_v38 }
 0x1e1   : > { %1333 = vst.msk [vmem:[#allocation2 + $0x28] sm:$0xff] %vm998_vm4, %v2506_v42  ;;  %v711_v48 = vpop.xlane.xlu0 %710  ;;  %v747_v26 = vsub.f32 %v2498_v36, %v2506_v42  ;;  %v749_v36 = vsub.f32 %v2484_v29, %v2490_v33  ;;  %v766_v29 = vmul.f32 1.442695, %v746_v45 }
 0x1e2   : > { %v717_v49 = vpop.xlane.xlu1 %716  ;;  %v2519_v50 = vmax.f32 %v2508_v43, %v711_v48  ;;  %v2594_v13 = vpop.eup %2006 }
 0x1e3   : > { %v2522_v51 = vmax.f32 %v2514_v47, %v717_v49  ;;  %v768_v41 = vmul.f32 1.442695, %v747_v26  ;;  %v772_v48 = vmul.f32 1.442695, %v749_v36 }
 0x1e4   : > { %1336 = vst.msk [vmem:[#allocation2 + $0x40] sm:$0xff] %vm998_vm4, %v2519_v50  ;;  %812 = vperm.xlu1 %1989, %v2487_v31  }
 0x1e5   : > { %1339 = vst.msk [vmem:[#allocation2 + $0x58] sm:$0xff] %vm998_vm4, %v2522_v51  ;;  %v715_v57 = vpop.xlane.xlu0 %714  ;;  %2012 = vpow2.f32 %v768_v41  ;;  %v753_v9 = vsub.f32 %v2514_v47, %v2522_v51  ;;  %v2602_v49 = vpop.eup %2008 }
 0x1e6   : > { %v713_v60 = vpop.xlane.xlu1 %712  ;;  %v2537_v62 = vmax.f32 %v2524_v52, %v715_v57 }
 0x1e7   : > { %v2540_v63 = vmax.f32 %v2530_v55, %v713_v60  ;;  %v780_v25 = vmul.f32 1.442695, %v753_v9 }
 0x1e8   : > { %1338 = vst.msk [vmem:[#allocation2 + $0x50] sm:$0xff] %vm998_vm4, %v2537_v62  ;;  %817 = vperm.xlu1 %1989, %v2506_v42   ;;  %v762_v42 = vmul.f32 1.442695, %v744_v24 }
 0x1e9   : > { %1337 = vst.msk [vmem:[#allocation2 + $0x48] sm:$0xff] %vm998_vm4, %v2540_v63  ;;  %837 = vperm.xlu0 %1988, %v2540_v63   ;;  %v719_v5 = vpop.xlane.xlu0 %718  ;;  %v751_v31 = vsub.f32 %v2530_v55, %v2540_v63  ;;  %v750_v55 = vsub.f32 %v2508_v43, %v2519_v50 }
 0x1ea   : > { %v725_v11 = vpop.xlane.xlu1 %724  ;;  %v2556_v12 = vmax.f32 %v2542_v0, %v719_v5  ;;  %2014 = vpow2.f32 %v762_v42  ;;  %v2608_v53 = vpop.eup %2010 }
 0x1eb   : > { %v2559_v14 = vmax.f32 %v2548_v2, %v725_v11  ;;  %2016 = vpow2.f32 %v772_v48  ;;  %v774_v63 = vmul.f32 1.442695, %v750_v55 }
 0x1ec   : > { %1340 = vst.msk [vmem:[#allocation2 + $0x60] sm:$0xff] %vm998_vm4, %v2556_v12  ;;  %827 = vperm.xlu1 %1989, %v2490_v33   ;;  %v748_v33 = vsub.f32 %v2493_v34, %v2503_v39  ;;  %2018 = vpow2.f32 %v766_v29  ;;  %v776_v34 = vmul.f32 1.442695, %v751_v31  ;;  %v754_v1 = vsub.f32 %v2542_v0, %v2556_v12 }
 0x1ed   : > { %v757_v16 = vsub.f32 %v2548_v2, %v2559_v14  ;;  %1343 = vst.msk [vmem:[#allocation2 + $0x78] sm:$0xff] %vm998_vm4, %v2559_v14  ;;  %847 = vperm.xlu0 %1988, %v2522_v51   ;;  %v723_v22 = vpop.xlane.xlu0 %722  ;;  %v752_v51 = vsub.f32 %v2524_v52, %v2537_v62  ;;  %2020 = vpow2.f32 %v780_v25 }
 0x1ee   : > { %v721_v30 = vpop.xlane.xlu1 %720  ;;  %v2576_v32 = vmax.f32 %v2561_v15, %v723_v22  ;;  %v770_v47 = vmul.f32 1.442695, %v748_v33  ;;  %v782_v5 = vmul.f32 1.442695, %v754_v1 }
 0x1ef   : > { %v739_v35 = vmax.f32 %v691_v18, %v721_v30  ;;  %v2610_v57 = vpop.eup %2012  ;;  %v778_v58 = vmul.f32 1.442695, %v752_v51 }
 0x1f0   : > { %v756_v17 = vsub.f32 %v2561_v15, %v2576_v32  ;;  %1342 = vst.msk [vmem:[#allocation2 + $0x70] sm:$0xff] %vm998_vm4, %v2576_v32  ;;  %832 = vperm.xlu1 %1989, %v2519_v50   ;;  %2022 = vpow2.f32 %v770_v47 }
 0x1f1   : > { %1341 = vst.msk [vmem:[#allocation2 + $0x68] sm:$0xff] %vm998_vm4, %v739_v35  ;;  %857 = vperm.xlu0 %1988, %v739_v35   ;;  %v755_v39 = vsub.f32 %v691_v18, %v739_v35  ;;  %2024 = vpow2.f32 %v776_v34 }
 0x1f2   : > { %2026 = vpow2.f32 %v778_v58 }
 0x1f3   : > { %v784_v52 = vmul.f32 1.442695, %v755_v39 }
 0x1f4   : > { %842 = vperm.xlu1 %1989, %v2537_v62   ;;  %v2616_v60 = vpop.eup %2014 }
 0x1f5   : > { %867 = vperm.xlu0 %1988, %v2559_v14   ;;  %v2618_v62 = vpop.eup %2016  ;;  %2028 = vpow2.f32 %v784_v52 }
 0x1f6   : > { %v2624_v43 = vpop.eup %2018  ;;  %2030 = vpow2.f32 %v774_v63 }
 0x1f7   : > { %v2626_v50 = vpop.eup %2020  ;;  %2032 = vpow2.f32 %v782_v5 }
 0x1f8   : > { %852 = vperm.xlu1 %1989, %v2556_v12  }
 0x1f9   : > { %1033 = vperm.xlu0 %1988, %v2594_v13  }
 0x1fa   : > { %v2630_v8 = vpop.eup %2022 }
 0x1fb   : > { %v2632_v10 = vpop.eup %2024 }
 0x1fc   : > { %862 = vperm.xlu1 %1989, %v2576_v32   ;;  %v2636_v0 = vpop.eup %2026 }
 0x1fd   : > { %1048 = vperm.xlu0 %1988, %v2602_v49  }
 0x1ff   : > { %v2638_v11 = vpop.eup %2028 }
 0x200   : > { %1038 = vperm.xlu1 %1989, %v2608_v53   ;;  %v2642_v12 = vpop.eup %2030 }
 0x201   : > { %1058 = vperm.xlu0 %1988, %v2610_v57   ;;  %v2645_v18 = vpop.eup %2032 }
 0x204   : > { %1043 = vperm.xlu1 %1989, %v2616_v60  }
 0x205   : > { %1068 = vperm.xlu0 %1988, %v2618_v62  }
 0x208   : > { %1053 = vperm.xlu1 %1989, %v2624_v43  }
 0x209   : > { %1088 = vperm.xlu0 %1988, %v2626_v50  }
 0x20c   : > { %1063 = vperm.xlu1 %1989, %v2630_v8  }
 0x20d   : > { %1078 = vperm.xlu0 %1988, %v2632_v10  }
 0x210   : > { %1083 = vperm.xlu1 %1989, %v2636_v0  }
 0x211   : > { %1098 = vperm.xlu0 %1988, %v2638_v11  }
 0x214   : > { %1073 = vperm.xlu1 %1989, %v2642_v12  }
 0x218   : > { %1093 = vperm.xlu1 %1989, %v2645_v18  }
 0x252   : > { %v803_v20 = vpop.permute.xlu1 %802 }
 0x253   : > { %v872_v22 = vsub.f32 %v2363_v19, %v803_v20  ;;  %v793_v23 = vpop.permute.xlu0 %792 }
 0x254   : > { %v870_v26 = vsub.f32 %v2366_v21, %v793_v23 }
 0x255   : > { %v890_v30 = vmul.f32 1.442695, %v872_v22 }
 0x256   : > { %v886_v35 = vmul.f32 1.442695, %v870_v26  ;;  %v808_v24 = vpop.permute.xlu1 %807 }
 0x257   : > { %2034 = vpow2.f32 %v890_v30  ;;  %v873_v38 = vsub.f32 %v2375_v27, %v808_v24 }
 0x258   : > { %2036 = vpow2.f32 %v886_v35 }
 0x259   : > { %v892_v36 = vmul.f32 1.442695, %v873_v38 }
 0x25a   : > { %v798_v41 = vpop.permute.xlu1 %797 }
 0x25b   : > { %2038 = vpow2.f32 %v892_v36  ;;  %v871_v42 = vsub.f32 %v2378_v28, %v798_v41 }
 0x25d   : > { %v888_v45 = vmul.f32 1.442695, %v871_v42 }
 0x25f   : > { %2040 = vpow2.f32 %v888_v45  ;;  %v823_v48 = vpop.permute.xlu1 %822 }
 0x260   : > { %v876_v19 = vsub.f32 %v2400_v44, %v823_v48 }
 0x261   : > { %v2035_v9 = vpop.eup %2034 }
 0x262   : > { %v2037_v29 = vpop.eup %2036  ;;  %v898_v21 = vmul.f32 1.442695, %v876_v19  ;;  %954 = vadd.xlane.f32.xlu0 %v2035_v9 }
 0x263   : > { %950 = vadd.xlane.f32.xlu1 %v2037_v29  ;;  %v813_v33 = vpop.permute.xlu1 %812 }
 0x264   : > { %2042 = vpow2.f32 %v898_v21  ;;  %v874_v27 = vsub.f32 %v2388_v37, %v813_v33 }
 0x265   : > { %v2039_v25 = vpop.eup %2038 }
 0x266   : > { %v894_v31 = vmul.f32 1.442695, %v874_v27  ;;  %v1128_v52 = vpack.c.bf16 %v2039_v25, %v2035_v9 }
 0x267   : > { %956 = vadd.xlane.f32.xlu1 %v2039_v25  ;;  %v818_v47 = vpop.permute.xlu1 %817 }
 0x268   : > { %2044 = vpow2.f32 %v894_v31  ;;  %v875_v28 = vsub.f32 %v2404_v46, %v818_v47  ;;  %v838_v51 = vpop.permute.xlu0 %837 }
 0x269   : > { %v2041_v34 = vpop.eup %2040  ;;  %v879_v55 = vsub.f32 %v2425_v61, %v838_v51 }
 0x26a   : > { %v896_v39 = vmul.f32 1.442695, %v875_v28  ;;  %952 = vadd.xlane.f32.xlu0 %v2041_v34  ;;  %v1127_v44 = vpack.c.bf16 %v2041_v34, %v2037_v29 }
 0x26b   : > { %v828_v58 = vpop.permute.xlu1 %827  ;;  %v904_v20 = vmul.f32 1.442695, %v879_v55 }
 0x26c   : > { %2046 = vpow2.f32 %v896_v39  ;;  %v877_v63 = vsub.f32 %v2392_v40, %v828_v58  ;;  %v848_v37 = vpop.permute.xlu0 %847  ;;  %1904 = vmatprep.mubr.bf16.mxu1 %v1127_v44  ;;  %v786_v58 = vmul.f32 1.442695, %v756_v17 }
 0x26d   : > { %1905 = vmatmul.mubr.bf16.vlgmr.msra.gmra.mrb[0].mxu1 %v1128_v52  ;;  %v881_v46 = vsub.f32 %v2417_v56, %v848_v37  ;;  %v788_v52 = vmul.f32 1.442695, %v757_v16 }
 0x26e   : > { %v2043_v1 = vpop.eup %2042  ;;  %v900_v5 = vmul.f32 1.442695, %v877_v63 }
 0x26f   : > { %962 = vadd.xlane.f32.xlu0 %v2043_v1  ;;  %v833_v22 = vpop.permute.xlu1 %832  ;;  %v908_v35 = vmul.f32 1.442695, %v881_v46 }
 0x270   : > { %2048 = vpow2.f32 %v900_v5  ;;  %v878_v23 = vsub.f32 %v2413_v54, %v833_v22  ;;  %v858_v26 = vpop.permute.xlu0 %857 }
 0x271   : > { %2050 = vpow2.f32 %v904_v20  ;;  %v883_v40 = vsub.f32 %v2443_v7, %v858_v26 }
 0x272   : > { %v2045_v61 = vpop.eup %2044  ;;  %v902_v30 = vmul.f32 1.442695, %v878_v23 }
 0x273   : > { %958 = vadd.xlane.f32.xlu0 %v2045_v61  ;;  %v843_v24 = vpop.permute.xlu1 %842  ;;  %v912_v42 = vmul.f32 1.442695, %v883_v40 }
 0x274   : > { %2052 = vpow2.f32 %v902_v30  ;;  %v880_v38 = vsub.f32 %v2422_v59, %v843_v24  ;;  %v868_v36 = vpop.permute.xlu0 %867 }
 0x275   : > { %2054 = vpow2.f32 %v908_v35  ;;  %v885_v45 = vsub.f32 %v2437_v4, %v868_v36  ;;  %v918_v35 = vld [vmem:[#allocation3] sm:$0xff] }
 0x276   : > { %v2047_v41 = vpop.eup %2046  ;;  %v906_v56 = vmul.f32 1.442695, %v880_v38  ;;  %v934_v38 = vmul.f32 %v2594_v13, %v918_v35  ;;  %v924_v13 = vld [vmem:[#allocation3 + $0x30] sm:$0xff] }
 0x277   : > { %v853_v54 = vpop.permute.xlu1 %852  ;;  %v1129_v48 = vpack.c.bf16 %v2047_v41, %v2045_v61  ;;  %v916_v29 = vmul.f32 1.442695, %v885_v45  ;;  %v920_v61 = vld [vmem:[#allocation3 + $0x10] sm:$0xff] }
 0x278   : > { %2056 = vpow2.f32 %v906_v56  ;;  %v882_v19 = vsub.f32 %v2434_v3, %v853_v54  ;;  %v936_v40 = vmul.f32 %v2616_v60, %v920_v61  ;;  %v921_v56 = vld [vmem:[#allocation3 + $0x18] sm:$0xff]  ;;  %v919_v54 = vld [vmem:[#allocation3 + $0x8] sm:$0xff] }
 0x279   : > { %1908 = vmatprep.mubr.bf16.mxu1 %v1129_v48  ;;  %2058 = vpow2.f32 %v912_v42  ;;  %v937_v45 = vmul.f32 %v2602_v49, %v921_v56 }
 0x27a   : > { %v2049_v9 = vpop.eup %2048  ;;  %v910_v7 = vmul.f32 1.442695, %v882_v19 }
 0x27b   : > { %964 = vadd.xlane.f32.xlu1 %v2049_v9  ;;  %v863_v21 = vpop.permute.xlu1 %862  ;;  %v1130_v59 = vpack.c.bf16 %v2049_v9, %v2043_v1  ;;  %v2051_v27 = vpop.eup %2050  ;;  %v935_v9 = vmul.f32 %v2608_v53, %v919_v54  ;;  %v925_v53 = vld [vmem:[#allocation3 + $0x38] sm:$0xff]  ;;  %v930_v54 = vld [vmem:[#allocation3 + $0x60] sm:$0xff] }
 0x27c   : > { %2060 = vpow2.f32 %v910_v7  ;;  %v884_v33 = vsub.f32 %v2441_v6, %v863_v21  ;;  %v2676_v1 = vpop.permute.xlu0 %1033 }
 0x27d   : > { %1909 = vmatmul.mubr.bf16.gmra.mrb[4].mxu1 %v1130_v59  ;;  %2062 = vpow2.f32 %v916_v29  ;;  %v940_v29 = vmul.f32 %v2630_v8, %v924_v13  ;;  %v922_v59 = vld [vmem:[#allocation3 + $0x20] sm:$0xff] }
 0x27e   : > { %v2053_v25 = vpop.eup %2052  ;;  %v914_v4 = vmul.f32 1.442695, %v884_v33  ;;  %v938_v49 = vmul.f32 %v2624_v43, %v922_v59  ;;  %v1016_v59 = vld [vmem:[#allocation4 + $0x8] sm:$0xff] }
 0x27f   : > { %960 = vadd.xlane.f32.xlu1 %v2047_v41  ;;  %v1131_v31 = vpack.c.bf16 %v2051_v27, %v2053_v25  ;;  %v2055_v3 = vpop.eup %2054  ;;  %v2678_v5 = vpop.permute.xlu1 %1038 }
 0x280   : > { %2064 = vpow2.f32 %v914_v4  ;;  %v2680_v15 = vpop.permute.xlu0 %1048  ;;  %v941_v4 = vmul.f32 %v2618_v62, %v925_v53  ;;  %v926_v62 = vld [vmem:[#allocation3 + $0x40] sm:$0xff]  ;;  %v1112_v53 = vmul.f32 %v2678_v5, %v1016_v59 }
 0x281   : > { %1912 = vmatprep.mubr.bf16.mxu1 %v1131_v31  ;;  %2066 = vpow2.f32 %v786_v58  ;;  %v927_v58 = vld [vmem:[#allocation3 + $0x48] sm:$0xff] }
 0x282   : > { %v2057_v47 = vpop.eup %2056  ;;  %2068 = vpow2.f32 %v788_v52  ;;  %v943_v35 = vmul.f32 %v2632_v10, %v927_v58 }
 0x283   : > { %972 = vadd.xlane.f32.xlu1 %v2055_v3  ;;  %970 = vadd.xlane.f32.xlu0 %v2057_v47  ;;  %v1132_v28 = vpack.c.bf16 %v2055_v3, %v2057_v47  ;;  %v2059_v51 = vpop.eup %2058  ;;  %v2682_v32 = vpop.permute.xlu1 %1043  ;;  %v923_v3 = vld [vmem:[#allocation3 + $0x28] sm:$0xff] }
 0x284   : > { %v2684_v17 = vpop.permute.xlu0 %1058  ;;  %v939_v8 = vmul.f32 %v2610_v57, %v923_v3  ;;  %v942_v57 = vmul.f32 %v2642_v12, %v926_v62  ;;  %v931_v12 = vld [vmem:[#allocation3 + $0x68] sm:$0xff] }
 0x285   : > { %1913 = vmatmul.mubr.bf16.gmra.mrb[8].mxu1 %v1132_v28 }
 0x286   : > { %v2061_v34 = vpop.eup %2060 }
 0x287   : > { %968 = vadd.xlane.f32.xlu1 %v2051_v27  ;;  %966 = vadd.xlane.f32.xlu0 %v2053_v25  ;;  %v1133_v6 = vpack.c.bf16 %v2059_v51, %v2061_v34  ;;  %v2063_v39 = vpop.eup %2062  ;;  %v2686_v2 = vpop.permute.xlu1 %1053 }
 0x288   : > { %v2688_v14 = vpop.permute.xlu0 %1068 }
 0x289   : > { %1916 = vmatprep.mubr.bf16.mxu1 %v1133_v6 }
 0x28a   : > { %v2065_v44 = vpop.eup %2064 }
 0x28b   : > { %980 = vadd.xlane.f32.xlu1 %v2063_v39  ;;  %978 = vadd.xlane.f32.xlu0 %v2065_v44  ;;  %v1134_v55 = vpack.c.bf16 %v2063_v39, %v2065_v44  ;;  %v2670_v63 = vpop.eup %2066  ;;  %v2690_v16 = vpop.permute.xlu1 %1063 }
 0x28c   : > { %v2673_v37 = vpop.eup %2068  ;;  %v2692_v20 = vpop.permute.xlu0 %1088 }
 0x28d   : > { %1917 = vmatmul.mubr.bf16.gmra.mrb[12].mxu1 %v1134_v55 }
 0x28f   : > { %976 = vadd.xlane.f32.xlu1 %v2059_v51  ;;  %974 = vadd.xlane.f32.xlu0 %v2061_v34  ;;  %v2694_v46 = vpop.permute.xlu1 %1083  ;;  %v928_v51 = vld [vmem:[#allocation3 + $0x50] sm:$0xff]  ;;  %v929_v34 = vld [vmem:[#allocation3 + $0x58] sm:$0xff] }
 0x290   : > { %v2696_v22 = vpop.permute.xlu0 %1078  ;;  %v944_v43 = vmul.f32 %v2636_v0, %v928_v51  ;;  %v945_v39 = vmul.f32 %v2626_v50, %v929_v34  ;;  %v933_v0 = vld [vmem:[#allocation3 + $0x78] sm:$0xff] }
 0x291   : > { %v949_v56 = vmul.f32 %v2673_v37, %v933_v0 }
 0x293   : > { %v2698_v23 = vpop.permute.xlu1 %1073 }
 0x294   : > { %v2700_v26 = vpop.permute.xlu0 %1098 }
 0x297   : > { %v2702_v30 = vpop.permute.xlu1 %1093 }
 0x2a0   : > { %1103 = vperm.xlu1 %1989, %v2670_v63  }
 0x2a5   : > { %1108 = vperm.xlu0 %1988, %v2673_v37   ;;  %v1017_v37 = vld [vmem:[#allocation4 + $0x10] sm:$0xff] }
 0x2ef   : > { %v955_v24 = vpop.xlane.xlu0 %954 }
 0x2f0   : > { %v984_v36 = vadd.f32 %v955_v24, %v936_v40  ;;  %v951_v41 = vpop.xlane.xlu1 %950 }
 0x2f1   : > { %v982_v42 = vadd.f32 %v951_v41, %v934_v38  ;;  %v932_v38 = vld [vmem:[#allocation3 + $0x70] sm:$0xff] }
 0x2f2   : > { %1001 = vst.msk [vmem:[#allocation3 + $0x10] sm:$0xff] %vm998_vm4, %v984_v36  ;;  %v948_v41 = vmul.f32 %v2670_v63, %v932_v38 }
 0x2f3   : > { %999 = vst.msk [vmem:[#allocation3] sm:$0xff] %vm998_vm4, %v982_v42 }
 0x2f4   : > { %v957_v48 = vpop.xlane.xlu1 %956 }
 0x2f5   : > { %v985_v19 = vadd.f32 %v957_v48, %v937_v45 }
 0x2f7   : > { %1002 = vst.msk [vmem:[#allocation3 + $0x18] sm:$0xff] %vm998_vm4, %v985_v19  ;;  %v953_v60 = vpop.xlane.xlu0 %952  ;;  %v946_v19 = vmul.f32 %v2645_v18, %v930_v54 }
 0x2f8   : > { %v983_v7 = vadd.f32 %v953_v60, %v935_v9  ;;  %v947_v9 = vmul.f32 %v2638_v11, %v931_v12  ;;  %v1027_v12 = vld [vmem:[#allocation4 + $0x60] sm:$0xff] }
 0x2fa   : > { %1000 = vst.msk [vmem:[#allocation3 + $0x8] sm:$0xff] %vm998_vm4, %v983_v7 }
 0x2fc   : > { %v963_v21 = vpop.xlane.xlu0 %962 }
 0x2fd   : > { %v988_v33 = vadd.f32 %v963_v21, %v940_v29  ;;  %v1015_v29 = vld [vmem:[#allocation4] sm:$0xff]  ;;  %v1018_v21 = vld [vmem:[#allocation4 + $0x18] sm:$0xff] }
 0x2fe   : > { %v1114_v18 = vmul.f32 %v2680_v15, %v1018_v21  ;;  %v1022_v15 = vld [vmem:[#allocation4 + $0x38] sm:$0xff] }
 0x2ff   : > { %1005 = vst.msk [vmem:[#allocation3 + $0x30] sm:$0xff] %vm998_vm4, %v988_v33  ;;  %v1113_v33 = vmul.f32 %v2682_v32, %v1017_v37  ;;  %v1019_v32 = vld [vmem:[#allocation4 + $0x20] sm:$0xff] }
 0x300   : > { %v959_v27 = vpop.xlane.xlu0 %958  ;;  %v1115_v5 = vmul.f32 %v2686_v2, %v1019_v32  ;;  %v1026_v2 = vld [vmem:[#allocation4 + $0x58] sm:$0xff] }
 0x301   : > { %v986_v25 = vadd.f32 %v959_v27, %v938_v49  ;;  %v1111_v49 = vmul.f32 %v2676_v1, %v1015_v29  ;;  %v1021_v1 = vld [vmem:[#allocation4 + $0x30] sm:$0xff] }
 0x302   : > { %v1117_v51 = vmul.f32 %v2690_v16, %v1021_v1  ;;  %v1023_v16 = vld [vmem:[#allocation4 + $0x40] sm:$0xff] }
 0x303   : > { %1003 = vst.msk [vmem:[#allocation3 + $0x20] sm:$0xff] %vm998_vm4, %v986_v25 }
 0x308   : > { %v965_v31 = vpop.xlane.xlu1 %964 }
 0x309   : > { %v989_v47 = vadd.f32 %v965_v31, %v941_v4 }
 0x30b   : > { %1006 = vst.msk [vmem:[#allocation3 + $0x38] sm:$0xff] %vm998_vm4, %v989_v47 }
 0x30c   : > { %v961_v28 = vpop.xlane.xlu1 %960 }
 0x30d   : > { %v987_v6 = vadd.f32 %v961_v28, %v939_v8  ;;  %v1020_v28 = vld [vmem:[#allocation4 + $0x28] sm:$0xff] }
 0x30f   : > { %1004 = vst.msk [vmem:[#allocation3 + $0x28] sm:$0xff] %vm998_vm4, %v987_v6  ;;  %v1118_v6 = vmul.f32 %v2688_v14, %v1022_v15  ;;  %v1024_v14 = vld [vmem:[#allocation4 + $0x48] sm:$0xff] }
 0x310   : > { %v971_v44 = vpop.xlane.xlu0 %970  ;;  %v973_v55 = vpop.xlane.xlu1 %972 }
 0x311   : > { %v992_v52 = vadd.f32 %v971_v44, %v944_v43  ;;  %v993_v61 = vadd.f32 %v973_v55, %v945_v39  ;;  %v1116_v44 = vmul.f32 %v2684_v17, %v1020_v28  ;;  %v1119_v17 = vmul.f32 %v2698_v23, %v1023_v16  ;;  %v1030_v23 = vld [vmem:[#allocation4 + $0x78] sm:$0xff] }
 0x313   : > { %1009 = vst.msk [vmem:[#allocation3 + $0x50] sm:$0xff] %vm998_vm4, %v992_v52  ;;  %1010 = vst.msk [vmem:[#allocation3 + $0x58] sm:$0xff] %vm998_vm4, %v993_v61  ;;  %v1025_v61 = vld [vmem:[#allocation4 + $0x50] sm:$0xff] }
 0x314   : > { %v967_v40 = vpop.xlane.xlu0 %966  ;;  %v969_v24 = vpop.xlane.xlu1 %968 }
 0x315   : > { %v990_v36 = vadd.f32 %v967_v40, %v942_v57  ;;  %v991_v50 = vadd.f32 %v969_v24, %v943_v35  ;;  %v1121_v35 = vmul.f32 %v2694_v46, %v1025_v61  ;;  %v1122_v24 = vmul.f32 %v2692_v20, %v1026_v2 }
 0x317   : > { %1007 = vst.msk [vmem:[#allocation3 + $0x40] sm:$0xff] %vm998_vm4, %v990_v36  ;;  %1008 = vst.msk [vmem:[#allocation3 + $0x48] sm:$0xff] %vm998_vm4, %v991_v50  ;;  %v1120_v36 = vmul.f32 %v2696_v22, %v1024_v14 }
 0x318   : > { %v979_v42 = vpop.xlane.xlu0 %978  ;;  %v981_v45 = vpop.xlane.xlu1 %980 }
 0x319   : > { %v996_v48 = vadd.f32 %v979_v42, %v948_v41  ;;  %v997_v10 = vadd.f32 %v981_v45, %v949_v56  ;;  %v1029_v45 = vld [vmem:[#allocation4 + $0x70] sm:$0xff] }
 0x31b   : > { %1013 = vst.msk [vmem:[#allocation3 + $0x70] sm:$0xff] %vm998_vm4, %v996_v48  ;;  %1014 = vst.msk [vmem:[#allocation3 + $0x78] sm:$0xff] %vm998_vm4, %v997_v10  ;;  %v1028_v48 = vld [vmem:[#allocation4 + $0x68] sm:$0xff]  ;;  %v1123_v10 = vmul.f32 %v2702_v30, %v1027_v12 }
 0x31c   : > { %v975_v60 = vpop.xlane.xlu0 %974  ;;  %v977_v7 = vpop.xlane.xlu1 %976 }
 0x31d   : > { %v994_v13 = vadd.f32 %v975_v60, %v946_v19  ;;  %v995_v63 = vadd.f32 %v977_v7, %v947_v9 }
 0x31f   : > { %1011 = vst.msk [vmem:[#allocation3 + $0x60] sm:$0xff] %vm998_vm4, %v994_v13  ;;  %1012 = vst.msk [vmem:[#allocation3 + $0x68] sm:$0xff] %vm998_vm4, %v995_v63  ;;  %v1124_v13 = vmul.f32 %v2700_v26, %v1028_v48 }
 0x320   : > { %v1104_v54 = vpop.permute.xlu1 %1103 }
 0x321   : > { %v1125_v22 = vmul.f32 %v1104_v54, %v1029_v45 }
 0x324   : > { %v1109_v20 = vpop.permute.xlu0 %1108 }
 0x325   : > { %v1126_v9 = vmul.f32 %v1109_v20, %v1030_v23 }
 0x340   : > { %v1906_v27 = vpop.f32.mrb[0].mxu1 }
 0x341   : > { %v1298_v11 = vadd.f32 %v1906_v27, %v1113_v33  ;;  %v1233_v25 = vpop.f32.mrb[1].mxu1 }
 0x342   : > { %v1296_v4 = vadd.f32 %v1233_v25, %v1111_v49  ;;  %v1907_v31 = vpop.f32.mrb[2].mxu1 }
 0x343   : > { %1314 = vst.msk [vmem:[#allocation4 + $0x10] sm:$0xff] %vm460_vm2, %v1298_v11  ;;  %v1299_v3 = vadd.f32 %v1907_v31, %v1114_v18  ;;  %v1236_v47 = vpop.f32.mrb[3].mxu1 }
 0x344   : > { %1312 = vst.msk [vmem:[#allocation4] sm:$0xff] %vm460_vm2, %v1296_v4  ;;  %v1297_v8 = vadd.f32 %v1236_v47, %v1112_v53 }
 0x345   : > { %1315 = vst.msk [vmem:[#allocation4 + $0x18] sm:$0xff] %vm460_vm2, %v1299_v3 }
 0x346   : > { %1313 = vst.msk [vmem:[#allocation4 + $0x8] sm:$0xff] %vm460_vm2, %v1297_v8 }
 0x350   : > { %v1910_v34 = vpop.f32.mrb[4].mxu1 }
 0x351   : > { %v1302_v43 = vadd.f32 %v1910_v34, %v1117_v51  ;;  %v1249_v39 = vpop.f32.mrb[5].mxu1 }
 0x352   : > { %v1300_v55 = vadd.f32 %v1249_v39, %v1115_v5  ;;  %v1911_v62 = vpop.f32.mrb[6].mxu1 }
 0x353   : > { %1318 = vst.msk [vmem:[#allocation4 + $0x30] sm:$0xff] %vm460_vm2, %v1302_v43  ;;  %v1303_v58 = vadd.f32 %v1911_v62, %v1118_v6  ;;  %v1252_v52 = vpop.f32.mrb[7].mxu1 }
 0x354   : > { %1316 = vst.msk [vmem:[#allocation4 + $0x20] sm:$0xff] %vm460_vm2, %v1300_v55  ;;  %v1301_v57 = vadd.f32 %v1252_v52, %v1116_v44 }
 0x355   : > { %1319 = vst.msk [vmem:[#allocation4 + $0x38] sm:$0xff] %vm460_vm2, %v1303_v58 }
 0x356   : > { %1317 = vst.msk [vmem:[#allocation4 + $0x28] sm:$0xff] %vm460_vm2, %v1301_v57 }
 0x358   : > { %v1914_v40 = vpop.f32.mrb[8].mxu1 }
 0x359   : > { %v1306_v38 = vadd.f32 %v1914_v40, %v1121_v35  ;;  %v1265_v0 = vpop.f32.mrb[9].mxu1 }
 0x35a   : > { %v1304_v50 = vadd.f32 %v1265_v0, %v1119_v17  ;;  %v1915_v41 = vpop.f32.mrb[10].mxu1 }
 0x35b   : > { %1322 = vst.msk [vmem:[#allocation4 + $0x50] sm:$0xff] %vm460_vm2, %v1306_v38  ;;  %v1307_v56 = vadd.f32 %v1915_v41, %v1122_v24  ;;  %v1268_v42 = vpop.f32.mrb[11].mxu1 }
 0x35c   : > { %1320 = vst.msk [vmem:[#allocation4 + $0x40] sm:$0xff] %vm460_vm2, %v1304_v50  ;;  %v1305_v46 = vadd.f32 %v1268_v42, %v1120_v36 }
 0x35d   : > { %1323 = vst.msk [vmem:[#allocation4 + $0x58] sm:$0xff] %vm460_vm2, %v1307_v56 }
 0x35e   : > { %1321 = vst.msk [vmem:[#allocation4 + $0x48] sm:$0xff] %vm460_vm2, %v1305_v46 }
 0x360   : > { %v1918_v19 = vpop.f32.mrb[12].mxu1 }
 0x361   : > { %v1310_v60 = vadd.f32 %v1918_v19, %v1125_v22  ;;  %v1281_v7 = vpop.f32.mrb[13].mxu1 }
 0x362   : > { %v1308_v63 = vadd.f32 %v1281_v7, %v1123_v10  ;;  %v1919_v37 = vpop.f32.mrb[14].mxu1 }
 0x363   : > { %1326 = vst.msk [vmem:[#allocation4 + $0x70] sm:$0xff] %vm460_vm2, %v1310_v60  ;;  %v1311_v29 = vadd.f32 %v1919_v37, %v1126_v9  ;;  %v1284_v21 = vpop.f32.mrb[15].mxu1 }
 0x364   : > { %1324 = vst.msk [vmem:[#allocation4 + $0x60] sm:$0xff] %vm460_vm2, %v1308_v63  ;;  %v1309_v59 = vadd.f32 %v1284_v21, %v1124_v13 }
 0x365   : > { %1327 = vst.msk [vmem:[#allocation4 + $0x78] sm:$0xff] %vm460_vm2, %v1311_v29 }
 0x366   : > { %1325 = vst.msk [vmem:[#allocation4 + $0x68] sm:$0xff] %vm460_vm2, %v1309_v59 }
 0x367 PF: > { %p1750_p11 = scmp.ne.s32.totalorder %s2134_s12, 1 }
 0x368   : > { %v1350_v30 = vld [vmem:[#allocation3 + $0x10] sm:$0xff] (!%p1750_p11)  ;;  %v1348_v33 = vld [vmem:[#allocation3] sm:$0xff] (!%p1750_p11)  ;;  %v1351_v26 = vld [vmem:[#allocation3 + $0x18] sm:$0xff] (!%p1750_p11)  ;;  %v2163_v49 = vmov (!%p1750_p11), 0   ;;  %vm1556_vm2 = vcmask (!%p1750_p11), 257024  }
 0x369   : > { %1347 = sbr.rel (%p1750_p11) target bundleno = 1046 (0x416), region = 44  ;;  %2071 = vset.pattern.permute.xlu1 (!%p1750_p11), %v2163_v49  ;;  %2070 = vset.pattern.permute.xlu0 (!%p1750_p11), %v2163_v49  ;;  %2072 = vrcp.f32 (!%p1750_p11), %v1350_v30  ;;  %v1349_v27 = vld [vmem:[#allocation3 + $0x8] sm:$0xff] (!%p1750_p11)  ;;  %v1352_v11 = vld [vmem:[#allocation3 + $0x20] sm:$0xff] (!%p1750_p11)  ;;  %v1355_v25 = vld [vmem:[#allocation3 + $0x38] sm:$0xff] (!%p1750_p11) }
 0x36a   : > { %2074 = vrcp.f32 (!%p1750_p11), %v1348_v33  ;;  %v1353_v18 = vld [vmem:[#allocation3 + $0x28] sm:$0xff] (!%p1750_p11)  ;;  %v1354_v53 = vld [vmem:[#allocation3 + $0x30] sm:$0xff] (!%p1750_p11)  ;;  %v1356_v8 = vld [vmem:[#allocation3 + $0x40] sm:$0xff] (!%p1750_p11) }
 0x36b   : > { %2076 = vrcp.f32 (!%p1750_p11), %v1351_v26  ;;  %v1357_v3 = vld [vmem:[#allocation3 + $0x48] sm:$0xff] (!%p1750_p11)  ;;  %v1359_v32 = vld [vmem:[#allocation3 + $0x58] sm:$0xff] (!%p1750_p11)  ;;  %v1358_v28 = vld [vmem:[#allocation3 + $0x50] sm:$0xff] (!%p1750_p11) }
 0x36c   : > { %2078 = vrcp.f32 (!%p1750_p11), %v1349_v27  ;;  %v1361_v5 = vld [vmem:[#allocation3 + $0x68] sm:$0xff] (!%p1750_p11)  ;;  %v1360_v6 = vld [vmem:[#allocation3 + $0x60] sm:$0xff] (!%p1750_p11)  ;;  %v1363_v39 = vld [vmem:[#allocation3 + $0x78] sm:$0xff] (!%p1750_p11) }
 0x36d   : > { %2080 = vrcp.f32 (!%p1750_p11), %v1353_v18  ;;  %v1362_v55 = vld [vmem:[#allocation3 + $0x70] sm:$0xff] (!%p1750_p11)  ;;  %v1380_v35 = vld [vmem:[#allocation4] sm:$0xff] (!%p1750_p11)  ;;  %v1383_v0 = vld [vmem:[#allocation4 + $0x18] sm:$0xff] (!%p1750_p11) }
 0x36e   : > { %2082 = vrcp.f32 (!%p1750_p11), %v1352_v11  ;;  %v1382_v14 = vld [vmem:[#allocation4 + $0x10] sm:$0xff] (!%p1750_p11)  ;;  %v1381_v50 = vld [vmem:[#allocation4 + $0x8] sm:$0xff] (!%p1750_p11)  ;;  %v1384_v23 = vld [vmem:[#allocation4 + $0x20] sm:$0xff] (!%p1750_p11) }
 0x36f   : > { %2084 = vrcp.f32 (!%p1750_p11), %v1355_v25  ;;  %v1385_v46 = vld [vmem:[#allocation4 + $0x28] sm:$0xff] (!%p1750_p11)  ;;  %v1387_v9 = vld [vmem:[#allocation4 + $0x38] sm:$0xff] (!%p1750_p11)  ;;  %v1386_v7 = vld [vmem:[#allocation4 + $0x30] sm:$0xff] (!%p1750_p11) }
 0x370   : > { %2086 = vrcp.f32 %v1354_v53  ;;  %v1389_v59 = vld [vmem:[#allocation4 + $0x48] sm:$0xff]  ;;  %v1388_v33 = vld [vmem:[#allocation4 + $0x40] sm:$0xff]  ;;  %v1391_v25 = vld [vmem:[#allocation4 + $0x58] sm:$0xff] }
 0x371   : > { %2088 = vrcp.f32 %v1357_v3 }
 0x372   : > { %2090 = vrcp.f32 %v1356_v8 }
 0x373   : > { %v2073_v4 = vpop.eup %2072  ;;  %2092 = vrcp.f32 %v1359_v32  ;;  %v1393_v32 = vld [vmem:[#allocation4 + $0x68] sm:$0xff] }
 0x374   : > { %v2075_v31 = vpop.eup %2074  ;;  %1408 = vperm.xlu1 %2071, %v2073_v4   ;;  %2094 = vrcp.f32 %v1358_v28  ;;  %v1390_v4 = vld [vmem:[#allocation4 + $0x50] sm:$0xff]  ;;  %v1392_v28 = vld [vmem:[#allocation4 + $0x60] sm:$0xff] }
 0x375   : > { %v2077_v47 = vpop.eup %2076  ;;  %1398 = vperm.xlu0 %2070, %v2075_v31   ;;  %2096 = vrcp.f32 %v1361_v5 }
 0x376   : > { %v2079_v1 = vpop.eup %2078  ;;  %2098 = vrcp.f32 %v1360_v6 }
 0x377   : > { %v2081_v15 = vpop.eup %2080  ;;  %2100 = vrcp.f32 %v1363_v39  ;;  %v1395_v39 = vld [vmem:[#allocation4 + $0x78] sm:$0xff] }
 0x378   : > { %1413 = vperm.xlu1 %2071, %v2077_v47   ;;  %v2083_v51 = vpop.eup %2082  ;;  %2102 = vrcp.f32 %v1362_v55  ;;  %v1394_v55 = vld [vmem:[#allocation4 + $0x70] sm:$0xff] }
 0x379   : > { %1403 = vperm.xlu0 %2070, %v2079_v1   ;;  %v2085_v34 = vpop.eup %2084 }
 0x37a   : > { %v2087_v43 = vpop.eup %2086 }
 0x37b   : > { %v2089_v44 = vpop.eup %2088 }
 0x37c   : > { %1423 = vperm.xlu1 %2071, %v2081_v15   ;;  %v2091_v62 = vpop.eup %2090 }
 0x37d   : > { %1418 = vperm.xlu0 %2070, %v2083_v51   ;;  %v2093_v58 = vpop.eup %2092 }
 0x37e   : > { %v2095_v52 = vpop.eup %2094 }
 0x37f   : > { %v2097_v61 = vpop.eup %2096 }
 0x380   : > { %1433 = vperm.xlu1 %2071, %v2085_v34   ;;  %v2099_v57 = vpop.eup %2098 }
 0x381   : > { %1428 = vperm.xlu0 %2070, %v2087_v43   ;;  %v2101_v16 = vpop.eup %2100 }
 0x382   : > { %v2103_v2 = vpop.eup %2102 }
 0x384   : > { %1443 = vperm.xlu1 %2071, %v2089_v44  }
 0x385   : > { %1438 = vperm.xlu0 %2070, %v2091_v62  }
 0x388   : > { %1453 = vperm.xlu1 %2071, %v2093_v58  }
 0x389   : > { %1448 = vperm.xlu0 %2070, %v2095_v52  }
 0x38c   : > { %1463 = vperm.xlu1 %2071, %v2097_v61  }
 0x38d   : > { %1458 = vperm.xlu0 %2070, %v2099_v57  }
 0x390   : > { %1473 = vperm.xlu1 %2071, %v2101_v16  }
 0x391   : > { %1468 = vperm.xlu0 %2070, %v2103_v2  }
 0x3f3   : > { %v1409_v17 = vpop.permute.xlu1 %1408 }
 0x3f4   : > { %v1478_v40 = vmul.f32 %v1409_v17, %v1382_v14  ;;  %v1399_v24 = vpop.permute.xlu0 %1398 }
 0x3f5   : > { %v1476_v38 = vmul.f32 %v1399_v24, %v1380_v35 }
 0x3f6   : > { %v1771_v36 = vpack.c.bf16 %v1478_v40, %v1478_v40 }
 0x3f7   : > { %v1769_v41 = vpack.c.bf16 %v1476_v38, %v1476_v38  ;;  %v1414_v56 = vpop.permute.xlu1 %1413 }
 0x3f8   : > { %1559 = vst.msk [vmem:[%s2240_s5 + $0x8] sm:$0xf] %vm1556_vm2, %v1771_v36  ;;  %v1479_v42 = vmul.f32 %v1414_v56, %v1383_v0  ;;  %v1404_v45 = vpop.permute.xlu0 %1403 }
 0x3f9   : > { %1557 = vst.msk [vmem:[%s2240_s5] sm:$0xf] %vm1556_vm2, %v1769_v41  ;;  %v1477_v54 = vmul.f32 %v1404_v45, %v1381_v50 }
 0x3fa   : > { %v1772_v12 = vpack.c.bf16 %v1479_v42, %v1479_v42 }
 0x3fb   : > { %v1770_v20 = vpack.c.bf16 %v1477_v54, %v1477_v54  ;;  %v1424_v48 = vpop.permute.xlu1 %1423 }
 0x3fc   : > { %1560 = vst.msk [vmem:[%s2240_s5 + $0xc] sm:$0xf] %vm1556_vm2, %v1772_v12  ;;  %v1481_v22 = vmul.f32 %v1424_v48, %v1385_v46  ;;  %v1419_v10 = vpop.permute.xlu0 %1418 }
 0x3fd   : > { %1558 = vst.msk [vmem:[%s2240_s5 + $0x4] sm:$0xf] %vm1556_vm2, %v1770_v20  ;;  %v1480_v19 = vmul.f32 %v1419_v10, %v1384_v23 }
 0x3fe   : > { %v1774_v60 = vpack.c.bf16 %v1481_v22, %v1481_v22 }
 0x3ff   : > { %v1773_v13 = vpack.c.bf16 %v1480_v19, %v1480_v19  ;;  %v1434_v63 = vpop.permute.xlu1 %1433 }
 0x400   : > { %1562 = vst.msk [vmem:[%s2240_s5 + $0x14] sm:$0xf] %vm1556_vm2, %v1774_v60  ;;  %v1483_v37 = vmul.f32 %v1434_v63, %v1387_v9  ;;  %v1429_v29 = vpop.permute.xlu0 %1428 }
 0x401   : > { %1561 = vst.msk [vmem:[%s2240_s5 + $0x10] sm:$0xf] %vm1556_vm2, %v1773_v13  ;;  %v1482_v21 = vmul.f32 %v1429_v29, %v1386_v7 }
 0x402   : > { %v1776_v30 = vpack.c.bf16 %v1483_v37, %v1483_v37 }
 0x403   : > { %v1775_v26 = vpack.c.bf16 %v1482_v21, %v1482_v21  ;;  %v1444_v49 = vpop.permute.xlu1 %1443 }
 0x404   : > { %1564 = vst.msk [vmem:[%s2240_s5 + $0x1c] sm:$0xf] %vm1556_vm2, %v1776_v30  ;;  %v1485_v27 = vmul.f32 %v1444_v49, %v1389_v59  ;;  %v1439_v18 = vpop.permute.xlu0 %1438 }
 0x405   : > { %1563 = vst.msk [vmem:[%s2240_s5 + $0x18] sm:$0xf] %vm1556_vm2, %v1775_v26  ;;  %v1484_v11 = vmul.f32 %v1439_v18, %v1388_v33 }
 0x406   : > { %v1778_v53 = vpack.c.bf16 %v1485_v27, %v1485_v27 }
 0x407   : > { %v1777_v31 = vpack.c.bf16 %v1484_v11, %v1484_v11  ;;  %v1454_v3 = vpop.permute.xlu1 %1453 }
 0x408   : > { %1566 = vst.msk [vmem:[%s2240_s5 + $0x24] sm:$0xf] %vm1556_vm2, %v1778_v53  ;;  %v1487_v47 = vmul.f32 %v1454_v3, %v1391_v25  ;;  %v1449_v8 = vpop.permute.xlu0 %1448 }
 0x409   : > { %1565 = vst.msk [vmem:[%s2240_s5 + $0x20] sm:$0xf] %vm1556_vm2, %v1777_v31  ;;  %v1486_v1 = vmul.f32 %v1449_v8, %v1390_v4 }
 0x40a   : > { %v1780_v15 = vpack.c.bf16 %v1487_v47, %v1487_v47 }
 0x40b   : > { %v1779_v51 = vpack.c.bf16 %v1486_v1, %v1486_v1  ;;  %v1464_v5 = vpop.permute.xlu1 %1463 }
 0x40c   : > { %1568 = vst.msk [vmem:[%s2240_s5 + $0x2c] sm:$0xf] %vm1556_vm2, %v1780_v15  ;;  %v1489_v34 = vmul.f32 %v1464_v5, %v1393_v32  ;;  %v1459_v6 = vpop.permute.xlu0 %1458 }
 0x40d   : > { %1567 = vst.msk [vmem:[%s2240_s5 + $0x28] sm:$0xf] %vm1556_vm2, %v1779_v51  ;;  %v1488_v43 = vmul.f32 %v1459_v6, %v1392_v28 }
 0x40e   : > { %v1782_v44 = vpack.c.bf16 %v1489_v34, %v1489_v34 }
 0x40f   : > { %v1781_v62 = vpack.c.bf16 %v1488_v43, %v1488_v43  ;;  %v1474_v58 = vpop.permute.xlu1 %1473 }
 0x410   : > { %1570 = vst.msk [vmem:[%s2240_s5 + $0x34] sm:$0xf] %vm1556_vm2, %v1782_v44  ;;  %v1491_v52 = vmul.f32 %v1474_v58, %v1395_v39  ;;  %v1469_v61 = vpop.permute.xlu0 %1468 }
 0x411   : > { %1569 = vst.msk [vmem:[%s2240_s5 + $0x30] sm:$0xf] %vm1556_vm2, %v1781_v62  ;;  %v1490_v57 = vmul.f32 %v1469_v61, %v1394_v55 }
 0x412   : > { %v1784_v16 = vpack.c.bf16 %v1491_v52, %v1491_v52 }
 0x413   : > { %v1783_v2 = vpack.c.bf16 %v1490_v57, %v1490_v57 }
 0x414   : > { %1572 = vst.msk [vmem:[%s2240_s5 + $0x3c] sm:$0xf] %vm1556_vm2, %v1784_v16 }
 0x415   : > { %1571 = vst.msk [vmem:[%s2240_s5 + $0x38] sm:$0xf] %vm1556_vm2, %v1783_v2 }
 0x416 PF: > { %s13_s18 = sadd.s32 1, %s2158_s18   ;;  %s2824_s12 = smov %s2146_s15 }
 0x417   : > { %p10_p12 = scmp.ge.s32.totalorder %s13_s18, 34   ;;  %s2825_s13 = smov %s2150_s16 }
 0x418   : > { %s2826_s14 = smov %s2154_s17  ;;  %s2827_s15 = smov %s2831_s19 }
 0x419   : > { %s2828_s16 = smov %s2835_s20  ;;  %s2829_s17 = smov %s2839_s21 }
 0x41a   :  { %12 = sbr.rel (!%p10_p12) target bundleno = 4 (0x4), region = 80 }

// kernel: gpt_forward.13
= control target key start
LH: loop header
LB: loop body
LE: loop exit
PB: predicated region body
PF: predicated region fallthrough
CT: control target
= control target key end

     0   :  { %s1084_s15 = smov 0   ;;  %s1086_s16 = smov 0   ;;  %s1271_s0 = inlined_call_operand.vmem [shape: bf16[512,128], index: 0, kind: input, shape index: {}]   ;;  %s1272_s1 = inlined_call_operand.vmem [shape: bf16[128,128], index: 1, kind: input, shape index: {}]   ;;  %s1273_s2 = inlined_call_operand.vmem [shape: f32[1,128], index: 2, kind: input, shape index: {}]   ;;  %s1274_s3 = inlined_call_operand.vmem [shape: f32[512,128], index: 3, kind: input, shape index: {}]   ;;  %s1275_s4 = inlined_call_operand.vmem [shape: f32[512,128], index: 4, kind: output, shape index: {}]  }
   0x1   :  { %s1088_s17 = smov 0  }
   0x2 LB: > { %s26_s18 = sadd.s32 1, %s1053_s16  ;;  %p865_p0 = scmp.ge.s32.totalorder %s1057_s17, 1  ;;  %s1057_s17 = sphi %s1088_s17, %s14_s17   ;;  %s1053_s16 = sphi %s1086_s16, %s1277_s16   ;;  %s1049_s15 = sphi %s1084_s15, %s1276_s15  }
   0x3   : > { %p28_p1 = scmp.ge.s32.totalorder %s26_s18, 2  ;;  %p210_p2 = scmp.lt.s32.totalorder %s1057_s17, 3 }
   0x5   : > { %s1279_s18 = smov (%p28_p1, %s26_s18), 0  ;;  %p211_p3 = pnand %p865_p0, %p210_p2 }
   0x6   : > { %v1011_v0 = vld [vmem:[%s1272_s1] sm:$0xff] (!%p211_p3)   ;;  %s866_s21 = sshll.u32 (!%p211_p3), %s1049_s15, 5  ;;  %v1012_v1 = vld [vmem:[%s1272_s1 + $0x8] sm:$0xff] (!%p211_p3)   ;;  %v1013_v2 = vld [vmem:[%s1272_s1 + $0x10] sm:$0xff] (!%p211_p3)  }
   0x7   : > { %214 = sbr.rel (%p211_p3) target bundleno = 283 (0x11b), region = 36  ;;  %p255_p4 = scmp.lt.s32.totalorder (!%p211_p3), %s866_s21, 63  ;;  %923 = vmatprep.subr.bf16.mxu0 (!%p211_p3), %v1011_v0  ;;  %971 = vmatprep.subr.bf16.mxu1 (!%p211_p3), %v1011_v0  ;;  %v1014_v3 = vld [vmem:[%s1272_s1 + $0x18] sm:$0xff] (!%p211_p3)   ;;  %v1015_v6 = vld [vmem:[%s1272_s1 + $0x20] sm:$0xff] (!%p211_p3)   ;;  %v1016_v7 = vld [vmem:[%s1272_s1 + $0x28] sm:$0xff] (!%p211_p3)  }
   0x8   : > { %924 = vmatpush3.bf16.msra.mxu0 (!%p211_p3), %v1011_v0  ;;  %979 = vmatpush3.bf16.msra.mxu1 (!%p211_p3), %v1011_v0  ;;  %v1017_v8 = vld [vmem:[%s1272_s1 + $0x30] sm:$0xff] (!%p211_p3)   ;;  %v1018_v9 = vld [vmem:[%s1272_s1 + $0x38] sm:$0xff] (!%p211_p3)   ;;  %v1159_v24 = vld [vmem:[%s1273_s2] ss:$0 sm:$0xff] (!%p211_p3) }
   0x9   : > { %925 = vmatprep.subr.bf16.mxu0 (!%p211_p3), %v1012_v1  ;;  %972 = vmatprep.subr.bf16.mxu1 (!%p211_p3), %v1012_v1 }
   0xc   : > { %926 = vmatpush3.bf16.msra.mxu0 (!%p211_p3), %v1012_v1  ;;  %980 = vmatpush3.bf16.msra.mxu1 (!%p211_p3), %v1012_v1 }
   0xd   : > { %927 = vmatprep.subr.bf16.mxu0 (!%p211_p3), %v1013_v2  ;;  %973 = vmatprep.subr.bf16.mxu1 (!%p211_p3), %v1013_v2 }
   0xe   : > { %s1281_s21 = smov (!%p255_p4, %s866_s21), 63 }
   0xf   : > { %s867_s26 = sshll.u32 %s1281_s21, 2  ;;  %s869_s14 = sshll.u32 %s1281_s21, 3 }
  0x10   : > { %s1117_s29 = scalar_lea.vmem %s1271_s0, %s867_s26  ;;  %928 = vmatpush3.bf16.msra.mxu0 %v1013_v2  ;;  %981 = vmatpush3.bf16.msra.mxu1 %v1013_v2  ;;  %s1154_s20 = scalar_lea.vmem %s1274_s3, %s869_s14 }
  0x11   : > { %v1019_v4 = vld [vmem:[%s1117_s29] sm:$0xff]   ;;  %929 = vmatprep.subr.bf16.mxu0 %v1014_v3  ;;  %974 = vmatprep.subr.bf16.mxu1 %v1014_v3  ;;  %v1021_v10 = vld [vmem:[%s1117_s29 + $0x8] sm:$0xff]   ;;  %v1023_v12 = vld [vmem:[%s1117_s29 + $0x10] sm:$0xff]   ;;  %s1170_s25 = scalar_lea.vmem %s1275_s4, %s869_s14 }
  0x12   : > { %v1020_v5 = vld [vmem:[%s1117_s29 + $0x40] sm:$0xff]   ;;  %939 = vmatprep.mubr.bf16.mxu0 %v1019_v4  ;;  %v1022_v11 = vld [vmem:[%s1117_s29 + $0x48] sm:$0xff]   ;;  %v1024_v13 = vld [vmem:[%s1117_s29 + $0x50] sm:$0xff]  }
  0x13   : > { %955 = vmatprep.mubr.bf16.mxu1 %v1020_v5  ;;  %v1025_v14 = vld [vmem:[%s1117_s29 + $0x18] sm:$0xff]   ;;  %v1027_v16 = vld [vmem:[%s1117_s29 + $0x20] sm:$0xff]   ;;  %v1029_v18 = vld [vmem:[%s1117_s29 + $0x28] sm:$0xff]  }
  0x14   : > { %930 = vmatpush3.bf16.msra.mxu0 %v1014_v3  ;;  %982 = vmatpush3.bf16.msra.mxu1 %v1014_v3  ;;  %v1026_v15 = vld [vmem:[%s1117_s29 + $0x58] sm:$0xff]   ;;  %v1028_v17 = vld [vmem:[%s1117_s29 + $0x60] sm:$0xff]   ;;  %v1030_v19 = vld [vmem:[%s1117_s29 + $0x68] sm:$0xff]  }
  0x15   : > { %931 = vmatprep.subr.bf16.mxu0 %v1015_v6  ;;  %975 = vmatprep.subr.bf16.mxu1 %v1015_v6  ;;  %v1031_v20 = vld [vmem:[%s1117_s29 + $0x30] sm:$0xff]   ;;  %v1033_v22 = vld [vmem:[%s1117_s29 + $0x38] sm:$0xff]   ;;  %v646_v32 = vld [vmem:[%s1154_s20] sm:$0xff] }
  0x16   : > { %v1032_v21 = vld [vmem:[%s1117_s29 + $0x70] sm:$0xff]   ;;  %v1034_v23 = vld [vmem:[%s1117_s29 + $0x78] sm:$0xff]   ;;  %v662_v34 = vld [vmem:[%s1154_s20 + $0x80] sm:$0xff] }
  0x17   : > { %v648_v26 = vld [vmem:[%s1154_s20 + $0x10] sm:$0xff]  ;;  %v649_v38 = vld [vmem:[%s1154_s20 + $0x18] sm:$0xff]  ;;  %v647_v46 = vld [vmem:[%s1154_s20 + $0x8] sm:$0xff] }
  0x18   : > { %932 = vmatpush3.bf16.msra.mxu0 %v1015_v6  ;;  %983 = vmatpush3.bf16.msra.mxu1 %v1015_v6  ;;  %v664_v28 = vld [vmem:[%s1154_s20 + $0x90] sm:$0xff]  ;;  %v665_v40 = vld [vmem:[%s1154_s20 + $0x98] sm:$0xff]  ;;  %v663_v48 = vld [vmem:[%s1154_s20 + $0x88] sm:$0xff] }
  0x19   : > { %933 = vmatprep.subr.bf16.mxu0 %v1016_v7  ;;  %976 = vmatprep.subr.bf16.mxu1 %v1016_v7  ;;  %v652_v58 = vld [vmem:[%s1154_s20 + $0x30] sm:$0xff]  ;;  %v650_v0 = vld [vmem:[%s1154_s20 + $0x20] sm:$0xff]  ;;  %v653_v6 = vld [vmem:[%s1154_s20 + $0x38] sm:$0xff] }
  0x1a   : > { %v668_v60 = vld [vmem:[%s1154_s20 + $0xb0] sm:$0xff]  ;;  %v666_v2 = vld [vmem:[%s1154_s20 + $0xa0] sm:$0xff] }
  0x1c   : > { %934 = vmatpush3.bf16.msra.mxu0 %v1016_v7  ;;  %984 = vmatpush3.bf16.msra.mxu1 %v1016_v7 }
  0x1d   : > { %935 = vmatprep.subr.bf16.mxu0 %v1017_v8  ;;  %977 = vmatprep.subr.bf16.mxu1 %v1017_v8 }
  0x20   : > { %936 = vmatpush3.bf16.msra.mxu0 %v1017_v8  ;;  %985 = vmatpush3.bf16.msra.mxu1 %v1017_v8  ;;  %v669_v8 = vld [vmem:[%s1154_s20 + $0xb8] sm:$0xff] }
  0x21   : > { %937 = vmatprep.subr.bf16.mxu0 %v1018_v9  ;;  %978 = vmatprep.subr.bf16.mxu1 %v1018_v9 }
  0x24   : > { %938 = vmatpush3.bf16.msra.mxu0 %v1018_v9  ;;  %986 = vmatpush3.bf16.msra.mxu1 %v1018_v9 }
  0x27   : > { %940 = vmatmul.mubr.bf16.vlgmr.msra.gmra.mrb[0].mxu0 %v1021_v10  ;;  %956 = vmatmul.mubr.bf16.vlgmr.msra.gmra.mrb[0].mxu1 %v1022_v11 }
  0x28   : > { %943 = vmatprep.mubr.bf16.mxu0 %v1023_v12  ;;  %959 = vmatprep.mubr.bf16.mxu1 %v1024_v13 }
  0x2f   : > { %944 = vmatmul.mubr.bf16.gmra.mrb[4].mxu0 %v1025_v14  ;;  %960 = vmatmul.mubr.bf16.gmra.mrb[4].mxu1 %v1026_v15  ;;  %v651_v14 = vld [vmem:[%s1154_s20 + $0x28] sm:$0xff] }
  0x30   : > { %947 = vmatprep.mubr.bf16.mxu0 %v1027_v16  ;;  %963 = vmatprep.mubr.bf16.mxu1 %v1028_v17  ;;  %v667_v16 = vld [vmem:[%s1154_s20 + $0xa8] sm:$0xff] }
  0x37   : > { %948 = vmatmul.mubr.bf16.gmra.mrb[8].mxu0 %v1029_v18  ;;  %964 = vmatmul.mubr.bf16.gmra.mrb[8].mxu1 %v1030_v19 }
  0x38   : > { %951 = vmatprep.mubr.bf16.mxu0 %v1031_v20  ;;  %967 = vmatprep.mubr.bf16.mxu1 %v1032_v21 }
  0x3f   : > { %952 = vmatmul.mubr.bf16.gmra.mrb[12].mxu0 %v1033_v22  ;;  %968 = vmatmul.mubr.bf16.gmra.mrb[12].mxu1 %v1034_v23 }
  0xfa   : > { %v941_v25 = vpop.f32.mrb[0].mxu0  ;;  %v957_v27 = vpop.f32.mrb[0].mxu1 }
  0xfb   : > { %v528_v29 = vadd.f32 %v941_v25, %v1159_v24  ;;  %v592_v30 = vadd.f32 %v957_v27, %v1159_v24  ;;  %v519_v31 = vpop.f32.mrb[1].mxu0  ;;  %v583_v33 = vpop.f32.mrb[1].mxu1  ;;  %v656_v27 = vld [vmem:[%s1154_s20 + $0x50] sm:$0xff] }
  0xfc   : > { %v520_v35 = vadd.f32 %v1159_v24, %v519_v31  ;;  %v584_v36 = vadd.f32 %v1159_v24, %v583_v33  ;;  %v942_v37 = vpop.f32.mrb[2].mxu0  ;;  %v958_v39 = vpop.f32.mrb[2].mxu1  ;;  %v654_v33 = vld [vmem:[%s1154_s20 + $0x40] sm:$0xff] }
  0xfd   : > { %v680_v41 = vadd.f32 %v648_v26, %v528_v29  ;;  %v696_v42 = vadd.f32 %v664_v28, %v592_v30  ;;  %v531_v43 = vadd.f32 %v942_v37, %v1159_v24  ;;  %v595_v44 = vadd.f32 %v958_v39, %v1159_v24  ;;  %v522_v45 = vpop.f32.mrb[3].mxu0  ;;  %v586_v47 = vpop.f32.mrb[3].mxu1  ;;  %v672_v29 = vld [vmem:[%s1154_s20 + $0xd0] sm:$0xff]  ;;  %v657_v39 = vld [vmem:[%s1154_s20 + $0x58] sm:$0xff] }
  0xfe   : > { %v678_v49 = vadd.f32 %v646_v32, %v520_v35  ;;  %v694_v50 = vadd.f32 %v662_v34, %v584_v36  ;;  %v523_v51 = vadd.f32 %v1159_v24, %v522_v45  ;;  %v587_v52 = vadd.f32 %v1159_v24, %v586_v47  ;;  %v670_v35 = vld [vmem:[%s1154_s20 + $0xc0] sm:$0xff]  ;;  %v655_v47 = vld [vmem:[%s1154_s20 + $0x48] sm:$0xff] }
  0xff   : > { %712 = vst [vmem:[%s1170_s25 + $0x10] sm:$0xff] %v680_v41  ;;  %728 = vst [vmem:[%s1170_s25 + $0x90] sm:$0xff] %v696_v42  ;;  %v681_v53 = vadd.f32 %v649_v38, %v531_v43  ;;  %v697_v54 = vadd.f32 %v665_v40, %v595_v44  ;;  %v673_v41 = vld [vmem:[%s1154_s20 + $0xd8] sm:$0xff] }
 0x100   : > { %710 = vst [vmem:[%s1170_s25] sm:$0xff] %v678_v49  ;;  %726 = vst [vmem:[%s1170_s25 + $0x80] sm:$0xff] %v694_v50  ;;  %v679_v55 = vadd.f32 %v647_v46, %v523_v51  ;;  %v695_v56 = vadd.f32 %v663_v48, %v587_v52  ;;  %v671_v49 = vld [vmem:[%s1154_s20 + $0xc8] sm:$0xff] }
 0x101   : > { %713 = vst [vmem:[%s1170_s25 + $0x18] sm:$0xff] %v681_v53  ;;  %729 = vst [vmem:[%s1170_s25 + $0x98] sm:$0xff] %v697_v54 }
 0x102   : > { %711 = vst [vmem:[%s1170_s25 + $0x8] sm:$0xff] %v679_v55  ;;  %727 = vst [vmem:[%s1170_s25 + $0x88] sm:$0xff] %v695_v56  ;;  %v945_v57 = vpop.f32.mrb[4].mxu0  ;;  %v961_v59 = vpop.f32.mrb[4].mxu1 }
 0x103   : > { %v544_v61 = vadd.f32 %v945_v57, %v1159_v24  ;;  %v608_v62 = vadd.f32 %v961_v59, %v1159_v24  ;;  %v535_v63 = vpop.f32.mrb[5].mxu0  ;;  %v599_v1 = vpop.f32.mrb[5].mxu1  ;;  %v660_v59 = vld [vmem:[%s1154_s20 + $0x70] sm:$0xff] }
 0x104   : > { %v536_v3 = vadd.f32 %v1159_v24, %v535_v63  ;;  %v600_v4 = vadd.f32 %v1159_v24, %v599_v1  ;;  %v946_v5 = vpop.f32.mrb[6].mxu0  ;;  %v962_v7 = vpop.f32.mrb[6].mxu1  ;;  %v658_v1 = vld [vmem:[%s1154_s20 + $0x60] sm:$0xff] }
 0x105   : > { %v684_v9 = vadd.f32 %v652_v58, %v544_v61  ;;  %v700_v10 = vadd.f32 %v668_v60, %v608_v62  ;;  %v547_v11 = vadd.f32 %v946_v5, %v1159_v24  ;;  %v611_v12 = vadd.f32 %v962_v7, %v1159_v24  ;;  %v538_v13 = vpop.f32.mrb[7].mxu0  ;;  %v602_v15 = vpop.f32.mrb[7].mxu1  ;;  %v676_v61 = vld [vmem:[%s1154_s20 + $0xf0] sm:$0xff]  ;;  %v661_v7 = vld [vmem:[%s1154_s20 + $0x78] sm:$0xff] }
 0x106   : > { %v682_v17 = vadd.f32 %v650_v0, %v536_v3  ;;  %v698_v18 = vadd.f32 %v666_v2, %v600_v4  ;;  %v539_v19 = vadd.f32 %v1159_v24, %v538_v13  ;;  %v603_v20 = vadd.f32 %v1159_v24, %v602_v15  ;;  %v674_v3 = vld [vmem:[%s1154_s20 + $0xe0] sm:$0xff]  ;;  %v659_v15 = vld [vmem:[%s1154_s20 + $0x68] sm:$0xff] }
 0x107   : > { %716 = vst [vmem:[%s1170_s25 + $0x30] sm:$0xff] %v684_v9  ;;  %732 = vst [vmem:[%s1170_s25 + $0xb0] sm:$0xff] %v700_v10  ;;  %v685_v21 = vadd.f32 %v653_v6, %v547_v11  ;;  %v701_v22 = vadd.f32 %v669_v8, %v611_v12  ;;  %v677_v9 = vld [vmem:[%s1154_s20 + $0xf8] sm:$0xff] }
 0x108   : > { %714 = vst [vmem:[%s1170_s25 + $0x20] sm:$0xff] %v682_v17  ;;  %730 = vst [vmem:[%s1170_s25 + $0xa0] sm:$0xff] %v698_v18  ;;  %v683_v23 = vadd.f32 %v651_v14, %v539_v19  ;;  %v699_v25 = vadd.f32 %v667_v16, %v603_v20  ;;  %v675_v17 = vld [vmem:[%s1154_s20 + $0xe8] sm:$0xff] }
 0x109   : > { %717 = vst [vmem:[%s1170_s25 + $0x38] sm:$0xff] %v685_v21  ;;  %733 = vst [vmem:[%s1170_s25 + $0xb8] sm:$0xff] %v701_v22 }
 0x10a   : > { %715 = vst [vmem:[%s1170_s25 + $0x28] sm:$0xff] %v683_v23  ;;  %731 = vst [vmem:[%s1170_s25 + $0xa8] sm:$0xff] %v699_v25  ;;  %v949_v26 = vpop.f32.mrb[8].mxu0  ;;  %v965_v28 = vpop.f32.mrb[8].mxu1 }
 0x10b   : > { %v560_v30 = vadd.f32 %v949_v26, %v1159_v24  ;;  %v624_v31 = vadd.f32 %v965_v28, %v1159_v24  ;;  %v551_v32 = vpop.f32.mrb[9].mxu0  ;;  %v615_v34 = vpop.f32.mrb[9].mxu1 }
 0x10c   : > { %v552_v36 = vadd.f32 %v1159_v24, %v551_v32  ;;  %v616_v37 = vadd.f32 %v1159_v24, %v615_v34  ;;  %v950_v38 = vpop.f32.mrb[10].mxu0  ;;  %v966_v40 = vpop.f32.mrb[10].mxu1 }
 0x10d   : > { %v688_v42 = vadd.f32 %v656_v27, %v560_v30  ;;  %v704_v43 = vadd.f32 %v672_v29, %v624_v31  ;;  %v563_v44 = vadd.f32 %v950_v38, %v1159_v24  ;;  %v627_v45 = vadd.f32 %v966_v40, %v1159_v24  ;;  %v554_v46 = vpop.f32.mrb[11].mxu0  ;;  %v618_v48 = vpop.f32.mrb[11].mxu1 }
 0x10e   : > { %v686_v50 = vadd.f32 %v654_v33, %v552_v36  ;;  %v702_v51 = vadd.f32 %v670_v35, %v616_v37  ;;  %v555_v52 = vadd.f32 %v1159_v24, %v554_v46  ;;  %v619_v53 = vadd.f32 %v1159_v24, %v618_v48 }
 0x10f   : > { %720 = vst [vmem:[%s1170_s25 + $0x50] sm:$0xff] %v688_v42  ;;  %736 = vst [vmem:[%s1170_s25 + $0xd0] sm:$0xff] %v704_v43  ;;  %v689_v54 = vadd.f32 %v657_v39, %v563_v44  ;;  %v705_v55 = vadd.f32 %v673_v41, %v627_v45 }
 0x110   : > { %718 = vst [vmem:[%s1170_s25 + $0x40] sm:$0xff] %v686_v50  ;;  %734 = vst [vmem:[%s1170_s25 + $0xc0] sm:$0xff] %v702_v51  ;;  %v687_v56 = vadd.f32 %v655_v47, %v555_v52  ;;  %v703_v57 = vadd.f32 %v671_v49, %v619_v53 }
 0x111   : > { %721 = vst [vmem:[%s1170_s25 + $0x58] sm:$0xff] %v689_v54  ;;  %737 = vst [vmem:[%s1170_s25 + $0xd8] sm:$0xff] %v705_v55 }
 0x112   : > { %719 = vst [vmem:[%s1170_s25 + $0x48] sm:$0xff] %v687_v56  ;;  %735 = vst [vmem:[%s1170_s25 + $0xc8] sm:$0xff] %v703_v57  ;;  %v953_v58 = vpop.f32.mrb[12].mxu0  ;;  %v969_v60 = vpop.f32.mrb[12].mxu1 }
 0x113   : > { %v576_v62 = vadd.f32 %v953_v58, %v1159_v24  ;;  %v640_v63 = vadd.f32 %v969_v60, %v1159_v24  ;;  %v567_v0 = vpop.f32.mrb[13].mxu0  ;;  %v631_v2 = vpop.f32.mrb[13].mxu1 }
 0x114   : > { %v568_v4 = vadd.f32 %v1159_v24, %v567_v0  ;;  %v632_v5 = vadd.f32 %v1159_v24, %v631_v2  ;;  %v954_v6 = vpop.f32.mrb[14].mxu0  ;;  %v970_v8 = vpop.f32.mrb[14].mxu1 }
 0x115   : > { %v692_v10 = vadd.f32 %v660_v59, %v576_v62  ;;  %v708_v11 = vadd.f32 %v676_v61, %v640_v63  ;;  %v579_v12 = vadd.f32 %v954_v6, %v1159_v24  ;;  %v643_v13 = vadd.f32 %v970_v8, %v1159_v24  ;;  %v570_v14 = vpop.f32.mrb[15].mxu0  ;;  %v634_v16 = vpop.f32.mrb[15].mxu1 }
 0x116   : > { %v690_v18 = vadd.f32 %v658_v1, %v568_v4  ;;  %v706_v19 = vadd.f32 %v674_v3, %v632_v5  ;;  %v571_v20 = vadd.f32 %v1159_v24, %v570_v14  ;;  %v635_v21 = vadd.f32 %v1159_v24, %v634_v16 }
 0x117   : > { %724 = vst [vmem:[%s1170_s25 + $0x70] sm:$0xff] %v692_v10  ;;  %740 = vst [vmem:[%s1170_s25 + $0xf0] sm:$0xff] %v708_v11  ;;  %v693_v22 = vadd.f32 %v661_v7, %v579_v12  ;;  %v709_v23 = vadd.f32 %v677_v9, %v643_v13 }
 0x118   : > { %722 = vst [vmem:[%s1170_s25 + $0x60] sm:$0xff] %v690_v18  ;;  %738 = vst [vmem:[%s1170_s25 + $0xe0] sm:$0xff] %v706_v19  ;;  %v691_v25 = vadd.f32 %v659_v15, %v571_v20  ;;  %v707_v26 = vadd.f32 %v675_v17, %v635_v21 }
 0x119   : > { %725 = vst [vmem:[%s1170_s25 + $0x78] sm:$0xff] %v693_v22  ;;  %741 = vst [vmem:[%s1170_s25 + $0xf8] sm:$0xff] %v709_v23 }
 0x11a   : > { %723 = vst [vmem:[%s1170_s25 + $0x68] sm:$0xff] %v691_v25  ;;  %739 = vst [vmem:[%s1170_s25 + $0xe8] sm:$0xff] %v707_v26 }
 0x11b PF: > { %s14_s17 = sadd.s32 1, %s1057_s17   ;;  %s1276_s15 = smov %s1053_s16 }
 0x11c   : > { %p11_p5 = scmp.ge.s32.totalorder %s14_s17, 4   ;;  %s1277_s16 = smov %s1279_s18 }
 0x11e   :  { %13 = sbr.rel (!%p11_p5) target bundleno = 2 (0x2), region = 75 }

// kernel: gpt_forward.15
= control target key start
LH: loop header
LB: loop body
LE: loop exit
PB: predicated region body
PF: predicated region fallthrough
CT: control target
= control target key end

     0   :  { %s2010_s15 = smov 0   ;;  %s2012_s16 = smov 0   ;;  %s2320_s0 = inlined_call_operand.vmem [shape: bf16[512,512], index: 0, kind: input, shape index: {}]   ;;  %s2321_s1 = inlined_call_operand.vmem [shape: bf16[512,128], index: 1, kind: input, shape index: {}]   ;;  %s2322_s2 = inlined_call_operand.vmem [shape: f32[1,128], index: 2, kind: input, shape index: {}]   ;;  %s2323_s3 = inlined_call_operand.vmem [shape: f32[512,128], index: 3, kind: input, shape index: {}]   ;;  %s2324_s4 = inlined_call_operand.vmem [shape: f32[512,128], index: 4, kind: output, shape index: {}]  }
   0x1   :  { %s2014_s17 = smov 0  }
   0x2 LB: > { %s26_s18 = sadd.s32 1, %s1979_s16  ;;  %p1477_p0 = scmp.ge.s32.totalorder %s1983_s17, 1  ;;  %s1983_s17 = sphi %s2014_s17, %s14_s17   ;;  %s1979_s16 = sphi %s2012_s16, %s2326_s16   ;;  %s1975_s15 = sphi %s2010_s15, %s2325_s15  }
   0x3   : > { %p28_p1 = scmp.ge.s32.totalorder %s26_s18, 2  ;;  %p211_p2 = scmp.lt.s32.totalorder %s1983_s17, 3 }
   0x5   : > { %s2328_s18 = smov (%p28_p1, %s26_s18), 0  ;;  %p212_p3 = pnand %p1477_p0, %p211_p2 }
   0x6   : > { %v1833_v0 = vld [vmem:[%s2321_s1 + $0x40] sm:$0xff] (!%p212_p3)   ;;  %v1837_v4 = vld [vmem:[%s2321_s1 + $0x48] sm:$0xff] (!%p212_p3)   ;;  %v1841_v8 = vld [vmem:[%s2321_s1 + $0x50] sm:$0xff] (!%p212_p3)   ;;  %s1478_s29 = sshll.u32 (!%p212_p3), %s1975_s15, 5 }
   0x7   : > { %215 = sbr.rel (%p212_p3) target bundleno = 384 (0x180), region = 36  ;;  %v1834_v1 = vld [vmem:[%s2321_s1 + $0xc0] sm:$0xff] (!%p212_p3)   ;;  %1585 = vmatprep.subr.bf16.mxu0 (!%p212_p3), %v1833_v0  ;;  %v1838_v5 = vld [vmem:[%s2321_s1 + $0xc8] sm:$0xff] (!%p212_p3)   ;;  %v1842_v9 = vld [vmem:[%s2321_s1 + $0xd0] sm:$0xff] (!%p212_p3)   ;;  %p257_p4 = scmp.lt.s32.totalorder (!%p212_p3), %s1478_s29, 63 }
   0x8   : > { %v1835_v2 = vld [vmem:[%s2321_s1] sm:$0xff] (!%p212_p3)   ;;  %1697 = vmatprep.subr.bf16.mxu1 (!%p212_p3), %v1834_v1  ;;  %v1839_v6 = vld [vmem:[%s2321_s1 + $0x8] sm:$0xff] (!%p212_p3)   ;;  %v1843_v10 = vld [vmem:[%s2321_s1 + $0x10] sm:$0xff] (!%p212_p3)  }
   0x9   : > { %v1836_v3 = vld [vmem:[%s2321_s1 + $0x80] sm:$0xff] (!%p212_p3)   ;;  %1586 = vmatpush3.bf16.msra.mxu0 (!%p212_p3), %v1835_v2  ;;  %v1840_v7 = vld [vmem:[%s2321_s1 + $0x88] sm:$0xff] (!%p212_p3)   ;;  %v1844_v11 = vld [vmem:[%s2321_s1 + $0x90] sm:$0xff] (!%p212_p3)  }
   0xa   : > { %1698 = vmatpush3.bf16.msra.mxu1 (!%p212_p3), %v1836_v3  ;;  %1587 = vmatprep.subr.bf16.mxu0 (!%p212_p3), %v1837_v4  ;;  %v1845_v12 = vld [vmem:[%s2321_s1 + $0x58] sm:$0xff] (!%p212_p3)   ;;  %v1849_v16 = vld [vmem:[%s2321_s1 + $0x60] sm:$0xff] (!%p212_p3)   ;;  %v1853_v20 = vld [vmem:[%s2321_s1 + $0x68] sm:$0xff] (!%p212_p3)  }
   0xb   : > { %1699 = vmatprep.subr.bf16.mxu1 (!%p212_p3), %v1838_v5  ;;  %v1846_v13 = vld [vmem:[%s2321_s1 + $0xd8] sm:$0xff] (!%p212_p3)   ;;  %v1850_v17 = vld [vmem:[%s2321_s1 + $0xe0] sm:$0xff] (!%p212_p3)   ;;  %v1854_v21 = vld [vmem:[%s2321_s1 + $0xe8] sm:$0xff] (!%p212_p3)  }
   0xc   : > { %v1847_v14 = vld [vmem:[%s2321_s1 + $0x18] sm:$0xff] (!%p212_p3)   ;;  %v1851_v18 = vld [vmem:[%s2321_s1 + $0x20] sm:$0xff] (!%p212_p3)   ;;  %v1855_v22 = vld [vmem:[%s2321_s1 + $0x28] sm:$0xff] (!%p212_p3)  }
   0xd   : > { %1588 = vmatpush3.bf16.msra.mxu0 (!%p212_p3), %v1839_v6  ;;  %v1848_v15 = vld [vmem:[%s2321_s1 + $0x98] sm:$0xff] (!%p212_p3)   ;;  %v1852_v19 = vld [vmem:[%s2321_s1 + $0xa0] sm:$0xff] (!%p212_p3)   ;;  %v1856_v23 = vld [vmem:[%s2321_s1 + $0xa8] sm:$0xff] (!%p212_p3)  }
   0xe   : > { %1700 = vmatpush3.bf16.msra.mxu1 %v1840_v7  ;;  %1589 = vmatprep.subr.bf16.mxu0 %v1841_v8  ;;  %s2330_s29 = smov (!%p257_p4, %s1478_s29), 63  ;;  %v1857_v24 = vld [vmem:[%s2321_s1 + $0x70] sm:$0xff]   ;;  %v1861_v28 = vld [vmem:[%s2321_s1 + $0x78] sm:$0xff]  }
   0xf   : > { %1701 = vmatprep.subr.bf16.mxu1 %v1842_v9  ;;  %v1858_v25 = vld [vmem:[%s2321_s1 + $0xf0] sm:$0xff]   ;;  %s1584_s30 = sshll.u32 %s2330_s29, 4  ;;  %v1862_v29 = vld [vmem:[%s2321_s1 + $0xf8] sm:$0xff]   ;;  %s1482_s21 = sshll.u32 %s2330_s29, 3 }
  0x10   : > { %v1859_v26 = vld [vmem:[%s2321_s1 + $0x30] sm:$0xff]   ;;  %s2127_s12 = scalar_lea.vmem %s2320_s0, %s1584_s30  ;;  %v1863_v30 = vld [vmem:[%s2321_s1 + $0x38] sm:$0xff]   ;;  %s2208_s26 = scalar_lea.vmem %s2323_s3, %s1482_s21 }
  0x11   : > { %1590 = vmatpush3.bf16.msra.mxu0 %v1843_v10  ;;  %v1860_v27 = vld [vmem:[%s2321_s1 + $0xb0] sm:$0xff]   ;;  %v1864_v31 = vld [vmem:[%s2321_s1 + $0xb8] sm:$0xff]   ;;  %s2216_s28 = scalar_lea.vmem %s2324_s4, %s1482_s21 }
  0x12   : > { %1702 = vmatpush3.bf16.msra.mxu1 %v1844_v11  ;;  %1591 = vmatprep.subr.bf16.mxu0 %v1845_v12  ;;  %v1865_v32 = vld [vmem:[%s2127_s12] ss:$16 sps:$4 sm:$0xff]   ;;  %v1867_v33 = vld [vmem:[%s2127_s12 + $0x4] ss:$16 sps:$4 sm:$0xff]   ;;  %v1868_v34 = vld [vmem:[%s2127_s12 + $0x8] ss:$16 sps:$4 sm:$0xff]  }
  0x13   : > { %1703 = vmatprep.subr.bf16.mxu1 %v1846_v13  ;;  %v1870_v35 = vld [vmem:[%s2127_s12 + $0xc] ss:$16 sps:$4 sm:$0xff]   ;;  %968 = vmatprep.mubr.bf16.mxu0 %v1867_v33  ;;  %v1871_v36 = vld [vmem:[%s2127_s12 + $0x24] ss:$16 sps:$4 sm:$0xff]   ;;  %v1875_v38 = vld [vmem:[%s2127_s12 + $0x20] ss:$16 sps:$4 sm:$0xff]  }
  0x14   : > { %1129 = vmatprep.mubr.bf16.mxu1 %v1870_v35  ;;  %v1873_v37 = vld [vmem:[%s2127_s12 + $0x2c] ss:$16 sps:$4 sm:$0xff]   ;;  %v1876_v39 = vld [vmem:[%s2127_s12 + $0x28] ss:$16 sps:$4 sm:$0xff]   ;;  %v1877_v40 = vld [vmem:[%s2127_s12 + $0x44] ss:$16 sps:$4 sm:$0xff]  }
  0x15   : > { %1592 = vmatpush3.bf16.msra.mxu0 %v1847_v14  ;;  %v1879_v41 = vld [vmem:[%s2127_s12 + $0x4c] ss:$16 sps:$4 sm:$0xff]   ;;  %v1881_v42 = vld [vmem:[%s2127_s12 + $0x40] ss:$16 sps:$4 sm:$0xff]   ;;  %v1882_v43 = vld [vmem:[%s2127_s12 + $0x48] ss:$16 sps:$4 sm:$0xff]  }
  0x16   : > { %1704 = vmatpush3.bf16.msra.mxu1 %v1848_v15  ;;  %1593 = vmatprep.subr.bf16.mxu0 %v1849_v16  ;;  %v1883_v44 = vld [vmem:[%s2127_s12 + $0x64] ss:$16 sps:$4 sm:$0xff]   ;;  %v1885_v45 = vld [vmem:[%s2127_s12 + $0x6c] ss:$16 sps:$4 sm:$0xff]   ;;  %v1887_v46 = vld [vmem:[%s2127_s12 + $0x60] ss:$16 sps:$4 sm:$0xff]  }
  0x17   : > { %1705 = vmatprep.subr.bf16.mxu1 %v1850_v17  ;;  %v1888_v47 = vld [vmem:[%s2127_s12 + $0x68] ss:$16 sps:$4 sm:$0xff]   ;;  %v1889_v48 = vld [vmem:[%s2127_s12 + $0x84] ss:$16 sps:$4 sm:$0xff]   ;;  %v1891_v49 = vld [vmem:[%s2127_s12 + $0x8c] ss:$16 sps:$4 sm:$0xff]  }
  0x18   : > { %v1893_v50 = vld [vmem:[%s2127_s12 + $0x80] ss:$16 sps:$4 sm:$0xff]   ;;  %v1894_v51 = vld [vmem:[%s2127_s12 + $0x88] ss:$16 sps:$4 sm:$0xff]   ;;  %v1895_v52 = vld [vmem:[%s2127_s12 + $0xa4] ss:$16 sps:$4 sm:$0xff]  }
  0x19   : > { %1594 = vmatpush3.bf16.msra.mxu0 %v1851_v18  ;;  %v1897_v53 = vld [vmem:[%s2127_s12 + $0xac] ss:$16 sps:$4 sm:$0xff]   ;;  %v1899_v54 = vld [vmem:[%s2127_s12 + $0xa0] ss:$16 sps:$4 sm:$0xff]   ;;  %v1900_v55 = vld [vmem:[%s2127_s12 + $0xa8] ss:$16 sps:$4 sm:$0xff]  }
  0x1a   : > { %1706 = vmatpush3.bf16.msra.mxu1 %v1852_v19  ;;  %1595 = vmatprep.subr.bf16.mxu0 %v1853_v20  ;;  %v1901_v56 = vld [vmem:[%s2127_s12 + $0xc4] ss:$16 sps:$4 sm:$0xff]   ;;  %v1903_v57 = vld [vmem:[%s2127_s12 + $0xcc] ss:$16 sps:$4 sm:$0xff]   ;;  %v1905_v58 = vld [vmem:[%s2127_s12 + $0xc0] ss:$16 sps:$4 sm:$0xff]  }
  0x1b   : > { %1707 = vmatprep.subr.bf16.mxu1 %v1854_v21  ;;  %v1906_v59 = vld [vmem:[%s2127_s12 + $0xc8] ss:$16 sps:$4 sm:$0xff]   ;;  %v1907_v60 = vld [vmem:[%s2127_s12 + $0xe4] ss:$16 sps:$4 sm:$0xff]   ;;  %v1909_v61 = vld [vmem:[%s2127_s12 + $0xec] ss:$16 sps:$4 sm:$0xff]  }
  0x1c   : > { %v1911_v62 = vld [vmem:[%s2127_s12 + $0xe0] ss:$16 sps:$4 sm:$0xff]   ;;  %v1912_v63 = vld [vmem:[%s2127_s12 + $0xe8] ss:$16 sps:$4 sm:$0xff]   ;;  %v1913_v0 = vld [vmem:[%s2127_s12 + $0x104] ss:$16 sps:$4 sm:$0xff]  }
  0x1d   : > { %1596 = vmatpush3.bf16.msra.mxu0 %v1855_v22  ;;  %v1915_v1 = vld [vmem:[%s2127_s12 + $0x10c] ss:$16 sps:$4 sm:$0xff]   ;;  %v1917_v2 = vld [vmem:[%s2127_s12 + $0x100] ss:$16 sps:$4 sm:$0xff]   ;;  %v1918_v3 = vld [vmem:[%s2127_s12 + $0x108] ss:$16 sps:$4 sm:$0xff]  }
  0x1e   : > { %1708 = vmatpush3.bf16.msra.mxu1 %v1856_v23  ;;  %1597 = vmatprep.subr.bf16.mxu0 %v1857_v24  ;;  %v1919_v4 = vld [vmem:[%s2127_s12 + $0x124] ss:$16 sps:$4 sm:$0xff]   ;;  %v1921_v5 = vld [vmem:[%s2127_s12 + $0x12c] ss:$16 sps:$4 sm:$0xff]   ;;  %v1923_v6 = vld [vmem:[%s2127_s12 + $0x120] ss:$16 sps:$4 sm:$0xff]  }
  0x1f   : > { %1709 = vmatprep.subr.bf16.mxu1 %v1858_v25  ;;  %v1924_v7 = vld [vmem:[%s2127_s12 + $0x128] ss:$16 sps:$4 sm:$0xff]   ;;  %v1925_v8 = vld [vmem:[%s2127_s12 + $0x144] ss:$16 sps:$4 sm:$0xff]   ;;  %v1927_v9 = vld [vmem:[%s2127_s12 + $0x14c] ss:$16 sps:$4 sm:$0xff]  }
  0x20   : > { %v1929_v10 = vld [vmem:[%s2127_s12 + $0x140] ss:$16 sps:$4 sm:$0xff]   ;;  %v1930_v11 = vld [vmem:[%s2127_s12 + $0x148] ss:$16 sps:$4 sm:$0xff]   ;;  %v1931_v12 = vld [vmem:[%s2127_s12 + $0x164] ss:$16 sps:$4 sm:$0xff]  }
  0x21   : > { %1598 = vmatpush3.bf16.msra.mxu0 %v1859_v26  ;;  %v1933_v13 = vld [vmem:[%s2127_s12 + $0x16c] ss:$16 sps:$4 sm:$0xff]   ;;  %v1935_v14 = vld [vmem:[%s2127_s12 + $0x160] ss:$16 sps:$4 sm:$0xff]   ;;  %v1936_v15 = vld [vmem:[%s2127_s12 + $0x168] ss:$16 sps:$4 sm:$0xff]  }
  0x22   : > { %1710 = vmatpush3.bf16.msra.mxu1 %v1860_v27  ;;  %1599 = vmatprep.subr.bf16.mxu0 %v1861_v28  ;;  %v1937_v16 = vld [vmem:[%s2127_s12 + $0x184] ss:$16 sps:$4 sm:$0xff]   ;;  %v1939_v17 = vld [vmem:[%s2127_s12 + $0x18c] ss:$16 sps:$4 sm:$0xff]   ;;  %v1941_v18 = vld [vmem:[%s2127_s12 + $0x180] ss:$16 sps:$4 sm:$0xff]  }
  0x23   : > { %1711 = vmatprep.subr.bf16.mxu1 %v1862_v29  ;;  %v1942_v19 = vld [vmem:[%s2127_s12 + $0x188] ss:$16 sps:$4 sm:$0xff]   ;;  %v1943_v20 = vld [vmem:[%s2127_s12 + $0x1a4] ss:$16 sps:$4 sm:$0xff]   ;;  %v1945_v21 = vld [vmem:[%s2127_s12 + $0x1ac] ss:$16 sps:$4 sm:$0xff]  }
  0x24   : > { %v1947_v22 = vld [vmem:[%s2127_s12 + $0x1a0] ss:$16 sps:$4 sm:$0xff]   ;;  %v1948_v23 = vld [vmem:[%s2127_s12 + $0x1a8] ss:$16 sps:$4 sm:$0xff]   ;;  %v1949_v24 = vld [vmem:[%s2127_s12 + $0x1c4] ss:$16 sps:$4 sm:$0xff]  }
  0x25   : > { %1600 = vmatpush3.bf16.msra.mxu0 %v1863_v30  ;;  %v1951_v25 = vld [vmem:[%s2127_s12 + $0x1cc] ss:$16 sps:$4 sm:$0xff]   ;;  %v1953_v26 = vld [vmem:[%s2127_s12 + $0x1c0] ss:$16 sps:$4 sm:$0xff]   ;;  %v1954_v27 = vld [vmem:[%s2127_s12 + $0x1c8] ss:$16 sps:$4 sm:$0xff]  }
  0x26   : > { %1712 = vmatpush3.bf16.msra.mxu1 %v1864_v31  ;;  %v1955_v28 = vld [vmem:[%s2127_s12 + $0x1e4] ss:$16 sps:$4 sm:$0xff]   ;;  %v1957_v29 = vld [vmem:[%s2127_s12 + $0x1ec] ss:$16 sps:$4 sm:$0xff]   ;;  %v1959_v30 = vld [vmem:[%s2127_s12 + $0x1e0] ss:$16 sps:$4 sm:$0xff]  }
  0x27   : > { %v1960_v31 = vld [vmem:[%s2127_s12 + $0x1e8] ss:$16 sps:$4 sm:$0xff]  }
  0x28   : > { %969 = vmatmul.mubr.bf16.vlgmr.msra.gmra.mrb[0].mxu0 %v1865_v32 }
  0x29   : > { %1130 = vmatmul.mubr.bf16.vlgmr.msra.gmra.mrb[0].mxu1 %v1868_v34  ;;  %976 = vmatprep.mubr.bf16.mxu0 %v1871_v36  ;;  %v2203_v34 = vld [vmem:[%s2322_s2] ss:$0 sm:$0xff] }
  0x2a   : > { %1137 = vmatprep.mubr.bf16.mxu1 %v1873_v37 }
  0x30   : > { %977 = vmatmul.mubr.bf16.gmra.mrb[4].mxu0 %v1875_v38 }
  0x31   : > { %1138 = vmatmul.mubr.bf16.gmra.mrb[4].mxu1 %v1876_v39  ;;  %984 = vmatprep.mubr.bf16.mxu0 %v1877_v40 }
  0x32   : > { %1145 = vmatprep.mubr.bf16.mxu1 %v1879_v41 }
  0x38   : > { %985 = vmatmul.mubr.bf16.gmra.mrb[8].mxu0 %v1881_v42 }
  0x39   : > { %1146 = vmatmul.mubr.bf16.gmra.mrb[8].mxu1 %v1882_v43  ;;  %992 = vmatprep.mubr.bf16.mxu0 %v1883_v44 }
  0x3a   : > { %1153 = vmatprep.mubr.bf16.mxu1 %v1885_v45  ;;  %v1258_v45 = vld [vmem:[%s2208_s26] sm:$0xff] }
  0x40   : > { %993 = vmatmul.mubr.bf16.gmra.mrb[12].mxu0 %v1887_v46 }
  0x41   : > { %1154 = vmatmul.mubr.bf16.gmra.mrb[12].mxu1 %v1888_v47  ;;  %1000 = vmatprep.mubr.bf16.mxu0 %v1889_v48 }
  0x42   : > { %1161 = vmatprep.mubr.bf16.mxu1 %v1891_v49  ;;  %v1259_v49 = vld [vmem:[%s2208_s26 + $0x8] sm:$0xff] }
  0x48   : > { %1001 = vmatmul.mubr.bf16.gmra.mrb[16].mxu0 %v1893_v50 }
  0x49   : > { %1162 = vmatmul.mubr.bf16.gmra.mrb[16].mxu1 %v1894_v51  ;;  %1008 = vmatprep.mubr.bf16.mxu0 %v1895_v52 }
  0x4a   : > { %1169 = vmatprep.mubr.bf16.mxu1 %v1897_v53 }
  0x50   : > { %1009 = vmatmul.mubr.bf16.gmra.mrb[20].mxu0 %v1899_v54 }
  0x51   : > { %1170 = vmatmul.mubr.bf16.gmra.mrb[20].mxu1 %v1900_v55  ;;  %1016 = vmatprep.mubr.bf16.mxu0 %v1901_v56 }
  0x52   : > { %1177 = vmatprep.mubr.bf16.mxu1 %v1903_v57 }
  0x58   : > { %1017 = vmatmul.mubr.bf16.gmra.mrb[24].mxu0 %v1905_v58 }
  0x59   : > { %1178 = vmatmul.mubr.bf16.gmra.mrb[24].mxu1 %v1906_v59  ;;  %1024 = vmatprep.mubr.bf16.mxu0 %v1907_v60 }
  0x5a   : > { %1185 = vmatprep.mubr.bf16.mxu1 %v1909_v61 }
  0x60   : > { %1025 = vmatmul.mubr.bf16.gmra.mrb[28].mxu0 %v1911_v62 }
  0x61   : > { %1186 = vmatmul.mubr.bf16.gmra.mrb[28].mxu1 %v1912_v63  ;;  %1032 = vmatprep.mubr.bf16.mxu0 %v1913_v0 }
  0x62   : > { %1193 = vmatprep.mubr.bf16.mxu1 %v1915_v1  ;;  %v1260_v1 = vld [vmem:[%s2208_s26 + $0x10] sm:$0xff] }
  0x68   : > { %1033 = vmatmul.mubr.bf16.gmra.mrb[32].mxu0 %v1917_v2 }
  0x69   : > { %1194 = vmatmul.mubr.bf16.gmra.mrb[32].mxu1 %v1918_v3  ;;  %1040 = vmatprep.mubr.bf16.mxu0 %v1919_v4 }
  0x6a   : > { %1201 = vmatprep.mubr.bf16.mxu1 %v1921_v5  ;;  %v1261_v5 = vld [vmem:[%s2208_s26 + $0x18] sm:$0xff] }
  0x70   : > { %1041 = vmatmul.mubr.bf16.gmra.mrb[36].mxu0 %v1923_v6 }
  0x71   : > { %1202 = vmatmul.mubr.bf16.gmra.mrb[36].mxu1 %v1924_v7  ;;  %1048 = vmatprep.mubr.bf16.mxu0 %v1925_v8 }
  0x72   : > { %1209 = vmatprep.mubr.bf16.mxu1 %v1927_v9 }
  0x78   : > { %1049 = vmatmul.mubr.bf16.gmra.mrb[40].mxu0 %v1929_v10 }
  0x79   : > { %1210 = vmatmul.mubr.bf16.gmra.mrb[40].mxu1 %v1930_v11  ;;  %1056 = vmatprep.mubr.bf16.mxu0 %v1931_v12 }
  0x7a   : > { %1217 = vmatprep.mubr.bf16.mxu1 %v1933_v13 }
  0x80   : > { %1057 = vmatmul.mubr.bf16.gmra.mrb[44].mxu0 %v1935_v14 }
  0x81   : > { %1218 = vmatmul.mubr.bf16.gmra.mrb[44].mxu1 %v1936_v15  ;;  %1064 = vmatprep.mubr.bf16.mxu0 %v1937_v16 }
  0x82   : > { %1225 = vmatprep.mubr.bf16.mxu1 %v1939_v17 }
  0x88   : > { %1065 = vmatmul.mubr.bf16.gmra.mrb[48].mxu0 %v1941_v18 }
  0x89   : > { %1226 = vmatmul.mubr.bf16.gmra.mrb[48].mxu1 %v1942_v19  ;;  %1072 = vmatprep.mubr.bf16.mxu0 %v1943_v20 }
  0x8a   : > { %1233 = vmatprep.mubr.bf16.mxu1 %v1945_v21  ;;  %v1262_v21 = vld [vmem:[%s2208_s26 + $0x20] sm:$0xff] }
  0x90   : > { %1073 = vmatmul.mubr.bf16.gmra.mrb[52].mxu0 %v1947_v22 }
  0x91   : > { %1234 = vmatmul.mubr.bf16.gmra.mrb[52].mxu1 %v1948_v23  ;;  %1080 = vmatprep.mubr.bf16.mxu0 %v1949_v24 }
  0x92   : > { %1241 = vmatprep.mubr.bf16.mxu1 %v1951_v25  ;;  %v1263_v25 = vld [vmem:[%s2208_s26 + $0x28] sm:$0xff] }
  0x98   : > { %1081 = vmatmul.mubr.bf16.gmra.mrb[56].mxu0 %v1953_v26 }
  0x99   : > { %1242 = vmatmul.mubr.bf16.gmra.mrb[56].mxu1 %v1954_v27  ;;  %1088 = vmatprep.mubr.bf16.mxu0 %v1955_v28 }
  0x9a   : > { %1249 = vmatprep.mubr.bf16.mxu1 %v1957_v29 }
  0xa0   : > { %1089 = vmatmul.mubr.bf16.gmra.mrb[60].mxu0 %v1959_v30 }
  0xa1   : > { %1250 = vmatmul.mubr.bf16.gmra.mrb[60].mxu1 %v1960_v31 }
  0xfb   : > { %v1601_v32 = vpop.f32.mrb[0].mxu0 }
  0xfc   : > { %v1713_v33 = vpop.f32.mrb[0].mxu1  ;;  %v1602_v35 = vpop.f32.mrb[1].mxu0 }
  0xfd   : > { %v1603_v36 = vadd.f32 %v1602_v35, %v1601_v32  ;;  %v1714_v37 = vpop.f32.mrb[1].mxu1  ;;  %v1604_v38 = vpop.f32.mrb[2].mxu0 }
  0xfe   : > { %v1715_v39 = vadd.f32 %v1714_v37, %v1713_v33  ;;  %v1716_v40 = vpop.f32.mrb[2].mxu1  ;;  %v1605_v41 = vpop.f32.mrb[3].mxu0 }
  0xff   : > { %v971_v42 = vadd.f32 %v1603_v36, %v2203_v34  ;;  %v1606_v43 = vadd.f32 %v1605_v41, %v1604_v38  ;;  %v1717_v44 = vpop.f32.mrb[3].mxu1 }
 0x100   : > { %v1718_v46 = vadd.f32 %v1717_v44, %v1716_v40 }
 0x101   : > { %v1132_v47 = vadd.f32 %v1715_v39, %v971_v42  ;;  %v974_v48 = vadd.f32 %v1606_v43, %v2203_v34  ;;  %v1264_v42 = vld [vmem:[%s2208_s26 + $0x30] sm:$0xff] }
 0x103   : > { %v1290_v50 = vadd.f32 %v1258_v45, %v1132_v47  ;;  %v1135_v51 = vadd.f32 %v1718_v46, %v974_v48  ;;  %v1607_v52 = vpop.f32.mrb[4].mxu0  ;;  %v1265_v46 = vld [vmem:[%s2208_s26 + $0x38] sm:$0xff] }
 0x104   : > { %v1719_v53 = vpop.f32.mrb[4].mxu1  ;;  %v1608_v54 = vpop.f32.mrb[5].mxu0 }
 0x105   : > { %1322 = vst [vmem:[%s2216_s28] sm:$0xff] %v1290_v50  ;;  %v1291_v55 = vadd.f32 %v1259_v49, %v1135_v51  ;;  %v1609_v56 = vadd.f32 %v1608_v54, %v1607_v52  ;;  %v1720_v57 = vpop.f32.mrb[5].mxu1  ;;  %v1610_v58 = vpop.f32.mrb[6].mxu0 }
 0x106   : > { %v1721_v59 = vadd.f32 %v1720_v57, %v1719_v53  ;;  %v1722_v60 = vpop.f32.mrb[6].mxu1  ;;  %v1611_v61 = vpop.f32.mrb[7].mxu0 }
 0x107   : > { %1323 = vst [vmem:[%s2216_s28 + $0x8] sm:$0xff] %v1291_v55  ;;  %v979_v62 = vadd.f32 %v1609_v56, %v2203_v34  ;;  %v1612_v63 = vadd.f32 %v1611_v61, %v1610_v58  ;;  %v1723_v0 = vpop.f32.mrb[7].mxu1 }
 0x108   : > { %v1724_v2 = vadd.f32 %v1723_v0, %v1722_v60 }
 0x109   : > { %v1140_v3 = vadd.f32 %v1721_v59, %v979_v62  ;;  %v982_v4 = vadd.f32 %v1612_v63, %v2203_v34  ;;  %v1266_v62 = vld [vmem:[%s2208_s26 + $0x40] sm:$0xff] }
 0x10b   : > { %v1292_v6 = vadd.f32 %v1260_v1, %v1140_v3  ;;  %v1143_v7 = vadd.f32 %v1724_v2, %v982_v4  ;;  %v1613_v8 = vpop.f32.mrb[8].mxu0  ;;  %v1267_v2 = vld [vmem:[%s2208_s26 + $0x48] sm:$0xff] }
 0x10c   : > { %v1725_v9 = vpop.f32.mrb[8].mxu1  ;;  %v1614_v10 = vpop.f32.mrb[9].mxu0 }
 0x10d   : > { %1324 = vst [vmem:[%s2216_s28 + $0x10] sm:$0xff] %v1292_v6  ;;  %v1293_v11 = vadd.f32 %v1261_v5, %v1143_v7  ;;  %v1615_v12 = vadd.f32 %v1614_v10, %v1613_v8  ;;  %v1726_v13 = vpop.f32.mrb[9].mxu1  ;;  %v1616_v14 = vpop.f32.mrb[10].mxu0 }
 0x10e   : > { %v1727_v15 = vadd.f32 %v1726_v13, %v1725_v9  ;;  %v1728_v16 = vpop.f32.mrb[10].mxu1  ;;  %v1617_v17 = vpop.f32.mrb[11].mxu0 }
 0x10f   : > { %1325 = vst [vmem:[%s2216_s28 + $0x18] sm:$0xff] %v1293_v11  ;;  %v987_v18 = vadd.f32 %v1615_v12, %v2203_v34  ;;  %v1618_v19 = vadd.f32 %v1617_v17, %v1616_v14  ;;  %v1729_v20 = vpop.f32.mrb[11].mxu1 }
 0x110   : > { %v1730_v22 = vadd.f32 %v1729_v20, %v1728_v16 }
 0x111   : > { %v1148_v23 = vadd.f32 %v1727_v15, %v987_v18  ;;  %v990_v24 = vadd.f32 %v1618_v19, %v2203_v34  ;;  %v1268_v18 = vld [vmem:[%s2208_s26 + $0x50] sm:$0xff] }
 0x113   : > { %v1294_v26 = vadd.f32 %v1262_v21, %v1148_v23  ;;  %v1151_v27 = vadd.f32 %v1730_v22, %v990_v24  ;;  %v1619_v28 = vpop.f32.mrb[12].mxu0  ;;  %v1269_v22 = vld [vmem:[%s2208_s26 + $0x58] sm:$0xff] }
 0x114   : > { %v1731_v29 = vpop.f32.mrb[12].mxu1  ;;  %v1620_v30 = vpop.f32.mrb[13].mxu0 }
 0x115   : > { %1326 = vst [vmem:[%s2216_s28 + $0x20] sm:$0xff] %v1294_v26  ;;  %v1295_v31 = vadd.f32 %v1263_v25, %v1151_v27  ;;  %v1621_v32 = vadd.f32 %v1620_v30, %v1619_v28  ;;  %v1732_v33 = vpop.f32.mrb[13].mxu1  ;;  %v1622_v35 = vpop.f32.mrb[14].mxu0 }
 0x116   : > { %v1733_v36 = vadd.f32 %v1732_v33, %v1731_v29  ;;  %v1734_v37 = vpop.f32.mrb[14].mxu1  ;;  %v1623_v38 = vpop.f32.mrb[15].mxu0 }
 0x117   : > { %1327 = vst [vmem:[%s2216_s28 + $0x28] sm:$0xff] %v1295_v31  ;;  %v995_v39 = vadd.f32 %v1621_v32, %v2203_v34  ;;  %v1624_v40 = vadd.f32 %v1623_v38, %v1622_v35  ;;  %v1735_v41 = vpop.f32.mrb[15].mxu1 }
 0x118   : > { %v1736_v43 = vadd.f32 %v1735_v41, %v1734_v37 }
 0x119   : > { %v1156_v44 = vadd.f32 %v1733_v36, %v995_v39  ;;  %v998_v45 = vadd.f32 %v1624_v40, %v2203_v34  ;;  %v1270_v39 = vld [vmem:[%s2208_s26 + $0x60] sm:$0xff] }
 0x11b   : > { %v1296_v47 = vadd.f32 %v1264_v42, %v1156_v44  ;;  %v1159_v48 = vadd.f32 %v1736_v43, %v998_v45  ;;  %v1625_v49 = vpop.f32.mrb[16].mxu0  ;;  %v1271_v43 = vld [vmem:[%s2208_s26 + $0x68] sm:$0xff] }
 0x11c   : > { %v1737_v50 = vpop.f32.mrb[16].mxu1  ;;  %v1626_v51 = vpop.f32.mrb[17].mxu0 }
 0x11d   : > { %1328 = vst [vmem:[%s2216_s28 + $0x30] sm:$0xff] %v1296_v47  ;;  %v1297_v52 = vadd.f32 %v1265_v46, %v1159_v48  ;;  %v1627_v53 = vadd.f32 %v1626_v51, %v1625_v49  ;;  %v1738_v54 = vpop.f32.mrb[17].mxu1  ;;  %v1628_v55 = vpop.f32.mrb[18].mxu0 }
 0x11e   : > { %v1739_v56 = vadd.f32 %v1738_v54, %v1737_v50  ;;  %v1740_v57 = vpop.f32.mrb[18].mxu1  ;;  %v1629_v58 = vpop.f32.mrb[19].mxu0 }
 0x11f   : > { %1329 = vst [vmem:[%s2216_s28 + $0x38] sm:$0xff] %v1297_v52  ;;  %v1003_v59 = vadd.f32 %v1627_v53, %v2203_v34  ;;  %v1630_v60 = vadd.f32 %v1629_v58, %v1628_v55  ;;  %v1741_v61 = vpop.f32.mrb[19].mxu1 }
 0x120   : > { %v1742_v63 = vadd.f32 %v1741_v61, %v1740_v57 }
 0x121   : > { %v1164_v0 = vadd.f32 %v1739_v56, %v1003_v59  ;;  %v1006_v1 = vadd.f32 %v1630_v60, %v2203_v34  ;;  %v1272_v59 = vld [vmem:[%s2208_s26 + $0x70] sm:$0xff] }
 0x123   : > { %v1298_v3 = vadd.f32 %v1266_v62, %v1164_v0  ;;  %v1167_v4 = vadd.f32 %v1742_v63, %v1006_v1  ;;  %v1631_v5 = vpop.f32.mrb[20].mxu0  ;;  %v1273_v63 = vld [vmem:[%s2208_s26 + $0x78] sm:$0xff] }
 0x124   : > { %v1743_v6 = vpop.f32.mrb[20].mxu1  ;;  %v1632_v7 = vpop.f32.mrb[21].mxu0 }
 0x125   : > { %1330 = vst [vmem:[%s2216_s28 + $0x40] sm:$0xff] %v1298_v3  ;;  %v1299_v8 = vadd.f32 %v1267_v2, %v1167_v4  ;;  %v1633_v9 = vadd.f32 %v1632_v7, %v1631_v5  ;;  %v1744_v10 = vpop.f32.mrb[21].mxu1  ;;  %v1634_v11 = vpop.f32.mrb[22].mxu0 }
 0x126   : > { %v1745_v12 = vadd.f32 %v1744_v10, %v1743_v6  ;;  %v1746_v13 = vpop.f32.mrb[22].mxu1  ;;  %v1635_v14 = vpop.f32.mrb[23].mxu0 }
 0x127   : > { %1331 = vst [vmem:[%s2216_s28 + $0x48] sm:$0xff] %v1299_v8  ;;  %v1011_v15 = vadd.f32 %v1633_v9, %v2203_v34  ;;  %v1636_v16 = vadd.f32 %v1635_v14, %v1634_v11  ;;  %v1747_v17 = vpop.f32.mrb[23].mxu1 }
 0x128   : > { %v1748_v19 = vadd.f32 %v1747_v17, %v1746_v13 }
 0x129   : > { %v1172_v20 = vadd.f32 %v1745_v12, %v1011_v15  ;;  %v1014_v21 = vadd.f32 %v1636_v16, %v2203_v34  ;;  %v1274_v15 = vld [vmem:[%s2208_s26 + $0x80] sm:$0xff] }
 0x12b   : > { %v1300_v23 = vadd.f32 %v1268_v18, %v1172_v20  ;;  %v1175_v24 = vadd.f32 %v1748_v19, %v1014_v21  ;;  %v1637_v25 = vpop.f32.mrb[24].mxu0  ;;  %v1275_v19 = vld [vmem:[%s2208_s26 + $0x88] sm:$0xff] }
 0x12c   : > { %v1749_v26 = vpop.f32.mrb[24].mxu1  ;;  %v1638_v27 = vpop.f32.mrb[25].mxu0 }
 0x12d   : > { %1332 = vst [vmem:[%s2216_s28 + $0x50] sm:$0xff] %v1300_v23  ;;  %v1301_v28 = vadd.f32 %v1269_v22, %v1175_v24  ;;  %v1639_v29 = vadd.f32 %v1638_v27, %v1637_v25  ;;  %v1750_v30 = vpop.f32.mrb[25].mxu1  ;;  %v1640_v31 = vpop.f32.mrb[26].mxu0 }
 0x12e   : > { %v1751_v32 = vadd.f32 %v1750_v30, %v1749_v26  ;;  %v1752_v33 = vpop.f32.mrb[26].mxu1  ;;  %v1641_v35 = vpop.f32.mrb[27].mxu0 }
 0x12f   : > { %1333 = vst [vmem:[%s2216_s28 + $0x58] sm:$0xff] %v1301_v28  ;;  %v1019_v36 = vadd.f32 %v1639_v29, %v2203_v34  ;;  %v1642_v37 = vadd.f32 %v1641_v35, %v1640_v31  ;;  %v1753_v38 = vpop.f32.mrb[27].mxu1 }
 0x130   : > { %v1754_v40 = vadd.f32 %v1753_v38, %v1752_v33 }
 0x131   : > { %v1180_v41 = vadd.f32 %v1751_v32, %v1019_v36  ;;  %v1022_v42 = vadd.f32 %v1642_v37, %v2203_v34  ;;  %v1276_v36 = vld [vmem:[%s2208_s26 + $0x90] sm:$0xff] }
 0x133   : > { %v1302_v44 = vadd.f32 %v1270_v39, %v1180_v41  ;;  %v1183_v45 = vadd.f32 %v1754_v40, %v1022_v42  ;;  %v1643_v46 = vpop.f32.mrb[28].mxu0  ;;  %v1277_v40 = vld [vmem:[%s2208_s26 + $0x98] sm:$0xff] }
 0x134   : > { %v1755_v47 = vpop.f32.mrb[28].mxu1  ;;  %v1644_v48 = vpop.f32.mrb[29].mxu0 }
 0x135   : > { %1334 = vst [vmem:[%s2216_s28 + $0x60] sm:$0xff] %v1302_v44  ;;  %v1303_v49 = vadd.f32 %v1271_v43, %v1183_v45  ;;  %v1645_v50 = vadd.f32 %v1644_v48, %v1643_v46  ;;  %v1756_v51 = vpop.f32.mrb[29].mxu1  ;;  %v1646_v52 = vpop.f32.mrb[30].mxu0 }
 0x136   : > { %v1757_v53 = vadd.f32 %v1756_v51, %v1755_v47  ;;  %v1758_v54 = vpop.f32.mrb[30].mxu1  ;;  %v1647_v55 = vpop.f32.mrb[31].mxu0 }
 0x137   : > { %1335 = vst [vmem:[%s2216_s28 + $0x68] sm:$0xff] %v1303_v49  ;;  %v1027_v56 = vadd.f32 %v1645_v50, %v2203_v34  ;;  %v1648_v57 = vadd.f32 %v1647_v55, %v1646_v52  ;;  %v1759_v58 = vpop.f32.mrb[31].mxu1 }
 0x138   : > { %v1760_v60 = vadd.f32 %v1759_v58, %v1758_v54 }
 0x139   : > { %v1188_v61 = vadd.f32 %v1757_v53, %v1027_v56  ;;  %v1030_v62 = vadd.f32 %v1648_v57, %v2203_v34  ;;  %v1278_v56 = vld [vmem:[%s2208_s26 + $0xa0] sm:$0xff] }
 0x13b   : > { %v1304_v0 = vadd.f32 %v1272_v59, %v1188_v61  ;;  %v1191_v1 = vadd.f32 %v1760_v60, %v1030_v62  ;;  %v1649_v2 = vpop.f32.mrb[32].mxu0  ;;  %v1279_v60 = vld [vmem:[%s2208_s26 + $0xa8] sm:$0xff] }
 0x13c   : > { %v1761_v3 = vpop.f32.mrb[32].mxu1  ;;  %v1650_v4 = vpop.f32.mrb[33].mxu0 }
 0x13d   : > { %1336 = vst [vmem:[%s2216_s28 + $0x70] sm:$0xff] %v1304_v0  ;;  %v1305_v5 = vadd.f32 %v1273_v63, %v1191_v1  ;;  %v1651_v6 = vadd.f32 %v1650_v4, %v1649_v2  ;;  %v1762_v7 = vpop.f32.mrb[33].mxu1  ;;  %v1652_v8 = vpop.f32.mrb[34].mxu0 }
 0x13e   : > { %v1763_v9 = vadd.f32 %v1762_v7, %v1761_v3  ;;  %v1764_v10 = vpop.f32.mrb[34].mxu1  ;;  %v1653_v11 = vpop.f32.mrb[35].mxu0 }
 0x13f   : > { %1337 = vst [vmem:[%s2216_s28 + $0x78] sm:$0xff] %v1305_v5  ;;  %v1035_v12 = vadd.f32 %v1651_v6, %v2203_v34  ;;  %v1654_v13 = vadd.f32 %v1653_v11, %v1652_v8  ;;  %v1765_v14 = vpop.f32.mrb[35].mxu1 }
 0x140   : > { %v1766_v16 = vadd.f32 %v1765_v14, %v1764_v10 }
 0x141   : > { %v1196_v17 = vadd.f32 %v1763_v9, %v1035_v12  ;;  %v1038_v18 = vadd.f32 %v1654_v13, %v2203_v34  ;;  %v1280_v12 = vld [vmem:[%s2208_s26 + $0xb0] sm:$0xff] }
 0x143   : > { %v1306_v20 = vadd.f32 %v1274_v15, %v1196_v17  ;;  %v1199_v21 = vadd.f32 %v1766_v16, %v1038_v18  ;;  %v1655_v22 = vpop.f32.mrb[36].mxu0  ;;  %v1281_v16 = vld [vmem:[%s2208_s26 + $0xb8] sm:$0xff] }
 0x144   : > { %v1767_v23 = vpop.f32.mrb[36].mxu1  ;;  %v1656_v24 = vpop.f32.mrb[37].mxu0 }
 0x145   : > { %1338 = vst [vmem:[%s2216_s28 + $0x80] sm:$0xff] %v1306_v20  ;;  %v1307_v25 = vadd.f32 %v1275_v19, %v1199_v21  ;;  %v1657_v26 = vadd.f32 %v1656_v24, %v1655_v22  ;;  %v1768_v27 = vpop.f32.mrb[37].mxu1  ;;  %v1658_v28 = vpop.f32.mrb[38].mxu0 }
 0x146   : > { %v1769_v29 = vadd.f32 %v1768_v27, %v1767_v23  ;;  %v1770_v30 = vpop.f32.mrb[38].mxu1  ;;  %v1659_v31 = vpop.f32.mrb[39].mxu0 }
 0x147   : > { %1339 = vst [vmem:[%s2216_s28 + $0x88] sm:$0xff] %v1307_v25  ;;  %v1043_v32 = vadd.f32 %v1657_v26, %v2203_v34  ;;  %v1660_v33 = vadd.f32 %v1659_v31, %v1658_v28  ;;  %v1771_v35 = vpop.f32.mrb[39].mxu1 }
 0x148   : > { %v1772_v37 = vadd.f32 %v1771_v35, %v1770_v30 }
 0x149   : > { %v1204_v38 = vadd.f32 %v1769_v29, %v1043_v32  ;;  %v1046_v39 = vadd.f32 %v1660_v33, %v2203_v34  ;;  %v1282_v32 = vld [vmem:[%s2208_s26 + $0xc0] sm:$0xff] }
 0x14b   : > { %v1308_v41 = vadd.f32 %v1276_v36, %v1204_v38  ;;  %v1207_v42 = vadd.f32 %v1772_v37, %v1046_v39  ;;  %v1661_v43 = vpop.f32.mrb[40].mxu0  ;;  %v1283_v37 = vld [vmem:[%s2208_s26 + $0xc8] sm:$0xff] }
 0x14c   : > { %v1773_v44 = vpop.f32.mrb[40].mxu1  ;;  %v1662_v45 = vpop.f32.mrb[41].mxu0 }
 0x14d   : > { %1340 = vst [vmem:[%s2216_s28 + $0x90] sm:$0xff] %v1308_v41  ;;  %v1309_v46 = vadd.f32 %v1277_v40, %v1207_v42  ;;  %v1663_v47 = vadd.f32 %v1662_v45, %v1661_v43  ;;  %v1774_v48 = vpop.f32.mrb[41].mxu1  ;;  %v1664_v49 = vpop.f32.mrb[42].mxu0 }
 0x14e   : > { %v1775_v50 = vadd.f32 %v1774_v48, %v1773_v44  ;;  %v1776_v51 = vpop.f32.mrb[42].mxu1  ;;  %v1665_v52 = vpop.f32.mrb[43].mxu0 }
 0x14f   : > { %1341 = vst [vmem:[%s2216_s28 + $0x98] sm:$0xff] %v1309_v46  ;;  %v1051_v53 = vadd.f32 %v1663_v47, %v2203_v34  ;;  %v1666_v54 = vadd.f32 %v1665_v52, %v1664_v49  ;;  %v1777_v55 = vpop.f32.mrb[43].mxu1 }
 0x150   : > { %v1778_v57 = vadd.f32 %v1777_v55, %v1776_v51 }
 0x151   : > { %v1212_v58 = vadd.f32 %v1775_v50, %v1051_v53  ;;  %v1054_v59 = vadd.f32 %v1666_v54, %v2203_v34  ;;  %v1284_v53 = vld [vmem:[%s2208_s26 + $0xd0] sm:$0xff] }
 0x153   : > { %v1310_v61 = vadd.f32 %v1278_v56, %v1212_v58  ;;  %v1215_v62 = vadd.f32 %v1778_v57, %v1054_v59  ;;  %v1667_v63 = vpop.f32.mrb[44].mxu0  ;;  %v1285_v57 = vld [vmem:[%s2208_s26 + $0xd8] sm:$0xff] }
 0x154   : > { %v1779_v0 = vpop.f32.mrb[44].mxu1  ;;  %v1668_v1 = vpop.f32.mrb[45].mxu0 }
 0x155   : > { %1342 = vst [vmem:[%s2216_s28 + $0xa0] sm:$0xff] %v1310_v61  ;;  %v1311_v2 = vadd.f32 %v1279_v60, %v1215_v62  ;;  %v1669_v3 = vadd.f32 %v1668_v1, %v1667_v63  ;;  %v1780_v4 = vpop.f32.mrb[45].mxu1  ;;  %v1670_v5 = vpop.f32.mrb[46].mxu0 }
 0x156   : > { %v1781_v6 = vadd.f32 %v1780_v4, %v1779_v0  ;;  %v1782_v7 = vpop.f32.mrb[46].mxu1  ;;  %v1671_v8 = vpop.f32.mrb[47].mxu0 }
 0x157   : > { %1343 = vst [vmem:[%s2216_s28 + $0xa8] sm:$0xff] %v1311_v2  ;;  %v1059_v9 = vadd.f32 %v1669_v3, %v2203_v34  ;;  %v1672_v10 = vadd.f32 %v1671_v8, %v1670_v5  ;;  %v1783_v11 = vpop.f32.mrb[47].mxu1 }
 0x158   : > { %v1784_v13 = vadd.f32 %v1783_v11, %v1782_v7 }
 0x159   : > { %v1220_v14 = vadd.f32 %v1781_v6, %v1059_v9  ;;  %v1062_v15 = vadd.f32 %v1672_v10, %v2203_v34  ;;  %v1286_v9 = vld [vmem:[%s2208_s26 + $0xe0] sm:$0xff] }
 0x15b   : > { %v1312_v17 = vadd.f32 %v1280_v12, %v1220_v14  ;;  %v1223_v18 = vadd.f32 %v1784_v13, %v1062_v15  ;;  %v1673_v19 = vpop.f32.mrb[48].mxu0  ;;  %v1287_v13 = vld [vmem:[%s2208_s26 + $0xe8] sm:$0xff] }
 0x15c   : > { %v1785_v20 = vpop.f32.mrb[48].mxu1  ;;  %v1674_v21 = vpop.f32.mrb[49].mxu0 }
 0x15d   : > { %1344 = vst [vmem:[%s2216_s28 + $0xb0] sm:$0xff] %v1312_v17  ;;  %v1313_v22 = vadd.f32 %v1281_v16, %v1223_v18  ;;  %v1675_v23 = vadd.f32 %v1674_v21, %v1673_v19  ;;  %v1786_v24 = vpop.f32.mrb[49].mxu1  ;;  %v1676_v25 = vpop.f32.mrb[50].mxu0 }
 0x15e   : > { %v1787_v26 = vadd.f32 %v1786_v24, %v1785_v20  ;;  %v1788_v27 = vpop.f32.mrb[50].mxu1  ;;  %v1677_v28 = vpop.f32.mrb[51].mxu0 }
 0x15f   : > { %1345 = vst [vmem:[%s2216_s28 + $0xb8] sm:$0xff] %v1313_v22  ;;  %v1067_v29 = vadd.f32 %v1675_v23, %v2203_v34  ;;  %v1678_v30 = vadd.f32 %v1677_v28, %v1676_v25  ;;  %v1789_v31 = vpop.f32.mrb[51].mxu1 }
 0x160   : > { %v1790_v33 = vadd.f32 %v1789_v31, %v1788_v27 }
 0x161   : > { %v1228_v35 = vadd.f32 %v1787_v26, %v1067_v29  ;;  %v1070_v36 = vadd.f32 %v1678_v30, %v2203_v34  ;;  %v1288_v29 = vld [vmem:[%s2208_s26 + $0xf0] sm:$0xff] }
 0x163   : > { %v1314_v38 = vadd.f32 %v1282_v32, %v1228_v35  ;;  %v1231_v39 = vadd.f32 %v1790_v33, %v1070_v36  ;;  %v1679_v40 = vpop.f32.mrb[52].mxu0  ;;  %v1289_v33 = vld [vmem:[%s2208_s26 + $0xf8] sm:$0xff] }
 0x164   : > { %v1791_v41 = vpop.f32.mrb[52].mxu1  ;;  %v1680_v42 = vpop.f32.mrb[53].mxu0 }
 0x165   : > { %1346 = vst [vmem:[%s2216_s28 + $0xc0] sm:$0xff] %v1314_v38  ;;  %v1315_v43 = vadd.f32 %v1283_v37, %v1231_v39  ;;  %v1681_v44 = vadd.f32 %v1680_v42, %v1679_v40  ;;  %v1792_v45 = vpop.f32.mrb[53].mxu1  ;;  %v1682_v46 = vpop.f32.mrb[54].mxu0 }
 0x166   : > { %v1793_v47 = vadd.f32 %v1792_v45, %v1791_v41  ;;  %v1794_v48 = vpop.f32.mrb[54].mxu1  ;;  %v1683_v49 = vpop.f32.mrb[55].mxu0 }
 0x167   : > { %1347 = vst [vmem:[%s2216_s28 + $0xc8] sm:$0xff] %v1315_v43  ;;  %v1075_v50 = vadd.f32 %v1681_v44, %v2203_v34  ;;  %v1684_v51 = vadd.f32 %v1683_v49, %v1682_v46  ;;  %v1795_v52 = vpop.f32.mrb[55].mxu1 }
 0x168   : > { %v1796_v54 = vadd.f32 %v1795_v52, %v1794_v48 }
 0x169   : > { %v1236_v55 = vadd.f32 %v1793_v47, %v1075_v50  ;;  %v1078_v56 = vadd.f32 %v1684_v51, %v2203_v34 }
 0x16b   : > { %v1316_v58 = vadd.f32 %v1284_v53, %v1236_v55  ;;  %v1239_v59 = vadd.f32 %v1796_v54, %v1078_v56  ;;  %v1685_v60 = vpop.f32.mrb[56].mxu0 }
 0x16c   : > { %v1797_v61 = vpop.f32.mrb[56].mxu1  ;;  %v1686_v62 = vpop.f32.mrb[57].mxu0 }
 0x16d   : > { %1348 = vst [vmem:[%s2216_s28 + $0xd0] sm:$0xff] %v1316_v58  ;;  %v1317_v63 = vadd.f32 %v1285_v57, %v1239_v59  ;;  %v1687_v0 = vadd.f32 %v1686_v62, %v1685_v60  ;;  %v1798_v1 = vpop.f32.mrb[57].mxu1  ;;  %v1688_v2 = vpop.f32.mrb[58].mxu0 }
 0x16e   : > { %v1799_v3 = vadd.f32 %v1798_v1, %v1797_v61  ;;  %v1800_v4 = vpop.f32.mrb[58].mxu1  ;;  %v1689_v5 = vpop.f32.mrb[59].mxu0 }
 0x16f   : > { %1349 = vst [vmem:[%s2216_s28 + $0xd8] sm:$0xff] %v1317_v63  ;;  %v1083_v6 = vadd.f32 %v1687_v0, %v2203_v34  ;;  %v1690_v7 = vadd.f32 %v1689_v5, %v1688_v2  ;;  %v1801_v8 = vpop.f32.mrb[59].mxu1 }
 0x170   : > { %v1802_v10 = vadd.f32 %v1801_v8, %v1800_v4 }
 0x171   : > { %v1244_v11 = vadd.f32 %v1799_v3, %v1083_v6  ;;  %v1086_v12 = vadd.f32 %v1690_v7, %v2203_v34 }
 0x173   : > { %v1318_v14 = vadd.f32 %v1286_v9, %v1244_v11  ;;  %v1247_v15 = vadd.f32 %v1802_v10, %v1086_v12  ;;  %v1691_v16 = vpop.f32.mrb[60].mxu0 }
 0x174   : > { %v1803_v17 = vpop.f32.mrb[60].mxu1  ;;  %v1692_v18 = vpop.f32.mrb[61].mxu0 }
 0x175   : > { %1350 = vst [vmem:[%s2216_s28 + $0xe0] sm:$0xff] %v1318_v14  ;;  %v1319_v19 = vadd.f32 %v1287_v13, %v1247_v15  ;;  %v1693_v20 = vadd.f32 %v1692_v18, %v1691_v16  ;;  %v1804_v21 = vpop.f32.mrb[61].mxu1  ;;  %v1694_v22 = vpop.f32.mrb[62].mxu0 }
 0x176   : > { %v1805_v23 = vadd.f32 %v1804_v21, %v1803_v17  ;;  %v1806_v24 = vpop.f32.mrb[62].mxu1  ;;  %v1695_v25 = vpop.f32.mrb[63].mxu0 }
 0x177   : > { %1351 = vst [vmem:[%s2216_s28 + $0xe8] sm:$0xff] %v1319_v19  ;;  %v1091_v26 = vadd.f32 %v1693_v20, %v2203_v34  ;;  %v1696_v27 = vadd.f32 %v1695_v25, %v1694_v22  ;;  %v1807_v28 = vpop.f32.mrb[63].mxu1 }
 0x178   : > { %v1808_v30 = vadd.f32 %v1807_v28, %v1806_v24 }
 0x179   : > { %v1252_v31 = vadd.f32 %v1805_v23, %v1091_v26  ;;  %v1094_v32 = vadd.f32 %v1696_v27, %v2203_v34 }
 0x17b   : > { %v1320_v35 = vadd.f32 %v1288_v29, %v1252_v31  ;;  %v1255_v36 = vadd.f32 %v1808_v30, %v1094_v32 }
 0x17d   : > { %1352 = vst [vmem:[%s2216_s28 + $0xf0] sm:$0xff] %v1320_v35  ;;  %v1321_v37 = vadd.f32 %v1289_v33, %v1255_v36 }
 0x17f   : > { %1353 = vst [vmem:[%s2216_s28 + $0xf8] sm:$0xff] %v1321_v37 }
 0x180 PF: > { %s14_s17 = sadd.s32 1, %s1983_s17   ;;  %s2325_s15 = smov %s1979_s16 }
 0x181   : > { %p11_p5 = scmp.ge.s32.totalorder %s14_s17, 4   ;;  %s2326_s16 = smov %s2328_s18 }
 0x183   :  { %13 = sbr.rel (!%p11_p5) target bundleno = 2 (0x2), region = 75 }

// kernel: gpt_forward.14
= control target key start
LH: loop header
LB: loop body
LE: loop exit
PB: predicated region body
PF: predicated region fallthrough
CT: control target
= control target key end

     0   :  { %s3710_s18 = smov 0   ;;  %s3712_s19 = smov 0   ;;  %s5703_s0 = inlined_call_operand.vmem [shape: f32[512,128], index: 0, kind: input, shape index: {}]   ;;  %s5704_s1 = inlined_call_operand.vmem [shape: f32[1,128], index: 1, kind: input, shape index: {}]   ;;  %s5705_s2 = inlined_call_operand.vmem [shape: f32[1,128], index: 2, kind: input, shape index: {}]   ;;  %s5706_s3 = inlined_call_operand.vmem [shape: bf16[128,512], index: 3, kind: input, shape index: {}]   ;;  %s5707_s4 = inlined_call_operand.vmem [shape: f32[1,512], index: 4, kind: input, shape index: {}]   ;;  %s5708_s5 = inlined_call_operand.vmem [shape: bf16[512,512], index: 5, kind: output, shape index: {}]  }
   0x1   :  { %s3714_s20 = smov 0  }
   0x2 LB: > { %s27_s21 = sadd.s32 1, %s3673_s19  ;;  %p3091_p0 = scmp.ge.s32.totalorder %s3677_s20, 1  ;;  %s3677_s20 = sphi %s3714_s20, %s15_s20   ;;  %s3673_s19 = sphi %s3712_s19, %s5776_s19   ;;  %s3669_s18 = sphi %s3710_s18, %s5775_s18  }
   0x3   : > { %p29_p1 = scmp.ge.s32.totalorder %s27_s21, 2  ;;  %p223_p2 = scmp.lt.s32.totalorder %s3677_s20, 3 }
   0x5   : > { %s5778_s21 = smov (%p29_p1, %s27_s21), 0  ;;  %p224_p3 = pnand %p3091_p0, %p223_p2 }
   0x7   : > { %227 = sbr.rel (%p224_p3) target bundleno = 905 (0x389), region = 40 }
   0xe   : > { %s3092_s22 = sshll.u32 %s3669_s18, 5  ;;  %v3287_v20 = vld [vmem:[%s5706_s3 + $0x4] ss:$16 sps:$4 sm:$0xff]   ;;  %v3289_v21 = vld [vmem:[%s5706_s3 + $0xc] ss:$16 sps:$4 sm:$0xff]  }
   0xf   : > { %p266_p4 = scmp.lt.s32.totalorder %s3092_s22, 63  ;;  %v3291_v22 = vld [vmem:[%s5706_s3] ss:$16 sps:$4 sm:$0xff]   ;;  %v3292_v23 = vld [vmem:[%s5706_s3 + $0x8] ss:$16 sps:$4 sm:$0xff]   ;;  %988 = vmatprep.subr.bf16.mxu0 %v3287_v20  ;;  %1181 = vmatprep.subr.bf16.mxu1 %v3289_v21 }
  0x10   : > { %v3293_v24 = vld [vmem:[%s5706_s3 + $0x24] ss:$16 sps:$4 sm:$0xff]   ;;  %v3295_v25 = vld [vmem:[%s5706_s3 + $0x2c] ss:$16 sps:$4 sm:$0xff]   ;;  %989 = vmatpush1.bf16.msra.mxu0 %v3291_v22  ;;  %1182 = vmatpush1.bf16.msra.mxu1 %v3292_v23  ;;  %v3297_v54 = vld [vmem:[%s5706_s3 + $0x20] ss:$16 sps:$4 sm:$0xff]  }
  0x11   : > { %s5780_s22 = smov (!%p266_p4, %s3092_s22), 63  ;;  %990 = vmatprep.subr.bf16.mxu0 %v3293_v24  ;;  %1183 = vmatprep.subr.bf16.mxu1 %v3295_v25  ;;  %v3298_v55 = vld [vmem:[%s5706_s3 + $0x28] ss:$16 sps:$4 sm:$0xff]   ;;  %v3299_v58 = vld [vmem:[%s5706_s3 + $0x44] ss:$16 sps:$4 sm:$0xff]  }
  0x12   : > { %s3093_s23 = sshll.u32 %s5780_s22, 3  ;;  %v3301_v59 = vld [vmem:[%s5706_s3 + $0x4c] ss:$16 sps:$4 sm:$0xff]   ;;  %v3303_v63 = vld [vmem:[%s5706_s3 + $0x40] ss:$16 sps:$4 sm:$0xff]   ;;  %s3197_s11 = sshll.u32 %s5780_s22, 4 }
  0x13   : > { %s3734_s26 = scalar_lea.vmem %s5703_s0, %s3093_s23  ;;  %v3309_v21 = vld [vmem:[%s5706_s3 + $0x60] ss:$16 sps:$4 sm:$0xff]   ;;  %v3310_v22 = vld [vmem:[%s5706_s3 + $0x68] ss:$16 sps:$4 sm:$0xff]   ;;  %v3311_v25 = vld [vmem:[%s5706_s3 + $0x84] ss:$16 sps:$4 sm:$0xff]   ;;  %s4397_s13 = scalar_lea.vmem %s5708_s5, %s3197_s11 }
  0x14   : > { %v295_v0 = vld [vmem:[%s3734_s26] sm:$0xff]  ;;  %v297_v1 = vld [vmem:[%s3734_s26 + $0x10] sm:$0xff]  ;;  %v296_v2 = vld [vmem:[%s3734_s26 + $0x8] sm:$0xff]  ;;  %991 = vmatpush1.bf16.msra.mxu0 %v3297_v54  ;;  %1184 = vmatpush1.bf16.msra.mxu1 %v3298_v55 }
  0x15   : > { %327 = vadd.xlane.f32.xlu0 %v295_v0  ;;  %331 = vadd.xlane.f32.xlu1 %v297_v1  ;;  %v3740_v3 = vld [vmem:[%s3734_s26 + $0x18] sm:$0xff]  ;;  %v3744_v4 = vld [vmem:[%s3734_s26 + $0x20] sm:$0xff]  ;;  %v3747_v5 = vld [vmem:[%s3734_s26 + $0x28] sm:$0xff] }
  0x16   : > { %v3752_v6 = vld [vmem:[%s3734_s26 + $0x30] sm:$0xff]  ;;  %v3755_v7 = vld [vmem:[%s3734_s26 + $0x38] sm:$0xff]  ;;  %v3760_v8 = vld [vmem:[%s3734_s26 + $0x40] sm:$0xff]  ;;  %992 = vmatprep.subr.bf16.mxu0 %v3299_v58  ;;  %1185 = vmatprep.subr.bf16.mxu1 %v3301_v59 }
  0x17   : > { %v3763_v9 = vld [vmem:[%s3734_s26 + $0x48] sm:$0xff]  ;;  %v3768_v10 = vld [vmem:[%s3734_s26 + $0x50] sm:$0xff]  ;;  %v3771_v11 = vld [vmem:[%s3734_s26 + $0x58] sm:$0xff] }
  0x18   : > { %v3776_v12 = vld [vmem:[%s3734_s26 + $0x60] sm:$0xff]  ;;  %v3779_v13 = vld [vmem:[%s3734_s26 + $0x68] sm:$0xff]  ;;  %v3784_v14 = vld [vmem:[%s3734_s26 + $0x70] sm:$0xff]  ;;  %993 = vmatpush1.bf16.msra.mxu0 %v3303_v63 }
  0x19   : > { %329 = vadd.xlane.f32.xlu0 %v296_v2  ;;  %333 = vadd.xlane.f32.xlu1 %v3740_v3  ;;  %v3787_v15 = vld [vmem:[%s3734_s26 + $0x78] sm:$0xff]  ;;  %v3792_v16 = vld [vmem:[%s3734_s26 + $0x80] sm:$0xff]  ;;  %v3795_v17 = vld [vmem:[%s3734_s26 + $0x88] sm:$0xff] }
  0x1a   : > { %v3800_v18 = vld [vmem:[%s3734_s26 + $0x90] sm:$0xff]  ;;  %v3803_v19 = vld [vmem:[%s3734_s26 + $0x98] sm:$0xff]  ;;  %v3834_v38 = vld [vmem:[%s3734_s26 + $0xa0] sm:$0xff] }
  0x1b   : > { %v3845_v44 = vld [vmem:[%s3734_s26 + $0xa8] sm:$0xff]  ;;  %v3854_v49 = vld [vmem:[%s3734_s26 + $0xb0] sm:$0xff]  ;;  %v3869_v56 = vld [vmem:[%s3734_s26 + $0xb8] sm:$0xff] }
  0x1c   : > { %v3911_v23 = vld [vmem:[%s3734_s26 + $0xc8] sm:$0xff]  ;;  %v3974_v59 = vld [vmem:[%s3734_s26 + $0xe0] sm:$0xff] }
  0x1d   : > { %335 = vadd.xlane.f32.xlu0 %v3744_v4  ;;  %337 = vadd.xlane.f32.xlu1 %v3747_v5  ;;  %v3328_v58 = vld [vmem:[%s5706_s3 + $0xc8] ss:$16 sps:$4 sm:$0xff]  }
  0x21   : > { %339 = vadd.xlane.f32.xlu0 %v3752_v6  ;;  %341 = vadd.xlane.f32.xlu1 %v3755_v7 }
  0x25   : > { %343 = vadd.xlane.f32.xlu0 %v3760_v8  ;;  %345 = vadd.xlane.f32.xlu1 %v3763_v9 }
  0x29   : > { %347 = vadd.xlane.f32.xlu0 %v3768_v10  ;;  %349 = vadd.xlane.f32.xlu1 %v3771_v11 }
  0x2d   : > { %351 = vadd.xlane.f32.xlu0 %v3776_v12  ;;  %353 = vadd.xlane.f32.xlu1 %v3779_v13 }
  0x31   : > { %355 = vadd.xlane.f32.xlu0 %v3784_v14  ;;  %357 = vadd.xlane.f32.xlu1 %v3787_v15 }
  0x35   : > { %359 = vadd.xlane.f32.xlu0 %v3792_v16  ;;  %361 = vadd.xlane.f32.xlu1 %v3795_v17 }
  0x39   : > { %363 = vadd.xlane.f32.xlu0 %v3800_v18  ;;  %365 = vadd.xlane.f32.xlu1 %v3803_v19 }
  0xa2   : > { %v328_v26 = vpop.xlane.xlu0 %327  ;;  %v332_v27 = vpop.xlane.xlu1 %331 }
  0xa3   : > { %v392_v28 = vmul.f32 0.0078125, %v328_v26  ;;  %v394_v30 = vmul.f32 0.0078125, %v332_v27  ;;  %v3313_v26 = vld [vmem:[%s5706_s3 + $0x8c] ss:$16 sps:$4 sm:$0xff]  }
  0xa5   : > { %v3825_v29 = vsub.f32 %v295_v0, %v392_v28  ;;  %v3831_v36 = vsub.f32 %v297_v1, %v394_v30  ;;  %v3304_v0 = vld [vmem:[%s5706_s3 + $0x48] ss:$16 sps:$4 sm:$0xff]   ;;  %v3890_v1 = vld [vmem:[%s3734_s26 + $0xc0] sm:$0xff] }
  0xa6   : > { %v330_v31 = vpop.xlane.xlu0 %329  ;;  %v334_v32 = vpop.xlane.xlu1 %333  ;;  %1186 = vmatpush1.bf16.msra.mxu1 %v3304_v0 }
  0xa7   : > { %v393_v33 = vmul.f32 0.0078125, %v330_v31  ;;  %v456_v34 = vmul.f32 %v3825_v29, %v3825_v29  ;;  %v395_v37 = vmul.f32 0.0078125, %v334_v32  ;;  %v458_v42 = vmul.f32 %v3831_v36, %v3831_v36  ;;  %v3315_v31 = vld [vmem:[%s5706_s3 + $0x80] ss:$16 sps:$4 sm:$0xff]   ;;  %v3316_v32 = vld [vmem:[%s5706_s3 + $0x88] ss:$16 sps:$4 sm:$0xff]  }
  0xa9   : > { %v3829_v35 = vsub.f32 %v296_v2, %v393_v33  ;;  %488 = vadd.xlane.f32.xlu0 %v456_v34  ;;  %v3840_v41 = vsub.f32 %v3740_v3, %v395_v37  ;;  %v3305_v3 = vld [vmem:[%s5706_s3 + $0x64] ss:$16 sps:$4 sm:$0xff]  }
  0xaa   : > { %v336_v39 = vpop.xlane.xlu0 %335  ;;  %v338_v45 = vpop.xlane.xlu1 %337  ;;  %994 = vmatprep.subr.bf16.mxu0 %v3305_v3  ;;  %v3932_v33 = vld [vmem:[%s3734_s26 + $0xd0] sm:$0xff] }
  0xab   : > { %v457_v40 = vmul.f32 %v3829_v35, %v3829_v35  ;;  %v396_v43 = vmul.f32 0.0078125, %v336_v39  ;;  %v459_v47 = vmul.f32 %v3840_v41, %v3840_v41  ;;  %v397_v48 = vmul.f32 0.0078125, %v338_v45  ;;  %995 = vmatpush1.bf16.msra.mxu0 %v3309_v21  ;;  %v3317_v37 = vld [vmem:[%s5706_s3 + $0xa4] ss:$16 sps:$4 sm:$0xff]   ;;  %v3319_v39 = vld [vmem:[%s5706_s3 + $0xac] ss:$16 sps:$4 sm:$0xff]  }
  0xac   : > { %996 = vmatprep.subr.bf16.mxu0 %v3311_v25  ;;  %v3321_v45 = vld [vmem:[%s5706_s3 + $0xa0] ss:$16 sps:$4 sm:$0xff]  }
  0xad   : > { %367 = vadd.xlane.f32.xlu0 %v3834_v38  ;;  %490 = vadd.xlane.f32.xlu1 %v457_v40  ;;  %v3849_v46 = vsub.f32 %v3744_v4, %v396_v43  ;;  %v3858_v51 = vsub.f32 %v3747_v5, %v397_v48  ;;  %v3307_v4 = vld [vmem:[%s5706_s3 + $0x6c] ss:$16 sps:$4 sm:$0xff]   ;;  %v3333_v3 = vld [vmem:[%s5706_s3 + $0xe0] ss:$16 sps:$4 sm:$0xff]  }
  0xae   : > { %v340_v50 = vpop.xlane.xlu0 %339  ;;  %v342_v57 = vpop.xlane.xlu1 %341  ;;  %1187 = vmatprep.subr.bf16.mxu1 %v3307_v4  ;;  %v3953_v48 = vld [vmem:[%s3734_s26 + $0xd8] sm:$0xff]  ;;  %v4004_v25 = vld [vmem:[%s3734_s26 + $0xf0] sm:$0xff] }
  0xaf   : > { %v460_v52 = vmul.f32 %v3849_v46, %v3849_v46  ;;  %v398_v53 = vmul.f32 0.0078125, %v340_v50  ;;  %v461_v61 = vmul.f32 %v3858_v51, %v3858_v51  ;;  %v399_v62 = vmul.f32 0.0078125, %v342_v57  ;;  %1188 = vmatpush1.bf16.msra.mxu1 %v3310_v22  ;;  %997 = vmatpush1.bf16.msra.mxu0 %v3315_v31  ;;  %v3323_v50 = vld [vmem:[%s5706_s3 + $0xc4] ss:$16 sps:$4 sm:$0xff]   ;;  %v3327_v57 = vld [vmem:[%s5706_s3 + $0xc0] ss:$16 sps:$4 sm:$0xff]  }
  0xb0   : > { %1189 = vmatprep.subr.bf16.mxu1 %v3313_v26  ;;  %998 = vmatprep.subr.bf16.mxu0 %v3317_v37  ;;  %v3334_v4 = vld [vmem:[%s5706_s3 + $0xe8] ss:$16 sps:$4 sm:$0xff]   ;;  %v3679_v26 = vmov 0  }
  0xb1   : > { %492 = vadd.xlane.f32.xlu0 %v458_v42  ;;  %369 = vadd.xlane.f32.xlu1 %v3845_v44  ;;  %v3879_v60 = vsub.f32 %v3752_v6, %v398_v53  ;;  %v3900_v5 = vsub.f32 %v3755_v7, %v399_v62  ;;  %v3331_v62 = vld [vmem:[%s5706_s3 + $0xec] ss:$16 sps:$4 sm:$0xff]  }
  0xb2   : > { %v344_v2 = vpop.xlane.xlu0 %343  ;;  %v346_v24 = vpop.xlane.xlu1 %345  ;;  %1020 = vmatprep.mubr.bf16.mxu0 %v3679_v26  ;;  %1213 = vmatprep.mubr.bf16.mxu1 %v3679_v26 }
  0xb3   : > { %v462_v6 = vmul.f32 %v3879_v60, %v3879_v60  ;;  %v400_v20 = vmul.f32 0.0078125, %v344_v2  ;;  %v463_v28 = vmul.f32 %v3900_v5, %v3900_v5  ;;  %v401_v30 = vmul.f32 0.0078125, %v346_v24  ;;  %1190 = vmatpush1.bf16.msra.mxu1 %v3316_v32  ;;  %999 = vmatpush1.bf16.msra.mxu0 %v3321_v45 }
  0xb4   : > { %1191 = vmatprep.subr.bf16.mxu1 %v3319_v39  ;;  %1000 = vmatprep.subr.bf16.mxu0 %v3323_v50 }
  0xb5   : > { %371 = vadd.xlane.f32.xlu0 %v3854_v49  ;;  %494 = vadd.xlane.f32.xlu1 %v459_v47  ;;  %v3921_v27 = vsub.f32 %v3760_v8, %v400_v20  ;;  %v3942_v40 = vsub.f32 %v3763_v9, %v401_v30  ;;  %v3322_v47 = vld [vmem:[%s5706_s3 + $0xa8] ss:$16 sps:$4 sm:$0xff]  }
  0xb6   : > { %v348_v7 = vpop.xlane.xlu0 %347  ;;  %v350_v8 = vpop.xlane.xlu1 %349 }
  0xb7   : > { %v464_v42 = vmul.f32 %v3921_v27, %v3921_v27  ;;  %v402_v43 = vmul.f32 0.0078125, %v348_v7  ;;  %1192 = vmatpush1.bf16.msra.mxu1 %v3322_v47  ;;  %v465_v54 = vmul.f32 %v3942_v40, %v3942_v40  ;;  %v403_v55 = vmul.f32 0.0078125, %v350_v8  ;;  %1001 = vmatpush1.bf16.msra.mxu0 %v3327_v57 }
  0xb9   : > { %373 = vadd.xlane.f32.xlu1 %v3869_v56  ;;  %496 = vadd.xlane.f32.xlu0 %v460_v52  ;;  %v3325_v52 = vld [vmem:[%s5706_s3 + $0xcc] ss:$16 sps:$4 sm:$0xff]   ;;  %v3963_v53 = vsub.f32 %v3768_v10, %v402_v43  ;;  %v3329_v10 = vld [vmem:[%s5706_s3 + $0xe4] ss:$16 sps:$4 sm:$0xff]   ;;  %v3984_v63 = vsub.f32 %v3771_v11, %v403_v55 }
  0xba   : > { %v352_v34 = vpop.xlane.xlu0 %351  ;;  %v354_v9 = vpop.xlane.xlu1 %353  ;;  %1193 = vmatprep.subr.bf16.mxu1 %v3325_v52  ;;  %1002 = vmatprep.subr.bf16.mxu0 %v3329_v10 }
  0xbb   : > { %1194 = vmatpush1.bf16.msra.mxu1 %v3328_v58  ;;  %v466_v0 = vmul.f32 %v3963_v53, %v3963_v53  ;;  %v404_v2 = vmul.f32 0.0078125, %v352_v34  ;;  %1003 = vmatpush1.bf16.msra.mxu0 %v3333_v3  ;;  %v405_v11 = vmul.f32 0.0078125, %v354_v9  ;;  %v467_v24 = vmul.f32 %v3984_v63, %v3984_v63  ;;  %v4018_v34 = vld [vmem:[%s3734_s26 + $0xf8] sm:$0xff] }
  0xbc   : > { %1195 = vmatprep.subr.bf16.mxu1 %v3331_v62 }
  0xbd   : > { %498 = vadd.xlane.f32.xlu1 %v461_v61  ;;  %375 = vadd.xlane.f32.xlu0 %v3890_v1  ;;  %v3999_v22 = vsub.f32 %v3776_v12, %v404_v2 }
  0xbe   : > { %v356_v61 = vpop.xlane.xlu0 %355  ;;  %v358_v20 = vpop.xlane.xlu1 %357 }
  0xbf   : > { %1196 = vmatpush1.bf16.msra.mxu1 %v3334_v4  ;;  %v406_v7 = vmul.f32 0.0078125, %v356_v61  ;;  %v407_v30 = vmul.f32 0.0078125, %v358_v20  ;;  %v468_v32 = vmul.f32 %v3999_v22, %v3999_v22 }
  0xc1   : > { %377 = vadd.xlane.f32.xlu1 %v3911_v23  ;;  %500 = vadd.xlane.f32.xlu0 %v462_v6  ;;  %v3995_v6 = vld [vmem:[%s3734_s26 + $0xe8] sm:$0xff]  ;;  %v4013_v12 = vsub.f32 %v3784_v14, %v406_v7  ;;  %v4021_v39 = vsub.f32 %v3787_v15, %v407_v30 }
  0xc2   : > { %v360_v21 = vpop.xlane.xlu0 %359  ;;  %v362_v31 = vpop.xlane.xlu1 %361 }
  0xc3   : > { %v408_v8 = vmul.f32 0.0078125, %v360_v21  ;;  %v470_v14 = vmul.f32 %v4013_v12, %v4013_v12  ;;  %v409_v43 = vmul.f32 0.0078125, %v362_v31  ;;  %v471_v9 = vmul.f32 %v4021_v39, %v4021_v39 }
  0xc5   : > { %502 = vadd.xlane.f32.xlu1 %v463_v28  ;;  %379 = vadd.xlane.f32.xlu0 %v3932_v33  ;;  %v4009_v28 = vsub.f32 %v3779_v13, %v405_v11  ;;  %v4034_v15 = vsub.f32 %v3795_v17, %v409_v43 }
  0xc6   : > { %v364_v37 = vpop.xlane.xlu0 %363  ;;  %v366_v47 = vpop.xlane.xlu1 %365 }
  0xc7   : > { %v469_v13 = vmul.f32 %v4009_v28, %v4009_v28  ;;  %v410_v45 = vmul.f32 0.0078125, %v364_v37  ;;  %v411_v52 = vmul.f32 0.0078125, %v366_v47  ;;  %v473_v55 = vmul.f32 %v4034_v15, %v4034_v15 }
  0xc9   : > { %381 = vadd.xlane.f32.xlu1 %v3953_v48  ;;  %504 = vadd.xlane.f32.xlu0 %v464_v42  ;;  %v4027_v42 = vsub.f32 %v3792_v16, %v408_v8  ;;  %v4037_v50 = vsub.f32 %v3800_v18, %v410_v45 }
  0xcb   : > { %v472_v16 = vmul.f32 %v4027_v42, %v4027_v42  ;;  %v474_v57 = vmul.f32 %v4037_v50, %v4037_v50 }
  0xcd   : > { %506 = vadd.xlane.f32.xlu1 %v465_v54  ;;  %383 = vadd.xlane.f32.xlu0 %v3974_v59  ;;  %v4042_v54 = vsub.f32 %v3803_v19, %v411_v52 }
  0xcf   : > { %v475_v17 = vmul.f32 %v4042_v54, %v4042_v54 }
  0xd1   : > { %385 = vadd.xlane.f32.xlu1 %v3995_v6  ;;  %508 = vadd.xlane.f32.xlu0 %v466_v0 }
  0xd5   : > { %510 = vadd.xlane.f32.xlu1 %v467_v24  ;;  %387 = vadd.xlane.f32.xlu0 %v4004_v25 }
  0xd9   : > { %389 = vadd.xlane.f32.xlu1 %v4018_v34  ;;  %512 = vadd.xlane.f32.xlu0 %v468_v32 }
  0xdd   : > { %514 = vadd.xlane.f32.xlu1 %v469_v13  ;;  %516 = vadd.xlane.f32.xlu0 %v470_v14 }
  0xe1   : > { %518 = vadd.xlane.f32.xlu1 %v471_v9  ;;  %520 = vadd.xlane.f32.xlu0 %v472_v16 }
  0xe5   : > { %522 = vadd.xlane.f32.xlu1 %v473_v55  ;;  %524 = vadd.xlane.f32.xlu0 %v474_v57  ;;  %v4069_v55 = vld [vmem:[%s5704_s1] ss:$0 sm:$0xff] }
  0xe9   : > { %526 = vadd.xlane.f32.xlu1 %v475_v17 }
 0x136   : > { %v489_v18 = vpop.xlane.xlu0 %488 }
 0x137   : > { %v552_v58 = vmul.f32 0.0078125, %v489_v18 }
 0x139   : > { %v584_v61 = vadd.f32 1e-05, %v552_v58 }
 0x13a   : > { %v491_v10 = vpop.xlane.xlu1 %490  ;;  %v368_v62 = vpop.xlane.xlu0 %367 }
 0x13b   : > { %3335 = vrsqrt.f32 %v584_v61  ;;  %v553_v19 = vmul.f32 0.0078125, %v491_v10  ;;  %v412_v0 = vmul.f32 0.0078125, %v368_v62 }
 0x13d   : > { %v585_v2 = vadd.f32 1e-05, %v553_v19  ;;  %v4051_v3 = vsub.f32 %v3834_v38, %v412_v0  ;;  %v4081_v0 = vld [vmem:[%s5705_s2] ss:$0 sm:$0xff] }
 0x13e   : > { %v370_v4 = vpop.xlane.xlu1 %369  ;;  %v493_v20 = vpop.xlane.xlu0 %492 }
 0x13f   : > { %3337 = vrsqrt.f32 %v585_v2  ;;  %v413_v11 = vmul.f32 0.0078125, %v370_v4  ;;  %v554_v21 = vmul.f32 0.0078125, %v493_v20  ;;  %v476_v24 = vmul.f32 %v4051_v3, %v4051_v3 }
 0x141   : > { %v4056_v7 = vsub.f32 %v3845_v44, %v413_v11  ;;  %v586_v30 = vadd.f32 1e-05, %v554_v21  ;;  %528 = vadd.xlane.f32.xlu0 %v476_v24 }
 0x142   : > { %v495_v31 = vpop.xlane.xlu1 %494  ;;  %v372_v32 = vpop.xlane.xlu0 %371 }
 0x143   : > { %3339 = vrsqrt.f32 %v586_v30  ;;  %v555_v8 = vmul.f32 0.0078125, %v495_v31  ;;  %v414_v37 = vmul.f32 0.0078125, %v372_v32  ;;  %v477_v38 = vmul.f32 %v4056_v7, %v4056_v7 }
 0x145   : > { %v3336_v13 = vpop.eup %3335  ;;  %v587_v14 = vadd.f32 1e-05, %v555_v8  ;;  %v4061_v43 = vsub.f32 %v3854_v49, %v414_v37  ;;  %530 = vadd.xlane.f32.xlu1 %v477_v38 }
 0x146   : > { %v374_v45 = vpop.xlane.xlu1 %373  ;;  %v497_v47 = vpop.xlane.xlu0 %496  ;;  %v648_v44 = vmul.f32 %v3336_v13, %v3825_v29 }
 0x147   : > { %3341 = vrsqrt.f32 %v587_v14  ;;  %v415_v9 = vmul.f32 0.0078125, %v374_v45  ;;  %v556_v16 = vmul.f32 0.0078125, %v497_v47  ;;  %v478_v52 = vmul.f32 %v4061_v43, %v4061_v43 }
 0x148   : > { %v687_v61 = vmul.f32 %v4069_v55, %v648_v44 }
 0x149   : > { %v3338_v57 = vpop.eup %3337  ;;  %v4072_v49 = vsub.f32 %v3869_v56, %v415_v9  ;;  %v588_v17 = vadd.f32 1e-05, %v556_v16  ;;  %532 = vadd.xlane.f32.xlu0 %v478_v52 }
 0x14a   : > { %v499_v18 = vpop.xlane.xlu1 %498  ;;  %v376_v58 = vpop.xlane.xlu0 %375  ;;  %v649_v29 = vmul.f32 %v3338_v57, %v3829_v35  ;;  %v726_v21 = vadd.f32 %v4081_v0, %v687_v61 }
 0x14b   : > { %3343 = vrsqrt.f32 %v588_v17  ;;  %v557_v10 = vmul.f32 0.0078125, %v499_v18  ;;  %v416_v62 = vmul.f32 0.0078125, %v376_v58  ;;  %v479_v19 = vmul.f32 %v4072_v49, %v4072_v49 }
 0x14c   : > { %v688_v56 = vmul.f32 %v4069_v55, %v649_v29 }
 0x14d   : > { %v3340_v2 = vpop.eup %3339  ;;  %v589_v4 = vadd.f32 1e-05, %v557_v10  ;;  %v4085_v20 = vsub.f32 %v3890_v1, %v416_v62  ;;  %534 = vadd.xlane.f32.xlu1 %v479_v19 }
 0x14e   : > { %v378_v35 = vpop.xlane.xlu1 %377  ;;  %v501_v11 = vpop.xlane.xlu0 %500  ;;  %v727_v24 = vadd.f32 %v4081_v0, %v688_v56  ;;  %v650_v30 = vmul.f32 %v3340_v2, %v3831_v36 }
 0x14f   : > { %3345 = vrsqrt.f32 %v589_v4  ;;  %v417_v31 = vmul.f32 0.0078125, %v378_v35  ;;  %v558_v32 = vmul.f32 0.0078125, %v501_v11  ;;  %v480_v8 = vmul.f32 %v4085_v20, %v4085_v20 }
 0x150   : > { %v758_v37 = vpack.c.bf16 %v727_v24, %v726_v21  ;;  %v689_v36 = vmul.f32 %v4069_v55, %v650_v30 }
 0x151   : > { %v3342_v38 = vpop.eup %3341  ;;  %v4093_v1 = vsub.f32 %v3911_v23, %v417_v31  ;;  %v590_v13 = vadd.f32 1e-05, %v558_v32  ;;  %536 = vadd.xlane.f32.xlu0 %v480_v8 }
 0x152   : > { %v503_v14 = vpop.xlane.xlu1 %502  ;;  %1021 = vmatmul.mubr.bf16.vlgmr.msra.gmra.mrb[0].mxu0 %v758_v37  ;;  %1214 = vmatmul.mubr.bf16.vlgmr.msra.gmra.mrb[0].mxu1 %v758_v37  ;;  %v380_v45 = vpop.xlane.xlu0 %379  ;;  %v651_v47 = vmul.f32 %v3342_v38, %v3840_v41  ;;  %v728_v58 = vadd.f32 %v4081_v0, %v689_v36 }
 0x153   : > { %3347 = vrsqrt.f32 %v590_v13  ;;  %v559_v44 = vmul.f32 0.0078125, %v503_v14  ;;  %v418_v9 = vmul.f32 0.0078125, %v380_v45  ;;  %v481_v16 = vmul.f32 %v4093_v1, %v4093_v1  ;;  %1030 = vmatprep.mubr.bf16.mxu0 %v3679_v26  ;;  %1223 = vmatprep.mubr.bf16.mxu1 %v3679_v26 }
 0x154   : > { %v690_v23 = vmul.f32 %v4069_v55, %v651_v47 }
 0x155   : > { %v3344_v52 = vpop.eup %3343  ;;  %v591_v57 = vadd.f32 1e-05, %v559_v44  ;;  %v4103_v17 = vsub.f32 %v3932_v33, %v418_v9  ;;  %538 = vadd.xlane.f32.xlu1 %v481_v16 }
 0x156   : > { %v382_v41 = vpop.xlane.xlu1 %381  ;;  %v505_v18 = vpop.xlane.xlu0 %504  ;;  %v729_v29 = vadd.f32 %v4081_v0, %v690_v23  ;;  %v652_v61 = vmul.f32 %v3344_v52, %v3849_v46 }
 0x157   : > { %3349 = vrsqrt.f32 %v591_v57  ;;  %v419_v10 = vmul.f32 0.0078125, %v382_v41  ;;  %v560_v62 = vmul.f32 0.0078125, %v505_v18  ;;  %v482_v19 = vmul.f32 %v4103_v17, %v4103_v17 }
 0x158   : > { %v759_v56 = vpack.c.bf16 %v729_v29, %v728_v58  ;;  %v691_v46 = vmul.f32 %v4069_v55, %v652_v61 }
 0x159   : > { %v3346_v2 = vpop.eup %3345  ;;  %v4111_v33 = vsub.f32 %v3953_v48, %v419_v10  ;;  %v592_v4 = vadd.f32 1e-05, %v560_v62  ;;  %540 = vadd.xlane.f32.xlu0 %v482_v19 }
 0x15a   : > { %v507_v35 = vpop.xlane.xlu1 %506  ;;  %1031 = vmatmul.mubr.bf16.gmra.mrb[4].mxu0 %v759_v56  ;;  %1224 = vmatmul.mubr.bf16.gmra.mrb[4].mxu1 %v759_v56  ;;  %v384_v11 = vpop.xlane.xlu0 %383  ;;  %v653_v21 = vmul.f32 %v3346_v2, %v3858_v51  ;;  %v730_v13 = vadd.f32 %v4081_v0, %v691_v46 }
 0x15b   : > { %3351 = vrsqrt.f32 %v592_v4  ;;  %v561_v24 = vmul.f32 0.0078125, %v507_v35  ;;  %v420_v30 = vmul.f32 0.0078125, %v384_v11  ;;  %v483_v31 = vmul.f32 %v4111_v33, %v4111_v33  ;;  %1040 = vmatprep.mubr.bf16.mxu0 %v3679_v26  ;;  %1233 = vmatprep.mubr.bf16.mxu1 %v3679_v26 }
 0x15c   : > { %v692_v48 = vmul.f32 %v4069_v55, %v653_v21 }
 0x15d   : > { %v3348_v32 = vpop.eup %3347  ;;  %v593_v8 = vadd.f32 1e-05, %v561_v24  ;;  %v4121_v37 = vsub.f32 %v3974_v59, %v420_v30  ;;  %542 = vadd.xlane.f32.xlu1 %v483_v31 }
 0x15e   : > { %v386_v51 = vpop.xlane.xlu1 %385  ;;  %v509_v38 = vpop.xlane.xlu0 %508  ;;  %v731_v14 = vadd.f32 %v4081_v0, %v692_v48  ;;  %v654_v45 = vmul.f32 %v3348_v32, %v3879_v60 }
 0x15f   : > { %3353 = vrsqrt.f32 %v593_v8  ;;  %v421_v47 = vmul.f32 0.0078125, %v386_v51  ;;  %v562_v36 = vmul.f32 0.0078125, %v509_v38  ;;  %v484_v44 = vmul.f32 %v4121_v37, %v4121_v37 }
 0x160   : > { %v760_v9 = vpack.c.bf16 %v731_v14, %v730_v13  ;;  %v693_v60 = vmul.f32 %v4069_v55, %v654_v45 }
 0x161   : > { %v3350_v16 = vpop.eup %3349  ;;  %v4129_v59 = vsub.f32 %v3995_v6, %v421_v47  ;;  %v594_v23 = vadd.f32 1e-05, %v562_v36  ;;  %544 = vadd.xlane.f32.xlu0 %v484_v44 }
 0x162   : > { %v511_v52 = vpop.xlane.xlu1 %510  ;;  %1041 = vmatmul.mubr.bf16.gmra.mrb[8].mxu0 %v760_v9  ;;  %1234 = vmatmul.mubr.bf16.gmra.mrb[8].mxu1 %v760_v9  ;;  %v388_v57 = vpop.xlane.xlu0 %387  ;;  %v655_v41 = vmul.f32 %v3350_v16, %v3900_v5  ;;  %v732_v56 = vadd.f32 %v4081_v0, %v693_v60 }
 0x163   : > { %3355 = vrsqrt.f32 %v594_v23  ;;  %v563_v18 = vmul.f32 0.0078125, %v511_v52  ;;  %v422_v58 = vmul.f32 0.0078125, %v388_v57  ;;  %v485_v29 = vmul.f32 %v4129_v59, %v4129_v59  ;;  %1050 = vmatprep.mubr.bf16.mxu0 %v3679_v26  ;;  %1243 = vmatprep.mubr.bf16.mxu1 %v3679_v26 }
 0x164   : > { %v694_v6 = vmul.f32 %v4069_v55, %v655_v41 }
 0x165   : > { %v3352_v61 = vpop.eup %3351  ;;  %v595_v10 = vadd.f32 1e-05, %v563_v18  ;;  %v4139_v62 = vsub.f32 %v4004_v25, %v422_v58  ;;  %546 = vadd.xlane.f32.xlu1 %v485_v29 }
 0x166   : > { %v390_v5 = vpop.xlane.xlu1 %389  ;;  %v513_v19 = vpop.xlane.xlu0 %512  ;;  %v733_v2 = vadd.f32 %v4081_v0, %v694_v6  ;;  %v656_v4 = vmul.f32 %v3352_v61, %v3921_v27 }
 0x167   : > { %3357 = vrsqrt.f32 %v595_v10  ;;  %v423_v35 = vmul.f32 0.0078125, %v390_v5  ;;  %v564_v11 = vmul.f32 0.0078125, %v513_v19  ;;  %v486_v21 = vmul.f32 %v4139_v62, %v4139_v62 }
 0x168   : > { %v761_v46 = vpack.c.bf16 %v733_v2, %v732_v56  ;;  %v695_v27 = vmul.f32 %v4069_v55, %v656_v4 }
 0x169   : > { %v3354_v24 = vpop.eup %3353  ;;  %v4147_v25 = vsub.f32 %v4018_v34, %v423_v35  ;;  %v596_v30 = vadd.f32 1e-05, %v564_v11  ;;  %548 = vadd.xlane.f32.xlu0 %v486_v21 }
 0x16a   : > { %v515_v31 = vpop.xlane.xlu1 %514  ;;  %1051 = vmatmul.mubr.bf16.gmra.mrb[12].mxu0 %v761_v46  ;;  %1244 = vmatmul.mubr.bf16.gmra.mrb[12].mxu1 %v761_v46  ;;  %v517_v48 = vpop.xlane.xlu0 %516  ;;  %v657_v32 = vmul.f32 %v3354_v24, %v3942_v40  ;;  %v734_v36 = vadd.f32 %v4081_v0, %v695_v27 }
 0x16b   : > { %3359 = vrsqrt.f32 %v596_v30  ;;  %v565_v8 = vmul.f32 0.0078125, %v515_v31  ;;  %v566_v51 = vmul.f32 0.0078125, %v517_v48  ;;  %v487_v38 = vmul.f32 %v4147_v25, %v4147_v25  ;;  %1060 = vmatprep.mubr.bf16.mxu0 %v3679_v26  ;;  %1253 = vmatprep.mubr.bf16.mxu1 %v3679_v26 }
 0x16c   : > { %v696_v34 = vmul.f32 %v4069_v55, %v657_v32 }
 0x16d   : > { %v3356_v13 = vpop.eup %3355  ;;  %v597_v14 = vadd.f32 1e-05, %v565_v8  ;;  %v598_v45 = vadd.f32 1e-05, %v566_v51  ;;  %550 = vadd.xlane.f32.xlu1 %v487_v38 }
 0x16e   : > { %v519_v47 = vpop.xlane.xlu1 %518  ;;  %v521_v40 = vpop.xlane.xlu0 %520  ;;  %v735_v44 = vadd.f32 %v4081_v0, %v696_v34  ;;  %v658_v9 = vmul.f32 %v3356_v13, %v3963_v53 }
 0x16f   : > { %3361 = vrsqrt.f32 %v597_v14  ;;  %v567_v16 = vmul.f32 0.0078125, %v519_v47  ;;  %v568_v41 = vmul.f32 0.0078125, %v521_v40 }
 0x170   : > { %v762_v23 = vpack.c.bf16 %v735_v44, %v734_v36  ;;  %3363 = vrsqrt.f32 %v598_v45  ;;  %v697_v58 = vmul.f32 %v4069_v55, %v658_v9 }
 0x171   : > { %v3358_v52 = vpop.eup %3357  ;;  %v599_v57 = vadd.f32 1e-05, %v567_v16  ;;  %v600_v61 = vadd.f32 1e-05, %v568_v41 }
 0x172   : > { %v523_v60 = vpop.xlane.xlu1 %522  ;;  %1061 = vmatmul.mubr.bf16.gmra.mrb[16].mxu0 %v762_v23  ;;  %1254 = vmatmul.mubr.bf16.gmra.mrb[16].mxu1 %v762_v23  ;;  %v659_v18 = vmul.f32 %v3358_v52, %v3984_v63  ;;  %v525_v5 = vpop.xlane.xlu0 %524  ;;  %v736_v56 = vadd.f32 %v4081_v0, %v697_v58 }
 0x173   : > { %3365 = vrsqrt.f32 %v599_v57  ;;  %v569_v29 = vmul.f32 0.0078125, %v523_v60  ;;  %1070 = vmatprep.mubr.bf16.mxu0 %v3679_v26  ;;  %1263 = vmatprep.mubr.bf16.mxu1 %v3679_v26  ;;  %v570_v21 = vmul.f32 0.0078125, %v525_v5 }
 0x174   : > { %v698_v53 = vmul.f32 %v4069_v55, %v659_v18 }
 0x175   : > { %v3360_v6 = vpop.eup %3359  ;;  %v601_v10 = vadd.f32 1e-05, %v569_v29  ;;  %v602_v32 = vadd.f32 1e-05, %v570_v21 }
 0x176   : > { %v527_v19 = vpop.xlane.xlu1 %526  ;;  %v737_v2 = vadd.f32 %v4081_v0, %v698_v53  ;;  %v660_v63 = vmul.f32 %v3360_v6, %v3999_v22 }
 0x177   : > { %3367 = vrsqrt.f32 %v601_v10  ;;  %v571_v4 = vmul.f32 0.0078125, %v527_v19 }
 0x178   : > { %v763_v35 = vpack.c.bf16 %v737_v2, %v736_v56  ;;  %3369 = vrsqrt.f32 %v600_v61  ;;  %v699_v24 = vmul.f32 %v4069_v55, %v660_v63 }
 0x179   : > { %v3362_v11 = vpop.eup %3361  ;;  %v603_v31 = vadd.f32 1e-05, %v571_v4 }
 0x17a   : > { %1071 = vmatmul.mubr.bf16.gmra.mrb[20].mxu0 %v763_v35  ;;  %1264 = vmatmul.mubr.bf16.gmra.mrb[20].mxu1 %v763_v35  ;;  %v661_v46 = vmul.f32 %v3362_v11, %v4009_v28  ;;  %v3364_v30 = vpop.eup %3363  ;;  %v738_v27 = vadd.f32 %v4081_v0, %v699_v24 }
 0x17b   : > { %1080 = vmatprep.mubr.bf16.mxu0 %v3679_v26  ;;  %1273 = vmatprep.mubr.bf16.mxu1 %v3679_v26  ;;  %v662_v51 = vmul.f32 %v3364_v30, %v4013_v12  ;;  %3371 = vrsqrt.f32 %v603_v31 }
 0x17c   : > { %v700_v22 = vmul.f32 %v4069_v55, %v661_v46  ;;  %3373 = vrsqrt.f32 %v602_v32 }
 0x17d   : > { %v3366_v48 = vpop.eup %3365  ;;  %v701_v14 = vmul.f32 %v4069_v55, %v662_v51 }
 0x17e   : > { %v739_v8 = vadd.f32 %v4081_v0, %v700_v22  ;;  %v663_v28 = vmul.f32 %v3366_v48, %v4021_v39 }
 0x17f   : > { %v740_v39 = vadd.f32 %v4081_v0, %v701_v14 }
 0x180   : > { %v764_v38 = vpack.c.bf16 %v739_v8, %v738_v27  ;;  %v702_v34 = vmul.f32 %v4069_v55, %v663_v28 }
 0x181   : > { %v3368_v13 = vpop.eup %3367 }
 0x182   : > { %1081 = vmatmul.mubr.bf16.gmra.mrb[24].mxu0 %v764_v38  ;;  %1274 = vmatmul.mubr.bf16.gmra.mrb[24].mxu1 %v764_v38  ;;  %v3370_v45 = vpop.eup %3369  ;;  %v741_v47 = vadd.f32 %v4081_v0, %v702_v34  ;;  %v665_v12 = vmul.f32 %v3368_v13, %v4034_v15 }
 0x183   : > { %1090 = vmatprep.mubr.bf16.mxu0 %v3679_v26  ;;  %1283 = vmatprep.mubr.bf16.mxu1 %v3679_v26  ;;  %v664_v40 = vmul.f32 %v3370_v45, %v4027_v42 }
 0x184   : > { %v765_v36 = vpack.c.bf16 %v741_v47, %v740_v39  ;;  %v704_v44 = vmul.f32 %v4069_v55, %v665_v12 }
 0x185   : > { %v3372_v9 = vpop.eup %3371  ;;  %v703_v16 = vmul.f32 %v4069_v55, %v664_v40 }
 0x186   : > { %v3374_v23 = vpop.eup %3373  ;;  %v743_v52 = vadd.f32 %v4081_v0, %v704_v44  ;;  %v667_v15 = vmul.f32 %v3372_v9, %v4042_v54 }
 0x187   : > { %v742_v57 = vadd.f32 %v4081_v0, %v703_v16  ;;  %v666_v42 = vmul.f32 %v3374_v23, %v4037_v50 }
 0x188   : > { %v706_v60 = vmul.f32 %v4069_v55, %v667_v15 }
 0x189   : > { %v766_v41 = vpack.c.bf16 %v743_v52, %v742_v57  ;;  %v705_v18 = vmul.f32 %v4069_v55, %v666_v42 }
 0x18a   : > { %1091 = vmatmul.mubr.bf16.gmra.mrb[28].mxu0 %v765_v36  ;;  %1284 = vmatmul.mubr.bf16.gmra.mrb[28].mxu1 %v765_v36  ;;  %v745_v58 = vadd.f32 %v4081_v0, %v706_v60 }
 0x18b   : > { %1100 = vmatprep.mubr.bf16.mxu0 %v3679_v26  ;;  %1293 = vmatprep.mubr.bf16.mxu1 %v3679_v26  ;;  %v744_v29 = vadd.f32 %v4081_v0, %v705_v18 }
 0x18d   : > { %v767_v54 = vpack.c.bf16 %v745_v58, %v744_v29 }
 0x192   : > { %1101 = vmatmul.mubr.bf16.gmra.mrb[32].mxu0 %v766_v41  ;;  %1294 = vmatmul.mubr.bf16.gmra.mrb[32].mxu1 %v766_v41 }
 0x193   : > { %1110 = vmatprep.mubr.bf16.mxu0 %v3679_v26  ;;  %1303 = vmatprep.mubr.bf16.mxu1 %v3679_v26 }
 0x19a   : > { %1111 = vmatmul.mubr.bf16.gmra.mrb[36].mxu0 %v767_v54  ;;  %1304 = vmatmul.mubr.bf16.gmra.mrb[36].mxu1 %v767_v54 }
 0x19b   : > { %1120 = vmatprep.mubr.bf16.mxu0 %v3679_v26  ;;  %1313 = vmatprep.mubr.bf16.mxu1 %v3679_v26 }
 0x1ce   : > { %v529_v50 = vpop.xlane.xlu0 %528 }
 0x1cf   : > { %v572_v53 = vmul.f32 0.0078125, %v529_v50 }
 0x1d1   : > { %v604_v6 = vadd.f32 1e-05, %v572_v53 }
 0x1d2   : > { %v531_v61 = vpop.xlane.xlu1 %530 }
 0x1d3   : > { %3375 = vrsqrt.f32 %v604_v6  ;;  %v573_v10 = vmul.f32 0.0078125, %v531_v61 }
 0x1d5   : > { %v605_v5 = vadd.f32 1e-05, %v573_v10 }
 0x1d6   : > { %v533_v19 = vpop.xlane.xlu0 %532 }
 0x1d7   : > { %3377 = vrsqrt.f32 %v605_v5  ;;  %v574_v56 = vmul.f32 0.0078125, %v533_v19 }
 0x1d9   : > { %v606_v2 = vadd.f32 1e-05, %v574_v56 }
 0x1da   : > { %v535_v63 = vpop.xlane.xlu1 %534 }
 0x1db   : > { %3379 = vrsqrt.f32 %v606_v2  ;;  %v575_v4 = vmul.f32 0.0078125, %v535_v63 }
 0x1dd   : > { %v3376_v35 = vpop.eup %3375  ;;  %v607_v11 = vadd.f32 1e-05, %v575_v4 }
 0x1de   : > { %v537_v21 = vpop.xlane.xlu0 %536  ;;  %v668_v46 = vmul.f32 %v3376_v35, %v4051_v3 }
 0x1df   : > { %3381 = vrsqrt.f32 %v607_v11  ;;  %v576_v24 = vmul.f32 0.0078125, %v537_v21 }
 0x1e0   : > { %v707_v32 = vmul.f32 %v4069_v55, %v668_v46 }
 0x1e1   : > { %v3378_v30 = vpop.eup %3377  ;;  %v608_v31 = vadd.f32 1e-05, %v576_v24 }
 0x1e2   : > { %v539_v22 = vpop.xlane.xlu1 %538  ;;  %v669_v48 = vmul.f32 %v3378_v30, %v4056_v7  ;;  %v746_v34 = vadd.f32 %v4081_v0, %v707_v32 }
 0x1e3   : > { %3383 = vrsqrt.f32 %v608_v31  ;;  %v577_v27 = vmul.f32 0.0078125, %v539_v22 }
 0x1e4   : > { %v708_v8 = vmul.f32 %v4069_v55, %v669_v48 }
 0x1e5   : > { %v3380_v51 = vpop.eup %3379  ;;  %v609_v28 = vadd.f32 1e-05, %v577_v27 }
 0x1e6   : > { %v541_v38 = vpop.xlane.xlu0 %540  ;;  %v747_v3 = vadd.f32 %v4081_v0, %v708_v8  ;;  %v670_v13 = vmul.f32 %v3380_v51, %v4061_v43 }
 0x1e7   : > { %3385 = vrsqrt.f32 %v609_v28  ;;  %v578_v14 = vmul.f32 0.0078125, %v541_v38 }
 0x1e8   : > { %v768_v45 = vpack.c.bf16 %v747_v3, %v746_v34  ;;  %v709_v40 = vmul.f32 %v4069_v55, %v670_v13 }
 0x1e9   : > { %v3382_v47 = vpop.eup %3381  ;;  %v610_v7 = vadd.f32 1e-05, %v578_v14 }
 0x1ea   : > { %v543_v12 = vpop.xlane.xlu1 %542  ;;  %1121 = vmatmul.mubr.bf16.gmra.mrb[40].mxu0 %v768_v45  ;;  %1314 = vmatmul.mubr.bf16.gmra.mrb[40].mxu1 %v768_v45  ;;  %v671_v39 = vmul.f32 %v3382_v47, %v4072_v49  ;;  %v748_v23 = vadd.f32 %v4081_v0, %v709_v40 }
 0x1eb   : > { %3387 = vrsqrt.f32 %v610_v7  ;;  %v579_v36 = vmul.f32 0.0078125, %v543_v12  ;;  %1130 = vmatprep.mubr.bf16.mxu0 %v3679_v26  ;;  %1323 = vmatprep.mubr.bf16.mxu1 %v3679_v26 }
 0x1ec   : > { %v710_v43 = vmul.f32 %v4069_v55, %v671_v39 }
 0x1ed   : > { %v3384_v44 = vpop.eup %3383  ;;  %v611_v9 = vadd.f32 1e-05, %v579_v36 }
 0x1ee   : > { %v545_v16 = vpop.xlane.xlu0 %544  ;;  %v749_v52 = vadd.f32 %v4081_v0, %v710_v43  ;;  %v672_v15 = vmul.f32 %v3384_v44, %v4085_v20 }
 0x1ef   : > { %3389 = vrsqrt.f32 %v611_v9  ;;  %v580_v49 = vmul.f32 0.0078125, %v545_v16 }
 0x1f0   : > { %v769_v57 = vpack.c.bf16 %v749_v52, %v748_v23  ;;  %v711_v58 = vmul.f32 %v4069_v55, %v672_v15 }
 0x1f1   : > { %v3386_v42 = vpop.eup %3385  ;;  %v612_v41 = vadd.f32 1e-05, %v580_v49 }
 0x1f2   : > { %v547_v60 = vpop.xlane.xlu1 %546  ;;  %1131 = vmatmul.mubr.bf16.gmra.mrb[44].mxu0 %v769_v57  ;;  %1324 = vmatmul.mubr.bf16.gmra.mrb[44].mxu1 %v769_v57  ;;  %v673_v18 = vmul.f32 %v3386_v42, %v4093_v1  ;;  %v750_v6 = vadd.f32 %v4081_v0, %v711_v58 }
 0x1f3   : > { %3391 = vrsqrt.f32 %v612_v41  ;;  %v581_v29 = vmul.f32 0.0078125, %v547_v60  ;;  %1140 = vmatprep.mubr.bf16.mxu0 %v3679_v26  ;;  %1333 = vmatprep.mubr.bf16.mxu1 %v3679_v26 }
 0x1f4   : > { %v712_v20 = vmul.f32 %v4069_v55, %v673_v18 }
 0x1f5   : > { %v3388_v54 = vpop.eup %3387  ;;  %v613_v50 = vadd.f32 1e-05, %v581_v29 }
 0x1f6   : > { %v549_v53 = vpop.xlane.xlu0 %548  ;;  %v751_v61 = vadd.f32 %v4081_v0, %v712_v20  ;;  %v674_v10 = vmul.f32 %v3388_v54, %v4103_v17 }
 0x1f7   : > { %3393 = vrsqrt.f32 %v613_v50  ;;  %v582_v1 = vmul.f32 0.0078125, %v549_v53 }
 0x1f8   : > { %v770_v5 = vpack.c.bf16 %v751_v61, %v750_v6  ;;  %v713_v4 = vmul.f32 %v4069_v55, %v674_v10 }
 0x1f9   : > { %v3390_v19 = vpop.eup %3389  ;;  %v614_v56 = vadd.f32 1e-05, %v582_v1 }
 0x1fa   : > { %v551_v2 = vpop.xlane.xlu1 %550  ;;  %1141 = vmatmul.mubr.bf16.gmra.mrb[48].mxu0 %v770_v5  ;;  %1334 = vmatmul.mubr.bf16.gmra.mrb[48].mxu1 %v770_v5  ;;  %v675_v63 = vmul.f32 %v3390_v19, %v4111_v33  ;;  %v752_v46 = vadd.f32 %v4081_v0, %v713_v4 }
 0x1fb   : > { %3395 = vrsqrt.f32 %v614_v56  ;;  %v583_v35 = vmul.f32 0.0078125, %v551_v2  ;;  %1150 = vmatprep.mubr.bf16.mxu0 %v3679_v26  ;;  %1343 = vmatprep.mubr.bf16.mxu1 %v3679_v26 }
 0x1fc   : > { %v714_v17 = vmul.f32 %v4069_v55, %v675_v63 }
 0x1fd   : > { %v3392_v11 = vpop.eup %3391  ;;  %v615_v21 = vadd.f32 1e-05, %v583_v35 }
 0x1fe   : > { %v753_v24 = vadd.f32 %v4081_v0, %v714_v17  ;;  %v676_v30 = vmul.f32 %v3392_v11, %v4121_v37 }
 0x1ff   : > { %3397 = vrsqrt.f32 %v615_v21 }
 0x200   : > { %v771_v33 = vpack.c.bf16 %v753_v24, %v752_v46  ;;  %v715_v48 = vmul.f32 %v4069_v55, %v676_v30 }
 0x201   : > { %v3394_v31 = vpop.eup %3393 }
 0x202   : > { %1151 = vmatmul.mubr.bf16.gmra.mrb[52].mxu0 %v771_v33  ;;  %1344 = vmatmul.mubr.bf16.gmra.mrb[52].mxu1 %v771_v33  ;;  %v677_v22 = vmul.f32 %v3394_v31, %v4129_v59  ;;  %v754_v8 = vadd.f32 %v4081_v0, %v715_v48 }
 0x203   : > { %1160 = vmatprep.mubr.bf16.mxu0 %v3679_v26  ;;  %1353 = vmatprep.mubr.bf16.mxu1 %v3679_v26 }
 0x204   : > { %v716_v32 = vmul.f32 %v4069_v55, %v677_v22 }
 0x205   : > { %v3396_v27 = vpop.eup %3395 }
 0x206   : > { %v755_v37 = vadd.f32 %v4081_v0, %v716_v32  ;;  %v678_v51 = vmul.f32 %v3396_v27, %v4139_v62  ;;  %v808_v62 = vlaneseq }
 0x208   : > { %v772_v28 = vpack.c.bf16 %v755_v37, %v754_v8  ;;  %v717_v34 = vmul.f32 %v4069_v55, %v678_v51  ;;  %v809_v47 = vshrl.u32 %v808_v62, 7 }
 0x209   : > { %v3398_v38 = vpop.eup %3397 }
 0x20a   : > { %1161 = vmatmul.mubr.bf16.gmra.mrb[56].mxu0 %v772_v28  ;;  %1354 = vmatmul.mubr.bf16.gmra.mrb[56].mxu1 %v772_v28  ;;  %v679_v59 = vmul.f32 %v3398_v38, %v4147_v25  ;;  %v756_v13 = vadd.f32 %v4081_v0, %v717_v34  ;;  %v810_v7 = vsub.s32 0, %v809_v47  ;;  %v818_v12 = vsub.s32 2, %v809_v47  ;;  %v806_v25 = vld [vmem:[%s5707_s4] sm:$0xf] }
 0x20b   : > { %1170 = vmatprep.mubr.bf16.mxu0 %v3679_v26  ;;  %1363 = vmatprep.mubr.bf16.mxu1 %v3679_v26  ;;  %v814_v39 = vsub.s32 1, %v809_v47  ;;  %v822_v40 = vsub.s32 3, %v809_v47 }
 0x20c   : > { %v718_v3 = vmul.f32 %v4069_v55, %v679_v59  ;;  %v4249_v26 = vrot.slane %v806_v25, %v810_v7  ;;  %v4251_v55 = vrot.slane %v806_v25, %v818_v12 }
 0x20d   : > { %v4253_v36 = vrot.slane %v806_v25, %v814_v39 }
 0x20e   : > { %v757_v14 = vadd.f32 %v4081_v0, %v718_v3  ;;  %v4255_v0 = vrot.slane %v806_v25, %v822_v40 }
 0x210   : > { %v773_v45 = vpack.c.bf16 %v757_v14, %v756_v13 }
 0x212   : > { %1171 = vmatmul.mubr.bf16.gmra.mrb[60].mxu0 %v773_v45  ;;  %1364 = vmatmul.mubr.bf16.gmra.mrb[60].mxu1 %v773_v45 }
 0x225   : > { %v1022_v43 = vpop.f32.mrb[0].mxu0  ;;  %v1215_v44 = vpop.f32.mrb[0].mxu1 }
 0x226   : > { %v1023_v9 = vadd.f32 %v1022_v43, %v4249_v26  ;;  %v1216_v16 = vadd.f32 %v1215_v44, %v4251_v55  ;;  %v1024_v23 = vpop.f32.mrb[1].mxu0  ;;  %v1217_v52 = vpop.f32.mrb[1].mxu1 }
 0x227   : > { %v4260_v15 = vadd.f32 %v1024_v23, %v4253_v36  ;;  %v4263_v49 = vadd.f32 %v1217_v52, %v4255_v0  ;;  %v1026_v57 = vpop.f32.mrb[2].mxu0  ;;  %v1219_v42 = vpop.f32.mrb[2].mxu1 }
 0x228   : > { %v1502_v41 = vmul.f32 0.044715, %v1023_v9  ;;  %v1504_v60 = vmul.f32 0.044715, %v1216_v16  ;;  %v4268_v54 = vadd.f32 %v1026_v57, %v4249_v26  ;;  %v4271_v50 = vadd.f32 %v1219_v42, %v4251_v55  ;;  %v1028_v53 = vpop.f32.mrb[3].mxu0  ;;  %v1221_v6 = vpop.f32.mrb[3].mxu1 }
 0x229   : > { %v1503_v18 = vmul.f32 0.044715, %v4260_v15  ;;  %v1505_v58 = vmul.f32 0.044715, %v4263_v49  ;;  %v4276_v1 = vadd.f32 %v1028_v53, %v4253_v36  ;;  %v4284_v24 = vadd.f32 %v1221_v6, %v4255_v0 }
 0x22a   : > { %v1630_v29 = vmul.f32 %v1502_v41, %v1023_v9  ;;  %v1632_v20 = vmul.f32 %v1504_v60, %v1216_v16  ;;  %v1506_v56 = vmul.f32 0.044715, %v4268_v54  ;;  %v1508_v4 = vmul.f32 0.044715, %v4271_v50 }
 0x22b   : > { %v1631_v61 = vmul.f32 %v1503_v18, %v4260_v15  ;;  %v1633_v10 = vmul.f32 %v1505_v58, %v4263_v49  ;;  %v1507_v32 = vmul.f32 0.044715, %v4276_v1  ;;  %v4292_v37 = vmul.f32 0.5, %v1023_v9 }
 0x22c   : > { %v1758_v5 = vmul.f32 %v1630_v29, %v1023_v9  ;;  %v1760_v19 = vmul.f32 %v1632_v20, %v1216_v16  ;;  %v1634_v46 = vmul.f32 %v1506_v56, %v4268_v54  ;;  %v1636_v48 = vmul.f32 %v1508_v4, %v4271_v50 }
 0x22d   : > { %v1759_v2 = vmul.f32 %v1631_v61, %v4260_v15  ;;  %v1761_v63 = vmul.f32 %v1633_v10, %v4263_v49  ;;  %v1032_v35 = vpop.f32.mrb[4].mxu0  ;;  %v1225_v17 = vpop.f32.mrb[4].mxu1  ;;  %v1635_v14 = vmul.f32 %v1507_v32, %v4276_v1  ;;  %v1509_v47 = vmul.f32 0.044715, %v4284_v24 }
 0x22e   : > { %v1886_v11 = vadd.f32 %v1758_v5, %v1023_v9  ;;  %v1888_v21 = vadd.f32 %v1760_v19, %v1216_v16  ;;  %v1034_v30 = vpop.f32.mrb[5].mxu0  ;;  %v1227_v33 = vpop.f32.mrb[5].mxu1  ;;  %v1762_v38 = vmul.f32 %v1634_v46, %v4268_v54  ;;  %v1764_v13 = vmul.f32 %v1636_v48, %v4271_v50 }
 0x22f   : > { %v1887_v31 = vadd.f32 %v1759_v2, %v4260_v15  ;;  %v1889_v22 = vadd.f32 %v1761_v63, %v4263_v49  ;;  %v1036_v27 = vpop.f32.mrb[6].mxu0  ;;  %v4290_v8 = vpop.f32.mrb[6].mxu1  ;;  %v4304_v7 = vadd.f32 %v1032_v35, %v4249_v26  ;;  %v1763_v25 = vmul.f32 %v1635_v14, %v4276_v1 }
 0x230   : > { %v2014_v51 = vmul.f32 0.7978846, %v1886_v11  ;;  %v2016_v28 = vmul.f32 0.7978846, %v1888_v21  ;;  %v4295_v59 = vpop.f32.mrb[7].mxu0  ;;  %v4299_v45 = vpop.f32.mrb[7].mxu1  ;;  %v1890_v62 = vadd.f32 %v1762_v38, %v4268_v54  ;;  %v1892_v12 = vadd.f32 %v1764_v13, %v4271_v50 }
 0x231   : > { %v2015_v34 = vmul.f32 0.7978846, %v1887_v31  ;;  %v2017_v3 = vmul.f32 0.7978846, %v1889_v22  ;;  %v4309_v39 = vadd.f32 %v1225_v17, %v4251_v55  ;;  %v4311_v40 = vmul.f32 0.5, %v1216_v16 }
 0x232   : > { %3399 = vtanh.f32 %v2014_v51  ;;  %v2018_v43 = vmul.f32 0.7978846, %v1890_v62  ;;  %v1637_v44 = vmul.f32 %v1509_v47, %v4284_v24  ;;  %v2020_v9 = vmul.f32 0.7978846, %v1892_v12 }
 0x233   : > { %3401 = vtanh.f32 %v2016_v28  ;;  %v1891_v23 = vadd.f32 %v1763_v25, %v4276_v1  ;;  %v1510_v52 = vmul.f32 0.044715, %v4304_v7  ;;  %v4321_v41 = vmul.f32 0.5, %v4260_v15 }
 0x234   : > { %3403 = vtanh.f32 %v2015_v34  ;;  %v1765_v16 = vmul.f32 %v1637_v44, %v4284_v24  ;;  %v1512_v60 = vmul.f32 0.044715, %v4309_v39  ;;  %v4331_v53 = vadd.f32 %v1034_v30, %v4253_v36 }
 0x235   : > { %3405 = vtanh.f32 %v2017_v3  ;;  %v4316_v57 = vpop.f32.mrb[8].mxu0  ;;  %v4318_v42 = vpop.f32.mrb[8].mxu1  ;;  %v2019_v29 = vmul.f32 0.7978846, %v1891_v23  ;;  %v1638_v20 = vmul.f32 %v1510_v52, %v4304_v7  ;;  %v4340_v5 = vadd.f32 %v1227_v33, %v4255_v0 }
 0x236   : > { %3407 = vtanh.f32 %v2018_v43  ;;  %v4325_v18 = vpop.f32.mrb[9].mxu0  ;;  %v4327_v58 = vpop.f32.mrb[9].mxu1  ;;  %v1893_v61 = vadd.f32 %v1765_v16, %v4284_v24  ;;  %v1640_v10 = vmul.f32 %v1512_v60, %v4309_v39  ;;  %v4343_v19 = vadd.f32 %v1036_v27, %v4249_v26 }
 0x237   : > { %3409 = vtanh.f32 %v2020_v9  ;;  %v4333_v6 = vpop.f32.mrb[10].mxu0  ;;  %v4335_v15 = vpop.f32.mrb[10].mxu1  ;;  %v1377_v63 = vmul.f32 0.5, %v4263_v49  ;;  %v1766_v4 = vmul.f32 %v1638_v20, %v4304_v7  ;;  %v1511_v35 = vmul.f32 0.044715, %v4331_v53 }
 0x238   : > { %v4345_v56 = vpop.f32.mrb[11].mxu0  ;;  %v4347_v2 = vpop.f32.mrb[11].mxu1  ;;  %3411 = vtanh.f32 %v2019_v29  ;;  %v1378_v17 = vmul.f32 0.5, %v4268_v54  ;;  %v2021_v11 = vmul.f32 0.7978846, %v1893_v61  ;;  %v1768_v21 = vmul.f32 %v1640_v10, %v4309_v39 }
 0x239   : > { %v1513_v46 = vmul.f32 0.044715, %v4340_v5  ;;  %v4356_v30 = vmul.f32 0.5, %v4271_v50  ;;  %v1894_v33 = vadd.f32 %v1766_v4, %v4304_v7  ;;  %v1639_v31 = vmul.f32 %v1511_v35, %v4331_v53 }
 0x23a   : > { %v1514_v49 = vmul.f32 0.044715, %v4343_v19  ;;  %v1379_v48 = vmul.f32 0.5, %v4276_v1  ;;  %3413 = vtanh.f32 %v2021_v11  ;;  %v1896_v54 = vadd.f32 %v1768_v21, %v4309_v39 }
 0x23b   : > { %v1641_v32 = vmul.f32 %v1513_v46, %v4340_v5  ;;  %v2022_v28 = vmul.f32 0.7978846, %v1894_v33  ;;  %v1767_v50 = vmul.f32 %v1639_v31, %v4331_v53  ;;  %v4373_v47 = vadd.f32 %v4290_v8, %v4251_v55 }
 0x23c   : > { %v3400_v22 = vpop.eup %3399  ;;  %v1642_v38 = vmul.f32 %v1514_v49, %v4343_v19  ;;  %v2024_v1 = vmul.f32 0.7978846, %v1896_v54  ;;  %v1381_v46 = vmul.f32 0.5, %v4284_v24  ;;  %v4406_v24 = vadd.f32 %v4295_v59, %v4253_v36 }
 0x23d   : > { %v3402_v27 = vpop.eup %3401  ;;  %v2270_v51 = vadd.f32 1.0, %v3400_v22  ;;  %v4366_v34 = vpop.f32.mrb[12].mxu0  ;;  %v1769_v62 = vmul.f32 %v1641_v32, %v4340_v5  ;;  %3415 = vtanh.f32 %v2022_v28  ;;  %v1895_v23 = vadd.f32 %v1767_v50, %v4331_v53 }
 0x23e   : > { %v4368_v3 = vpop.f32.mrb[12].mxu1  ;;  %v3404_v13 = vpop.eup %3403  ;;  %v2272_v14 = vadd.f32 1.0, %v3402_v27  ;;  %3417 = vtanh.f32 %v2024_v1  ;;  %v1770_v21 = vmul.f32 %v1642_v38, %v4343_v19  ;;  %v1516_v31 = vmul.f32 0.044715, %v4373_v47 }
 0x23f   : > { %v4375_v12 = vpop.f32.mrb[13].mxu0  ;;  %v4377_v25 = vpop.f32.mrb[13].mxu1  ;;  %v2398_v44 = vmul.f32 %v2270_v51, %v4292_v37  ;;  %v2271_v9 = vadd.f32 1.0, %v3404_v13  ;;  %v1897_v20 = vadd.f32 %v1769_v62, %v4340_v5  ;;  %v2023_v11 = vmul.f32 0.7978846, %v1895_v23 }
 0x240   : > { %v3406_v43 = vpop.eup %3405  ;;  %v4382_v52 = vpop.f32.mrb[14].mxu0  ;;  %v2400_v8 = vmul.f32 %v2272_v14, %v4311_v40  ;;  %v1898_v54 = vadd.f32 %v1770_v21, %v4343_v19  ;;  %v4410_v50 = vadd.f32 %v4299_v45, %v4255_v0  ;;  %v1382_v1 = vmul.f32 0.5, %v4304_v7 }
 0x241   : > { %v4384_v16 = vpop.f32.mrb[14].mxu1  ;;  %v3408_v60 = vpop.eup %3407  ;;  %v2273_v29 = vadd.f32 1.0, %v3406_v43  ;;  %v2399_v4 = vmul.f32 %v2271_v9, %v4321_v41  ;;  %v2025_v33 = vmul.f32 0.7978846, %v1897_v20  ;;  %3419 = vtanh.f32 %v2023_v11 }
 0x242   : > { %v4388_v61 = vpop.f32.mrb[15].mxu0  ;;  %v4390_v10 = vpop.f32.mrb[15].mxu1  ;;  %v2274_v35 = vadd.f32 1.0, %v3408_v60  ;;  %v2026_v28 = vmul.f32 0.7978846, %v1898_v54  ;;  %v1384_v62 = vmul.f32 0.5, %v4309_v39  ;;  %v4421_v43 = vadd.f32 %v4316_v57, %v4249_v26 }
 0x243   : > { %v3410_v37 = vpop.eup %3409  ;;  %v2401_v40 = vmul.f32 %v2273_v29, %v1377_v63  ;;  %v3198_v22 = vpack.c.bf16 %v2399_v4, %v2398_v44  ;;  %3421 = vtanh.f32 %v2025_v33  ;;  %v1644_v63 = vmul.f32 %v1516_v31, %v4373_v47 }
 0x244   : > { %v3412_v49 = vpop.eup %3411  ;;  %v2276_v41 = vadd.f32 1.0, %v3410_v37  ;;  %v2402_v27 = vmul.f32 %v2274_v35, %v1378_v17  ;;  %v1383_v23 = vmul.f32 0.5, %v4331_v53  ;;  %v1515_v57 = vmul.f32 0.044715, %v4406_v24 }
 0x245   : > { %v3199_v32 = vpack.c.bf16 %v2401_v40, %v2400_v8  ;;  %v2275_v51 = vadd.f32 1.0, %v3412_v49  ;;  %2910 = vst [vmem:[%s4397_s13] sm:$0xff] %v3198_v22  ;;  %v4412_v38 = vpop.f32.mrb[16].mxu0  ;;  %v4414_v13 = vpop.f32.mrb[16].mxu1  ;;  %v1517_v8 = vmul.f32 0.044715, %v4410_v50  ;;  %v4438_v29 = vadd.f32 %v4318_v42, %v4251_v55 }
 0x246   : > { %v3414_v14 = vpop.eup %3413  ;;  %v4423_v59 = vpop.f32.mrb[17].mxu0  ;;  %v2404_v45 = vmul.f32 %v2276_v41, %v4356_v30  ;;  %3423 = vtanh.f32 %v2026_v28  ;;  %v1518_v4 = vmul.f32 0.044715, %v4421_v43  ;;  %v1643_v40 = vmul.f32 %v1515_v57, %v4406_v24 }
 0x247   : > { %2911 = vst [vmem:[%s4397_s13 + $0x8] sm:$0xff] %v3199_v32  ;;  %v2403_v17 = vmul.f32 %v2275_v51, %v1379_v48  ;;  %v4425_v44 = vpop.f32.mrb[17].mxu1  ;;  %v2277_v9 = vadd.f32 1.0, %v3414_v14  ;;  %v1772_v48 = vmul.f32 %v1644_v63, %v4373_v47  ;;  %v4430_v60 = vpop.f32.mrb[18].mxu0  ;;  %v1645_v42 = vmul.f32 %v1517_v8, %v4410_v50 }
 0x248   : > { %v4432_v7 = vpop.f32.mrb[18].mxu1  ;;  %v4440_v30 = vpop.f32.mrb[19].mxu0  ;;  %v4451_v33 = vadd.f32 %v4325_v18, %v4253_v36  ;;  %v1646_v22 = vmul.f32 %v1518_v4, %v4421_v43  ;;  %v1385_v41 = vmul.f32 0.5, %v4340_v5  ;;  %v1771_v54 = vmul.f32 %v1643_v40, %v4406_v24 }
 0x249   : > { %v3200_v39 = vpack.c.bf16 %v2403_v17, %v2402_v27  ;;  %v3416_v20 = vpop.eup %3415  ;;  %v2405_v53 = vmul.f32 %v2277_v9, %v1381_v46  ;;  %v1900_v37 = vadd.f32 %v1772_v48, %v4373_v47  ;;  %v4444_v35 = vpop.f32.mrb[19].mxu1  ;;  %v1773_v32 = vmul.f32 %v1645_v42, %v4410_v50 }
 0x24a   : > { %v3418_v11 = vpop.eup %3417  ;;  %v2278_v21 = vadd.f32 1.0, %v3416_v20  ;;  %v1520_v27 = vmul.f32 0.044715, %v4438_v29  ;;  %v1774_v18 = vmul.f32 %v1646_v22, %v4421_v43  ;;  %v1899_v5 = vadd.f32 %v1771_v54, %v4406_v24 }
 0x24b   : > { %2912 = vst [vmem:[%s4397_s13 + $0x10] sm:$0xff] %v3200_v39  ;;  %v3201_v46 = vpack.c.bf16 %v2405_v53, %v2404_v45  ;;  %v2280_v31 = vadd.f32 1.0, %v3418_v11  ;;  %v2028_v49 = vmul.f32 0.7978846, %v1900_v37  ;;  %v3420_v51 = vpop.eup %3419  ;;  %v1901_v48 = vadd.f32 %v1773_v32, %v4410_v50 }
 0x24c   : > { %v2406_v28 = vmul.f32 %v2278_v21, %v1382_v1  ;;  %v2279_v9 = vadd.f32 1.0, %v3420_v51  ;;  %v1648_v39 = vmul.f32 %v1520_v27, %v4438_v29  ;;  %v1519_v20 = vmul.f32 0.044715, %v4451_v33 }
 0x24d   : > { %2913 = vst [vmem:[%s4397_s13 + $0x18] sm:$0xff] %v3201_v46  ;;  %v2408_v63 = vmul.f32 %v2280_v31, %v1384_v62  ;;  %3425 = vtanh.f32 %v2028_v49  ;;  %v4460_v14 = vpop.f32.mrb[20].mxu0  ;;  %v4462_v17 = vpop.f32.mrb[20].mxu1  ;;  %v1902_v62 = vadd.f32 %v1774_v18, %v4421_v43  ;;  %v4475_v53 = vadd.f32 %v4327_v58, %v4255_v0 }
 0x24e   : > { %v3422_v45 = vpop.eup %3421  ;;  %v4467_v57 = vpop.f32.mrb[21].mxu0  ;;  %v2407_v11 = vmul.f32 %v2279_v9, %v1383_v23  ;;  %v2027_v21 = vmul.f32 0.7978846, %v1899_v5  ;;  %v2029_v40 = vmul.f32 0.7978846, %v1901_v48  ;;  %v1776_v42 = vmul.f32 %v1648_v39, %v4438_v29 }
 0x24f   : > { %v4469_v8 = vpop.f32.mrb[21].mxu1  ;;  %v2281_v1 = vadd.f32 1.0, %v3422_v45  ;;  %v4477_v37 = vpop.f32.mrb[22].mxu0  ;;  %v1386_v22 = vmul.f32 0.5, %v4343_v19  ;;  %v2030_v54 = vmul.f32 0.7978846, %v1902_v62  ;;  %v1647_v58 = vmul.f32 %v1519_v20, %v4451_v33 }
 0x250   : > { %v4479_v4 = vpop.f32.mrb[22].mxu1  ;;  %v4482_v46 = vpop.f32.mrb[23].mxu0  ;;  %v3202_v32 = vpack.c.bf16 %v2407_v11, %v2406_v28  ;;  %v1388_v27 = vmul.f32 0.5, %v4373_v47  ;;  %3427 = vtanh.f32 %v2027_v21  ;;  %v1904_v23 = vadd.f32 %v1776_v42, %v4438_v29 }
 0x251   : > { %v4484_v31 = vpop.f32.mrb[23].mxu1  ;;  %v2409_v49 = vmul.f32 %v2281_v1, %v1385_v41  ;;  %v3424_v51 = vpop.eup %3423  ;;  %3429 = vtanh.f32 %v2029_v40  ;;  %v1775_v45 = vmul.f32 %v1647_v58, %v4451_v33  ;;  %v1521_v9 = vmul.f32 0.044715, %v4475_v53 }
 0x252   : > { %2914 = vst [vmem:[%s4397_s13 + $0x20] sm:$0xff] %v3202_v32  ;;  %v1387_v19 = vmul.f32 0.5, %v4406_v24  ;;  %3431 = vtanh.f32 %v2030_v54  ;;  %v2032_v41 = vmul.f32 0.7978846, %v1904_v23  ;;  %v4496_v28 = vadd.f32 %v4333_v6, %v4249_v26 }
 0x253   : > { %v3203_v18 = vpack.c.bf16 %v2409_v49, %v2408_v63  ;;  %v1903_v47 = vadd.f32 %v1775_v45, %v4451_v33  ;;  %v1649_v5 = vmul.f32 %v1521_v9, %v4475_v53  ;;  %v4503_v63 = vadd.f32 %v4335_v15, %v4251_v55 }
 0x254   : > { %v4507_v48 = vadd.f32 %v4345_v56, %v4253_v36  ;;  %v2282_v1 = vadd.f32 1.0, %v3424_v51  ;;  %3433 = vtanh.f32 %v2032_v41  ;;  %v1522_v6 = vmul.f32 0.044715, %v4496_v28 }
 0x255   : > { %2915 = vst [vmem:[%s4397_s13 + $0x28] sm:$0xff] %v3203_v18  ;;  %v4509_v24 = vpop.f32.mrb[24].mxu0  ;;  %v4511_v39 = vpop.f32.mrb[24].mxu1  ;;  %v4516_v62 = vadd.f32 %v4347_v2, %v4255_v0  ;;  %v1389_v56 = vmul.f32 0.5, %v4410_v50  ;;  %v2031_v21 = vmul.f32 0.7978846, %v1903_v47  ;;  %v1777_v40 = vmul.f32 %v1649_v5, %v4475_v53 }
 0x256   : > { %v4518_v20 = vpop.f32.mrb[25].mxu0  ;;  %v4520_v15 = vpop.f32.mrb[25].mxu1  ;;  %v1524_v42 = vmul.f32 0.044715, %v4503_v63  ;;  %v1390_v58 = vmul.f32 0.5, %v4421_v43  ;;  %v1650_v2 = vmul.f32 %v1522_v6, %v4496_v28  ;;  %v4535_v50 = vmul.f32 0.5, %v4438_v29 }
 0x257   : > { %v3426_v11 = vpop.eup %3425  ;;  %v4525_v49 = vpop.f32.mrb[26].mxu0  ;;  %v1523_v32 = vmul.f32 0.044715, %v4507_v48  ;;  %3435 = vtanh.f32 %v2031_v21  ;;  %v1905_v18 = vadd.f32 %v1777_v40, %v4475_v53  ;;  %v2410_v41 = vmul.f32 %v2282_v1, %v1386_v22 }
 0x258   : > { %5709 = vst [vmem:[#allocation2_spill] sm:$0xff] %v4525_v49  ;;  %v2284_v54 = vadd.f32 1.0, %v3426_v11  ;;  %v4530_v23 = vpop.f32.mrb[26].mxu1  ;;  %v4532_v51 = vpop.f32.mrb[27].mxu0  ;;  %v1652_v45 = vmul.f32 %v1524_v42, %v4503_v63  ;;  %v1778_v43 = vmul.f32 %v1650_v2, %v4496_v28  ;;  %v1525_v5 = vmul.f32 0.044715, %v4516_v62 }
 0x259   : > { %5710 = vst [vmem:[#allocation3_spill] sm:$0xff] %v4530_v23  ;;  %5711 = vst [vmem:[#allocation4_spill] sm:$0xff] %v4532_v51  ;;  %v4539_v9 = vpop.f32.mrb[27].mxu1  ;;  %v1651_v47 = vmul.f32 %v1523_v32, %v4507_v48  ;;  %v2033_v11 = vmul.f32 0.7978846, %v1905_v18  ;;  %v4547_v29 = vadd.f32 %v4366_v34, %v4249_v26  ;;  %v4554_v1 = vadd.f32 %v4368_v3, %v4251_v55 }
 0x25a   : > { %5712 = vst [vmem:[#allocation5_spill] sm:$0xff] %v4539_v9  ;;  %v2412_v6 = vmul.f32 %v2284_v54, %v1388_v27  ;;  %v1780_v51 = vmul.f32 %v1652_v45, %v4503_v63  ;;  %v3428_v21 = vpop.eup %3427  ;;  %v1906_v40 = vadd.f32 %v1778_v43, %v4496_v28  ;;  %v1653_v22 = vmul.f32 %v1525_v5, %v4516_v62 }
 0x25b   : > { %v1779_v42 = vmul.f32 %v1651_v47, %v4507_v48  ;;  %v3430_v2 = vpop.eup %3429  ;;  %v2283_v27 = vadd.f32 1.0, %v3428_v21  ;;  %3437 = vtanh.f32 %v2033_v11  ;;  %v4559_v34 = vadd.f32 %v4375_v12, %v4253_v36 }
 0x25c   : > { %v1908_v54 = vadd.f32 %v1780_v51, %v4503_v63  ;;  %v3432_v45 = vpop.eup %3431  ;;  %v2285_v43 = vadd.f32 1.0, %v3430_v2  ;;  %v2034_v47 = vmul.f32 0.7978846, %v1906_v40  ;;  %v1781_v3 = vmul.f32 %v1653_v22, %v4516_v62 }
 0x25d   : > { %v4561_v32 = vpop.f32.mrb[28].mxu0  ;;  %v4563_v18 = vpop.f32.mrb[28].mxu1  ;;  %v1907_v5 = vadd.f32 %v1779_v42, %v4507_v48  ;;  %v2411_v51 = vmul.f32 %v2283_v27, %v1387_v19  ;;  %v2286_v21 = vadd.f32 1.0, %v3432_v45  ;;  %v1526_v12 = vmul.f32 0.044715, %v4547_v29 }
 0x25e   : > { %5713 = vst [vmem:[#allocation6_spill] sm:$0xff] %v4561_v32  ;;  %5714 = vst [vmem:[#allocation7_spill] sm:$0xff] %v4563_v18  ;;  %v4567_v9 = vpop.f32.mrb[29].mxu0  ;;  %v4569_v11 = vpop.f32.mrb[29].mxu1  ;;  %v2036_v23 = vmul.f32 0.7978846, %v1908_v54  ;;  %v2413_v18 = vmul.f32 %v2285_v43, %v1389_v56  ;;  %3439 = vtanh.f32 %v2034_v47  ;;  %v1909_v42 = vadd.f32 %v1781_v3, %v4516_v62 }
 0x25f   : > { %5715 = vst [vmem:[#allocation8_spill] sm:$0xff] %v4569_v11  ;;  %v4572_v49 = vpop.f32.mrb[30].mxu0  ;;  %v3434_v32 = vpop.eup %3433  ;;  %v2035_v40 = vmul.f32 0.7978846, %v1907_v5  ;;  %v3204_v11 = vpack.c.bf16 %v2411_v51, %v2410_v41  ;;  %v1391_v19 = vmul.f32 0.5, %v4451_v33  ;;  %v1393_v27 = vmul.f32 0.5, %v4475_v53 }
 0x260   : > { %v4575_v2 = vpop.f32.mrb[30].mxu1  ;;  %v4577_v22 = vpop.f32.mrb[31].mxu0  ;;  %3441 = vtanh.f32 %v2036_v23  ;;  %v3205_v45 = vpack.c.bf16 %v2413_v18, %v2412_v6  ;;  %v2037_v56 = vmul.f32 0.7978846, %v1909_v42  ;;  %v1654_v43 = vmul.f32 %v1526_v12, %v4547_v29 }
 0x261   : > { %5716 = vst [vmem:[#allocation9_spill] sm:$0xff] %v4577_v22  ;;  %v4581_v54 = vpop.f32.mrb[31].mxu1  ;;  %3443 = vtanh.f32 %v2035_v40  ;;  %v3436_v47 = vpop.eup %3435  ;;  %2916 = vst [vmem:[%s4397_s13 + $0x30] sm:$0xff] %v3204_v11  ;;  %v2414_v5 = vmul.f32 %v2286_v21, %v1390_v58  ;;  %v2288_v3 = vadd.f32 1.0, %v3434_v32  ;;  %v1394_v22 = vmul.f32 0.5, %v4496_v28 }
 0x262   : > { %v1528_v41 = vmul.f32 0.044715, %v4554_v1  ;;  %2917 = vst [vmem:[%s4397_s13 + $0x38] sm:$0xff] %v3205_v45  ;;  %v2287_v33 = vadd.f32 1.0, %v3436_v47  ;;  %3445 = vtanh.f32 %v2037_v56  ;;  %v1782_v53 = vmul.f32 %v1654_v43, %v4547_v29 }
 0x263   : > { %v1527_v23 = vmul.f32 0.044715, %v4559_v34  ;;  %v1396_v6 = vmul.f32 0.5, %v4503_v63  ;;  %v4594_v11 = vadd.f32 %v4377_v25, %v4255_v0  ;;  %v4598_v28 = vadd.f32 %v4382_v52, %v4249_v26 }
 0x264   : > { %v1656_v18 = vmul.f32 %v1528_v41, %v4554_v1  ;;  %v2415_v51 = vmul.f32 %v2287_v33, %v1391_v19  ;;  %v1910_v21 = vadd.f32 %v1782_v53, %v4547_v29  ;;  %v4608_v63 = vadd.f32 %v4384_v16, %v4251_v55 }
 0x265   : > { %v4600_v58 = vpop.f32.mrb[32].mxu0  ;;  %v4602_v32 = vpop.f32.mrb[32].mxu1  ;;  %v1655_v12 = vmul.f32 %v1527_v23, %v4559_v34  ;;  %v2416_v52 = vmul.f32 %v2288_v3, %v4535_v50  ;;  %v1395_v45 = vmul.f32 0.5, %v4507_v48  ;;  %v1529_v56 = vmul.f32 0.044715, %v4594_v11 }
 0x266   : > { %v4610_v40 = vpop.f32.mrb[33].mxu0  ;;  %v4612_v25 = vpop.f32.mrb[33].mxu1  ;;  %v1784_v19 = vmul.f32 %v1656_v18, %v4554_v1  ;;  %v3206_v16 = vpack.c.bf16 %v2415_v51, %v2414_v5  ;;  %v2038_v33 = vmul.f32 0.7978846, %v1910_v21  ;;  %v1530_v3 = vmul.f32 0.044715, %v4598_v28 }
 0x267   : > { %5717 = vst [vmem:[#allocation10_spill] sm:$0xff] %v4610_v40  ;;  %5718 = vst [vmem:[#allocation11_spill] sm:$0xff] %v4612_v25  ;;  %v3438_v42 = vpop.eup %3437  ;;  %v4618_v43 = vpop.f32.mrb[34].mxu0  ;;  %v1783_v53 = vmul.f32 %v1655_v12, %v4559_v34  ;;  %v1657_v50 = vmul.f32 %v1529_v56, %v4594_v11  ;;  %v4632_v18 = vadd.f32 %v4388_v61, %v4253_v36  ;;  %v1532_v21 = vmul.f32 0.044715, %v4608_v63 }
 0x268   : > { %5719 = vst [vmem:[#allocation12_spill] sm:$0xff] %v4618_v43  ;;  %v4620_v47 = vpop.f32.mrb[34].mxu1  ;;  %v2289_v41 = vadd.f32 1.0, %v3438_v42  ;;  %v4623_v23 = vpop.f32.mrb[35].mxu0  ;;  %v1912_v48 = vadd.f32 %v1784_v19, %v4554_v1  ;;  %2918 = vst [vmem:[%s4397_s13 + $0x40] sm:$0xff] %v3206_v16  ;;  %3447 = vtanh.f32 %v2038_v33 }
 0x269   : > { %5720 = vst [vmem:[#allocation13_spill] sm:$0xff] %v4620_v47  ;;  %5721 = vst [vmem:[#allocation14_spill] sm:$0xff] %v4623_v23  ;;  %v4625_v25 = vpop.f32.mrb[35].mxu1  ;;  %v3440_v47 = vpop.eup %3439  ;;  %v1911_v51 = vadd.f32 %v1783_v53, %v4559_v34  ;;  %v1785_v56 = vmul.f32 %v1657_v50, %v4594_v11  ;;  %v1660_v16 = vmul.f32 %v1532_v21, %v4608_v63  ;;  %v1397_v50 = vmul.f32 0.5, %v4516_v62 }
 0x26a   : > { %5722 = vst [vmem:[#allocation15_spill] sm:$0xff] %v4625_v25  ;;  %v2417_v5 = vmul.f32 %v2289_v41, %v1393_v27  ;;  %v3442_v12 = vpop.eup %3441  ;;  %v2290_v42 = vadd.f32 1.0, %v3440_v47  ;;  %v2040_v19 = vmul.f32 0.7978846, %v1912_v48  ;;  %v1658_v25 = vmul.f32 %v1530_v3, %v4598_v28 }
 0x26b   : > { %v3444_v23 = vpop.eup %3443  ;;  %v2292_v61 = vadd.f32 1.0, %v3442_v12  ;;  %v2039_v40 = vmul.f32 0.7978846, %v1911_v51  ;;  %v1913_v33 = vadd.f32 %v1785_v56, %v4594_v11  ;;  %v1788_v3 = vmul.f32 %v1660_v16, %v4608_v63 }
 0x26c   : > { %v3207_v43 = vpack.c.bf16 %v2417_v5, %v2416_v52  ;;  %v2418_v27 = vmul.f32 %v2290_v42, %v1394_v22  ;;  %v2291_v41 = vadd.f32 1.0, %v3444_v23  ;;  %3449 = vtanh.f32 %v2040_v19  ;;  %v3446_v48 = vpop.eup %3445 }
 0x26d   : > { %v4641_v53 = vpop.f32.mrb[36].mxu0  ;;  %v4643_v47 = vpop.f32.mrb[36].mxu1  ;;  %3451 = vtanh.f32 %v2039_v40  ;;  %v1786_v52 = vmul.f32 %v1658_v25, %v4598_v28  ;;  %v2420_v23 = vmul.f32 %v2292_v61, %v1396_v6  ;;  %v2293_v21 = vadd.f32 1.0, %v3446_v48 }
 0x26e   : > { %2919 = vst [vmem:[%s4397_s13 + $0x48] sm:$0xff] %v3207_v43  ;;  %v4649_v5 = vpop.f32.mrb[37].mxu0  ;;  %v4651_v22 = vpop.f32.mrb[37].mxu1  ;;  %v2419_v51 = vmul.f32 %v2291_v41, %v1395_v45  ;;  %v2041_v12 = vmul.f32 0.7978846, %v1913_v33  ;;  %v1916_v40 = vadd.f32 %v1788_v3, %v4608_v63  ;;  %v4662_v43 = vadd.f32 %v4390_v10, %v4255_v0 }
 0x26f   : > { %v4653_v42 = vpop.f32.mrb[38].mxu0  ;;  %v4655_v19 = vpop.f32.mrb[38].mxu1  ;;  %v1914_v62 = vadd.f32 %v1786_v52, %v4598_v28  ;;  %v1531_v25 = vmul.f32 0.044715, %v4632_v18  ;;  %v2421_v61 = vmul.f32 %v2293_v21, %v1397_v50  ;;  %v4670_v16 = vadd.f32 %v4412_v38, %v4249_v26 }
 0x270   : > { %v4664_v56 = vpop.f32.mrb[39].mxu0  ;;  %v4666_v6 = vpop.f32.mrb[39].mxu1  ;;  %v3208_v45 = vpack.c.bf16 %v2419_v51, %v2418_v27  ;;  %3453 = vtanh.f32 %v2041_v12  ;;  %v1398_v41 = vmul.f32 0.5, %v4547_v29  ;;  %v2044_v48 = vmul.f32 0.7978846, %v1916_v40 }
 0x271   : > { %5723 = vst [vmem:[#allocation16_spill] sm:$0xff] %v4664_v56  ;;  %5724 = vst [vmem:[#allocation17_spill] sm:$0xff] %v4666_v6  ;;  %v2042_v33 = vmul.f32 0.7978846, %v1914_v62  ;;  %v1659_v52 = vmul.f32 %v1531_v25, %v4632_v18  ;;  %v3209_v10 = vpack.c.bf16 %v2421_v61, %v2420_v23  ;;  %v1400_v3 = vmul.f32 0.5, %v4554_v1 }
 0x272   : > { %2920 = vst [vmem:[%s4397_s13 + $0x50] sm:$0xff] %v3208_v45  ;;  %v1533_v6 = vmul.f32 0.044715, %v4662_v43  ;;  %v1534_v27 = vmul.f32 0.044715, %v4670_v16  ;;  %v3448_v50 = vpop.eup %3447  ;;  %v1256_v38 = vadd.f32 %v4414_v13, %v4251_v55  ;;  %v4683_v29 = vadd.f32 %v4423_v59, %v4253_v36 }
 0x273   : > { %3455 = vtanh.f32 %v2042_v33  ;;  %v1787_v51 = vmul.f32 %v1659_v52, %v4632_v18  ;;  %2921 = vst [vmem:[%s4397_s13 + $0x58] sm:$0xff] %v3209_v10  ;;  %v2294_v21 = vadd.f32 1.0, %v3448_v50  ;;  %v1399_v23 = vmul.f32 0.5, %v4559_v34 }
 0x274   : > { %v1661_v1 = vmul.f32 %v1533_v6, %v4662_v43  ;;  %v1662_v12 = vmul.f32 %v1534_v27, %v4670_v16  ;;  %v1401_v62 = vmul.f32 0.5, %v4594_v11  ;;  %3457 = vtanh.f32 %v2044_v48 }
 0x275   : > { %v1915_v40 = vadd.f32 %v1787_v51, %v4632_v18  ;;  %v1536_v25 = vmul.f32 0.044715, %v1256_v38  ;;  %v2422_v13 = vmul.f32 %v2294_v21, %v1398_v41  ;;  %v1535_v33 = vmul.f32 0.044715, %v4683_v29 }
 0x276   : > { %v3450_v45 = vpop.eup %3449  ;;  %v1789_v61 = vmul.f32 %v1661_v1, %v4662_v43  ;;  %v1790_v59 = vmul.f32 %v1662_v12, %v4670_v16  ;;  %v4696_v27 = vadd.f32 %v4425_v44, %v4255_v0  ;;  %v1402_v21 = vmul.f32 0.5, %v4598_v28 }
 0x277   : > { %v3452_v52 = vpop.eup %3451  ;;  %v2296_v34 = vadd.f32 1.0, %v3450_v45  ;;  %v2043_v10 = vmul.f32 0.7978846, %v1915_v40  ;;  %v1664_v6 = vmul.f32 %v1536_v25, %v1256_v38  ;;  %v1663_v41 = vmul.f32 %v1535_v33, %v4683_v29 }
 0x278   : > { %v2295_v11 = vadd.f32 1.0, %v3452_v52  ;;  %v1917_v48 = vadd.f32 %v1789_v61, %v4662_v43  ;;  %v1918_v50 = vadd.f32 %v1790_v59, %v4670_v16  ;;  %v1537_v61 = vmul.f32 0.044715, %v4696_v27 }
 0x279   : > { %v2424_v51 = vmul.f32 %v2296_v34, %v1400_v3  ;;  %3459 = vtanh.f32 %v2043_v10  ;;  %v1792_v1 = vmul.f32 %v1664_v6, %v1256_v38  ;;  %v1791_v44 = vmul.f32 %v1663_v41, %v4683_v29 }
 0x27a   : > { %v3454_v12 = vpop.eup %3453  ;;  %v2423_v45 = vmul.f32 %v2295_v11, %v1399_v23  ;;  %v2045_v40 = vmul.f32 0.7978846, %v1917_v48  ;;  %v2046_v25 = vmul.f32 0.7978846, %v1918_v50  ;;  %v4706_v59 = vadd.f32 %v4430_v60, %v4249_v26 }
 0x27b   : > { %v2297_v56 = vadd.f32 1.0, %v3454_v12  ;;  %v1920_v52 = vadd.f32 %v1792_v1, %v1256_v38  ;;  %v1919_v28 = vadd.f32 %v1791_v44, %v4683_v29  ;;  %v4711_v23 = vadd.f32 %v4432_v7, %v4251_v55 }
 0x27c   : > { %v3210_v3 = vpack.c.bf16 %v2423_v45, %v2422_v13  ;;  %3461 = vtanh.f32 %v2045_v40  ;;  %v1665_v6 = vmul.f32 %v1537_v61, %v4696_v27  ;;  %v1404_v11 = vmul.f32 0.5, %v4608_v63 }
 0x27d   : > { %v3456_v33 = vpop.eup %3455  ;;  %v2425_v34 = vmul.f32 %v2297_v56, %v1401_v62  ;;  %3463 = vtanh.f32 %v2046_v25  ;;  %v2048_v10 = vmul.f32 0.7978846, %v1920_v52  ;;  %v1403_v60 = vmul.f32 0.5, %v4632_v18 }
 0x27e   : > { %2922 = vst [vmem:[%s4397_s13 + $0x60] sm:$0xff] %v3210_v3  ;;  %v2047_v13 = vmul.f32 0.7978846, %v1919_v28  ;;  %v1538_v48 = vmul.f32 0.044715, %v4706_v59  ;;  %v3458_v50 = vpop.eup %3457  ;;  %v1405_v7 = vmul.f32 0.5, %v4662_v43  ;;  %v1793_v56 = vmul.f32 %v1665_v6, %v4696_v27 }
 0x27f   : > { %v3211_v41 = vpack.c.bf16 %v2425_v34, %v2424_v51  ;;  %3465 = vtanh.f32 %v2048_v10  ;;  %v2298_v62 = vadd.f32 1.0, %v3456_v33  ;;  %v1406_v1 = vmul.f32 0.5, %v4670_v16 }
 0x280   : > { %3467 = vtanh.f32 %v2047_v13  ;;  %v1666_v12 = vmul.f32 %v1538_v48, %v4706_v59  ;;  %v4723_v63 = vmul.f32 0.5, %v1256_v38  ;;  %v1921_v18 = vadd.f32 %v1793_v56, %v4696_v27 }
 0x281   : > { %2923 = vst [vmem:[%s4397_s13 + $0x68] sm:$0xff] %v3211_v41  ;;  %v1540_v45 = vmul.f32 0.044715, %v4711_v23  ;;  %v4729_v51 = vadd.f32 %v4440_v30, %v4253_v36  ;;  %v1407_v43 = vmul.f32 0.5, %v4683_v29  ;;  %v4735_v16 = vadd.f32 %v4444_v35, %v4255_v0 }
 0x282   : > { %v1794_v40 = vmul.f32 %v1666_v12, %v4706_v59  ;;  %v4739_v38 = vadd.f32 %v4460_v14, %v4249_v26  ;;  %v2300_v44 = vadd.f32 1.0, %v3458_v50  ;;  %v2049_v52 = vmul.f32 0.7978846, %v1921_v18 }
 0x283   : > { %v3460_v25 = vpop.eup %3459  ;;  %v1668_v61 = vmul.f32 %v1540_v45, %v4711_v23  ;;  %v1539_v30 = vmul.f32 0.044715, %v4729_v51  ;;  %v2426_v3 = vmul.f32 %v2298_v62, %v1402_v21  ;;  %v1541_v33 = vmul.f32 0.044715, %v4735_v16 }
 0x284   : > { %v2299_v28 = vadd.f32 1.0, %v3460_v25  ;;  %v1922_v29 = vadd.f32 %v1794_v40, %v4706_v59  ;;  %3469 = vtanh.f32 %v2049_v52  ;;  %v4749_v14 = vadd.f32 %v4462_v17, %v4251_v55 }
 0x285   : > { %v1796_v35 = vmul.f32 %v1668_v61, %v4711_v23  ;;  %v1667_v34 = vmul.f32 %v1539_v30, %v4729_v51  ;;  %v1669_v48 = vmul.f32 %v1541_v33, %v4735_v16  ;;  %v1542_v21 = vmul.f32 0.044715, %v4739_v38 }
 0x286   : > { %v3462_v10 = vpop.eup %3461  ;;  %v2427_v6 = vmul.f32 %v2299_v28, %v1403_v60  ;;  %v2050_v13 = vmul.f32 0.7978846, %v1922_v29  ;;  %v2428_v41 = vmul.f32 %v2300_v44, %v1404_v11 }
 0x287   : > { %v3464_v50 = vpop.eup %3463  ;;  %v2301_v56 = vadd.f32 1.0, %v3462_v10  ;;  %v1924_v62 = vadd.f32 %v1796_v35, %v4711_v23  ;;  %v1795_v12 = vmul.f32 %v1667_v34, %v4729_v51  ;;  %v1797_v17 = vmul.f32 %v1669_v48, %v4735_v16 }
 0x288   : > { %v3212_v18 = vpack.c.bf16 %v2427_v6, %v2426_v3  ;;  %v2302_v45 = vadd.f32 1.0, %v3464_v50  ;;  %3471 = vtanh.f32 %v2050_v13  ;;  %v1670_v61 = vmul.f32 %v1542_v21, %v4739_v38 }
 0x289   : > { %v3466_v40 = vpop.eup %3465  ;;  %v2429_v60 = vmul.f32 %v2301_v56, %v1405_v7  ;;  %v2052_v25 = vmul.f32 0.7978846, %v1924_v62  ;;  %v1923_v52 = vadd.f32 %v1795_v12, %v4729_v51  ;;  %v1925_v28 = vadd.f32 %v1797_v17, %v4735_v16 }
 0x28a   : > { %v3468_v30 = vpop.eup %3467  ;;  %2924 = vst [vmem:[%s4397_s13 + $0x70] sm:$0xff] %v3212_v18  ;;  %v2430_v11 = vmul.f32 %v2302_v45, %v1406_v1  ;;  %v2304_v44 = vadd.f32 1.0, %v3466_v40  ;;  %v1544_v3 = vmul.f32 0.044715, %v4749_v14  ;;  %v1409_v7 = vmul.f32 0.5, %v4696_v27 }
 0x28b   : > { %v3213_v29 = vpack.c.bf16 %v2429_v60, %v2428_v41  ;;  %v2303_v33 = vadd.f32 1.0, %v3468_v30  ;;  %3473 = vtanh.f32 %v2052_v25  ;;  %v2051_v35 = vmul.f32 0.7978846, %v1923_v52 }
 0x28c   : > { %v2053_v34 = vmul.f32 0.7978846, %v1925_v28  ;;  %v1798_v10 = vmul.f32 %v1670_v61, %v4739_v38  ;;  %v1672_v6 = vmul.f32 %v1544_v3, %v4749_v14  ;;  %v4767_v1 = vadd.f32 %v4467_v57, %v4253_v36 }
 0x28d   : > { %2925 = vst [vmem:[%s4397_s13 + $0x78] sm:$0xff] %v3213_v29  ;;  %v2431_v13 = vmul.f32 %v2303_v33, %v1407_v43  ;;  %3475 = vtanh.f32 %v2051_v35  ;;  %v4771_v48 = vadd.f32 %v4469_v8, %v4255_v0  ;;  %v4777_v50 = vadd.f32 %v4477_v37, %v4249_v26 }
 0x28e   : > { %3477 = vtanh.f32 %v2053_v34  ;;  %v1926_v27 = vadd.f32 %v1798_v10, %v4739_v38  ;;  %v1800_v21 = vmul.f32 %v1672_v6, %v4749_v14  ;;  %v3470_v43 = vpop.eup %3469  ;;  %v2432_v41 = vmul.f32 %v2304_v44, %v4723_v63 }
 0x28f   : > { %v3214_v56 = vpack.c.bf16 %v2431_v13, %v2430_v11  ;;  %v1410_v57 = vmul.f32 0.5, %v4706_v59  ;;  %v1543_v62 = vmul.f32 0.044715, %v4767_v1  ;;  %v2305_v12 = vadd.f32 1.0, %v3470_v43 }
 0x290   : > { %v2054_v8 = vmul.f32 0.7978846, %v1926_v27  ;;  %v1928_v18 = vadd.f32 %v1800_v21, %v4749_v14  ;;  %v1545_v45 = vmul.f32 0.044715, %v4771_v48  ;;  %v1412_v17 = vmul.f32 0.5, %v4711_v23 }
 0x291   : > { %2926 = vst [vmem:[%s4397_s13 + $0x80] sm:$0xff] %v3214_v56  ;;  %v1671_v37 = vmul.f32 %v1543_v62, %v4767_v1  ;;  %v1546_v40 = vmul.f32 0.044715, %v4777_v50  ;;  %v4790_v63 = vadd.f32 %v4479_v4, %v4251_v55  ;;  %v2433_v60 = vmul.f32 %v2305_v12, %v1409_v7 }
 0x292   : > { %v3472_v59 = vpop.eup %3471  ;;  %3479 = vtanh.f32 %v2054_v8  ;;  %v2056_v25 = vmul.f32 0.7978846, %v1928_v18  ;;  %v1673_v52 = vmul.f32 %v1545_v45, %v4771_v48  ;;  %v1411_v30 = vmul.f32 0.5, %v4729_v51 }
 0x293   : > { %v2306_v61 = vadd.f32 1.0, %v3472_v59  ;;  %v1799_v23 = vmul.f32 %v1671_v37, %v4767_v1  ;;  %v1674_v11 = vmul.f32 %v1546_v40, %v4777_v50  ;;  %v3215_v44 = vpack.c.bf16 %v2433_v60, %v2432_v41 }
 0x294   : > { %3481 = vtanh.f32 %v2056_v25  ;;  %v1801_v28 = vmul.f32 %v1673_v52, %v4771_v48  ;;  %v1548_v4 = vmul.f32 0.044715, %v4790_v63  ;;  %v1413_v29 = vmul.f32 0.5, %v4735_v16 }
 0x295   : > { %v3474_v3 = vpop.eup %3473  ;;  %v1927_v33 = vadd.f32 %v1799_v23, %v4767_v1  ;;  %v1802_v35 = vmul.f32 %v1674_v11, %v4777_v50  ;;  %v4803_v51 = vadd.f32 %v4482_v46, %v4253_v36  ;;  %2927 = vst [vmem:[%s4397_s13 + $0x88] sm:$0xff] %v3215_v44  ;;  %v2434_v7 = vmul.f32 %v2306_v61, %v1410_v57 }
 0x296   : > { %v2308_v34 = vadd.f32 1.0, %v3474_v3  ;;  %v1929_v10 = vadd.f32 %v1801_v28, %v4771_v48  ;;  %v1676_v6 = vmul.f32 %v1548_v4, %v4790_v63  ;;  %v4812_v43 = vadd.f32 %v4484_v31, %v4255_v0 }
 0x297   : > { %v3476_v13 = vpop.eup %3475  ;;  %v2055_v27 = vmul.f32 0.7978846, %v1927_v33  ;;  %v1930_v21 = vadd.f32 %v1802_v35, %v4777_v50  ;;  %v1547_v16 = vmul.f32 0.044715, %v4803_v51  ;;  %v1414_v37 = vmul.f32 0.5, %v4739_v38 }
 0x298   : > { %v3478_v41 = vpop.eup %3477  ;;  %v2436_v46 = vmul.f32 %v2308_v34, %v1412_v17  ;;  %v2307_v56 = vadd.f32 1.0, %v3476_v13  ;;  %v2057_v62 = vmul.f32 0.7978846, %v1929_v10  ;;  %v1804_v57 = vmul.f32 %v1676_v6, %v4790_v63  ;;  %v5725_v6 = vld [vmem:[#allocation2_spill] sm:$0xff] }
 0x299   : > { %v2309_v12 = vadd.f32 1.0, %v3478_v41  ;;  %3483 = vtanh.f32 %v2055_v27  ;;  %v2058_v8 = vmul.f32 0.7978846, %v1930_v21  ;;  %v1675_v18 = vmul.f32 %v1547_v16, %v4803_v51 }
 0x29a   : > { %v2435_v45 = vmul.f32 %v2307_v56, %v1411_v30  ;;  %3485 = vtanh.f32 %v2057_v62  ;;  %v1932_v40 = vadd.f32 %v1804_v57, %v4790_v63  ;;  %v1549_v59 = vmul.f32 0.044715, %v4812_v43 }
 0x29b   : > { %v2437_v31 = vmul.f32 %v2309_v12, %v1413_v29  ;;  %3487 = vtanh.f32 %v2058_v8  ;;  %v1803_v17 = vmul.f32 %v1675_v18, %v4803_v51  ;;  %v4822_v61 = vadd.f32 %v4509_v24, %v4249_v26 }
 0x29c   : > { %v3480_v60 = vpop.eup %3479  ;;  %v3216_v25 = vpack.c.bf16 %v2435_v45, %v2434_v7  ;;  %v2060_v52 = vmul.f32 0.7978846, %v1932_v40  ;;  %v4826_v38 = vadd.f32 %v4511_v39, %v4251_v55  ;;  %v1416_v23 = vmul.f32 0.5, %v4749_v14 }
 0x29d   : > { %v3217_v30 = vpack.c.bf16 %v2437_v31, %v2436_v46  ;;  %v1931_v11 = vadd.f32 %v1803_v17, %v4803_v51  ;;  %v1677_v44 = vmul.f32 %v1549_v59, %v4812_v43  ;;  %v1415_v4 = vmul.f32 0.5, %v4767_v1 }
 0x29e   : > { %v3482_v28 = vpop.eup %3481  ;;  %2928 = vst [vmem:[%s4397_s13 + $0x90] sm:$0xff] %v3216_v25  ;;  %v1417_v3 = vmul.f32 0.5, %v4771_v48  ;;  %3489 = vtanh.f32 %v2060_v52  ;;  %v1550_v24 = vmul.f32 0.044715, %v4822_v61  ;;  %v2310_v29 = vadd.f32 1.0, %v3480_v60 }
 0x29f   : > { %2929 = vst [vmem:[%s4397_s13 + $0x98] sm:$0xff] %v3217_v30  ;;  %v2312_v39 = vadd.f32 1.0, %v3482_v28  ;;  %v2059_v33 = vmul.f32 0.7978846, %v1931_v11  ;;  %v1805_v35 = vmul.f32 %v1677_v44, %v4812_v43  ;;  %v1552_v7 = vmul.f32 0.044715, %v4826_v38 }
 0x2a0   : > { %v1678_v14 = vmul.f32 %v1550_v24, %v4822_v61  ;;  %v4841_v34 = vadd.f32 %v4518_v20, %v4253_v36  ;;  %v4845_v1 = vadd.f32 %v4520_v15, %v4255_v0  ;;  %v1418_v48 = vmul.f32 0.5, %v4777_v50 }
 0x2a1   : > { %3491 = vtanh.f32 %v2059_v33  ;;  %v1933_v10 = vadd.f32 %v1805_v35, %v4812_v43  ;;  %v4851_v13 = vadd.f32 %v5725_v6, %v4249_v26  ;;  %v1420_v27 = vmul.f32 0.5, %v4790_v63  ;;  %v5726_v33 = vld [vmem:[#allocation3_spill] sm:$0xff] }
 0x2a2   : > { %v1806_v21 = vmul.f32 %v1678_v14, %v4822_v61  ;;  %v1680_v20 = vmul.f32 %v1552_v7, %v4826_v38  ;;  %v1551_v16 = vmul.f32 0.044715, %v4841_v34  ;;  %v2438_v15 = vmul.f32 %v2310_v29, %v1414_v37  ;;  %v5727_v14 = vld [vmem:[#allocation4_spill] sm:$0xff] }
 0x2a3   : > { %v3484_v41 = vpop.eup %3483  ;;  %v2440_v46 = vmul.f32 %v2312_v39, %v1416_v23  ;;  %v2061_v56 = vmul.f32 0.7978846, %v1933_v10  ;;  %v1553_v50 = vmul.f32 0.044715, %v4845_v1  ;;  %v1554_v31 = vmul.f32 0.044715, %v4851_v13 }
 0x2a4   : > { %v3486_v62 = vpop.eup %3485  ;;  %v2311_v57 = vadd.f32 1.0, %v3484_v41  ;;  %v1934_v12 = vadd.f32 %v1806_v21, %v4822_v61  ;;  %v1808_v8 = vmul.f32 %v1680_v20, %v4826_v38  ;;  %v1679_v63 = vmul.f32 %v1551_v16, %v4841_v34  ;;  %v5728_v16 = vld [vmem:[#allocation5_spill] sm:$0xff] }
 0x2a5   : > { %v3488_v18 = vpop.eup %3487  ;;  %v2313_v45 = vadd.f32 1.0, %v3486_v62  ;;  %3493 = vtanh.f32 %v2061_v56  ;;  %v1681_v40 = vmul.f32 %v1553_v50, %v4845_v1  ;;  %v1419_v17 = vmul.f32 0.5, %v4803_v51 }
 0x2a6   : > { %v2439_v37 = vmul.f32 %v2311_v57, %v1415_v4  ;;  %v2062_v59 = vmul.f32 0.7978846, %v1934_v12  ;;  %v1936_v60 = vadd.f32 %v1808_v8, %v4826_v38  ;;  %v1807_v52 = vmul.f32 %v1679_v63, %v4841_v34 }
 0x2a7   : > { %v2441_v25 = vmul.f32 %v2313_v45, %v1417_v3  ;;  %v1809_v30 = vmul.f32 %v1681_v40, %v4845_v1  ;;  %v1682_v23 = vmul.f32 %v1554_v31, %v4851_v13  ;;  %v2314_v28 = vadd.f32 1.0, %v3488_v18  ;;  %v5729_v40 = vld [vmem:[#allocation6_spill] sm:$0xff] }
 0x2a8   : > { %v3490_v11 = vpop.eup %3489  ;;  %v3218_v44 = vpack.c.bf16 %v2439_v37, %v2438_v15  ;;  %3495 = vtanh.f32 %v2062_v59  ;;  %v2064_v24 = vmul.f32 0.7978846, %v1936_v60  ;;  %v1935_v51 = vadd.f32 %v1807_v52, %v4841_v34 }
 0x2a9   : > { %v3219_v4 = vpack.c.bf16 %v2441_v25, %v2440_v46  ;;  %v2316_v29 = vadd.f32 1.0, %v3490_v11  ;;  %v1937_v39 = vadd.f32 %v1809_v30, %v4845_v1  ;;  %v1810_v3 = vmul.f32 %v1682_v23, %v4851_v13 }
 0x2aa   : > { %2930 = vst [vmem:[%s4397_s13 + $0xa0] sm:$0xff] %v3218_v44  ;;  %3497 = vtanh.f32 %v2064_v24  ;;  %v4874_v35 = vadd.f32 %v5726_v33, %v4251_v55  ;;  %v4878_v7 = vadd.f32 %v5727_v14, %v4253_v36  ;;  %v1421_v6 = vmul.f32 0.5, %v4812_v43 }
 0x2ab   : > { %v3492_v10 = vpop.eup %3491  ;;  %2931 = vst [vmem:[%s4397_s13 + $0xa8] sm:$0xff] %v3219_v4  ;;  %v2063_v21 = vmul.f32 0.7978846, %v1935_v51  ;;  %v2065_v20 = vmul.f32 0.7978846, %v1937_v39  ;;  %v4884_v41 = vadd.f32 %v5728_v16, %v4255_v0  ;;  %v2442_v15 = vmul.f32 %v2314_v28, %v1418_v48 }
 0x2ac   : > { %v2315_v46 = vadd.f32 1.0, %v3492_v10  ;;  %v1938_v56 = vadd.f32 %v1810_v3, %v4851_v13  ;;  %v1556_v50 = vmul.f32 0.044715, %v4874_v35  ;;  %v2444_v62 = vmul.f32 %v2316_v29, %v1420_v27 }
 0x2ad   : > { %v1422_v57 = vmul.f32 0.5, %v4822_v61  ;;  %3499 = vtanh.f32 %v2063_v21  ;;  %v1555_v12 = vmul.f32 0.044715, %v4878_v7  ;;  %v1557_v45 = vmul.f32 0.044715, %v4884_v41  ;;  %v5730_v61 = vld [vmem:[#allocation7_spill] sm:$0xff] }
 0x2ae   : > { %v2443_v8 = vmul.f32 %v2315_v46, %v1419_v17  ;;  %3501 = vtanh.f32 %v2065_v20  ;;  %v2066_v43 = vmul.f32 0.7978846, %v1938_v56  ;;  %v1684_v63 = vmul.f32 %v1556_v50, %v4874_v35 }
 0x2af   : > { %v3494_v18 = vpop.eup %3493  ;;  %v1683_v48 = vmul.f32 %v1555_v12, %v4878_v7  ;;  %v4895_v31 = vadd.f32 %v5729_v40, %v4249_v26  ;;  %v4899_v27 = vadd.f32 %v5730_v61, %v4251_v55  ;;  %v1424_v60 = vmul.f32 0.5, %v4826_v38 }
 0x2b0   : > { %v3220_v37 = vpack.c.bf16 %v2443_v8, %v2442_v15  ;;  %v2317_v17 = vadd.f32 1.0, %v3494_v18  ;;  %3503 = vtanh.f32 %v2066_v43  ;;  %v1812_v59 = vmul.f32 %v1684_v63, %v4874_v35  ;;  %v5731_v63 = vld [vmem:[#allocation8_spill] sm:$0xff] }
 0x2b1   : > { %v1811_v25 = vmul.f32 %v1683_v48, %v4878_v7  ;;  %v1685_v52 = vmul.f32 %v1557_v45, %v4884_v41  ;;  %v1558_v30 = vmul.f32 0.044715, %v4895_v31  ;;  %v1423_v44 = vmul.f32 0.5, %v4841_v34 }
 0x2b2   : > { %v3496_v23 = vpop.eup %3495  ;;  %2932 = vst [vmem:[%s4397_s13 + $0xb0] sm:$0xff] %v3220_v37  ;;  %v2445_v11 = vmul.f32 %v2317_v17, %v1421_v6  ;;  %v1940_v28 = vadd.f32 %v1812_v59, %v4874_v35  ;;  %v1560_v24 = vmul.f32 0.044715, %v4899_v27  ;;  %v4916_v34 = vadd.f32 %v4567_v9, %v4253_v36 }
 0x2b3   : > { %v2318_v4 = vadd.f32 1.0, %v3496_v23  ;;  %v1939_v29 = vadd.f32 %v1811_v25, %v4878_v7  ;;  %v1813_v38 = vmul.f32 %v1685_v52, %v4884_v41  ;;  %v1686_v51 = vmul.f32 %v1558_v30, %v4895_v31 }
 0x2b4   : > { %v3498_v39 = vpop.eup %3497  ;;  %v3221_v3 = vpack.c.bf16 %v2445_v11, %v2444_v62  ;;  %v2068_v33 = vmul.f32 0.7978846, %v1940_v28  ;;  %v1688_v14 = vmul.f32 %v1560_v24, %v4899_v27  ;;  %v1425_v6 = vmul.f32 0.5, %v4845_v1 }
 0x2b5   : > { %v2320_v10 = vadd.f32 1.0, %v3498_v39  ;;  %v2067_v21 = vmul.f32 0.7978846, %v1939_v29  ;;  %v1941_v20 = vadd.f32 %v1813_v38, %v4884_v41  ;;  %v2446_v16 = vmul.f32 %v2318_v4, %v1422_v57 }
 0x2b6   : > { %2933 = vst [vmem:[%s4397_s13 + $0xb8] sm:$0xff] %v3221_v3  ;;  %3505 = vtanh.f32 %v2068_v33  ;;  %v1814_v15 = vmul.f32 %v1686_v51, %v4895_v31  ;;  %v1816_v46 = vmul.f32 %v1688_v14, %v4899_v27  ;;  %v1559_v9 = vmul.f32 0.044715, %v4916_v34  ;;  %v5732_v3 = vld [vmem:[#allocation9_spill] sm:$0xff] }
 0x2b7   : > { %v3500_v56 = vpop.eup %3499  ;;  %v2448_v50 = vmul.f32 %v2320_v10, %v1424_v60  ;;  %3507 = vtanh.f32 %v2067_v21  ;;  %v2069_v62 = vmul.f32 0.7978846, %v1941_v20  ;;  %v4928_v57 = vadd.f32 %v5731_v63, %v4255_v0 }
 0x2b8   : > { %v3502_v12 = vpop.eup %3501  ;;  %v2319_v8 = vadd.f32 1.0, %v3500_v56  ;;  %v1942_v1 = vadd.f32 %v1814_v15, %v4895_v31  ;;  %v1944_v43 = vadd.f32 %v1816_v46, %v4899_v27  ;;  %v1687_v48 = vmul.f32 %v1559_v9, %v4916_v34 }
 0x2b9   : > { %v2321_v18 = vadd.f32 1.0, %v3502_v12  ;;  %3509 = vtanh.f32 %v2069_v62  ;;  %v4933_v45 = vadd.f32 %v4572_v49, %v4249_v26  ;;  %v1426_v37 = vmul.f32 0.5, %v4851_v13 }
 0x2ba   : > { %v3504_v40 = vpop.eup %3503  ;;  %v2447_v61 = vmul.f32 %v2319_v8, %v1423_v44  ;;  %v2070_v17 = vmul.f32 0.7978846, %v1942_v1  ;;  %v2072_v59 = vmul.f32 0.7978846, %v1944_v43  ;;  %v1428_v25 = vmul.f32 0.5, %v4874_v35 }
 0x2bb   : > { %v2449_v60 = vmul.f32 %v2321_v18, %v1425_v6  ;;  %v1815_v52 = vmul.f32 %v1687_v48, %v4916_v34  ;;  %v1561_v30 = vmul.f32 0.044715, %v4928_v57  ;;  %v2322_v11 = vadd.f32 1.0, %v3504_v40 }
 0x2bc   : > { %v3222_v23 = vpack.c.bf16 %v2447_v61, %v2446_v16  ;;  %3511 = vtanh.f32 %v2070_v17  ;;  %v1562_v49 = vmul.f32 0.044715, %v4933_v45  ;;  %v1427_v24 = vmul.f32 0.5, %v4878_v7 }
 0x2bd   : > { %v4940_v28 = vpop.f32.mrb[40].mxu0  ;;  %v4942_v44 = vpop.f32.mrb[40].mxu1  ;;  %v3223_v13 = vpack.c.bf16 %v2449_v60, %v2448_v50  ;;  %3513 = vtanh.f32 %v2072_v59  ;;  %v1943_v35 = vadd.f32 %v1815_v52, %v4916_v34  ;;  %v1689_v38 = vmul.f32 %v1561_v30, %v4928_v57 }
 0x2be   : > { %v4946_v4 = vpop.f32.mrb[41].mxu0  ;;  %v4948_v29 = vpop.f32.mrb[41].mxu1  ;;  %2934 = vst [vmem:[%s4397_s13 + $0xc0] sm:$0xff] %v3222_v23  ;;  %v1690_v51 = vmul.f32 %v1562_v49, %v4933_v45  ;;  %v4955_v39 = vadd.f32 %v4575_v2, %v4251_v55  ;;  %v4959_v33 = vadd.f32 %v5732_v3, %v4253_v36  ;;  %v1429_v10 = vmul.f32 0.5, %v4884_v41 }
 0x2bf   : > { %v4961_v7 = vpop.f32.mrb[42].mxu0  ;;  %v4963_v14 = vpop.f32.mrb[42].mxu1  ;;  %2935 = vst [vmem:[%s4397_s13 + $0xc8] sm:$0xff] %v3223_v13  ;;  %v1430_v6 = vmul.f32 0.5, %v4895_v31  ;;  %v2071_v21 = vmul.f32 0.7978846, %v1943_v35  ;;  %v4970_v20 = vadd.f32 %v4581_v54, %v4255_v0  ;;  %v2450_v46 = vmul.f32 %v2322_v11, %v1426_v37 }
 0x2c0   : > { %v4972_v2 = vpop.f32.mrb[43].mxu0  ;;  %v4974_v16 = vpop.f32.mrb[43].mxu1  ;;  %v1817_v56 = vmul.f32 %v1689_v38, %v4928_v57  ;;  %v1818_v50 = vmul.f32 %v1690_v51, %v4933_v45  ;;  %v1564_v62 = vmul.f32 0.044715, %v4955_v39  ;;  %v1563_v31 = vmul.f32 0.044715, %v4959_v33 }
 0x2c1   : > { %v3506_v15 = vpop.eup %3505  ;;  %3515 = vtanh.f32 %v2071_v21  ;;  %v4982_v54 = vadd.f32 %v4600_v58, %v4249_v26  ;;  %v4988_v48 = vmul.f32 0.5, %v4899_v27  ;;  %v1565_v61 = vmul.f32 0.044715, %v4970_v20 }
 0x2c2   : > { %v3508_v41 = vpop.eup %3507  ;;  %v2324_v9 = vadd.f32 1.0, %v3506_v15  ;;  %v1945_v8 = vadd.f32 %v1817_v56, %v4928_v57  ;;  %v1946_v1 = vadd.f32 %v1818_v50, %v4933_v45  ;;  %v1692_v43 = vmul.f32 %v1564_v62, %v4955_v39 }
 0x2c3   : > { %v2323_v12 = vadd.f32 1.0, %v3508_v41  ;;  %v3510_v63 = vpop.eup %3509  ;;  %v1691_v40 = vmul.f32 %v1563_v31, %v4959_v33  ;;  %v1693_v23 = vmul.f32 %v1565_v61, %v4970_v20  ;;  %v4999_v27 = vadd.f32 %v4602_v32, %v4251_v55  ;;  %v5733_v61 = vld [vmem:[#allocation10_spill] sm:$0xff] }
 0x2c4   : > { %v2452_v18 = vmul.f32 %v2324_v9, %v1428_v25  ;;  %v2325_v17 = vadd.f32 1.0, %v3510_v63  ;;  %v2073_v58 = vmul.f32 0.7978846, %v1945_v8  ;;  %v2074_v59 = vmul.f32 0.7978846, %v1946_v1 }
 0x2c5   : > { %v2451_v37 = vmul.f32 %v2323_v12, %v1427_v24  ;;  %v4992_v60 = vpop.f32.mrb[44].mxu0  ;;  %v1820_v52 = vmul.f32 %v1692_v43, %v4955_v39  ;;  %v1819_v30 = vmul.f32 %v1691_v40, %v4959_v33  ;;  %v5001_v25 = vpop.f32.mrb[44].mxu1  ;;  %v1566_v35 = vmul.f32 0.044715, %v4982_v54 }
 0x2c6   : > { %v5003_v11 = vpop.f32.mrb[45].mxu0  ;;  %v3512_v49 = vpop.eup %3511  ;;  %v2453_v24 = vmul.f32 %v2325_v17, %v1429_v10  ;;  %3517 = vtanh.f32 %v2073_v58  ;;  %v1821_v62 = vmul.f32 %v1693_v23, %v4970_v20  ;;  %v1433_v12 = vmul.f32 0.5, %v4928_v57  ;;  %v5734_v17 = vld [vmem:[#allocation11_spill] sm:$0xff]  ;;  %v5735_v57 = vld [vmem:[#allocation12_spill] sm:$0xff] }
 0x2c7   : > { %v3224_v13 = vpack.c.bf16 %v2451_v37, %v2450_v46  ;;  %v5006_v38 = vpop.f32.mrb[45].mxu1  ;;  %v5008_v51 = vpop.f32.mrb[46].mxu0  ;;  %v2326_v21 = vadd.f32 1.0, %v3512_v49  ;;  %3519 = vtanh.f32 %v2074_v59  ;;  %v1948_v32 = vadd.f32 %v1820_v52, %v4955_v39 }
 0x2c8   : > { %v3514_v3 = vpop.eup %3513  ;;  %v1947_v15 = vadd.f32 %v1819_v30, %v4959_v33  ;;  %v5012_v56 = vpop.f32.mrb[46].mxu1  ;;  %v3225_v10 = vpack.c.bf16 %v2453_v24, %v2452_v18  ;;  %v1431_v46 = vmul.f32 0.5, %v4916_v34  ;;  %v1694_v41 = vmul.f32 %v1566_v35, %v4982_v54 }
 0x2c9   : > { %v5014_v50 = vpop.f32.mrb[47].mxu0  ;;  %2936 = vst [vmem:[%s4397_s13 + $0xd0] sm:$0xff] %v3224_v13  ;;  %v5020_v9 = vpop.f32.mrb[47].mxu1  ;;  %v2328_v31 = vadd.f32 1.0, %v3514_v3  ;;  %v2076_v8 = vmul.f32 0.7978846, %v1948_v32  ;;  %v2454_v43 = vmul.f32 %v2326_v21, %v1430_v6  ;;  %v1949_v63 = vadd.f32 %v1821_v62, %v4970_v20 }
 0x2ca   : > { %v2075_v1 = vmul.f32 0.7978846, %v1947_v15  ;;  %2937 = vst [vmem:[%s4397_s13 + $0xd8] sm:$0xff] %v3225_v10  ;;  %v1822_v40 = vmul.f32 %v1694_v41, %v4982_v54  ;;  %v1568_v18 = vmul.f32 0.044715, %v4999_v27  ;;  %v5029_v37 = vadd.f32 %v5733_v61, %v4253_v36 }
 0x2cb   : > { %v3516_v34 = vpop.eup %3515  ;;  %3521 = vtanh.f32 %v2076_v8  ;;  %v5033_v58 = vadd.f32 %v5734_v17, %v4255_v0  ;;  %v5037_v59 = vadd.f32 %v5735_v57, %v4249_v26  ;;  %v2077_v52 = vmul.f32 0.7978846, %v1949_v63  ;;  %v5739_v17 = vld [vmem:[#allocation13_spill] sm:$0xff] }
 0x2cc   : > { %v2327_v6 = vadd.f32 1.0, %v3516_v34  ;;  %3523 = vtanh.f32 %v2075_v1  ;;  %v1950_v30 = vadd.f32 %v1822_v40, %v4982_v54  ;;  %v1434_v13 = vmul.f32 0.5, %v4933_v45 }
 0x2cd   : > { %v5040_v23 = vpop.f32.mrb[48].mxu0  ;;  %v5042_v49 = vpop.f32.mrb[48].mxu1  ;;  %v5046_v24 = vmul.f32 0.5, %v4955_v39  ;;  %v1696_v35 = vmul.f32 %v1568_v18, %v4999_v27  ;;  %v1567_v3 = vmul.f32 0.044715, %v5029_v37  ;;  %3525 = vtanh.f32 %v2077_v52 }
 0x2ce   : > { %v5050_v21 = vpop.f32.mrb[49].mxu0  ;;  %v5052_v32 = vpop.f32.mrb[49].mxu1  ;;  %v2455_v15 = vmul.f32 %v2327_v6, %v1431_v46  ;;  %v2078_v10 = vmul.f32 0.7978846, %v1950_v30  ;;  %v1569_v62 = vmul.f32 0.044715, %v5033_v58  ;;  %v2456_v45 = vmul.f32 %v2328_v31, %v4988_v48 }
 0x2cf   : > { %v5055_v41 = vpop.f32.mrb[50].mxu0  ;;  %v5057_v8 = vpop.f32.mrb[50].mxu1  ;;  %v1824_v39 = vmul.f32 %v1696_v35, %v4999_v27  ;;  %v1695_v1 = vmul.f32 %v1567_v3, %v5029_v37  ;;  %v1570_v63 = vmul.f32 0.044715, %v5037_v59  ;;  %v5070_v57 = vadd.f32 %v5739_v17, %v4251_v55 }
 0x2d0   : > { %5736 = vst [vmem:[#allocation2_spill] sm:$0xff] %v5057_v8  ;;  %v5063_v40 = vpop.f32.mrb[51].mxu0  ;;  %v5065_v46 = vpop.f32.mrb[51].mxu1  ;;  %v3226_v34 = vpack.c.bf16 %v2455_v15, %v2454_v43  ;;  %3527 = vtanh.f32 %v2078_v10  ;;  %v1697_v61 = vmul.f32 %v1569_v62, %v5033_v58  ;;  %v1435_v3 = vmul.f32 0.5, %v4959_v33 }
 0x2d1   : > { %5737 = vst [vmem:[#allocation3_spill] sm:$0xff] %v5063_v40  ;;  %5738 = vst [vmem:[#allocation4_spill] sm:$0xff] %v5065_v46  ;;  %v3518_v18 = vpop.eup %3517  ;;  %v1952_v6 = vadd.f32 %v1824_v39, %v4999_v27  ;;  %v1823_v52 = vmul.f32 %v1695_v1, %v5029_v37  ;;  %v1698_v30 = vmul.f32 %v1570_v63, %v5037_v59  ;;  %v1572_v15 = vmul.f32 0.044715, %v5070_v57 }
 0x2d2   : > { %v3520_v48 = vpop.eup %3519  ;;  %v2329_v31 = vadd.f32 1.0, %v3518_v18  ;;  %2938 = vst [vmem:[%s4397_s13 + $0xe0] sm:$0xff] %v3226_v34  ;;  %v1825_v43 = vmul.f32 %v1697_v61, %v5033_v58  ;;  %v1437_v39 = vmul.f32 0.5, %v4970_v20  ;;  %v5740_v34 = vld [vmem:[#allocation14_spill] sm:$0xff] }
 0x2d3   : > { %v2330_v35 = vadd.f32 1.0, %v3520_v48  ;;  %v2080_v62 = vmul.f32 0.7978846, %v1952_v6  ;;  %v1951_v17 = vadd.f32 %v1823_v52, %v5029_v37  ;;  %v1826_v18 = vmul.f32 %v1698_v30, %v5037_v59 }
 0x2d4   : > { %v2457_v10 = vmul.f32 %v2329_v31, %v1433_v12  ;;  %v1953_v1 = vadd.f32 %v1825_v43, %v5033_v58  ;;  %v1700_v63 = vmul.f32 %v1572_v15, %v5070_v57  ;;  %v5086_v48 = vadd.f32 %v5740_v34, %v4253_v36 }
 0x2d5   : > { %v5088_v33 = vpop.f32.mrb[52].mxu0  ;;  %v5090_v61 = vpop.f32.mrb[52].mxu1  ;;  %3529 = vtanh.f32 %v2080_v62  ;;  %v2079_v6 = vmul.f32 0.7978846, %v1951_v17  ;;  %v1954_v52 = vadd.f32 %v1826_v18, %v5037_v59  ;;  %v2458_v15 = vmul.f32 %v2330_v35, %v1434_v13  ;;  %v5744_v35 = vld [vmem:[#allocation15_spill] sm:$0xff] }
 0x2d6   : > { %5741 = vst [vmem:[#allocation5_spill] sm:$0xff] %v5088_v33  ;;  %v3522_v12 = vpop.eup %3521  ;;  %v3227_v31 = vpack.c.bf16 %v2457_v10, %v2456_v45  ;;  %v5093_v20 = vpop.f32.mrb[53].mxu0  ;;  %v2081_v34 = vmul.f32 0.7978846, %v1953_v1  ;;  %v1828_v40 = vmul.f32 %v1700_v63, %v5070_v57  ;;  %v1571_v62 = vmul.f32 0.044715, %v5086_v48 }
 0x2d7   : > { %v5095_v30 = vpop.f32.mrb[53].mxu1  ;;  %v3524_v43 = vpop.eup %3523  ;;  %v2332_v46 = vadd.f32 1.0, %v3522_v12  ;;  %3531 = vtanh.f32 %v2079_v6  ;;  %v2082_v10 = vmul.f32 0.7978846, %v1954_v52  ;;  %v5110_v1 = vadd.f32 %v5744_v35, %v4255_v0 }
 0x2d8   : > { %5742 = vst [vmem:[#allocation6_spill] sm:$0xff] %v5095_v30  ;;  %v5098_v33 = vpop.f32.mrb[54].mxu0  ;;  %v5100_v8 = vpop.f32.mrb[54].mxu1  ;;  %2939 = vst [vmem:[%s4397_s13 + $0xe8] sm:$0xff] %v3227_v31  ;;  %v2331_v45 = vadd.f32 1.0, %v3524_v43  ;;  %v1438_v30 = vmul.f32 0.5, %v4982_v54  ;;  %3533 = vtanh.f32 %v2081_v34  ;;  %v1956_v13 = vadd.f32 %v1828_v40, %v5070_v57 }
 0x2d9   : > { %v5104_v17 = vpop.f32.mrb[55].mxu0  ;;  %v3526_v18 = vpop.eup %3525  ;;  %v2460_v12 = vmul.f32 %v2332_v46, %v5046_v24  ;;  %v1699_v52 = vmul.f32 %v1571_v62, %v5086_v48  ;;  %3535 = vtanh.f32 %v2082_v10  ;;  %v1573_v54 = vmul.f32 0.044715, %v5110_v1 }
 0x2da   : > { %5743 = vst [vmem:[#allocation7_spill] sm:$0xff] %v5104_v17  ;;  %v5112_v63 = vpop.f32.mrb[55].mxu1  ;;  %v2459_v31 = vmul.f32 %v2331_v45, %v1435_v3  ;;  %v2333_v6 = vadd.f32 1.0, %v3526_v18  ;;  %v3528_v43 = vpop.eup %3527  ;;  %v2084_v17 = vmul.f32 0.7978846, %v1956_v13  ;;  %v5119_v40 = vadd.f32 %v4641_v53, %v4249_v26 }
 0x2db   : > { %5745 = vst [vmem:[#allocation8_spill] sm:$0xff] %v5112_v63  ;;  %v1440_v63 = vmul.f32 0.5, %v4999_v27  ;;  %v1827_v24 = vmul.f32 %v1699_v52, %v5086_v48  ;;  %v1439_v46 = vmul.f32 0.5, %v5029_v37  ;;  %v1701_v3 = vmul.f32 %v1573_v54, %v5110_v1 }
 0x2dc   : > { %v3228_v34 = vpack.c.bf16 %v2459_v31, %v2458_v15  ;;  %v2461_v35 = vmul.f32 %v2333_v6, %v1437_v39  ;;  %3537 = vtanh.f32 %v2084_v17  ;;  %v1574_v45 = vmul.f32 0.044715, %v5119_v40 }
 0x2dd   : > { %v5126_v10 = vpop.f32.mrb[56].mxu0  ;;  %v5128_v62 = vpop.f32.mrb[56].mxu1  ;;  %v2334_v15 = vadd.f32 1.0, %v3528_v43  ;;  %v1955_v39 = vadd.f32 %v1827_v24, %v5086_v48  ;;  %v5134_v27 = vadd.f32 %v4643_v47, %v4251_v55  ;;  %v1441_v18 = vmul.f32 0.5, %v5033_v58 }
 0x2de   : > { %5746 = vst [vmem:[#allocation9_spill] sm:$0xff] %v5128_v62  ;;  %2940 = vst [vmem:[%s4397_s13 + $0xf0] sm:$0xff] %v3228_v34  ;;  %v3229_v53 = vpack.c.bf16 %v2461_v35, %v2460_v12  ;;  %v5136_v37 = vpop.f32.mrb[57].mxu0  ;;  %v5138_v17 = vpop.f32.mrb[57].mxu1  ;;  %v1829_v13 = vmul.f32 %v1701_v3, %v5110_v1  ;;  %v1702_v31 = vmul.f32 %v1574_v45, %v5119_v40  ;;  %v5153_v43 = vmul.f32 0.5, %v5037_v59 }
 0x2df   : > { %5747 = vst [vmem:[#allocation10_spill] sm:$0xff] %v5136_v37  ;;  %5748 = vst [vmem:[#allocation11_spill] sm:$0xff] %v5138_v17  ;;  %v5145_v12 = vadd.f32 %v4649_v5, %v4253_v36  ;;  %v5147_v6 = vpop.f32.mrb[58].mxu0  ;;  %v5149_v52 = vpop.f32.mrb[58].mxu1  ;;  %v2083_v54 = vmul.f32 0.7978846, %v1955_v39  ;;  %v5158_v34 = vadd.f32 %v4651_v22, %v4255_v0  ;;  %v2462_v39 = vmul.f32 %v2334_v15, %v1438_v30 }
 0x2e0   : > { %5749 = vst [vmem:[#allocation12_spill] sm:$0xff] %v5147_v6  ;;  %5750 = vst [vmem:[#allocation13_spill] sm:$0xff] %v5149_v52  ;;  %v3530_v47 = vpop.eup %3529  ;;  %v1576_v58 = vmul.f32 0.044715, %v5134_v27  ;;  %v5160_v35 = vpop.f32.mrb[59].mxu0  ;;  %v5163_v24 = vmul.f32 0.5, %v5070_v57  ;;  %v1957_v3 = vadd.f32 %v1829_v13, %v5110_v1  ;;  %v1830_v45 = vmul.f32 %v1702_v31, %v5119_v40 }
 0x2e1   : > { %2941 = vst [vmem:[%s4397_s13 + $0xf8] sm:$0xff] %v3229_v53  ;;  %5751 = vst [vmem:[#allocation14_spill] sm:$0xff] %v5160_v35  ;;  %v2336_v5 = vadd.f32 1.0, %v3530_v47  ;;  %v5167_v53 = vpop.f32.mrb[59].mxu1  ;;  %v3532_v59 = vpop.eup %3531  ;;  %3539 = vtanh.f32 %v2083_v54  ;;  %v1575_v22 = vmul.f32 0.044715, %v5145_v12  ;;  %v5177_v54 = vadd.f32 %v4653_v42, %v4249_v26 }
 0x2e2   : > { %5752 = vst [vmem:[#allocation15_spill] sm:$0xff] %v5167_v53  ;;  %v1704_v52 = vmul.f32 %v1576_v58, %v5134_v27  ;;  %v3534_v6 = vpop.eup %3533  ;;  %v2335_v35 = vadd.f32 1.0, %v3532_v59  ;;  %v2085_v47 = vmul.f32 0.7978846, %v1957_v3  ;;  %v1958_v57 = vadd.f32 %v1830_v45, %v5119_v40 }
 0x2e3   : > { %v2464_v17 = vmul.f32 %v2336_v5, %v1440_v63  ;;  %v2337_v37 = vadd.f32 1.0, %v3534_v6  ;;  %v1703_v31 = vmul.f32 %v1575_v22, %v5145_v12  ;;  %v1577_v53 = vmul.f32 0.044715, %v5158_v34  ;;  %v3536_v62 = vpop.eup %3535 }
 0x2e4   : > { %v1832_v13 = vmul.f32 %v1704_v52, %v5134_v27  ;;  %v2463_v30 = vmul.f32 %v2335_v35, %v1439_v46  ;;  %3541 = vtanh.f32 %v2085_v47  ;;  %v2086_v15 = vmul.f32 0.7978846, %v1958_v57 }
 0x2e5   : > { %v5179_v63 = vpop.f32.mrb[60].mxu0  ;;  %v5181_v58 = vpop.f32.mrb[60].mxu1  ;;  %v2465_v5 = vmul.f32 %v2337_v37, %v1441_v18  ;;  %v1831_v52 = vmul.f32 %v1703_v31, %v5145_v12  ;;  %v1705_v3 = vmul.f32 %v1577_v53, %v5158_v34  ;;  %v1443_v42 = vmul.f32 0.5, %v5086_v48 }
 0x2e6   : > { %v1960_v6 = vadd.f32 %v1832_v13, %v5134_v27  ;;  %v5186_v45 = vpop.f32.mrb[61].mxu0  ;;  %v5188_v46 = vpop.f32.mrb[61].mxu1  ;;  %v3230_v59 = vpack.c.bf16 %v2463_v30, %v2462_v39  ;;  %v1445_v22 = vmul.f32 0.5, %v5110_v1  ;;  %3543 = vtanh.f32 %v2086_v15  ;;  %v5756_v30 = vld [vmem:[#allocation16_spill] sm:$0xff] }
 0x2e7   : > { %5753 = vst [vmem:[#allocation18_spill] sm:$0xff] %v5188_v46  ;;  %v3538_v35 = vpop.eup %3537  ;;  %v5192_v37 = vpop.f32.mrb[62].mxu0  ;;  %v3231_v47 = vpack.c.bf16 %v2465_v5, %v2464_v17  ;;  %v2338_v57 = vadd.f32 1.0, %v3536_v62  ;;  %v1959_v13 = vadd.f32 %v1831_v52, %v5145_v12  ;;  %v1833_v48 = vmul.f32 %v1705_v3, %v5158_v34  ;;  %v5757_v5 = vld [vmem:[#allocation17_spill] sm:$0xff] }
 0x2e8   : > { %v5194_v18 = vpop.f32.mrb[62].mxu1  ;;  %v2088_v53 = vmul.f32 0.7978846, %v1960_v6  ;;  %v5197_v31 = vpop.f32.mrb[63].mxu0  ;;  %2942 = vst [vmem:[%s4397_s13 + $0x100] sm:$0xff] %v3230_v59  ;;  %v5206_v1 = vadd.f32 %v4655_v19, %v4251_v55  ;;  %v5210_v17 = vadd.f32 %v5756_v30, %v4253_v36  ;;  %v2340_v62 = vadd.f32 1.0, %v3538_v35 }
 0x2e9   : > { %5754 = vst [vmem:[#allocation19_spill] sm:$0xff] %v5197_v31  ;;  %v5199_v46 = vpop.f32.mrb[63].mxu1  ;;  %v1578_v39 = vmul.f32 0.044715, %v5177_v54  ;;  %2943 = vst [vmem:[%s4397_s13 + $0x108] sm:$0xff] %v3231_v47  ;;  %v5215_v6 = vadd.f32 %v5757_v5, %v4255_v0  ;;  %v1446_v52 = vmul.f32 0.5, %v5119_v40  ;;  %v1961_v3 = vadd.f32 %v1833_v48, %v5158_v34 }
 0x2ea   : > { %5755 = vst [vmem:[#allocation20_spill] sm:$0xff] %v5199_v46  ;;  %3545 = vtanh.f32 %v2088_v53  ;;  %v2087_v15 = vmul.f32 0.7978846, %v1959_v13  ;;  %v1580_v19 = vmul.f32 0.044715, %v5206_v1  ;;  %v2466_v30 = vmul.f32 %v2338_v57, %v5153_v43 }
 0x2eb   : > { %v1706_v59 = vmul.f32 %v1578_v39, %v5177_v54  ;;  %v3540_v46 = vpop.eup %3539  ;;  %v1448_v47 = vmul.f32 0.5, %v5134_v27  ;;  %v1579_v35 = vmul.f32 0.044715, %v5210_v17  ;;  %v2089_v13 = vmul.f32 0.7978846, %v1961_v3 }
 0x2ec   : > { %3547 = vtanh.f32 %v2087_v15  ;;  %v2339_v53 = vadd.f32 1.0, %v3540_v46  ;;  %v1708_v40 = vmul.f32 %v1580_v19, %v5206_v1  ;;  %v2468_v48 = vmul.f32 %v2340_v62, %v5163_v24 }
 0x2ed   : > { %v1834_v5 = vmul.f32 %v1706_v59, %v5177_v54  ;;  %v1707_v39 = vmul.f32 %v1579_v35, %v5210_v17  ;;  %v1581_v31 = vmul.f32 0.044715, %v5215_v6  ;;  %v5231_v43 = vadd.f32 %v4940_v28, %v4249_v26 }
 0x2ee   : > { %v3542_v27 = vpop.eup %3541  ;;  %v2467_v57 = vmul.f32 %v2339_v53, %v1443_v42  ;;  %3549 = vtanh.f32 %v2089_v13  ;;  %v1836_v15 = vmul.f32 %v1708_v40, %v5206_v1  ;;  %v5239_v62 = vadd.f32 %v4942_v44, %v4251_v55 }
 0x2ef   : > { %v1962_v46 = vadd.f32 %v1834_v5, %v5177_v54  ;;  %v2341_v3 = vadd.f32 1.0, %v3542_v27  ;;  %v1835_v59 = vmul.f32 %v1707_v39, %v5210_v17  ;;  %v1709_v24 = vmul.f32 %v1581_v31, %v5215_v6 }
 0x2f0   : > { %v3544_v19 = vpop.eup %3543  ;;  %v3232_v28 = vpack.c.bf16 %v2467_v57, %v2466_v30  ;;  %v1964_v42 = vadd.f32 %v1836_v15, %v5206_v1  ;;  %v1582_v53 = vmul.f32 0.044715, %v5231_v43  ;;  %v1447_v5 = vmul.f32 0.5, %v5145_v12 }
 0x2f1   : > { %v2090_v35 = vmul.f32 0.7978846, %v1962_v46  ;;  %v2469_v13 = vmul.f32 %v2341_v3, %v1445_v22  ;;  %v1963_v40 = vadd.f32 %v1835_v59, %v5210_v17  ;;  %v1837_v39 = vmul.f32 %v1709_v24, %v5215_v6 }
 0x2f2   : > { %2944 = vst [vmem:[%s4397_s13 + $0x110] sm:$0xff] %v3232_v28  ;;  %v2342_v31 = vadd.f32 1.0, %v3544_v19  ;;  %v2092_v44 = vmul.f32 0.7978846, %v1964_v42  ;;  %v1710_v27 = vmul.f32 %v1582_v53, %v5231_v43  ;;  %v1449_v46 = vmul.f32 0.5, %v5158_v34 }
 0x2f3   : > { %3551 = vtanh.f32 %v2090_v35  ;;  %v3233_v57 = vpack.c.bf16 %v2469_v13, %v2468_v48  ;;  %v2091_v15 = vmul.f32 0.7978846, %v1963_v40  ;;  %v1965_v22 = vadd.f32 %v1837_v39, %v5215_v6 }
 0x2f4   : > { %v3546_v30 = vpop.eup %3545  ;;  %3553 = vtanh.f32 %v2092_v44  ;;  %v1838_v12 = vmul.f32 %v1710_v27, %v5231_v43  ;;  %v1584_v59 = vmul.f32 0.044715, %v5239_v62  ;;  %v5255_v28 = vadd.f32 %v4946_v4, %v4253_v36 }
 0x2f5   : > { %v2344_v3 = vadd.f32 1.0, %v3546_v30  ;;  %2945 = vst [vmem:[%s4397_s13 + $0x118] sm:$0xff] %v3233_v57  ;;  %3555 = vtanh.f32 %v2091_v15  ;;  %v2093_v19 = vmul.f32 0.7978846, %v1965_v22  ;;  %v5259_v34 = vadd.f32 %v4948_v29, %v4255_v0 }
 0x2f6   : > { %v3548_v24 = vpop.eup %3547  ;;  %v2470_v48 = vmul.f32 %v2342_v31, %v1446_v52  ;;  %v1966_v42 = vadd.f32 %v1838_v12, %v5231_v43  ;;  %v1712_v53 = vmul.f32 %v1584_v59, %v5239_v62  ;;  %v1450_v40 = vmul.f32 0.5, %v5177_v54 }
 0x2f7   : > { %v2343_v35 = vadd.f32 1.0, %v3548_v24  ;;  %v2472_v13 = vmul.f32 %v2344_v3, %v1448_v47  ;;  %3557 = vtanh.f32 %v2093_v19  ;;  %v1583_v39 = vmul.f32 0.044715, %v5255_v28 }
 0x2f8   : > { %v3550_v44 = vpop.eup %3549  ;;  %v2094_v4 = vmul.f32 0.7978846, %v1966_v42  ;;  %v1840_v30 = vmul.f32 %v1712_v53, %v5239_v62  ;;  %v1585_v29 = vmul.f32 0.044715, %v5259_v34  ;;  %v5270_v57 = vadd.f32 %v4961_v7, %v4249_v26 }
 0x2f9   : > { %v2471_v27 = vmul.f32 %v2343_v35, %v1447_v5  ;;  %v2345_v52 = vadd.f32 1.0, %v3550_v44  ;;  %v1711_v31 = vmul.f32 %v1583_v39, %v5255_v28  ;;  %v5274_v54 = vadd.f32 %v4963_v14, %v4251_v55 }
 0x2fa   : > { %3559 = vtanh.f32 %v2094_v4  ;;  %v1968_v5 = vadd.f32 %v1840_v30, %v5239_v62  ;;  %v1713_v15 = vmul.f32 %v1585_v29, %v5259_v34  ;;  %v1452_v3 = vmul.f32 0.5, %v5206_v1 }
 0x2fb   : > { %v3234_v47 = vpack.c.bf16 %v2471_v27, %v2470_v48  ;;  %v2473_v22 = vmul.f32 %v2345_v52, %v1449_v46  ;;  %v1839_v12 = vmul.f32 %v1711_v31, %v5255_v28  ;;  %v1586_v59 = vmul.f32 0.044715, %v5270_v57 }
 0x2fc   : > { %v1451_v7 = vmul.f32 0.5, %v5210_v17  ;;  %v2096_v14 = vmul.f32 0.7978846, %v1968_v5  ;;  %v1841_v19 = vmul.f32 %v1713_v15, %v5259_v34  ;;  %v1588_v48 = vmul.f32 0.044715, %v5274_v54 }
 0x2fd   : > { %v3552_v24 = vpop.eup %3551  ;;  %2946 = vst [vmem:[%s4397_s13 + $0x120] sm:$0xff] %v3234_v47  ;;  %v3235_v35 = vpack.c.bf16 %v2473_v22, %v2472_v13  ;;  %v1967_v46 = vadd.f32 %v1839_v12, %v5255_v28  ;;  %v1714_v1 = vmul.f32 %v1586_v59, %v5270_v57  ;;  %v5291_v17 = vadd.f32 %v4972_v2, %v4253_v36 }
 0x2fe   : > { %v2346_v42 = vadd.f32 1.0, %v3552_v24  ;;  %v3554_v53 = vpop.eup %3553  ;;  %3561 = vtanh.f32 %v2096_v14  ;;  %v1969_v39 = vadd.f32 %v1841_v19, %v5259_v34  ;;  %v1716_v44 = vmul.f32 %v1588_v48, %v5274_v54 }
 0x2ff   : > { %v3556_v27 = vpop.eup %3555  ;;  %2947 = vst [vmem:[%s4397_s13 + $0x128] sm:$0xff] %v3235_v35  ;;  %v2348_v4 = vadd.f32 1.0, %v3554_v53  ;;  %v1453_v13 = vmul.f32 0.5, %v5215_v6  ;;  %v2095_v30 = vmul.f32 0.7978846, %v1967_v46  ;;  %v1842_v29 = vmul.f32 %v1714_v1, %v5270_v57 }
 0x300   : > { %v2474_v52 = vmul.f32 %v2346_v42, %v1450_v40  ;;  %v2347_v31 = vadd.f32 1.0, %v3556_v27  ;;  %v2097_v47 = vmul.f32 0.7978846, %v1969_v39  ;;  %v1844_v5 = vmul.f32 %v1716_v44, %v5274_v54 }
 0x301   : > { %v3558_v15 = vpop.eup %3557  ;;  %v2476_v22 = vmul.f32 %v2348_v4, %v1452_v3  ;;  %3563 = vtanh.f32 %v2095_v30  ;;  %v1970_v12 = vadd.f32 %v1842_v29, %v5270_v57  ;;  %v1587_v2 = vmul.f32 0.044715, %v5291_v17 }
 0x302   : > { %v2475_v59 = vmul.f32 %v2347_v31, %v1451_v7  ;;  %v2349_v24 = vadd.f32 1.0, %v3558_v15  ;;  %3565 = vtanh.f32 %v2097_v47  ;;  %v1972_v6 = vadd.f32 %v1844_v5, %v5274_v54 }
 0x303   : > { %v2098_v14 = vmul.f32 0.7978846, %v1970_v12  ;;  %v1715_v40 = vmul.f32 %v1587_v2, %v5291_v17  ;;  %v5303_v19 = vadd.f32 %v4974_v16, %v4255_v0  ;;  %v5307_v3 = vadd.f32 %v4992_v60, %v4249_v26 }
 0x304   : > { %v3560_v48 = vpop.eup %3559  ;;  %v3236_v35 = vpack.c.bf16 %v2475_v59, %v2474_v52  ;;  %v2477_v42 = vmul.f32 %v2349_v24, %v1453_v13  ;;  %v2100_v7 = vmul.f32 0.7978846, %v1972_v6  ;;  %v5311_v46 = vadd.f32 %v5001_v25, %v4251_v55 }
 0x305   : > { %v1454_v1 = vmul.f32 0.5, %v5231_v43  ;;  %v1456_v53 = vmul.f32 0.5, %v5239_v62  ;;  %3567 = vtanh.f32 %v2098_v14  ;;  %v1843_v16 = vmul.f32 %v1715_v40, %v5291_v17 }
 0x306   : > { %2948 = vst [vmem:[%s4397_s13 + $0x130] sm:$0xff] %v3236_v35  ;;  %v3237_v39 = vpack.c.bf16 %v2477_v42, %v2476_v22  ;;  %v1455_v60 = vmul.f32 0.5, %v5255_v28  ;;  %v1457_v44 = vmul.f32 0.5, %v5259_v34  ;;  %v1589_v27 = vmul.f32 0.044715, %v5303_v19 }
 0x307   : > { %v2350_v4 = vadd.f32 1.0, %v3560_v48  ;;  %3569 = vtanh.f32 %v2100_v7  ;;  %v1971_v25 = vadd.f32 %v1843_v16, %v5291_v17  ;;  %v1590_v13 = vmul.f32 0.044715, %v5307_v3 }
 0x308   : > { %v3562_v43 = vpop.eup %3561  ;;  %2949 = vst [vmem:[%s4397_s13 + $0x138] sm:$0xff] %v3237_v39  ;;  %v1458_v62 = vmul.f32 0.5, %v5270_v57  ;;  %v1717_v30 = vmul.f32 %v1589_v27, %v5303_v19  ;;  %v1592_v29 = vmul.f32 0.044715, %v5311_v46  ;;  %v5328_v28 = vadd.f32 %v5003_v11, %v4253_v36 }
 0x309   : > { %v2352_v34 = vadd.f32 1.0, %v3562_v43  ;;  %v2099_v52 = vmul.f32 0.7978846, %v1971_v25  ;;  %v1718_v31 = vmul.f32 %v1590_v13, %v5307_v3  ;;  %v5333_v47 = vadd.f32 %v5006_v38, %v4255_v0 }
 0x30a   : > { %v5336_v5 = vmul.f32 0.5, %v5274_v54  ;;  %v1845_v57 = vmul.f32 %v1717_v30, %v5303_v19  ;;  %v1720_v15 = vmul.f32 %v1592_v29, %v5311_v46  ;;  %v1591_v22 = vmul.f32 0.044715, %v5328_v28 }
 0x30b   : > { %v3564_v12 = vpop.eup %3563  ;;  %v2478_v11 = vmul.f32 %v2350_v4, %v1454_v1  ;;  %3571 = vtanh.f32 %v2099_v52  ;;  %v1846_v2 = vmul.f32 %v1718_v31, %v5307_v3  ;;  %v5344_v59 = vadd.f32 %v5008_v51, %v4249_v26 }
 0x30c   : > { %v3566_v38 = vpop.eup %3565  ;;  %v2351_v24 = vadd.f32 1.0, %v3564_v12  ;;  %v1973_v54 = vadd.f32 %v1845_v57, %v5303_v19  ;;  %v1848_v6 = vmul.f32 %v1720_v15, %v5311_v46  ;;  %v1719_v14 = vmul.f32 %v1591_v22, %v5328_v28 }
 0x30d   : > { %v2480_v40 = vmul.f32 %v2352_v34, %v1456_v53  ;;  %v2353_v48 = vadd.f32 1.0, %v3566_v38  ;;  %v1974_v35 = vadd.f32 %v1846_v2, %v5307_v3  ;;  %v1593_v42 = vmul.f32 0.044715, %v5333_v47 }
 0x30e   : > { %v2479_v7 = vmul.f32 %v2351_v24, %v1455_v60  ;;  %v2101_v1 = vmul.f32 0.7978846, %v1973_v54  ;;  %v1976_v16 = vadd.f32 %v1848_v6, %v5311_v46  ;;  %v1847_v51 = vmul.f32 %v1719_v14, %v5328_v28 }
 0x30f   : > { %v3568_v39 = vpop.eup %3567  ;;  %v2481_v27 = vmul.f32 %v2353_v48, %v1457_v44  ;;  %v2102_v4 = vmul.f32 0.7978846, %v1974_v35  ;;  %v1721_v25 = vmul.f32 %v1593_v42, %v5333_v47  ;;  %v1594_v53 = vmul.f32 0.044715, %v5344_v59 }
 0x310   : > { %v3238_v13 = vpack.c.bf16 %v2479_v7, %v2478_v11  ;;  %v1459_v43 = vmul.f32 0.5, %v5291_v17  ;;  %3573 = vtanh.f32 %v2101_v1  ;;  %v2104_v30 = vmul.f32 0.7978846, %v1976_v16 }
 0x311   : > { %v3570_v60 = vpop.eup %3569  ;;  %v3239_v29 = vpack.c.bf16 %v2481_v27, %v2480_v40  ;;  %v2354_v34 = vadd.f32 1.0, %v3568_v39  ;;  %3575 = vtanh.f32 %v2102_v4  ;;  %v1975_v52 = vadd.f32 %v1847_v51, %v5328_v28 }
 0x312   : > { %2950 = vst [vmem:[%s4397_s13 + $0x140] sm:$0xff] %v3238_v13  ;;  %v1461_v44 = vmul.f32 0.5, %v5303_v19  ;;  %3577 = vtanh.f32 %v2104_v30  ;;  %v1849_v31 = vmul.f32 %v1721_v25, %v5333_v47  ;;  %v1722_v57 = vmul.f32 %v1594_v53, %v5344_v59 }
 0x313   : > { %2951 = vst [vmem:[%s4397_s13 + $0x148] sm:$0xff] %v3239_v29  ;;  %v1462_v15 = vmul.f32 0.5, %v5307_v3  ;;  %v2103_v17 = vmul.f32 0.7978846, %v1975_v52  ;;  %v5365_v22 = vadd.f32 %v5012_v56, %v4251_v55  ;;  %v5369_v12 = vadd.f32 %v5014_v50, %v4253_v36 }
 0x314   : > { %v2356_v11 = vadd.f32 1.0, %v3570_v60  ;;  %v1977_v19 = vadd.f32 %v1849_v31, %v5333_v47  ;;  %v1850_v2 = vmul.f32 %v1722_v57, %v5344_v59  ;;  %v5375_v38 = vadd.f32 %v5020_v9, %v4255_v0 }
 0x315   : > { %v3572_v24 = vpop.eup %3571  ;;  %v2482_v3 = vmul.f32 %v2354_v34, %v1458_v62  ;;  %3579 = vtanh.f32 %v2103_v17  ;;  %v1596_v54 = vmul.f32 0.044715, %v5365_v22  ;;  %v5380_v56 = vadd.f32 %v5040_v23, %v4249_v26 }
 0x316   : > { %v2355_v50 = vadd.f32 1.0, %v3572_v24  ;;  %v2105_v6 = vmul.f32 0.7978846, %v1977_v19  ;;  %v1978_v14 = vadd.f32 %v1850_v2, %v5344_v59  ;;  %v1595_v40 = vmul.f32 0.044715, %v5369_v12 }
 0x317   : > { %v1464_v48 = vmul.f32 0.5, %v5311_v46  ;;  %v1463_v9 = vmul.f32 0.5, %v5328_v28  ;;  %v1724_v35 = vmul.f32 %v1596_v54, %v5365_v22  ;;  %v1597_v62 = vmul.f32 0.044715, %v5375_v38 }
 0x318   : > { %v2483_v42 = vmul.f32 %v2355_v50, %v1459_v43  ;;  %3581 = vtanh.f32 %v2105_v6  ;;  %v2106_v7 = vmul.f32 0.7978846, %v1978_v14  ;;  %v1723_v23 = vmul.f32 %v1595_v40, %v5369_v12 }
 0x319   : > { %v1852_v1 = vmul.f32 %v1724_v35, %v5365_v22  ;;  %v1725_v16 = vmul.f32 %v1597_v62, %v5375_v38  ;;  %v1598_v51 = vmul.f32 0.044715, %v5380_v56  ;;  %v5394_v46 = vadd.f32 %v5042_v49, %v4251_v55 }
 0x31a   : > { %v3574_v28 = vpop.eup %3573  ;;  %v2484_v39 = vmul.f32 %v2356_v11, %v5336_v5  ;;  %v3240_v27 = vpack.c.bf16 %v2483_v42, %v2482_v3  ;;  %3583 = vtanh.f32 %v2106_v7  ;;  %v1851_v4 = vmul.f32 %v1723_v23, %v5369_v12 }
 0x31b   : > { %v3576_v25 = vpop.eup %3575  ;;  %v2357_v53 = vadd.f32 1.0, %v3574_v28  ;;  %v1980_v13 = vadd.f32 %v1852_v1, %v5365_v22  ;;  %v1853_v43 = vmul.f32 %v1725_v16, %v5375_v38  ;;  %v1726_v30 = vmul.f32 %v1598_v51, %v5380_v56 }
 0x31c   : > { %v3578_v60 = vpop.eup %3577  ;;  %2952 = vst [vmem:[%s4397_s13 + $0x150] sm:$0xff] %v3240_v27  ;;  %v2358_v29 = vadd.f32 1.0, %v3576_v25  ;;  %v1465_v49 = vmul.f32 0.5, %v5333_v47  ;;  %v1979_v34 = vadd.f32 %v1851_v4, %v5369_v12  ;;  %v1600_v5 = vmul.f32 0.044715, %v5394_v46 }
 0x31d   : > { %v2485_v52 = vmul.f32 %v2357_v53, %v1461_v44  ;;  %v2108_v31 = vmul.f32 0.7978846, %v1980_v13  ;;  %v1981_v57 = vadd.f32 %v1853_v43, %v5375_v38  ;;  %v5408_v17 = vadd.f32 %v5050_v21, %v4253_v36  ;;  %v5758_v53 = vld [vmem:[#allocation2_spill] sm:$0xff]  ;;  %v5759_v43 = vld [vmem:[#allocation3_spill] sm:$0xff] }
 0x31e   : > { %v2360_v11 = vadd.f32 1.0, %v3578_v60  ;;  %v2107_v19 = vmul.f32 0.7978846, %v1979_v34  ;;  %v1854_v2 = vmul.f32 %v1726_v30, %v5380_v56  ;;  %v1728_v24 = vmul.f32 %v1600_v5, %v5394_v46 }
 0x31f   : > { %v3580_v47 = vpop.eup %3579  ;;  %v3241_v3 = vpack.c.bf16 %v2485_v52, %v2484_v39  ;;  %v2486_v54 = vmul.f32 %v2358_v29, %v1462_v15  ;;  %3585 = vtanh.f32 %v2108_v31  ;;  %v2109_v50 = vmul.f32 0.7978846, %v1981_v57 }
 0x320   : > { %v2359_v44 = vadd.f32 1.0, %v3580_v47  ;;  %3587 = vtanh.f32 %v2107_v19  ;;  %v1982_v6 = vadd.f32 %v1854_v2, %v5380_v56  ;;  %v1856_v14 = vmul.f32 %v1728_v24, %v5394_v46 }
 0x321   : > { %2953 = vst [vmem:[%s4397_s13 + $0x158] sm:$0xff] %v3241_v3  ;;  %v1466_v21 = vmul.f32 0.5, %v5344_v59  ;;  %3589 = vtanh.f32 %v2109_v50  ;;  %v1599_v40 = vmul.f32 0.044715, %v5408_v17  ;;  %v5419_v35 = vadd.f32 %v5052_v32, %v4255_v0 }
 0x322   : > { %v3582_v62 = vpop.eup %3581  ;;  %v2487_v15 = vmul.f32 %v2359_v44, %v1463_v9  ;;  %v2110_v42 = vmul.f32 0.7978846, %v1982_v6  ;;  %v1984_v7 = vadd.f32 %v1856_v14, %v5394_v46  ;;  %v5424_v23 = vadd.f32 %v5055_v41, %v4249_v26 }
 0x323   : > { %v2488_v1 = vmul.f32 %v2360_v11, %v1464_v48  ;;  %v2361_v16 = vadd.f32 1.0, %v3582_v62  ;;  %v1727_v59 = vmul.f32 %v1599_v40, %v5408_v17  ;;  %v1601_v51 = vmul.f32 0.044715, %v5419_v35 }
 0x324   : > { %v3584_v28 = vpop.eup %3583  ;;  %v3242_v39 = vpack.c.bf16 %v2487_v15, %v2486_v54  ;;  %v1468_v32 = vmul.f32 0.5, %v5365_v22  ;;  %3591 = vtanh.f32 %v2110_v42  ;;  %v2112_v9 = vmul.f32 0.7978846, %v1984_v7 }
 0x325   : > { %v2489_v27 = vmul.f32 %v2361_v16, %v1465_v49  ;;  %v2362_v4 = vadd.f32 1.0, %v3584_v28  ;;  %v1855_v25 = vmul.f32 %v1727_v59, %v5408_v17  ;;  %v1729_v41 = vmul.f32 %v1601_v51, %v5419_v35 }
 0x326   : > { %2954 = vst [vmem:[%s4397_s13 + $0x160] sm:$0xff] %v3242_v39  ;;  %3593 = vtanh.f32 %v2112_v9  ;;  %v1602_v48 = vmul.f32 0.044715, %v5424_v23  ;;  %v1340_v13 = vadd.f32 %v5758_v53, %v4251_v55  ;;  %v5437_v30 = vadd.f32 %v5759_v43, %v4253_v36 }
 0x327   : > { %v3243_v22 = vpack.c.bf16 %v2489_v27, %v2488_v1  ;;  %v1467_v60 = vmul.f32 0.5, %v5369_v12  ;;  %v1983_v29 = vadd.f32 %v1855_v25, %v5408_v17  ;;  %v1857_v49 = vmul.f32 %v1729_v41, %v5419_v35  ;;  %v5761_v1 = vld [vmem:[#allocation5_spill] sm:$0xff] }
 0x328   : > { %v1469_v34 = vmul.f32 0.5, %v5375_v38  ;;  %v1470_v5 = vmul.f32 0.5, %v5380_v56  ;;  %v1730_v52 = vmul.f32 %v1602_v48, %v5424_v23  ;;  %v1604_v31 = vmul.f32 0.044715, %v1340_v13  ;;  %v5760_v38 = vld [vmem:[#allocation4_spill] sm:$0xff] }
 0x329   : > { %v3586_v57 = vpop.eup %3585  ;;  %2955 = vst [vmem:[%s4397_s13 + $0x168] sm:$0xff] %v3243_v22  ;;  %v2490_v11 = vmul.f32 %v2362_v4, %v1466_v21  ;;  %v2111_v19 = vmul.f32 0.7978846, %v1983_v29  ;;  %v1985_v2 = vadd.f32 %v1857_v49, %v5419_v35  ;;  %v1603_v24 = vmul.f32 0.044715, %v5437_v30 }
 0x32a   : > { %v3588_v12 = vpop.eup %3587  ;;  %v2364_v47 = vadd.f32 1.0, %v3586_v57  ;;  %v1858_v3 = vmul.f32 %v1730_v52, %v5424_v23  ;;  %v1732_v54 = vmul.f32 %v1604_v31, %v1340_v13  ;;  %v5451_v50 = vadd.f32 %v5760_v38, %v4255_v0 }
 0x32b   : > { %v3590_v56 = vpop.eup %3589  ;;  %v2363_v44 = vadd.f32 1.0, %v3588_v12  ;;  %3595 = vtanh.f32 %v2111_v19  ;;  %v2113_v6 = vmul.f32 0.7978846, %v1985_v2  ;;  %v1731_v14 = vmul.f32 %v1603_v24, %v5437_v30 }
 0x32c   : > { %v2492_v21 = vmul.f32 %v2364_v47, %v1468_v32  ;;  %v2365_v40 = vadd.f32 1.0, %v3590_v56  ;;  %v1986_v62 = vadd.f32 %v1858_v3, %v5424_v23  ;;  %v1860_v15 = vmul.f32 %v1732_v54, %v1340_v13 }
 0x32d   : > { %v2491_v42 = vmul.f32 %v2363_v44, %v1467_v60  ;;  %3597 = vtanh.f32 %v2113_v6  ;;  %v1859_v7 = vmul.f32 %v1731_v14, %v5437_v30  ;;  %v5458_v16 = vadd.f32 %v5761_v1, %v4249_v26 }
 0x32e   : > { %v3592_v59 = vpop.eup %3591  ;;  %v2493_v51 = vmul.f32 %v2365_v40, %v1469_v34  ;;  %v2114_v28 = vmul.f32 0.7978846, %v1986_v62  ;;  %v1988_v39 = vadd.f32 %v1860_v15, %v1340_v13  ;;  %v1605_v32 = vmul.f32 0.044715, %v5451_v50 }
 0x32f   : > { %v3244_v9 = vpack.c.bf16 %v2491_v42, %v2490_v11  ;;  %v1472_v27 = vmul.f32 0.5, %v5394_v46  ;;  %v1471_v4 = vmul.f32 0.5, %v5408_v17  ;;  %v1987_v25 = vadd.f32 %v1859_v7, %v5437_v30 }
 0x330   : > { %v3594_v41 = vpop.eup %3593  ;;  %v3245_v48 = vpack.c.bf16 %v2493_v51, %v2492_v21  ;;  %3599 = vtanh.f32 %v2114_v28  ;;  %v2116_v53 = vmul.f32 0.7978846, %v1988_v39  ;;  %v1733_v43 = vmul.f32 %v1605_v32, %v5451_v50 }
 0x331   : > { %2956 = vst [vmem:[%s4397_s13 + $0x170] sm:$0xff] %v3244_v9  ;;  %v2366_v22 = vadd.f32 1.0, %v3592_v59  ;;  %v1473_v60 = vmul.f32 0.5, %v5419_v35  ;;  %v2115_v29 = vmul.f32 0.7978846, %v1987_v25  ;;  %v5472_v17 = vadd.f32 %v5090_v61, %v4251_v55  ;;  %v5762_v35 = vld [vmem:[#allocation6_spill] sm:$0xff] }
 0x332   : > { %v1606_v49 = vmul.f32 0.044715, %v5458_v16  ;;  %2957 = vst [vmem:[%s4397_s13 + $0x178] sm:$0xff] %v3245_v48  ;;  %3601 = vtanh.f32 %v2116_v53  ;;  %v1861_v46 = vmul.f32 %v1733_v43, %v5451_v50  ;;  %v5476_v34 = vadd.f32 %v5093_v20, %v4253_v36 }
 0x333   : > { %v2368_v52 = vadd.f32 1.0, %v3594_v41  ;;  %3603 = vtanh.f32 %v2115_v29  ;;  %v5481_v57 = vadd.f32 %v5762_v35, %v4255_v0  ;;  %v1474_v11 = vmul.f32 0.5, %v5424_v23 }
 0x334   : > { %v1734_v31 = vmul.f32 %v1606_v49, %v5458_v16  ;;  %v1476_v19 = vmul.f32 0.5, %v1340_v13  ;;  %v1989_v2 = vadd.f32 %v1861_v46, %v5451_v50  ;;  %v1608_v61 = vmul.f32 0.044715, %v5472_v17 }
 0x335   : > { %v3596_v24 = vpop.eup %3595  ;;  %v2494_v12 = vmul.f32 %v2366_v22, %v1470_v5  ;;  %v1607_v47 = vmul.f32 0.044715, %v5476_v34  ;;  %v1609_v3 = vmul.f32 0.044715, %v5481_v57  ;;  %v5492_v23 = vadd.f32 %v5098_v33, %v4249_v26 }
 0x336   : > { %v1862_v20 = vmul.f32 %v1734_v31, %v5458_v16  ;;  %v2367_v54 = vadd.f32 1.0, %v3596_v24  ;;  %v2117_v38 = vmul.f32 0.7978846, %v1989_v2  ;;  %v1736_v56 = vmul.f32 %v1608_v61, %v5472_v17  ;;  %v5764_v2 = vld [vmem:[#allocation8_spill] sm:$0xff] }
 0x337   : > { %v3598_v13 = vpop.eup %3597  ;;  %v2496_v44 = vmul.f32 %v2368_v52, %v1472_v27  ;;  %v1735_v5 = vmul.f32 %v1607_v47, %v5476_v34  ;;  %v1737_v14 = vmul.f32 %v1609_v3, %v5481_v57  ;;  %v5502_v7 = vadd.f32 %v5100_v8, %v4251_v55 }
 0x338   : > { %v1990_v6 = vadd.f32 %v1862_v20, %v5458_v16  ;;  %v2495_v21 = vmul.f32 %v2367_v54, %v1471_v4  ;;  %v2369_v40 = vadd.f32 1.0, %v3598_v13  ;;  %3605 = vtanh.f32 %v2117_v38 }
 0x339   : > { %v1864_v62 = vmul.f32 %v1736_v56, %v5472_v17  ;;  %v1863_v42 = vmul.f32 %v1735_v5, %v5476_v34  ;;  %v1865_v33 = vmul.f32 %v1737_v14, %v5481_v57  ;;  %v1610_v39 = vmul.f32 0.044715, %v5492_v23 }
 0x33a   : > { %v2118_v15 = vmul.f32 0.7978846, %v1990_v6  ;;  %v3600_v1 = vpop.eup %3599  ;;  %v3246_v59 = vpack.c.bf16 %v2495_v21, %v2494_v12  ;;  %v2497_v51 = vmul.f32 %v2369_v40, %v1473_v60  ;;  %v1475_v8 = vmul.f32 0.5, %v5437_v30  ;;  %v5763_v30 = vld [vmem:[#allocation7_spill] sm:$0xff] }
 0x33b   : > { %v1992_v28 = vadd.f32 %v1864_v62, %v5472_v17  ;;  %v2370_v32 = vadd.f32 1.0, %v3600_v1  ;;  %v1991_v9 = vadd.f32 %v1863_v42, %v5476_v34  ;;  %v1993_v27 = vadd.f32 %v1865_v33, %v5481_v57 }
 0x33c   : > { %3607 = vtanh.f32 %v2118_v15  ;;  %v3602_v4 = vpop.eup %3601  ;;  %2958 = vst [vmem:[%s4397_s13 + $0x180] sm:$0xff] %v3246_v59  ;;  %v3247_v25 = vpack.c.bf16 %v2497_v51, %v2496_v44  ;;  %v1738_v48 = vmul.f32 %v1610_v39, %v5492_v23  ;;  %v1612_v52 = vmul.f32 0.044715, %v5502_v7 }
 0x33d   : > { %v2120_v41 = vmul.f32 0.7978846, %v1992_v28  ;;  %v3604_v53 = vpop.eup %3603  ;;  %v2498_v43 = vmul.f32 %v2370_v32, %v1474_v11  ;;  %v2372_v22 = vadd.f32 1.0, %v3602_v4  ;;  %v2119_v60 = vmul.f32 0.7978846, %v1991_v9 }
 0x33e   : > { %v2121_v29 = vmul.f32 0.7978846, %v1993_v27  ;;  %2959 = vst [vmem:[%s4397_s13 + $0x188] sm:$0xff] %v3247_v25  ;;  %v2371_v49 = vadd.f32 1.0, %v3604_v53  ;;  %v1866_v46 = vmul.f32 %v1738_v48, %v5492_v23  ;;  %v1477_v31 = vmul.f32 0.5, %v5451_v50  ;;  %v5766_v27 = vld [vmem:[#allocation10_spill] sm:$0xff] }
 0x33f   : > { %3609 = vtanh.f32 %v2120_v41  ;;  %v5517_v35 = vadd.f32 %v5763_v30, %v4253_v36  ;;  %v5521_v11 = vadd.f32 %v5764_v2, %v4255_v0  ;;  %v1740_v12 = vmul.f32 %v1612_v52, %v5502_v7  ;;  %v5767_v2 = vld [vmem:[#allocation11_spill] sm:$0xff] }
 0x340   : > { %3611 = vtanh.f32 %v2119_v60  ;;  %v2499_v61 = vmul.f32 %v2371_v49, %v1475_v8  ;;  %v1994_v24 = vadd.f32 %v1866_v46, %v5492_v23  ;;  %v2500_v20 = vmul.f32 %v2372_v22, %v1476_v19 }
 0x341   : > { %3613 = vtanh.f32 %v2121_v29  ;;  %v1478_v47 = vmul.f32 0.5, %v5458_v16  ;;  %v1611_v50 = vmul.f32 0.044715, %v5517_v35  ;;  %v1613_v3 = vmul.f32 0.044715, %v5521_v11  ;;  %v5765_v16 = vld [vmem:[#allocation9_spill] sm:$0xff] }
 0x342   : > { %v3606_v54 = vpop.eup %3605  ;;  %v3248_v38 = vpack.c.bf16 %v2499_v61, %v2498_v43  ;;  %v2122_v56 = vmul.f32 0.7978846, %v1994_v24  ;;  %v1868_v13 = vmul.f32 %v1740_v12, %v5502_v7  ;;  %v5531_v44 = vadd.f32 %v5126_v10, %v4249_v26 }
 0x343   : > { %v2373_v6 = vadd.f32 1.0, %v3606_v54  ;;  %v1739_v5 = vmul.f32 %v1611_v50, %v5517_v35  ;;  %v1741_v19 = vmul.f32 %v1613_v3, %v5521_v11  ;;  %v5537_v14 = vadd.f32 %v5765_v16, %v4251_v55 }
 0x344   : > { %2960 = vst [vmem:[%s4397_s13 + $0x190] sm:$0xff] %v3248_v38  ;;  %v1480_v21 = vmul.f32 0.5, %v5472_v17  ;;  %3615 = vtanh.f32 %v2122_v56  ;;  %v1996_v40 = vadd.f32 %v1868_v13, %v5502_v7  ;;  %v1614_v62 = vmul.f32 0.044715, %v5531_v44 }
 0x345   : > { %v2501_v10 = vmul.f32 %v2373_v6, %v1477_v31  ;;  %v1479_v42 = vmul.f32 0.5, %v5476_v34  ;;  %v1867_v33 = vmul.f32 %v1739_v5, %v5517_v35  ;;  %v1869_v1 = vmul.f32 %v1741_v19, %v5521_v11  ;;  %v5768_v6 = vld [vmem:[#allocation12_spill] sm:$0xff] }
 0x346   : > { %v3608_v15 = vpop.eup %3607  ;;  %v2124_v51 = vmul.f32 0.7978846, %v1996_v40  ;;  %v1742_v28 = vmul.f32 %v1614_v62, %v5531_v44  ;;  %v1616_v17 = vmul.f32 0.044715, %v5537_v14  ;;  %v5552_v4 = vadd.f32 %v5766_v27, %v4253_v36 }
 0x347   : > { %v2374_v59 = vadd.f32 1.0, %v3608_v15  ;;  %v3249_v39 = vpack.c.bf16 %v2501_v10, %v2500_v20  ;;  %v1995_v32 = vadd.f32 %v1867_v33, %v5517_v35  ;;  %v1997_v9 = vadd.f32 %v1869_v1, %v5521_v11  ;;  %v5769_v15 = vld [vmem:[#allocation13_spill] sm:$0xff]  ;;  %v5770_v1 = vld [vmem:[#allocation14_spill] sm:$0xff] }
 0x348   : > { %v1481_v25 = vmul.f32 0.5, %v5481_v57  ;;  %3617 = vtanh.f32 %v2124_v51  ;;  %v1870_v8 = vmul.f32 %v1742_v28, %v5531_v44  ;;  %v1744_v41 = vmul.f32 %v1616_v17, %v5537_v14 }
 0x349   : > { %v3610_v34 = vpop.eup %3609  ;;  %2961 = vst [vmem:[%s4397_s13 + $0x198] sm:$0xff] %v3249_v39  ;;  %v2502_v53 = vmul.f32 %v2374_v59, %v1478_v47  ;;  %v2123_v22 = vmul.f32 0.7978846, %v1995_v32  ;;  %v2125_v60 = vmul.f32 0.7978846, %v1997_v9  ;;  %v5563_v61 = vadd.f32 %v5767_v2, %v4255_v0  ;;  %v5771_v32 = vld [vmem:[#allocation15_spill] sm:$0xff] }
 0x34a   : > { %v3612_v48 = vpop.eup %3611  ;;  %v2376_v43 = vadd.f32 1.0, %v3610_v34  ;;  %v1998_v46 = vadd.f32 %v1870_v8, %v5531_v44  ;;  %v1872_v52 = vmul.f32 %v1744_v41, %v5537_v14  ;;  %v1615_v31 = vmul.f32 0.044715, %v5552_v4 }
 0x34b   : > { %v3614_v29 = vpop.eup %3613  ;;  %v2375_v49 = vadd.f32 1.0, %v3612_v48  ;;  %3619 = vtanh.f32 %v2123_v22  ;;  %v1482_v50 = vmul.f32 0.5, %v5492_v23  ;;  %v1617_v54 = vmul.f32 0.044715, %v5563_v61 }
 0x34c   : > { %v2504_v57 = vmul.f32 %v2376_v43, %v1480_v21  ;;  %v2377_v30 = vadd.f32 1.0, %v3614_v29  ;;  %3621 = vtanh.f32 %v2125_v60  ;;  %v2126_v12 = vmul.f32 0.7978846, %v1998_v46 }
 0x34d   : > { %v2503_v24 = vmul.f32 %v2375_v49, %v1479_v42  ;;  %v2000_v20 = vadd.f32 %v1872_v52, %v5537_v14  ;;  %v1743_v3 = vmul.f32 %v1615_v31, %v5552_v4  ;;  %v5571_v5 = vadd.f32 %v5768_v6, %v4249_v26 }
 0x34e   : > { %v2505_v47 = vmul.f32 %v2377_v30, %v1481_v25  ;;  %v3616_v38 = vpop.eup %3615  ;;  %3623 = vtanh.f32 %v2126_v12  ;;  %v1484_v16 = vmul.f32 0.5, %v5502_v7  ;;  %v1745_v23 = vmul.f32 %v1617_v54, %v5563_v61 }
 0x34f   : > { %v3250_v56 = vpack.c.bf16 %v2503_v24, %v2502_v53  ;;  %v2128_v13 = vmul.f32 0.7978846, %v2000_v20  ;;  %v1871_v21 = vmul.f32 %v1743_v3, %v5552_v4  ;;  %v2378_v40 = vadd.f32 1.0, %v3616_v38 }
 0x350   : > { %v3251_v19 = vpack.c.bf16 %v2505_v47, %v2504_v57  ;;  %v1618_v62 = vmul.f32 0.044715, %v5571_v5  ;;  %v5580_v10 = vadd.f32 %v5769_v15, %v4251_v55  ;;  %v1483_v42 = vmul.f32 0.5, %v5517_v35 }
 0x351   : > { %2962 = vst [vmem:[%s4397_s13 + $0x1a0] sm:$0xff] %v3250_v56  ;;  %3625 = vtanh.f32 %v2128_v13  ;;  %v1999_v33 = vadd.f32 %v1871_v21, %v5552_v4  ;;  %v1873_v7 = vmul.f32 %v1745_v23, %v5563_v61  ;;  %v5588_v59 = vadd.f32 %v5770_v1, %v4253_v36 }
 0x352   : > { %2963 = vst [vmem:[%s4397_s13 + $0x1a8] sm:$0xff] %v3251_v19  ;;  %v3618_v51 = vpop.eup %3617  ;;  %v1485_v28 = vmul.f32 0.5, %v5521_v11  ;;  %v1746_v17 = vmul.f32 %v1618_v62, %v5571_v5  ;;  %v1620_v39 = vmul.f32 0.044715, %v5580_v10  ;;  %v5595_v9 = vadd.f32 %v5771_v32, %v4255_v0 }
 0x353   : > { %v2380_v35 = vadd.f32 1.0, %v3618_v51  ;;  %v1486_v27 = vmul.f32 0.5, %v5531_v44  ;;  %v2127_v34 = vmul.f32 0.7978846, %v1999_v33  ;;  %v2001_v25 = vadd.f32 %v1873_v7, %v5563_v61 }
 0x354   : > { %v2506_v8 = vmul.f32 %v2378_v40, %v1482_v50  ;;  %v1874_v41 = vmul.f32 %v1746_v17, %v5571_v5  ;;  %v1748_v48 = vmul.f32 %v1620_v39, %v5580_v10  ;;  %v1619_v11 = vmul.f32 0.044715, %v5588_v59 }
 0x355   : > { %v3620_v53 = vpop.eup %3619  ;;  %v2508_v43 = vmul.f32 %v2380_v35, %v1484_v16  ;;  %3627 = vtanh.f32 %v2127_v34  ;;  %v2129_v22 = vmul.f32 0.7978846, %v2001_v25  ;;  %v1621_v60 = vmul.f32 0.044715, %v5595_v9 }
 0x356   : > { %v3622_v29 = vpop.eup %3621  ;;  %v2379_v49 = vadd.f32 1.0, %v3620_v53  ;;  %v2002_v44 = vadd.f32 %v1874_v41, %v5571_v5  ;;  %v1876_v46 = vmul.f32 %v1748_v48, %v5580_v10  ;;  %v1747_v52 = vmul.f32 %v1619_v11, %v5588_v59 }
 0x357   : > { %v2381_v31 = vadd.f32 1.0, %v3622_v29  ;;  %3629 = vtanh.f32 %v2129_v22  ;;  %v1749_v57 = vmul.f32 %v1621_v60, %v5595_v9  ;;  %v5609_v30 = vadd.f32 %v5179_v63, %v4249_v26 }
 0x358   : > { %v3624_v2 = vpop.eup %3623  ;;  %v2507_v24 = vmul.f32 %v2379_v49, %v1483_v42  ;;  %v2130_v12 = vmul.f32 0.7978846, %v2002_v44  ;;  %v2004_v20 = vadd.f32 %v1876_v46, %v5580_v10  ;;  %v1875_v47 = vmul.f32 %v1747_v52, %v5588_v59 }
 0x359   : > { %v2509_v50 = vmul.f32 %v2381_v31, %v1485_v28  ;;  %v1488_v3 = vmul.f32 0.5, %v5537_v14  ;;  %v1487_v54 = vmul.f32 0.5, %v5552_v4  ;;  %v1877_v38 = vmul.f32 %v1749_v57, %v5595_v9 }
 0x35a   : > { %v3252_v13 = vpack.c.bf16 %v2507_v24, %v2506_v8  ;;  %3631 = vtanh.f32 %v2130_v12  ;;  %v2132_v63 = vmul.f32 0.7978846, %v2004_v20  ;;  %v2003_v6 = vadd.f32 %v1875_v47, %v5588_v59 }
 0x35b   : > { %v3626_v56 = vpop.eup %3625  ;;  %v3253_v19 = vpack.c.bf16 %v2509_v50, %v2508_v43  ;;  %v2382_v16 = vadd.f32 1.0, %v3624_v2  ;;  %v1489_v21 = vmul.f32 0.5, %v5563_v61  ;;  %v2005_v23 = vadd.f32 %v1877_v38, %v5595_v9  ;;  %v5772_v61 = vld [vmem:[#allocation18_spill] sm:$0xff] }
 0x35c   : > { %2964 = vst [vmem:[%s4397_s13 + $0x1b0] sm:$0xff] %v3252_v13  ;;  %3633 = vtanh.f32 %v2132_v63  ;;  %v2131_v14 = vmul.f32 0.7978846, %v2003_v6  ;;  %v1622_v4 = vmul.f32 0.044715, %v5609_v30  ;;  %v5623_v40 = vadd.f32 %v5181_v58, %v4251_v55 }
 0x35d   : > { %2965 = vst [vmem:[%s4397_s13 + $0x1b8] sm:$0xff] %v3253_v19  ;;  %v2384_v62 = vadd.f32 1.0, %v3626_v56  ;;  %v2133_v15 = vmul.f32 0.7978846, %v2005_v23  ;;  %v5628_v42 = vadd.f32 %v5186_v45, %v4253_v36  ;;  %v5632_v33 = vadd.f32 %v5772_v61, %v4255_v0 }
 0x35e   : > { %v1490_v7 = vmul.f32 0.5, %v5571_v5  ;;  %3635 = vtanh.f32 %v2131_v14  ;;  %v1750_v1 = vmul.f32 %v1622_v4, %v5609_v30  ;;  %v1624_v51 = vmul.f32 0.044715, %v5623_v40  ;;  %v5774_v4 = vld [vmem:[#allocation20_spill] sm:$0xff] }
 0x35f   : > { %v3628_v58 = vpop.eup %3627  ;;  %v2510_v28 = vmul.f32 %v2382_v16, %v1486_v27  ;;  %v1492_v17 = vmul.f32 0.5, %v5580_v10  ;;  %3637 = vtanh.f32 %v2133_v15  ;;  %v1623_v39 = vmul.f32 0.044715, %v5628_v42 }
 0x360   : > { %v2383_v45 = vadd.f32 1.0, %v3628_v58  ;;  %v1878_v32 = vmul.f32 %v1750_v1, %v5609_v30  ;;  %v1752_v35 = vmul.f32 %v1624_v51, %v5623_v40  ;;  %v1625_v34 = vmul.f32 0.044715, %v5632_v33 }
 0x361   : > { %v3630_v5 = vpop.eup %3629  ;;  %v2512_v25 = vmul.f32 %v2384_v62, %v1488_v3  ;;  %v1491_v8 = vmul.f32 0.5, %v5588_v59  ;;  %v1751_v41 = vmul.f32 %v1623_v39, %v5628_v42  ;;  %v5646_v27 = vadd.f32 %v5192_v37, %v4249_v26 }
 0x362   : > { %v2511_v10 = vmul.f32 %v2383_v45, %v1487_v54  ;;  %v2385_v48 = vadd.f32 1.0, %v3630_v5  ;;  %v2006_v11 = vadd.f32 %v1878_v32, %v5609_v30  ;;  %v1880_v53 = vmul.f32 %v1752_v35, %v5623_v40 }
 0x363   : > { %v1879_v43 = vmul.f32 %v1751_v41, %v5628_v42  ;;  %v1753_v22 = vmul.f32 %v1625_v34, %v5632_v33  ;;  %v1626_v60 = vmul.f32 0.044715, %v5646_v27  ;;  %v5655_v59 = vadd.f32 %v5194_v18, %v4251_v55  ;;  %v5773_v18 = vld [vmem:[#allocation19_spill] sm:$0xff] }
 0x364   : > { %v3632_v29 = vpop.eup %3631  ;;  %v3254_v26 = vpack.c.bf16 %v2511_v10, %v2510_v28  ;;  %v2513_v37 = vmul.f32 %v2385_v48, %v1489_v21  ;;  %v2134_v49 = vmul.f32 0.7978846, %v2006_v11  ;;  %v2008_v44 = vadd.f32 %v1880_v53, %v5623_v40 }
 0x365   : > { %v2386_v46 = vadd.f32 1.0, %v3632_v29  ;;  %v2007_v52 = vadd.f32 %v1879_v43, %v5628_v42  ;;  %v1881_v31 = vmul.f32 %v1753_v22, %v5632_v33  ;;  %v1754_v57 = vmul.f32 %v1626_v60, %v5646_v27 }
 0x366   : > { %v3634_v2 = vpop.eup %3633  ;;  %2966 = vst [vmem:[%s4397_s13 + $0x1c0] sm:$0xff] %v3254_v26  ;;  %v3255_v24 = vpack.c.bf16 %v2513_v37, %v2512_v25  ;;  %3639 = vtanh.f32 %v2134_v49  ;;  %v2136_v55 = vmul.f32 0.7978846, %v2008_v44  ;;  %v5664_v12 = vadd.f32 %v5773_v18, %v4253_v36 }
 0x367   : > { %v2388_v20 = vadd.f32 1.0, %v3634_v2  ;;  %v1493_v47 = vmul.f32 0.5, %v5595_v9  ;;  %v2135_v50 = vmul.f32 0.7978846, %v2007_v52  ;;  %v2009_v3 = vadd.f32 %v1881_v31, %v5632_v33 }
 0x368   : > { %v3636_v54 = vpop.eup %3635  ;;  %2967 = vst [vmem:[%s4397_s13 + $0x1c8] sm:$0xff] %v3255_v24  ;;  %v2514_v38 = vmul.f32 %v2386_v46, %v1490_v7  ;;  %3641 = vtanh.f32 %v2136_v55  ;;  %v1882_v56 = vmul.f32 %v1754_v57, %v5646_v27  ;;  %v1628_v13 = vmul.f32 0.044715, %v5655_v59 }
 0x369   : > { %v3638_v63 = vpop.eup %3637  ;;  %v2516_v6 = vmul.f32 %v2388_v20, %v1492_v17  ;;  %v2387_v19 = vadd.f32 1.0, %v3636_v54  ;;  %3643 = vtanh.f32 %v2135_v50  ;;  %v2137_v36 = vmul.f32 0.7978846, %v2009_v3 }
 0x36a   : > { %v2389_v16 = vadd.f32 1.0, %v3638_v63  ;;  %v2010_v21 = vadd.f32 %v1882_v56, %v5646_v27  ;;  %v1756_v9 = vmul.f32 %v1628_v13, %v5655_v59  ;;  %v1627_v23 = vmul.f32 0.044715, %v5664_v12 }
 0x36b   : > { %v2515_v14 = vmul.f32 %v2387_v19, %v1491_v8  ;;  %3645 = vtanh.f32 %v2137_v36  ;;  %v1372_v62 = vadd.f32 %v5774_v4, %v4255_v0  ;;  %v1494_v8 = vmul.f32 0.5, %v5609_v30 }
 0x36c   : > { %v2517_v15 = vmul.f32 %v2389_v16, %v1493_v47  ;;  %v2138_v61 = vmul.f32 0.7978846, %v2010_v21  ;;  %v1884_v7 = vmul.f32 %v1756_v9, %v5655_v59  ;;  %v1755_v1 = vmul.f32 %v1627_v23, %v5664_v12 }
 0x36d   : > { %v3256_v51 = vpack.c.bf16 %v2515_v14, %v2514_v38  ;;  %v1629_v58 = vmul.f32 0.044715, %v1372_v62  ;;  %v1496_v48 = vmul.f32 0.5, %v5623_v40  ;;  %v1495_v22 = vmul.f32 0.5, %v5628_v42 }
 0x36e   : > { %v3257_v28 = vpack.c.bf16 %v2517_v15, %v2516_v6  ;;  %3647 = vtanh.f32 %v2138_v61  ;;  %v2012_v17 = vadd.f32 %v1884_v7, %v5655_v59  ;;  %v1883_v39 = vmul.f32 %v1755_v1, %v5664_v12 }
 0x36f   : > { %2968 = vst [vmem:[%s4397_s13 + $0x1d0] sm:$0xff] %v3256_v51  ;;  %v1757_v45 = vmul.f32 %v1629_v58, %v1372_v62  ;;  %v1497_v30 = vmul.f32 0.5, %v5632_v33  ;;  %v1498_v42 = vmul.f32 0.5, %v5646_v27  ;;  %v1499_v20 = vmul.f32 0.5, %v5664_v12 }
 0x370   : > { %v3640_v32 = vpop.eup %3639  ;;  %2969 = vst [vmem:[%s4397_s13 + $0x1d8] sm:$0xff] %v3257_v28  ;;  %v2140_v35 = vmul.f32 0.7978846, %v2012_v17  ;;  %v2011_v0 = vadd.f32 %v1883_v39, %v5664_v12  ;;  %v1500_v47 = vmul.f32 0.5, %v5655_v59  ;;  %v1501_v38 = vmul.f32 0.5, %v1372_v62 }
 0x371   : > { %v2390_v34 = vadd.f32 1.0, %v3640_v32  ;;  %v1885_v5 = vmul.f32 %v1757_v45, %v1372_v62 }
 0x372   : > { %v3642_v25 = vpop.eup %3641  ;;  %3649 = vtanh.f32 %v2140_v35  ;;  %v2139_v41 = vmul.f32 0.7978846, %v2011_v0 }
 0x373   : > { %v3644_v10 = vpop.eup %3643  ;;  %v2392_v11 = vadd.f32 1.0, %v3642_v25  ;;  %v2013_v53 = vadd.f32 %v1885_v5, %v1372_v62  ;;  %v2518_v43 = vmul.f32 %v2390_v34, %v1494_v8 }
 0x374   : > { %v2391_v60 = vadd.f32 1.0, %v3644_v10  ;;  %3651 = vtanh.f32 %v2139_v41 }
 0x375   : > { %v3646_v29 = vpop.eup %3645  ;;  %v2141_v26 = vmul.f32 0.7978846, %v2013_v53  ;;  %v2520_v37 = vmul.f32 %v2392_v11, %v1496_v48 }
 0x376   : > { %v2519_v49 = vmul.f32 %v2391_v60, %v1495_v22  ;;  %v2393_v44 = vadd.f32 1.0, %v3646_v29 }
 0x377   : > { %3653 = vtanh.f32 %v2141_v26 }
 0x378   : > { %v3648_v46 = vpop.eup %3647  ;;  %v3258_v52 = vpack.c.bf16 %v2519_v49, %v2518_v43  ;;  %v2521_v40 = vmul.f32 %v2393_v44, %v1497_v30 }
 0x379   : > { %v2394_v57 = vadd.f32 1.0, %v3648_v46 }
 0x37a   : > { %2970 = vst [vmem:[%s4397_s13 + $0x1e0] sm:$0xff] %v3258_v52  ;;  %v3259_v31 = vpack.c.bf16 %v2521_v40, %v2520_v37 }
 0x37b   : > { %v2522_v18 = vmul.f32 %v2394_v57, %v1498_v42 }
 0x37c   : > { %v3650_v2 = vpop.eup %3649  ;;  %2971 = vst [vmem:[%s4397_s13 + $0x1e8] sm:$0xff] %v3259_v31 }
 0x37d   : > { %v2396_v55 = vadd.f32 1.0, %v3650_v2 }
 0x37e   : > { %v3652_v24 = vpop.eup %3651 }
 0x37f   : > { %v2395_v33 = vadd.f32 1.0, %v3652_v24  ;;  %v2524_v54 = vmul.f32 %v2396_v55, %v1500_v47 }
 0x381   : > { %v3654_v50 = vpop.eup %3653  ;;  %v2523_v3 = vmul.f32 %v2395_v33, %v1499_v20 }
 0x382   : > { %v2397_v56 = vadd.f32 1.0, %v3654_v50 }
 0x383   : > { %v3260_v13 = vpack.c.bf16 %v2523_v3, %v2522_v18 }
 0x384   : > { %v2525_v63 = vmul.f32 %v2397_v56, %v1501_v38 }
 0x385   : > { %2972 = vst [vmem:[%s4397_s13 + $0x1f0] sm:$0xff] %v3260_v13 }
 0x386   : > { %v3261_v6 = vpack.c.bf16 %v2525_v63, %v2524_v54 }
 0x388   : > { %2973 = vst [vmem:[%s4397_s13 + $0x1f8] sm:$0xff] %v3261_v6 }
 0x389 PF: > { %s15_s20 = sadd.s32 1, %s3677_s20   ;;  %s5775_s18 = smov %s3673_s19 }
 0x38a   : > { %p12_p5 = scmp.ge.s32.totalorder %s15_s20, 4   ;;  %s5776_s19 = smov %s5778_s21 }
 0x38c   :  { %14 = sbr.rel (!%p12_p5) target bundleno = 2 (0x2), region = 76 }

// kernel: gpt_forward.21
= control target key start
LH: loop header
LB: loop body
LE: loop exit
PB: predicated region body
PF: predicated region fallthrough
CT: control target
= control target key end

     0   :  { %9 = vsyncpa [#allocation3], 0  ;;  %s2618_s0 = inlined_call_operand.vmem [shape: f32[512,128], index: 0, kind: input, shape index: {}]   ;;  %s2619_s1 = inlined_call_operand.vmem [shape: f32[1,128], index: 1, kind: input, shape index: {}]   ;;  %s2620_s2 = inlined_call_operand.vmem [shape: f32[1,128], index: 2, kind: input, shape index: {}]   ;;  %s2621_s3 = inlined_call_operand.vmem [shape: bf16[128,512], index: 3, kind: input, shape index: {}]   ;;  %s2622_s4 = inlined_call_operand.hbm [shape: f32[512,512], index: 4, kind: output, shape index: {}]  }
   0x1   :  { %11 = vsyncpa [#allocation3 + $0x1], 0  ;;  %s1857_s15 = smov 0   ;;  %s1859_s16 = smov 0  }
   0x2   :  { %s1861_s17 = smov 0   ;;  %s1863_s18 = smov 0  }
   0x3   :  { %s1865_s19 = smov 0   ;;  %s1867_s20 = smov 0  }
   0x4 LB: > { %s1527_s21 = sadd.s32 4294967295, %s1826_s20   ;;  %s1528_s22 = sadd.s32 4294967294, %s1826_s20   ;;  %s1826_s20 = sphi %s1867_s20, %s17_s20   ;;  %s1822_s19 = sphi %s1865_s19, %s2629_s19   ;;  %s1818_s18 = sphi %s1863_s18, %s2628_s18   ;;  %s1814_s17 = sphi %s1861_s17, %s2627_s17   ;;  %s1810_s16 = sphi %s1859_s16, %s2626_s16   ;;  %s1806_s15 = sphi %s1857_s15, %s2625_s15  }
   0x5   : > { %s29_s23 = sadd.s32 1, %s1822_s19  ;;  %s132_s24 = sadd.s32 1, %s1814_s17 }
   0x6   : > { %p31_p0 = scmp.ge.s32.totalorder %s29_s23, 2  ;;  %p142_p1 = scmp.ne.s32.totalorder %s1814_s17, %s1810_s16 }
   0x7   : > { %p143_p2 = scmp.eq.s32.totalorder %s1527_s21, 1  ;;  %p148_p3 = scmp.ne.s32.totalorder %s1810_s16, %s1806_s15 }
   0x8   : > { %s2631_s23 = smov (%p31_p0, %s29_s23), 0  ;;  %p149_p5 = scmp.eq.s32.totalorder %s1528_s22, 1 }
   0x9   : > { %p1897_p4 = por %p143_p2, %p142_p1  ;;  %s127_s26 = ssub.s32 %s1822_s19, %s2631_s23 }
   0xa   : > { %p1532_p6 = scmp.ge.s32.totalorder %s1826_s20, 1  ;;  %p130_p7 = scmp.eq.s32.totalorder %s127_s26, 0 }
   0xb   : > { %p1904_p8 = por %p149_p5, %p148_p3  ;;  %p191_p9 = scmp.lt.s32.totalorder %s1826_s20, 3 }
   0xc   : > { %s1910_s28 = scalar_select %p130_p7, %s1814_s17, %s132_s24  }
   0xd   : > { %p192_p10 = pnand %p1532_p6, %p191_p9 }
   0xe   : > { %s1534_s29 = sshll.u32 (!%p192_p10), %s1818_s18, 5  ;;  %v1636_v20 = vld [vmem:[%s2621_s3 + $0x4] ss:$16 sps:$4 sm:$0xff] (!%p192_p10)   ;;  %v1638_v21 = vld [vmem:[%s2621_s3 + $0xc] ss:$16 sps:$4 sm:$0xff] (!%p192_p10)   ;;  %s219_s21 = sand.u32 (!%p192_p10), 1, %s1810_s16  }
   0xf   : > { %195 = sbr.rel (%p192_p10) target bundleno = 765 (0x2fd), region = 36  ;;  %p223_p11 = scmp.lt.s32.totalorder (!%p192_p10), %s1534_s29, 63  ;;  %v1640_v22 = vld [vmem:[%s2621_s3] ss:$16 sps:$4 sm:$0xff] (!%p192_p10)   ;;  %v1641_v23 = vld [vmem:[%s2621_s3 + $0x8] ss:$16 sps:$4 sm:$0xff] (!%p192_p10)   ;;  %908 = vmatprep.subr.bf16.mxu0 (!%p192_p10), %v1636_v20  ;;  %1101 = vmatprep.subr.bf16.mxu1 (!%p192_p10), %v1638_v21 }
  0x10   : > { %v1642_v24 = vld [vmem:[%s2621_s3 + $0x24] ss:$16 sps:$4 sm:$0xff] (!%p192_p10)   ;;  %v1644_v25 = vld [vmem:[%s2621_s3 + $0x2c] ss:$16 sps:$4 sm:$0xff] (!%p192_p10)   ;;  %909 = vmatpush1.bf16.msra.mxu0 (!%p192_p10), %v1640_v22  ;;  %1102 = vmatpush1.bf16.msra.mxu1 (!%p192_p10), %v1641_v23  ;;  %v1646_v54 = vld [vmem:[%s2621_s3 + $0x20] ss:$16 sps:$4 sm:$0xff] (!%p192_p10)  }
  0x11   : > { %910 = vmatprep.subr.bf16.mxu0 (!%p192_p10), %v1642_v24  ;;  %1103 = vmatprep.subr.bf16.mxu1 (!%p192_p10), %v1644_v25  ;;  %v1647_v55 = vld [vmem:[%s2621_s3 + $0x28] ss:$16 sps:$4 sm:$0xff] (!%p192_p10)   ;;  %v1648_v58 = vld [vmem:[%s2621_s3 + $0x44] ss:$16 sps:$4 sm:$0xff] (!%p192_p10)   ;;  %v1650_v59 = vld [vmem:[%s2621_s3 + $0x4c] ss:$16 sps:$4 sm:$0xff] (!%p192_p10)  }
  0x12   : > { %v1652_v63 = vld [vmem:[%s2621_s3 + $0x40] ss:$16 sps:$4 sm:$0xff] (!%p192_p10)   ;;  %v1659_v22 = vld [vmem:[%s2621_s3 + $0x68] ss:$16 sps:$4 sm:$0xff] (!%p192_p10)   ;;  %v1660_v25 = vld [vmem:[%s2621_s3 + $0x84] ss:$16 sps:$4 sm:$0xff] (!%p192_p10)  }
  0x13   : > { %v1658_v21 = vld [vmem:[%s2621_s3 + $0x60] ss:$16 sps:$4 sm:$0xff] (!%p192_p10)   ;;  %s1533_s22 = sshll.u32 (!%p192_p10), %s219_s21, 10  ;;  %s1577_s26 = sshll.u32 (!%p192_p10), %s1818_s18, 14 }
  0x14   : > { %911 = vmatpush1.bf16.msra.mxu0 (!%p192_p10), %v1646_v54  ;;  %1104 = vmatpush1.bf16.msra.mxu1 (!%p192_p10), %v1647_v55  ;;  %s2431_s24 = scalar_lea.vmem (!%p192_p10), [#allocation2], %s1533_s22  ;;  %s2560_s6 = scalar_lea.hbm (!%p192_p10), %s2622_s4, %s1577_s26 }
  0x15   : > { %912 = vmatprep.subr.bf16.mxu0 (!%p192_p10), %v1648_v58  ;;  %1105 = vmatprep.subr.bf16.mxu1 (!%p192_p10), %v1650_v59  ;;  %v1677_v58 = vld [vmem:[%s2621_s3 + $0xc8] ss:$16 sps:$4 sm:$0xff] (!%p192_p10)   ;;  %s2572_s18 = scalar_lea.sflag (!%p192_p10), [#allocation3], %s219_s21  ;;  %s1829_s9 = smov (!%p192_p10), [#allocation2]  }
  0x16   : > { %s2633_s29 = smov (!%p223_p11, %s1534_s29), 63  ;;  %s1752_s10 = sshll.u32 %s1829_s9, 4  ;;  %s1753_s10 = int_to_ptr.vmem [resolvable:$false] %s1752_s10 }
  0x17   : > { %s1535_s30 = sshll.u32 %s2633_s29, 3  ;;  %s1439_s29 = sshll.u32 %s2431_s24, 4  ;;  %s2562_s29 = int_to_ptr.vmem [resolvable:$true] %s1439_s29 }
  0x18   : > { %s1916_s7 = scalar_lea.vmem %s2618_s0, %s1535_s30  ;;  %913 = vmatpush1.bf16.msra.mxu0 %v1652_v63  ;;  %s1748_s8 = scalar_lea.vmem %s2562_s29, 16384 }
  0x19   : > { %v237_v0 = vld [vmem:[%s1916_s7] sm:$0xff]  ;;  %v239_v1 = vld [vmem:[%s1916_s7 + $0x10] sm:$0xff]  ;;  %v238_v2 = vld [vmem:[%s1916_s7 + $0x8] sm:$0xff]  ;;  %p1749_p12 = scmp.ne.s32.totalorder %s2562_s29, %s1748_s8  ;;  %s1754_s11 = scalar_lea.vmem %s1753_s10, 32768 }
  0x1a   : > { %269 = vadd.xlane.f32.xlu0 %v237_v0  ;;  %273 = vadd.xlane.f32.xlu1 %v239_v1  ;;  %v1922_v3 = vld [vmem:[%s1916_s7 + $0x18] sm:$0xff]  ;;  %v1926_v4 = vld [vmem:[%s1916_s7 + $0x20] sm:$0xff]  ;;  %v1929_v5 = vld [vmem:[%s1916_s7 + $0x28] sm:$0xff]  ;;  %p1755_p1 = scmp.lt.s32.totalorder %s2562_s29, %s1753_s10  ;;  %p1756_p2 = scmp.lt.s32.totalorder %s1754_s11, %s1748_s8 }
  0x1b   : > { %v1934_v6 = vld [vmem:[%s1916_s7 + $0x30] sm:$0xff]  ;;  %v1937_v7 = vld [vmem:[%s1916_s7 + $0x38] sm:$0xff]  ;;  %v1942_v8 = vld [vmem:[%s1916_s7 + $0x40] sm:$0xff]  ;;  %p1750_p13 = pnand %p1749_p12, %p1897_p4 }
  0x1c   : > { %v1945_v9 = vld [vmem:[%s1916_s7 + $0x48] sm:$0xff]  ;;  %v1950_v10 = vld [vmem:[%s1916_s7 + $0x50] sm:$0xff]  ;;  %v1953_v11 = vld [vmem:[%s1916_s7 + $0x58] sm:$0xff]  ;;  %p1757_p3 = por %p1756_p2, %p1755_p1 }
  0x1d   : > { %v1958_v12 = vld [vmem:[%s1916_s7 + $0x60] sm:$0xff]  ;;  %v1961_v13 = vld [vmem:[%s1916_s7 + $0x68] sm:$0xff]  ;;  %v1966_v14 = vld [vmem:[%s1916_s7 + $0x70] sm:$0xff]  ;;  %p1751_p0 = pneg %p1750_p13 }
  0x1e   : > { %271 = vadd.xlane.f32.xlu0 %v238_v2  ;;  %275 = vadd.xlane.f32.xlu1 %v1922_v3  ;;  %v1969_v15 = vld [vmem:[%s1916_s7 + $0x78] sm:$0xff]  ;;  %v1974_v16 = vld [vmem:[%s1916_s7 + $0x80] sm:$0xff]  ;;  %v1977_v17 = vld [vmem:[%s1916_s7 + $0x88] sm:$0xff] }
  0x1f   : > { %v1982_v18 = vld [vmem:[%s1916_s7 + $0x90] sm:$0xff]  ;;  %v1985_v19 = vld [vmem:[%s1916_s7 + $0x98] sm:$0xff]  ;;  %v2016_v38 = vld [vmem:[%s1916_s7 + $0xa0] sm:$0xff]  ;;  %p1758_p5 = pnand %p1757_p3, %p1751_p0 }
  0x20   : > { %v2027_v44 = vld [vmem:[%s1916_s7 + $0xa8] sm:$0xff]  ;;  %v2036_v49 = vld [vmem:[%s1916_s7 + $0xb0] sm:$0xff]  ;;  %v2051_v56 = vld [vmem:[%s1916_s7 + $0xb8] sm:$0xff] }
  0x21   : > { %v2093_v23 = vld [vmem:[%s1916_s7 + $0xc8] sm:$0xff]  ;;  %v2156_v59 = vld [vmem:[%s1916_s7 + $0xe0] sm:$0xff] }
  0x22   : > { %277 = vadd.xlane.f32.xlu0 %v1926_v4  ;;  %279 = vadd.xlane.f32.xlu1 %v1929_v5 }
  0x26   : > { %281 = vadd.xlane.f32.xlu0 %v1934_v6  ;;  %283 = vadd.xlane.f32.xlu1 %v1937_v7 }
  0x2a   : > { %285 = vadd.xlane.f32.xlu0 %v1942_v8  ;;  %287 = vadd.xlane.f32.xlu1 %v1945_v9 }
  0x2e   : > { %289 = vadd.xlane.f32.xlu0 %v1950_v10  ;;  %291 = vadd.xlane.f32.xlu1 %v1953_v11 }
  0x32   : > { %293 = vadd.xlane.f32.xlu0 %v1958_v12  ;;  %295 = vadd.xlane.f32.xlu1 %v1961_v13 }
  0x36   : > { %297 = vadd.xlane.f32.xlu0 %v1966_v14  ;;  %299 = vadd.xlane.f32.xlu1 %v1969_v15 }
  0x3a   : > { %301 = vadd.xlane.f32.xlu0 %v1974_v16  ;;  %303 = vadd.xlane.f32.xlu1 %v1977_v17 }
  0x3e   : > { %305 = vadd.xlane.f32.xlu0 %v1982_v18  ;;  %307 = vadd.xlane.f32.xlu1 %v1985_v19 }
  0xa7   : > { %v270_v26 = vpop.xlane.xlu0 %269  ;;  %v274_v27 = vpop.xlane.xlu1 %273 }
  0xa8   : > { %v334_v28 = vmul.f32 0.0078125, %v270_v26  ;;  %v336_v30 = vmul.f32 0.0078125, %v274_v27  ;;  %v1662_v26 = vld [vmem:[%s2621_s3 + $0x8c] ss:$16 sps:$4 sm:$0xff]  }
  0xaa   : > { %v2007_v29 = vsub.f32 %v237_v0, %v334_v28  ;;  %v2013_v36 = vsub.f32 %v239_v1, %v336_v30  ;;  %v1653_v0 = vld [vmem:[%s2621_s3 + $0x48] ss:$16 sps:$4 sm:$0xff]   ;;  %v2072_v1 = vld [vmem:[%s1916_s7 + $0xc0] sm:$0xff] }
  0xab   : > { %v272_v31 = vpop.xlane.xlu0 %271  ;;  %v276_v32 = vpop.xlane.xlu1 %275  ;;  %1106 = vmatpush1.bf16.msra.mxu1 %v1653_v0 }
  0xac   : > { %v335_v33 = vmul.f32 0.0078125, %v272_v31  ;;  %v398_v34 = vmul.f32 %v2007_v29, %v2007_v29  ;;  %v337_v37 = vmul.f32 0.0078125, %v276_v32  ;;  %v400_v42 = vmul.f32 %v2013_v36, %v2013_v36  ;;  %v1664_v31 = vld [vmem:[%s2621_s3 + $0x80] ss:$16 sps:$4 sm:$0xff]   ;;  %v1665_v32 = vld [vmem:[%s2621_s3 + $0x88] ss:$16 sps:$4 sm:$0xff]  }
  0xae   : > { %v2011_v35 = vsub.f32 %v238_v2, %v335_v33  ;;  %430 = vadd.xlane.f32.xlu0 %v398_v34  ;;  %v2022_v41 = vsub.f32 %v1922_v3, %v337_v37  ;;  %v1654_v3 = vld [vmem:[%s2621_s3 + $0x64] ss:$16 sps:$4 sm:$0xff]  }
  0xaf   : > { %v278_v39 = vpop.xlane.xlu0 %277  ;;  %v280_v45 = vpop.xlane.xlu1 %279  ;;  %914 = vmatprep.subr.bf16.mxu0 %v1654_v3  ;;  %v2114_v33 = vld [vmem:[%s1916_s7 + $0xd0] sm:$0xff] }
  0xb0   : > { %v399_v40 = vmul.f32 %v2011_v35, %v2011_v35  ;;  %v338_v43 = vmul.f32 0.0078125, %v278_v39  ;;  %v401_v47 = vmul.f32 %v2022_v41, %v2022_v41  ;;  %v339_v48 = vmul.f32 0.0078125, %v280_v45  ;;  %915 = vmatpush1.bf16.msra.mxu0 %v1658_v21  ;;  %v1666_v37 = vld [vmem:[%s2621_s3 + $0xa4] ss:$16 sps:$4 sm:$0xff]   ;;  %v1668_v39 = vld [vmem:[%s2621_s3 + $0xac] ss:$16 sps:$4 sm:$0xff]  }
  0xb1   : > { %916 = vmatprep.subr.bf16.mxu0 %v1660_v25  ;;  %v1670_v45 = vld [vmem:[%s2621_s3 + $0xa0] ss:$16 sps:$4 sm:$0xff]  }
  0xb2   : > { %309 = vadd.xlane.f32.xlu0 %v2016_v38  ;;  %432 = vadd.xlane.f32.xlu1 %v399_v40  ;;  %v2031_v46 = vsub.f32 %v1926_v4, %v338_v43  ;;  %v2040_v51 = vsub.f32 %v1929_v5, %v339_v48  ;;  %v1656_v4 = vld [vmem:[%s2621_s3 + $0x6c] ss:$16 sps:$4 sm:$0xff]   ;;  %v1682_v3 = vld [vmem:[%s2621_s3 + $0xe0] ss:$16 sps:$4 sm:$0xff]  }
  0xb3   : > { %v282_v50 = vpop.xlane.xlu0 %281  ;;  %v284_v57 = vpop.xlane.xlu1 %283  ;;  %1107 = vmatprep.subr.bf16.mxu1 %v1656_v4  ;;  %v2135_v48 = vld [vmem:[%s1916_s7 + $0xd8] sm:$0xff]  ;;  %v2186_v25 = vld [vmem:[%s1916_s7 + $0xf0] sm:$0xff] }
  0xb4   : > { %v402_v52 = vmul.f32 %v2031_v46, %v2031_v46  ;;  %v340_v53 = vmul.f32 0.0078125, %v282_v50  ;;  %v403_v61 = vmul.f32 %v2040_v51, %v2040_v51  ;;  %v341_v62 = vmul.f32 0.0078125, %v284_v57  ;;  %1108 = vmatpush1.bf16.msra.mxu1 %v1659_v22  ;;  %917 = vmatpush1.bf16.msra.mxu0 %v1664_v31  ;;  %v1672_v50 = vld [vmem:[%s2621_s3 + $0xc4] ss:$16 sps:$4 sm:$0xff]   ;;  %v1676_v57 = vld [vmem:[%s2621_s3 + $0xc0] ss:$16 sps:$4 sm:$0xff]  }
  0xb5   : > { %1109 = vmatprep.subr.bf16.mxu1 %v1662_v26  ;;  %918 = vmatprep.subr.bf16.mxu0 %v1666_v37  ;;  %v1683_v4 = vld [vmem:[%s2621_s3 + $0xe8] ss:$16 sps:$4 sm:$0xff]   ;;  %v1828_v26 = vmov 0  }
  0xb6   : > { %434 = vadd.xlane.f32.xlu0 %v400_v42  ;;  %311 = vadd.xlane.f32.xlu1 %v2027_v44  ;;  %v2061_v60 = vsub.f32 %v1934_v6, %v340_v53  ;;  %v2082_v5 = vsub.f32 %v1937_v7, %v341_v62  ;;  %v1680_v62 = vld [vmem:[%s2621_s3 + $0xec] ss:$16 sps:$4 sm:$0xff]  }
  0xb7   : > { %v286_v2 = vpop.xlane.xlu0 %285  ;;  %v288_v24 = vpop.xlane.xlu1 %287  ;;  %940 = vmatprep.mubr.bf16.mxu0 %v1828_v26  ;;  %1133 = vmatprep.mubr.bf16.mxu1 %v1828_v26 }
  0xb8   : > { %v404_v6 = vmul.f32 %v2061_v60, %v2061_v60  ;;  %v342_v20 = vmul.f32 0.0078125, %v286_v2  ;;  %v405_v28 = vmul.f32 %v2082_v5, %v2082_v5  ;;  %v343_v30 = vmul.f32 0.0078125, %v288_v24  ;;  %1110 = vmatpush1.bf16.msra.mxu1 %v1665_v32  ;;  %919 = vmatpush1.bf16.msra.mxu0 %v1670_v45 }
  0xb9   : > { %1111 = vmatprep.subr.bf16.mxu1 %v1668_v39  ;;  %920 = vmatprep.subr.bf16.mxu0 %v1672_v50 }
  0xba   : > { %313 = vadd.xlane.f32.xlu0 %v2036_v49  ;;  %436 = vadd.xlane.f32.xlu1 %v401_v47  ;;  %v2103_v27 = vsub.f32 %v1942_v8, %v342_v20  ;;  %v2124_v40 = vsub.f32 %v1945_v9, %v343_v30  ;;  %v1671_v47 = vld [vmem:[%s2621_s3 + $0xa8] ss:$16 sps:$4 sm:$0xff]  }
  0xbb   : > { %v290_v7 = vpop.xlane.xlu0 %289  ;;  %v292_v8 = vpop.xlane.xlu1 %291 }
  0xbc   : > { %v406_v42 = vmul.f32 %v2103_v27, %v2103_v27  ;;  %v344_v43 = vmul.f32 0.0078125, %v290_v7  ;;  %1112 = vmatpush1.bf16.msra.mxu1 %v1671_v47  ;;  %v407_v54 = vmul.f32 %v2124_v40, %v2124_v40  ;;  %v345_v55 = vmul.f32 0.0078125, %v292_v8  ;;  %921 = vmatpush1.bf16.msra.mxu0 %v1676_v57 }
  0xbe   : > { %315 = vadd.xlane.f32.xlu1 %v2051_v56  ;;  %438 = vadd.xlane.f32.xlu0 %v402_v52  ;;  %v1674_v52 = vld [vmem:[%s2621_s3 + $0xcc] ss:$16 sps:$4 sm:$0xff]   ;;  %v2145_v53 = vsub.f32 %v1950_v10, %v344_v43  ;;  %v1678_v10 = vld [vmem:[%s2621_s3 + $0xe4] ss:$16 sps:$4 sm:$0xff]   ;;  %v2166_v63 = vsub.f32 %v1953_v11, %v345_v55 }
  0xbf   : > { %v294_v34 = vpop.xlane.xlu0 %293  ;;  %v296_v9 = vpop.xlane.xlu1 %295  ;;  %1113 = vmatprep.subr.bf16.mxu1 %v1674_v52  ;;  %922 = vmatprep.subr.bf16.mxu0 %v1678_v10 }
  0xc0   : > { %1114 = vmatpush1.bf16.msra.mxu1 %v1677_v58  ;;  %v408_v0 = vmul.f32 %v2145_v53, %v2145_v53  ;;  %v346_v2 = vmul.f32 0.0078125, %v294_v34  ;;  %923 = vmatpush1.bf16.msra.mxu0 %v1682_v3  ;;  %v347_v11 = vmul.f32 0.0078125, %v296_v9  ;;  %v409_v24 = vmul.f32 %v2166_v63, %v2166_v63  ;;  %v2200_v34 = vld [vmem:[%s1916_s7 + $0xf8] sm:$0xff] }
  0xc1   : > { %1115 = vmatprep.subr.bf16.mxu1 %v1680_v62 }
  0xc2   : > { %440 = vadd.xlane.f32.xlu1 %v403_v61  ;;  %317 = vadd.xlane.f32.xlu0 %v2072_v1  ;;  %v2181_v22 = vsub.f32 %v1958_v12, %v346_v2 }
  0xc3   : > { %v298_v61 = vpop.xlane.xlu0 %297  ;;  %v300_v20 = vpop.xlane.xlu1 %299 }
  0xc4   : > { %1116 = vmatpush1.bf16.msra.mxu1 %v1683_v4  ;;  %v348_v7 = vmul.f32 0.0078125, %v298_v61  ;;  %v349_v30 = vmul.f32 0.0078125, %v300_v20  ;;  %v410_v32 = vmul.f32 %v2181_v22, %v2181_v22 }
  0xc6   : > { %319 = vadd.xlane.f32.xlu1 %v2093_v23  ;;  %442 = vadd.xlane.f32.xlu0 %v404_v6  ;;  %v2177_v6 = vld [vmem:[%s1916_s7 + $0xe8] sm:$0xff]  ;;  %v2195_v12 = vsub.f32 %v1966_v14, %v348_v7  ;;  %v2203_v39 = vsub.f32 %v1969_v15, %v349_v30 }
  0xc7   : > { %v302_v21 = vpop.xlane.xlu0 %301  ;;  %v304_v31 = vpop.xlane.xlu1 %303 }
  0xc8   : > { %v350_v8 = vmul.f32 0.0078125, %v302_v21  ;;  %v412_v14 = vmul.f32 %v2195_v12, %v2195_v12  ;;  %v351_v43 = vmul.f32 0.0078125, %v304_v31  ;;  %v413_v9 = vmul.f32 %v2203_v39, %v2203_v39 }
  0xca   : > { %444 = vadd.xlane.f32.xlu1 %v405_v28  ;;  %321 = vadd.xlane.f32.xlu0 %v2114_v33  ;;  %v2191_v28 = vsub.f32 %v1961_v13, %v347_v11  ;;  %v2216_v15 = vsub.f32 %v1977_v17, %v351_v43 }
  0xcb   : > { %v306_v37 = vpop.xlane.xlu0 %305  ;;  %v308_v47 = vpop.xlane.xlu1 %307 }
  0xcc   : > { %v411_v13 = vmul.f32 %v2191_v28, %v2191_v28  ;;  %v352_v45 = vmul.f32 0.0078125, %v306_v37  ;;  %v353_v52 = vmul.f32 0.0078125, %v308_v47  ;;  %v415_v55 = vmul.f32 %v2216_v15, %v2216_v15 }
  0xce   : > { %323 = vadd.xlane.f32.xlu1 %v2135_v48  ;;  %446 = vadd.xlane.f32.xlu0 %v406_v42  ;;  %v2209_v42 = vsub.f32 %v1974_v16, %v350_v8  ;;  %v2219_v50 = vsub.f32 %v1982_v18, %v352_v45 }
  0xd0   : > { %v414_v16 = vmul.f32 %v2209_v42, %v2209_v42  ;;  %v416_v57 = vmul.f32 %v2219_v50, %v2219_v50 }
  0xd2   : > { %448 = vadd.xlane.f32.xlu1 %v407_v54  ;;  %325 = vadd.xlane.f32.xlu0 %v2156_v59  ;;  %v2224_v54 = vsub.f32 %v1985_v19, %v353_v52 }
  0xd4   : > { %v417_v17 = vmul.f32 %v2224_v54, %v2224_v54 }
  0xd6   : > { %327 = vadd.xlane.f32.xlu1 %v2177_v6  ;;  %450 = vadd.xlane.f32.xlu0 %v408_v0 }
  0xda   : > { %452 = vadd.xlane.f32.xlu1 %v409_v24  ;;  %329 = vadd.xlane.f32.xlu0 %v2186_v25 }
  0xde   : > { %331 = vadd.xlane.f32.xlu1 %v2200_v34  ;;  %454 = vadd.xlane.f32.xlu0 %v410_v32 }
  0xe2   : > { %456 = vadd.xlane.f32.xlu1 %v411_v13  ;;  %458 = vadd.xlane.f32.xlu0 %v412_v14 }
  0xe6   : > { %460 = vadd.xlane.f32.xlu1 %v413_v9  ;;  %462 = vadd.xlane.f32.xlu0 %v414_v16 }
  0xea   : > { %464 = vadd.xlane.f32.xlu1 %v415_v55  ;;  %466 = vadd.xlane.f32.xlu0 %v416_v57  ;;  %v2251_v55 = vld [vmem:[%s2619_s1] ss:$0 sm:$0xff] }
  0xee   : > { %468 = vadd.xlane.f32.xlu1 %v417_v17 }
 0x13b   : > { %v431_v18 = vpop.xlane.xlu0 %430 }
 0x13c   : > { %v494_v58 = vmul.f32 0.0078125, %v431_v18 }
 0x13e   : > { %v526_v61 = vadd.f32 1e-05, %v494_v58 }
 0x13f   : > { %v433_v10 = vpop.xlane.xlu1 %432  ;;  %v310_v62 = vpop.xlane.xlu0 %309 }
 0x140   : > { %1684 = vrsqrt.f32 %v526_v61  ;;  %v495_v19 = vmul.f32 0.0078125, %v433_v10  ;;  %v354_v0 = vmul.f32 0.0078125, %v310_v62 }
 0x142   : > { %v527_v2 = vadd.f32 1e-05, %v495_v19  ;;  %v2233_v3 = vsub.f32 %v2016_v38, %v354_v0  ;;  %v2263_v0 = vld [vmem:[%s2620_s2] ss:$0 sm:$0xff] }
 0x143   : > { %v312_v4 = vpop.xlane.xlu1 %311  ;;  %v435_v20 = vpop.xlane.xlu0 %434 }
 0x144   : > { %1686 = vrsqrt.f32 %v527_v2  ;;  %v355_v11 = vmul.f32 0.0078125, %v312_v4  ;;  %v496_v21 = vmul.f32 0.0078125, %v435_v20  ;;  %v418_v24 = vmul.f32 %v2233_v3, %v2233_v3 }
 0x146   : > { %v2238_v7 = vsub.f32 %v2027_v44, %v355_v11  ;;  %v528_v30 = vadd.f32 1e-05, %v496_v21  ;;  %470 = vadd.xlane.f32.xlu0 %v418_v24 }
 0x147   : > { %v437_v31 = vpop.xlane.xlu1 %436  ;;  %v314_v32 = vpop.xlane.xlu0 %313 }
 0x148   : > { %1688 = vrsqrt.f32 %v528_v30  ;;  %v497_v8 = vmul.f32 0.0078125, %v437_v31  ;;  %v356_v37 = vmul.f32 0.0078125, %v314_v32  ;;  %v419_v38 = vmul.f32 %v2238_v7, %v2238_v7 }
 0x14a   : > { %v1685_v13 = vpop.eup %1684  ;;  %v529_v14 = vadd.f32 1e-05, %v497_v8  ;;  %v2243_v43 = vsub.f32 %v2036_v49, %v356_v37  ;;  %472 = vadd.xlane.f32.xlu1 %v419_v38 }
 0x14b   : > { %v316_v45 = vpop.xlane.xlu1 %315  ;;  %v439_v47 = vpop.xlane.xlu0 %438  ;;  %v590_v44 = vmul.f32 %v1685_v13, %v2007_v29 }
 0x14c   : > { %1690 = vrsqrt.f32 %v529_v14  ;;  %v357_v9 = vmul.f32 0.0078125, %v316_v45  ;;  %v498_v16 = vmul.f32 0.0078125, %v439_v47  ;;  %v420_v52 = vmul.f32 %v2243_v43, %v2243_v43 }
 0x14d   : > { %v629_v61 = vmul.f32 %v2251_v55, %v590_v44 }
 0x14e   : > { %v1687_v57 = vpop.eup %1686  ;;  %v2254_v49 = vsub.f32 %v2051_v56, %v357_v9  ;;  %v530_v17 = vadd.f32 1e-05, %v498_v16  ;;  %474 = vadd.xlane.f32.xlu0 %v420_v52 }
 0x14f   : > { %v441_v18 = vpop.xlane.xlu1 %440  ;;  %v318_v58 = vpop.xlane.xlu0 %317  ;;  %v591_v29 = vmul.f32 %v1687_v57, %v2011_v35  ;;  %v668_v21 = vadd.f32 %v2263_v0, %v629_v61 }
 0x150   : > { %1692 = vrsqrt.f32 %v530_v17  ;;  %v499_v10 = vmul.f32 0.0078125, %v441_v18  ;;  %v358_v62 = vmul.f32 0.0078125, %v318_v58  ;;  %v421_v19 = vmul.f32 %v2254_v49, %v2254_v49 }
 0x151   : > { %v630_v56 = vmul.f32 %v2251_v55, %v591_v29 }
 0x152   : > { %v1689_v2 = vpop.eup %1688  ;;  %v531_v4 = vadd.f32 1e-05, %v499_v10  ;;  %v2267_v20 = vsub.f32 %v2072_v1, %v358_v62  ;;  %476 = vadd.xlane.f32.xlu1 %v421_v19 }
 0x153   : > { %v320_v35 = vpop.xlane.xlu1 %319  ;;  %v443_v11 = vpop.xlane.xlu0 %442  ;;  %v669_v24 = vadd.f32 %v2263_v0, %v630_v56  ;;  %v592_v30 = vmul.f32 %v1689_v2, %v2013_v36 }
 0x154   : > { %1694 = vrsqrt.f32 %v531_v4  ;;  %v359_v31 = vmul.f32 0.0078125, %v320_v35  ;;  %v500_v32 = vmul.f32 0.0078125, %v443_v11  ;;  %v422_v8 = vmul.f32 %v2267_v20, %v2267_v20 }
 0x155   : > { %v700_v37 = vpack.c.bf16 %v669_v24, %v668_v21  ;;  %v631_v36 = vmul.f32 %v2251_v55, %v592_v30 }
 0x156   : > { %v1691_v38 = vpop.eup %1690  ;;  %v2275_v1 = vsub.f32 %v2093_v23, %v359_v31  ;;  %v532_v13 = vadd.f32 1e-05, %v500_v32  ;;  %478 = vadd.xlane.f32.xlu0 %v422_v8 }
 0x157   : > { %v445_v14 = vpop.xlane.xlu1 %444  ;;  %941 = vmatmul.mubr.bf16.vlgmr.msra.gmra.mrb[0].mxu0 %v700_v37  ;;  %1134 = vmatmul.mubr.bf16.vlgmr.msra.gmra.mrb[0].mxu1 %v700_v37  ;;  %v322_v45 = vpop.xlane.xlu0 %321  ;;  %v593_v47 = vmul.f32 %v1691_v38, %v2022_v41  ;;  %v670_v58 = vadd.f32 %v2263_v0, %v631_v36 }
 0x158   : > { %1696 = vrsqrt.f32 %v532_v13  ;;  %v501_v44 = vmul.f32 0.0078125, %v445_v14  ;;  %v360_v9 = vmul.f32 0.0078125, %v322_v45  ;;  %v423_v16 = vmul.f32 %v2275_v1, %v2275_v1  ;;  %950 = vmatprep.mubr.bf16.mxu0 %v1828_v26  ;;  %1143 = vmatprep.mubr.bf16.mxu1 %v1828_v26 }
 0x159   : > { %v632_v23 = vmul.f32 %v2251_v55, %v593_v47 }
 0x15a   : > { %v1693_v52 = vpop.eup %1692  ;;  %v533_v57 = vadd.f32 1e-05, %v501_v44  ;;  %v2285_v17 = vsub.f32 %v2114_v33, %v360_v9  ;;  %480 = vadd.xlane.f32.xlu1 %v423_v16 }
 0x15b   : > { %v324_v41 = vpop.xlane.xlu1 %323  ;;  %v447_v18 = vpop.xlane.xlu0 %446  ;;  %v671_v29 = vadd.f32 %v2263_v0, %v632_v23  ;;  %v594_v61 = vmul.f32 %v1693_v52, %v2031_v46 }
 0x15c   : > { %1698 = vrsqrt.f32 %v533_v57  ;;  %v361_v10 = vmul.f32 0.0078125, %v324_v41  ;;  %v502_v62 = vmul.f32 0.0078125, %v447_v18  ;;  %v424_v19 = vmul.f32 %v2285_v17, %v2285_v17 }
 0x15d   : > { %v701_v56 = vpack.c.bf16 %v671_v29, %v670_v58  ;;  %v633_v46 = vmul.f32 %v2251_v55, %v594_v61 }
 0x15e   : > { %v1695_v2 = vpop.eup %1694  ;;  %v2293_v33 = vsub.f32 %v2135_v48, %v361_v10  ;;  %v534_v4 = vadd.f32 1e-05, %v502_v62  ;;  %482 = vadd.xlane.f32.xlu0 %v424_v19 }
 0x15f   : > { %v449_v35 = vpop.xlane.xlu1 %448  ;;  %951 = vmatmul.mubr.bf16.gmra.mrb[4].mxu0 %v701_v56  ;;  %1144 = vmatmul.mubr.bf16.gmra.mrb[4].mxu1 %v701_v56  ;;  %v326_v11 = vpop.xlane.xlu0 %325  ;;  %v595_v21 = vmul.f32 %v1695_v2, %v2040_v51  ;;  %v672_v13 = vadd.f32 %v2263_v0, %v633_v46 }
 0x160   : > { %1700 = vrsqrt.f32 %v534_v4  ;;  %v503_v24 = vmul.f32 0.0078125, %v449_v35  ;;  %v362_v30 = vmul.f32 0.0078125, %v326_v11  ;;  %v425_v31 = vmul.f32 %v2293_v33, %v2293_v33  ;;  %960 = vmatprep.mubr.bf16.mxu0 %v1828_v26  ;;  %1153 = vmatprep.mubr.bf16.mxu1 %v1828_v26 }
 0x161   : > { %v634_v48 = vmul.f32 %v2251_v55, %v595_v21 }
 0x162   : > { %v1697_v32 = vpop.eup %1696  ;;  %v535_v8 = vadd.f32 1e-05, %v503_v24  ;;  %v2303_v37 = vsub.f32 %v2156_v59, %v362_v30  ;;  %484 = vadd.xlane.f32.xlu1 %v425_v31 }
 0x163   : > { %v328_v51 = vpop.xlane.xlu1 %327  ;;  %v451_v38 = vpop.xlane.xlu0 %450  ;;  %v673_v14 = vadd.f32 %v2263_v0, %v634_v48  ;;  %v596_v45 = vmul.f32 %v1697_v32, %v2061_v60 }
 0x164   : > { %1702 = vrsqrt.f32 %v535_v8  ;;  %v363_v47 = vmul.f32 0.0078125, %v328_v51  ;;  %v504_v36 = vmul.f32 0.0078125, %v451_v38  ;;  %v426_v44 = vmul.f32 %v2303_v37, %v2303_v37 }
 0x165   : > { %v702_v9 = vpack.c.bf16 %v673_v14, %v672_v13  ;;  %v635_v60 = vmul.f32 %v2251_v55, %v596_v45 }
 0x166   : > { %v1699_v16 = vpop.eup %1698  ;;  %v2311_v59 = vsub.f32 %v2177_v6, %v363_v47  ;;  %v536_v23 = vadd.f32 1e-05, %v504_v36  ;;  %486 = vadd.xlane.f32.xlu0 %v426_v44 }
 0x167   : > { %v453_v52 = vpop.xlane.xlu1 %452  ;;  %961 = vmatmul.mubr.bf16.gmra.mrb[8].mxu0 %v702_v9  ;;  %1154 = vmatmul.mubr.bf16.gmra.mrb[8].mxu1 %v702_v9  ;;  %v330_v57 = vpop.xlane.xlu0 %329  ;;  %v597_v41 = vmul.f32 %v1699_v16, %v2082_v5  ;;  %v674_v56 = vadd.f32 %v2263_v0, %v635_v60 }
 0x168   : > { %1704 = vrsqrt.f32 %v536_v23  ;;  %v505_v18 = vmul.f32 0.0078125, %v453_v52  ;;  %v364_v58 = vmul.f32 0.0078125, %v330_v57  ;;  %v427_v29 = vmul.f32 %v2311_v59, %v2311_v59  ;;  %970 = vmatprep.mubr.bf16.mxu0 %v1828_v26  ;;  %1163 = vmatprep.mubr.bf16.mxu1 %v1828_v26 }
 0x169   : > { %v636_v6 = vmul.f32 %v2251_v55, %v597_v41 }
 0x16a   : > { %v1701_v61 = vpop.eup %1700  ;;  %v537_v10 = vadd.f32 1e-05, %v505_v18  ;;  %v2321_v62 = vsub.f32 %v2186_v25, %v364_v58  ;;  %488 = vadd.xlane.f32.xlu1 %v427_v29 }
 0x16b   : > { %v332_v5 = vpop.xlane.xlu1 %331  ;;  %v455_v19 = vpop.xlane.xlu0 %454  ;;  %v675_v2 = vadd.f32 %v2263_v0, %v636_v6  ;;  %v598_v4 = vmul.f32 %v1701_v61, %v2103_v27 }
 0x16c   : > { %1706 = vrsqrt.f32 %v537_v10  ;;  %v365_v35 = vmul.f32 0.0078125, %v332_v5  ;;  %v506_v11 = vmul.f32 0.0078125, %v455_v19  ;;  %v428_v21 = vmul.f32 %v2321_v62, %v2321_v62 }
 0x16d   : > { %v703_v46 = vpack.c.bf16 %v675_v2, %v674_v56  ;;  %v637_v27 = vmul.f32 %v2251_v55, %v598_v4 }
 0x16e   : > { %v1703_v24 = vpop.eup %1702  ;;  %v2329_v25 = vsub.f32 %v2200_v34, %v365_v35  ;;  %v538_v30 = vadd.f32 1e-05, %v506_v11  ;;  %490 = vadd.xlane.f32.xlu0 %v428_v21 }
 0x16f   : > { %v457_v31 = vpop.xlane.xlu1 %456  ;;  %971 = vmatmul.mubr.bf16.gmra.mrb[12].mxu0 %v703_v46  ;;  %1164 = vmatmul.mubr.bf16.gmra.mrb[12].mxu1 %v703_v46  ;;  %v459_v48 = vpop.xlane.xlu0 %458  ;;  %v599_v32 = vmul.f32 %v1703_v24, %v2124_v40  ;;  %v676_v36 = vadd.f32 %v2263_v0, %v637_v27 }
 0x170   : > { %1708 = vrsqrt.f32 %v538_v30  ;;  %v507_v8 = vmul.f32 0.0078125, %v457_v31  ;;  %v508_v51 = vmul.f32 0.0078125, %v459_v48  ;;  %v429_v38 = vmul.f32 %v2329_v25, %v2329_v25  ;;  %980 = vmatprep.mubr.bf16.mxu0 %v1828_v26  ;;  %1173 = vmatprep.mubr.bf16.mxu1 %v1828_v26 }
 0x171   : > { %v638_v34 = vmul.f32 %v2251_v55, %v599_v32 }
 0x172   : > { %v1705_v13 = vpop.eup %1704  ;;  %v539_v14 = vadd.f32 1e-05, %v507_v8  ;;  %v540_v45 = vadd.f32 1e-05, %v508_v51  ;;  %492 = vadd.xlane.f32.xlu1 %v429_v38 }
 0x173   : > { %v461_v47 = vpop.xlane.xlu1 %460  ;;  %v463_v40 = vpop.xlane.xlu0 %462  ;;  %v677_v44 = vadd.f32 %v2263_v0, %v638_v34  ;;  %v600_v9 = vmul.f32 %v1705_v13, %v2145_v53 }
 0x174   : > { %1710 = vrsqrt.f32 %v539_v14  ;;  %v509_v16 = vmul.f32 0.0078125, %v461_v47  ;;  %v510_v41 = vmul.f32 0.0078125, %v463_v40 }
 0x175   : > { %v704_v23 = vpack.c.bf16 %v677_v44, %v676_v36  ;;  %1712 = vrsqrt.f32 %v540_v45  ;;  %v639_v58 = vmul.f32 %v2251_v55, %v600_v9 }
 0x176   : > { %v1707_v52 = vpop.eup %1706  ;;  %v541_v57 = vadd.f32 1e-05, %v509_v16  ;;  %v542_v61 = vadd.f32 1e-05, %v510_v41 }
 0x177   : > { %v465_v60 = vpop.xlane.xlu1 %464  ;;  %981 = vmatmul.mubr.bf16.gmra.mrb[16].mxu0 %v704_v23  ;;  %1174 = vmatmul.mubr.bf16.gmra.mrb[16].mxu1 %v704_v23  ;;  %v601_v18 = vmul.f32 %v1707_v52, %v2166_v63  ;;  %v467_v5 = vpop.xlane.xlu0 %466  ;;  %v678_v56 = vadd.f32 %v2263_v0, %v639_v58 }
 0x178   : > { %1714 = vrsqrt.f32 %v541_v57  ;;  %v511_v29 = vmul.f32 0.0078125, %v465_v60  ;;  %990 = vmatprep.mubr.bf16.mxu0 %v1828_v26  ;;  %1183 = vmatprep.mubr.bf16.mxu1 %v1828_v26  ;;  %v512_v21 = vmul.f32 0.0078125, %v467_v5 }
 0x179   : > { %v640_v53 = vmul.f32 %v2251_v55, %v601_v18 }
 0x17a   : > { %v1709_v6 = vpop.eup %1708  ;;  %v543_v10 = vadd.f32 1e-05, %v511_v29  ;;  %v544_v32 = vadd.f32 1e-05, %v512_v21 }
 0x17b   : > { %v469_v19 = vpop.xlane.xlu1 %468  ;;  %v679_v2 = vadd.f32 %v2263_v0, %v640_v53  ;;  %v602_v63 = vmul.f32 %v1709_v6, %v2181_v22 }
 0x17c   : > { %1716 = vrsqrt.f32 %v543_v10  ;;  %v513_v4 = vmul.f32 0.0078125, %v469_v19 }
 0x17d   : > { %v705_v35 = vpack.c.bf16 %v679_v2, %v678_v56  ;;  %1718 = vrsqrt.f32 %v542_v61  ;;  %v641_v24 = vmul.f32 %v2251_v55, %v602_v63 }
 0x17e   : > { %v1711_v11 = vpop.eup %1710  ;;  %v545_v31 = vadd.f32 1e-05, %v513_v4 }
 0x17f   : > { %991 = vmatmul.mubr.bf16.gmra.mrb[20].mxu0 %v705_v35  ;;  %1184 = vmatmul.mubr.bf16.gmra.mrb[20].mxu1 %v705_v35  ;;  %v603_v46 = vmul.f32 %v1711_v11, %v2191_v28  ;;  %v1713_v30 = vpop.eup %1712  ;;  %v680_v27 = vadd.f32 %v2263_v0, %v641_v24 }
 0x180   : > { %1000 = vmatprep.mubr.bf16.mxu0 %v1828_v26  ;;  %1193 = vmatprep.mubr.bf16.mxu1 %v1828_v26  ;;  %v604_v51 = vmul.f32 %v1713_v30, %v2195_v12  ;;  %1720 = vrsqrt.f32 %v545_v31 }
 0x181   : > { %v642_v22 = vmul.f32 %v2251_v55, %v603_v46  ;;  %1722 = vrsqrt.f32 %v544_v32 }
 0x182   : > { %v1715_v48 = vpop.eup %1714  ;;  %v643_v14 = vmul.f32 %v2251_v55, %v604_v51 }
 0x183   : > { %v681_v8 = vadd.f32 %v2263_v0, %v642_v22  ;;  %v605_v28 = vmul.f32 %v1715_v48, %v2203_v39 }
 0x184   : > { %v682_v39 = vadd.f32 %v2263_v0, %v643_v14 }
 0x185   : > { %v706_v38 = vpack.c.bf16 %v681_v8, %v680_v27  ;;  %v644_v34 = vmul.f32 %v2251_v55, %v605_v28 }
 0x186   : > { %v1717_v13 = vpop.eup %1716 }
 0x187   : > { %1001 = vmatmul.mubr.bf16.gmra.mrb[24].mxu0 %v706_v38  ;;  %1194 = vmatmul.mubr.bf16.gmra.mrb[24].mxu1 %v706_v38  ;;  %v1719_v45 = vpop.eup %1718  ;;  %v683_v47 = vadd.f32 %v2263_v0, %v644_v34  ;;  %v607_v12 = vmul.f32 %v1717_v13, %v2216_v15 }
 0x188   : > { %1010 = vmatprep.mubr.bf16.mxu0 %v1828_v26  ;;  %1203 = vmatprep.mubr.bf16.mxu1 %v1828_v26  ;;  %v606_v40 = vmul.f32 %v1719_v45, %v2209_v42 }
 0x189   : > { %v707_v36 = vpack.c.bf16 %v683_v47, %v682_v39  ;;  %v646_v44 = vmul.f32 %v2251_v55, %v607_v12 }
 0x18a   : > { %v1721_v9 = vpop.eup %1720  ;;  %v645_v16 = vmul.f32 %v2251_v55, %v606_v40 }
 0x18b   : > { %v1723_v23 = vpop.eup %1722  ;;  %v685_v52 = vadd.f32 %v2263_v0, %v646_v44  ;;  %v609_v15 = vmul.f32 %v1721_v9, %v2224_v54 }
 0x18c   : > { %v684_v57 = vadd.f32 %v2263_v0, %v645_v16  ;;  %v608_v42 = vmul.f32 %v1723_v23, %v2219_v50 }
 0x18d   : > { %v648_v60 = vmul.f32 %v2251_v55, %v609_v15 }
 0x18e   : > { %v708_v41 = vpack.c.bf16 %v685_v52, %v684_v57  ;;  %v647_v18 = vmul.f32 %v2251_v55, %v608_v42 }
 0x18f   : > { %1011 = vmatmul.mubr.bf16.gmra.mrb[28].mxu0 %v707_v36  ;;  %1204 = vmatmul.mubr.bf16.gmra.mrb[28].mxu1 %v707_v36  ;;  %v687_v58 = vadd.f32 %v2263_v0, %v648_v60 }
 0x190   : > { %1020 = vmatprep.mubr.bf16.mxu0 %v1828_v26  ;;  %1213 = vmatprep.mubr.bf16.mxu1 %v1828_v26  ;;  %v686_v29 = vadd.f32 %v2263_v0, %v647_v18 }
 0x192   : > { %v709_v54 = vpack.c.bf16 %v687_v58, %v686_v29 }
 0x197   : > { %1021 = vmatmul.mubr.bf16.gmra.mrb[32].mxu0 %v708_v41  ;;  %1214 = vmatmul.mubr.bf16.gmra.mrb[32].mxu1 %v708_v41 }
 0x198   : > { %1030 = vmatprep.mubr.bf16.mxu0 %v1828_v26  ;;  %1223 = vmatprep.mubr.bf16.mxu1 %v1828_v26 }
 0x19f   : > { %1031 = vmatmul.mubr.bf16.gmra.mrb[36].mxu0 %v709_v54  ;;  %1224 = vmatmul.mubr.bf16.gmra.mrb[36].mxu1 %v709_v54 }
 0x1a0   : > { %1040 = vmatprep.mubr.bf16.mxu0 %v1828_v26  ;;  %1233 = vmatprep.mubr.bf16.mxu1 %v1828_v26 }
 0x1d3   : > { %v471_v50 = vpop.xlane.xlu0 %470 }
 0x1d4   : > { %v514_v53 = vmul.f32 0.0078125, %v471_v50 }
 0x1d6   : > { %v546_v6 = vadd.f32 1e-05, %v514_v53 }
 0x1d7   : > { %v473_v61 = vpop.xlane.xlu1 %472 }
 0x1d8   : > { %1724 = vrsqrt.f32 %v546_v6  ;;  %v515_v10 = vmul.f32 0.0078125, %v473_v61 }
 0x1da   : > { %v547_v5 = vadd.f32 1e-05, %v515_v10 }
 0x1db   : > { %v475_v19 = vpop.xlane.xlu0 %474 }
 0x1dc   : > { %1726 = vrsqrt.f32 %v547_v5  ;;  %v516_v56 = vmul.f32 0.0078125, %v475_v19 }
 0x1de   : > { %v548_v2 = vadd.f32 1e-05, %v516_v56 }
 0x1df   : > { %v477_v63 = vpop.xlane.xlu1 %476 }
 0x1e0   : > { %1728 = vrsqrt.f32 %v548_v2  ;;  %v517_v4 = vmul.f32 0.0078125, %v477_v63 }
 0x1e2   : > { %v1725_v35 = vpop.eup %1724  ;;  %v549_v11 = vadd.f32 1e-05, %v517_v4 }
 0x1e3   : > { %v479_v21 = vpop.xlane.xlu0 %478  ;;  %v610_v46 = vmul.f32 %v1725_v35, %v2233_v3 }
 0x1e4   : > { %1730 = vrsqrt.f32 %v549_v11  ;;  %v518_v24 = vmul.f32 0.0078125, %v479_v21 }
 0x1e5   : > { %v649_v32 = vmul.f32 %v2251_v55, %v610_v46 }
 0x1e6   : > { %v1727_v30 = vpop.eup %1726  ;;  %v550_v31 = vadd.f32 1e-05, %v518_v24 }
 0x1e7   : > { %v481_v22 = vpop.xlane.xlu1 %480  ;;  %v611_v48 = vmul.f32 %v1727_v30, %v2238_v7  ;;  %v688_v34 = vadd.f32 %v2263_v0, %v649_v32 }
 0x1e8   : > { %1732 = vrsqrt.f32 %v550_v31  ;;  %v519_v27 = vmul.f32 0.0078125, %v481_v22 }
 0x1e9   : > { %v650_v8 = vmul.f32 %v2251_v55, %v611_v48 }
 0x1ea   : > { %v1729_v51 = vpop.eup %1728  ;;  %v551_v28 = vadd.f32 1e-05, %v519_v27 }
 0x1eb   : > { %v483_v38 = vpop.xlane.xlu0 %482  ;;  %v689_v3 = vadd.f32 %v2263_v0, %v650_v8  ;;  %v612_v13 = vmul.f32 %v1729_v51, %v2243_v43 }
 0x1ec   : > { %1734 = vrsqrt.f32 %v551_v28  ;;  %v520_v14 = vmul.f32 0.0078125, %v483_v38 }
 0x1ed   : > { %v710_v45 = vpack.c.bf16 %v689_v3, %v688_v34  ;;  %v651_v40 = vmul.f32 %v2251_v55, %v612_v13 }
 0x1ee   : > { %v1731_v47 = vpop.eup %1730  ;;  %v552_v7 = vadd.f32 1e-05, %v520_v14 }
 0x1ef   : > { %v485_v12 = vpop.xlane.xlu1 %484  ;;  %1041 = vmatmul.mubr.bf16.gmra.mrb[40].mxu0 %v710_v45  ;;  %1234 = vmatmul.mubr.bf16.gmra.mrb[40].mxu1 %v710_v45  ;;  %v613_v39 = vmul.f32 %v1731_v47, %v2254_v49  ;;  %v690_v23 = vadd.f32 %v2263_v0, %v651_v40 }
 0x1f0   : > { %1736 = vrsqrt.f32 %v552_v7  ;;  %v521_v36 = vmul.f32 0.0078125, %v485_v12  ;;  %1050 = vmatprep.mubr.bf16.mxu0 %v1828_v26  ;;  %1243 = vmatprep.mubr.bf16.mxu1 %v1828_v26 }
 0x1f1   : > { %v652_v43 = vmul.f32 %v2251_v55, %v613_v39 }
 0x1f2   : > { %v1733_v44 = vpop.eup %1732  ;;  %v553_v9 = vadd.f32 1e-05, %v521_v36 }
 0x1f3   : > { %v487_v16 = vpop.xlane.xlu0 %486  ;;  %v691_v52 = vadd.f32 %v2263_v0, %v652_v43  ;;  %v614_v15 = vmul.f32 %v1733_v44, %v2267_v20 }
 0x1f4   : > { %1738 = vrsqrt.f32 %v553_v9  ;;  %v522_v49 = vmul.f32 0.0078125, %v487_v16 }
 0x1f5   : > { %v711_v57 = vpack.c.bf16 %v691_v52, %v690_v23  ;;  %v653_v58 = vmul.f32 %v2251_v55, %v614_v15 }
 0x1f6   : > { %v1735_v42 = vpop.eup %1734  ;;  %v554_v41 = vadd.f32 1e-05, %v522_v49 }
 0x1f7   : > { %v489_v60 = vpop.xlane.xlu1 %488  ;;  %1051 = vmatmul.mubr.bf16.gmra.mrb[44].mxu0 %v711_v57  ;;  %1244 = vmatmul.mubr.bf16.gmra.mrb[44].mxu1 %v711_v57  ;;  %v615_v18 = vmul.f32 %v1735_v42, %v2275_v1  ;;  %v692_v6 = vadd.f32 %v2263_v0, %v653_v58 }
 0x1f8   : > { %1740 = vrsqrt.f32 %v554_v41  ;;  %v523_v29 = vmul.f32 0.0078125, %v489_v60  ;;  %1060 = vmatprep.mubr.bf16.mxu0 %v1828_v26  ;;  %1253 = vmatprep.mubr.bf16.mxu1 %v1828_v26 }
 0x1f9   : > { %v654_v20 = vmul.f32 %v2251_v55, %v615_v18 }
 0x1fa   : > { %v1737_v54 = vpop.eup %1736  ;;  %v555_v50 = vadd.f32 1e-05, %v523_v29 }
 0x1fb   : > { %v491_v53 = vpop.xlane.xlu0 %490  ;;  %v693_v61 = vadd.f32 %v2263_v0, %v654_v20  ;;  %v616_v10 = vmul.f32 %v1737_v54, %v2285_v17 }
 0x1fc   : > { %1742 = vrsqrt.f32 %v555_v50  ;;  %v524_v1 = vmul.f32 0.0078125, %v491_v53 }
 0x1fd   : > { %v712_v5 = vpack.c.bf16 %v693_v61, %v692_v6  ;;  %v655_v4 = vmul.f32 %v2251_v55, %v616_v10 }
 0x1fe   : > { %v1739_v19 = vpop.eup %1738  ;;  %v556_v56 = vadd.f32 1e-05, %v524_v1 }
 0x1ff   : > { %v493_v2 = vpop.xlane.xlu1 %492  ;;  %1061 = vmatmul.mubr.bf16.gmra.mrb[48].mxu0 %v712_v5  ;;  %1254 = vmatmul.mubr.bf16.gmra.mrb[48].mxu1 %v712_v5  ;;  %v617_v63 = vmul.f32 %v1739_v19, %v2293_v33  ;;  %v694_v46 = vadd.f32 %v2263_v0, %v655_v4 }
 0x200   : > { %1744 = vrsqrt.f32 %v556_v56  ;;  %v525_v35 = vmul.f32 0.0078125, %v493_v2  ;;  %1070 = vmatprep.mubr.bf16.mxu0 %v1828_v26  ;;  %1263 = vmatprep.mubr.bf16.mxu1 %v1828_v26 }
 0x201   : > { %v656_v17 = vmul.f32 %v2251_v55, %v617_v63 }
 0x202   : > { %v1741_v11 = vpop.eup %1740  ;;  %v557_v21 = vadd.f32 1e-05, %v525_v35 }
 0x203   : > { %v695_v24 = vadd.f32 %v2263_v0, %v656_v17  ;;  %v618_v30 = vmul.f32 %v1741_v11, %v2303_v37 }
 0x204   : > { %1746 = vrsqrt.f32 %v557_v21 }
 0x205   : > { %v713_v33 = vpack.c.bf16 %v695_v24, %v694_v46  ;;  %v657_v48 = vmul.f32 %v2251_v55, %v618_v30 }
 0x206   : > { %v1743_v31 = vpop.eup %1742 }
 0x207   : > { %1071 = vmatmul.mubr.bf16.gmra.mrb[52].mxu0 %v713_v33  ;;  %1264 = vmatmul.mubr.bf16.gmra.mrb[52].mxu1 %v713_v33  ;;  %v619_v22 = vmul.f32 %v1743_v31, %v2311_v59  ;;  %v696_v8 = vadd.f32 %v2263_v0, %v657_v48 }
 0x208   : > { %1080 = vmatprep.mubr.bf16.mxu0 %v1828_v26  ;;  %1273 = vmatprep.mubr.bf16.mxu1 %v1828_v26 }
 0x209   : > { %v658_v32 = vmul.f32 %v2251_v55, %v619_v22 }
 0x20a   : > { %v1745_v27 = vpop.eup %1744 }
 0x20b   : > { %v697_v37 = vadd.f32 %v2263_v0, %v658_v32  ;;  %v620_v51 = vmul.f32 %v1745_v27, %v2321_v62 }
 0x20d   : > { %v714_v28 = vpack.c.bf16 %v697_v37, %v696_v8  ;;  %v659_v34 = vmul.f32 %v2251_v55, %v620_v51 }
 0x20e   : > { %v1747_v38 = vpop.eup %1746 }
 0x20f   : > { %1081 = vmatmul.mubr.bf16.gmra.mrb[56].mxu0 %v714_v28  ;;  %1274 = vmatmul.mubr.bf16.gmra.mrb[56].mxu1 %v714_v28  ;;  %v621_v59 = vmul.f32 %v1747_v38, %v2329_v25  ;;  %v698_v13 = vadd.f32 %v2263_v0, %v659_v34 }
 0x210   : > { %1090 = vmatprep.mubr.bf16.mxu0 %v1828_v26  ;;  %1283 = vmatprep.mubr.bf16.mxu1 %v1828_v26 }
 0x211   : > { %v660_v3 = vmul.f32 %v2251_v55, %v621_v59 }
 0x213   : > { %v699_v14 = vadd.f32 %v2263_v0, %v660_v3 }
 0x215   : > { %v715_v62 = vpack.c.bf16 %v699_v14, %v698_v13 }
 0x217   : > { %1091 = vmatmul.mubr.bf16.gmra.mrb[60].mxu0 %v715_v62  ;;  %1284 = vmatmul.mubr.bf16.gmra.mrb[60].mxu1 %v715_v62 }
 0x22a   : > { %v942_v45 = vpop.f32.mrb[0].mxu0  ;;  %v1135_v25 = vpop.f32.mrb[0].mxu1 }
 0x22b   : > { %1294 = vst [vmem:[%s2431_s24] sm:$0xff] %v942_v45  ;;  %1296 = vst [vmem:[%s2431_s24 + $0x10] sm:$0xff] %v1135_v25  ;;  %v944_v26 = vpop.f32.mrb[1].mxu0  ;;  %v1137_v55 = vpop.f32.mrb[1].mxu1 }
 0x22c   : > { %1295 = vst [vmem:[%s2431_s24 + $0x8] sm:$0xff] %v944_v26  ;;  %1297 = vst [vmem:[%s2431_s24 + $0x18] sm:$0xff] %v1137_v55  ;;  %v946_v0 = vpop.f32.mrb[2].mxu0  ;;  %v1139_v47 = vpop.f32.mrb[2].mxu1 }
 0x22d   : > { %1298 = vst [vmem:[%s2431_s24 + $0x20] sm:$0xff] %v946_v0  ;;  %1300 = vst [vmem:[%s2431_s24 + $0x30] sm:$0xff] %v1139_v47  ;;  %v948_v7 = vpop.f32.mrb[3].mxu0  ;;  %v1141_v12 = vpop.f32.mrb[3].mxu1 }
 0x22e   : > { %1299 = vst [vmem:[%s2431_s24 + $0x28] sm:$0xff] %v948_v7  ;;  %1301 = vst [vmem:[%s2431_s24 + $0x38] sm:$0xff] %v1141_v12 }
 0x232   : > { %v952_v39 = vpop.f32.mrb[4].mxu0  ;;  %v1145_v40 = vpop.f32.mrb[4].mxu1 }
 0x233   : > { %1302 = vst [vmem:[%s2431_s24 + $0x40] sm:$0xff] %v952_v39  ;;  %1304 = vst [vmem:[%s2431_s24 + $0x50] sm:$0xff] %v1145_v40  ;;  %v954_v36 = vpop.f32.mrb[5].mxu0  ;;  %v1147_v43 = vpop.f32.mrb[5].mxu1 }
 0x234   : > { %1303 = vst [vmem:[%s2431_s24 + $0x48] sm:$0xff] %v954_v36  ;;  %1305 = vst [vmem:[%s2431_s24 + $0x58] sm:$0xff] %v1147_v43  ;;  %v956_v44 = vpop.f32.mrb[6].mxu0  ;;  %v1149_v9 = vpop.f32.mrb[6].mxu1 }
 0x235   : > { %1306 = vst [vmem:[%s2431_s24 + $0x60] sm:$0xff] %v956_v44  ;;  %1308 = vst [vmem:[%s2431_s24 + $0x70] sm:$0xff] %v1149_v9  ;;  %v958_v16 = vpop.f32.mrb[7].mxu0  ;;  %v1151_v23 = vpop.f32.mrb[7].mxu1 }
 0x236   : > { %1307 = vst [vmem:[%s2431_s24 + $0x68] sm:$0xff] %v958_v16  ;;  %1309 = vst [vmem:[%s2431_s24 + $0x78] sm:$0xff] %v1151_v23 }
 0x23a   : > { %v962_v52 = vpop.f32.mrb[8].mxu0  ;;  %v1155_v15 = vpop.f32.mrb[8].mxu1 }
 0x23b   : > { %1310 = vst [vmem:[%s2431_s24 + $0x80] sm:$0xff] %v962_v52  ;;  %1312 = vst [vmem:[%s2431_s24 + $0x90] sm:$0xff] %v1155_v15  ;;  %v964_v49 = vpop.f32.mrb[9].mxu0  ;;  %v1157_v57 = vpop.f32.mrb[9].mxu1 }
 0x23c   : > { %1311 = vst [vmem:[%s2431_s24 + $0x88] sm:$0xff] %v964_v49  ;;  %1313 = vst [vmem:[%s2431_s24 + $0x98] sm:$0xff] %v1157_v57  ;;  %v966_v42 = vpop.f32.mrb[10].mxu0  ;;  %v1159_v41 = vpop.f32.mrb[10].mxu1 }
 0x23d   : > { %1314 = vst [vmem:[%s2431_s24 + $0xa0] sm:$0xff] %v966_v42  ;;  %1316 = vst [vmem:[%s2431_s24 + $0xb0] sm:$0xff] %v1159_v41  ;;  %v968_v60 = vpop.f32.mrb[11].mxu0  ;;  %v1161_v18 = vpop.f32.mrb[11].mxu1 }
 0x23e   : > { %1315 = vst [vmem:[%s2431_s24 + $0xa8] sm:$0xff] %v968_v60  ;;  %1317 = vst [vmem:[%s2431_s24 + $0xb8] sm:$0xff] %v1161_v18 }
 0x242   : > { %v972_v58 = vpop.f32.mrb[12].mxu0  ;;  %v1165_v29 = vpop.f32.mrb[12].mxu1 }
 0x243   : > { %1318 = vst [vmem:[%s2431_s24 + $0xc0] sm:$0xff] %v972_v58  ;;  %1320 = vst [vmem:[%s2431_s24 + $0xd0] sm:$0xff] %v1165_v29  ;;  %v974_v20 = vpop.f32.mrb[13].mxu0  ;;  %v1167_v54 = vpop.f32.mrb[13].mxu1 }
 0x244   : > { %1319 = vst [vmem:[%s2431_s24 + $0xc8] sm:$0xff] %v974_v20  ;;  %1321 = vst [vmem:[%s2431_s24 + $0xd8] sm:$0xff] %v1167_v54  ;;  %v976_v50 = vpop.f32.mrb[14].mxu0  ;;  %v1169_v53 = vpop.f32.mrb[14].mxu1 }
 0x245   : > { %1322 = vst [vmem:[%s2431_s24 + $0xe0] sm:$0xff] %v976_v50  ;;  %1324 = vst [vmem:[%s2431_s24 + $0xf0] sm:$0xff] %v1169_v53  ;;  %v978_v6 = vpop.f32.mrb[15].mxu0  ;;  %v1171_v61 = vpop.f32.mrb[15].mxu1 }
 0x246   : > { %1323 = vst [vmem:[%s2431_s24 + $0xe8] sm:$0xff] %v978_v6  ;;  %1325 = vst [vmem:[%s2431_s24 + $0xf8] sm:$0xff] %v1171_v61 }
 0x24a   : > { %v982_v10 = vpop.f32.mrb[16].mxu0  ;;  %v1175_v1 = vpop.f32.mrb[16].mxu1 }
 0x24b   : > { %1326 = vst [vmem:[%s2431_s24 + $0x100] sm:$0xff] %v982_v10  ;;  %1328 = vst [vmem:[%s2431_s24 + $0x110] sm:$0xff] %v1175_v1  ;;  %v984_v5 = vpop.f32.mrb[17].mxu0  ;;  %v1177_v19 = vpop.f32.mrb[17].mxu1 }
 0x24c   : > { %1327 = vst [vmem:[%s2431_s24 + $0x108] sm:$0xff] %v984_v5  ;;  %1329 = vst [vmem:[%s2431_s24 + $0x118] sm:$0xff] %v1177_v19  ;;  %v986_v56 = vpop.f32.mrb[18].mxu0  ;;  %v1179_v2 = vpop.f32.mrb[18].mxu1 }
 0x24d   : > { %1330 = vst [vmem:[%s2431_s24 + $0x120] sm:$0xff] %v986_v56  ;;  %1332 = vst [vmem:[%s2431_s24 + $0x130] sm:$0xff] %v1179_v2  ;;  %v988_v63 = vpop.f32.mrb[19].mxu0  ;;  %v1181_v4 = vpop.f32.mrb[19].mxu1 }
 0x24e   : > { %1331 = vst [vmem:[%s2431_s24 + $0x128] sm:$0xff] %v988_v63  ;;  %1333 = vst [vmem:[%s2431_s24 + $0x138] sm:$0xff] %v1181_v4 }
 0x252   : > { %v992_v35 = vpop.f32.mrb[20].mxu0  ;;  %v1185_v17 = vpop.f32.mrb[20].mxu1 }
 0x253   : > { %1334 = vst [vmem:[%s2431_s24 + $0x140] sm:$0xff] %v992_v35  ;;  %1336 = vst [vmem:[%s2431_s24 + $0x150] sm:$0xff] %v1185_v17  ;;  %v994_v11 = vpop.f32.mrb[21].mxu0  ;;  %v1187_v21 = vpop.f32.mrb[21].mxu1 }
 0x254   : > { %1335 = vst [vmem:[%s2431_s24 + $0x148] sm:$0xff] %v994_v11  ;;  %1337 = vst [vmem:[%s2431_s24 + $0x158] sm:$0xff] %v1187_v21  ;;  %v996_v46 = vpop.f32.mrb[22].mxu0  ;;  %v1189_v24 = vpop.f32.mrb[22].mxu1 }
 0x255   : > { %1338 = vst [vmem:[%s2431_s24 + $0x160] sm:$0xff] %v996_v46  ;;  %1340 = vst [vmem:[%s2431_s24 + $0x170] sm:$0xff] %v1189_v24  ;;  %v998_v30 = vpop.f32.mrb[23].mxu0  ;;  %v1191_v33 = vpop.f32.mrb[23].mxu1 }
 0x256   : > { %1339 = vst [vmem:[%s2431_s24 + $0x168] sm:$0xff] %v998_v30  ;;  %1341 = vst [vmem:[%s2431_s24 + $0x178] sm:$0xff] %v1191_v33 }
 0x25a   : > { %v1002_v31 = vpop.f32.mrb[24].mxu0  ;;  %v1195_v22 = vpop.f32.mrb[24].mxu1 }
 0x25b   : > { %1342 = vst [vmem:[%s2431_s24 + $0x180] sm:$0xff] %v1002_v31  ;;  %1344 = vst [vmem:[%s2431_s24 + $0x190] sm:$0xff] %v1195_v22  ;;  %v1004_v48 = vpop.f32.mrb[25].mxu0  ;;  %v1197_v32 = vpop.f32.mrb[25].mxu1 }
 0x25c   : > { %1343 = vst [vmem:[%s2431_s24 + $0x188] sm:$0xff] %v1004_v48  ;;  %1345 = vst [vmem:[%s2431_s24 + $0x198] sm:$0xff] %v1197_v32  ;;  %v1006_v27 = vpop.f32.mrb[26].mxu0  ;;  %v1199_v8 = vpop.f32.mrb[26].mxu1 }
 0x25d   : > { %1346 = vst [vmem:[%s2431_s24 + $0x1a0] sm:$0xff] %v1006_v27  ;;  %1348 = vst [vmem:[%s2431_s24 + $0x1b0] sm:$0xff] %v1199_v8  ;;  %v1008_v37 = vpop.f32.mrb[27].mxu0  ;;  %v1201_v51 = vpop.f32.mrb[27].mxu1 }
 0x25e   : > { %1347 = vst [vmem:[%s2431_s24 + $0x1a8] sm:$0xff] %v1008_v37  ;;  %1349 = vst [vmem:[%s2431_s24 + $0x1b8] sm:$0xff] %v1201_v51 }
 0x262   : > { %v1012_v28 = vpop.f32.mrb[28].mxu0  ;;  %v1205_v38 = vpop.f32.mrb[28].mxu1 }
 0x263   : > { %1350 = vst [vmem:[%s2431_s24 + $0x1c0] sm:$0xff] %v1012_v28  ;;  %1352 = vst [vmem:[%s2431_s24 + $0x1d0] sm:$0xff] %v1205_v38  ;;  %v1014_v59 = vpop.f32.mrb[29].mxu0  ;;  %v1207_v34 = vpop.f32.mrb[29].mxu1 }
 0x264   : > { %1351 = vst [vmem:[%s2431_s24 + $0x1c8] sm:$0xff] %v1014_v59  ;;  %1353 = vst [vmem:[%s2431_s24 + $0x1d8] sm:$0xff] %v1207_v34  ;;  %v1016_v3 = vpop.f32.mrb[30].mxu0  ;;  %v1209_v13 = vpop.f32.mrb[30].mxu1 }
 0x265   : > { %1354 = vst [vmem:[%s2431_s24 + $0x1e0] sm:$0xff] %v1016_v3  ;;  %1356 = vst [vmem:[%s2431_s24 + $0x1f0] sm:$0xff] %v1209_v13  ;;  %v1018_v14 = vpop.f32.mrb[31].mxu0  ;;  %v1211_v62 = vpop.f32.mrb[31].mxu1 }
 0x266   : > { %1355 = vst [vmem:[%s2431_s24 + $0x1e8] sm:$0xff] %v1018_v14  ;;  %1357 = vst [vmem:[%s2431_s24 + $0x1f8] sm:$0xff] %v1211_v62 }
 0x26a   : > { %v1022_v45 = vpop.f32.mrb[32].mxu0  ;;  %v1215_v25 = vpop.f32.mrb[32].mxu1 }
 0x26b   : > { %1358 = vst [vmem:[%s2431_s24 + $0x200] sm:$0xff] %v1022_v45  ;;  %1360 = vst [vmem:[%s2431_s24 + $0x210] sm:$0xff] %v1215_v25  ;;  %v1024_v26 = vpop.f32.mrb[33].mxu0  ;;  %v1217_v55 = vpop.f32.mrb[33].mxu1 }
 0x26c   : > { %1359 = vst [vmem:[%s2431_s24 + $0x208] sm:$0xff] %v1024_v26  ;;  %1361 = vst [vmem:[%s2431_s24 + $0x218] sm:$0xff] %v1217_v55  ;;  %v1026_v0 = vpop.f32.mrb[34].mxu0  ;;  %v1219_v47 = vpop.f32.mrb[34].mxu1 }
 0x26d   : > { %1362 = vst [vmem:[%s2431_s24 + $0x220] sm:$0xff] %v1026_v0  ;;  %1364 = vst [vmem:[%s2431_s24 + $0x230] sm:$0xff] %v1219_v47  ;;  %v1028_v7 = vpop.f32.mrb[35].mxu0  ;;  %v1221_v12 = vpop.f32.mrb[35].mxu1 }
 0x26e   : > { %1363 = vst [vmem:[%s2431_s24 + $0x228] sm:$0xff] %v1028_v7  ;;  %1365 = vst [vmem:[%s2431_s24 + $0x238] sm:$0xff] %v1221_v12 }
 0x272   : > { %v1032_v39 = vpop.f32.mrb[36].mxu0  ;;  %v1225_v40 = vpop.f32.mrb[36].mxu1 }
 0x273   : > { %1366 = vst [vmem:[%s2431_s24 + $0x240] sm:$0xff] %v1032_v39  ;;  %1368 = vst [vmem:[%s2431_s24 + $0x250] sm:$0xff] %v1225_v40  ;;  %v1034_v36 = vpop.f32.mrb[37].mxu0  ;;  %v1227_v43 = vpop.f32.mrb[37].mxu1 }
 0x274   : > { %1367 = vst [vmem:[%s2431_s24 + $0x248] sm:$0xff] %v1034_v36  ;;  %1369 = vst [vmem:[%s2431_s24 + $0x258] sm:$0xff] %v1227_v43  ;;  %v1036_v44 = vpop.f32.mrb[38].mxu0  ;;  %v1229_v9 = vpop.f32.mrb[38].mxu1 }
 0x275   : > { %1370 = vst [vmem:[%s2431_s24 + $0x260] sm:$0xff] %v1036_v44  ;;  %1372 = vst [vmem:[%s2431_s24 + $0x270] sm:$0xff] %v1229_v9  ;;  %v1038_v16 = vpop.f32.mrb[39].mxu0  ;;  %v1231_v23 = vpop.f32.mrb[39].mxu1 }
 0x276   : > { %1371 = vst [vmem:[%s2431_s24 + $0x268] sm:$0xff] %v1038_v16  ;;  %1373 = vst [vmem:[%s2431_s24 + $0x278] sm:$0xff] %v1231_v23 }
 0x2c2   : > { %v1042_v52 = vpop.f32.mrb[40].mxu0  ;;  %v1235_v15 = vpop.f32.mrb[40].mxu1 }
 0x2c3   : > { %1374 = vst [vmem:[%s2431_s24 + $0x280] sm:$0xff] %v1042_v52  ;;  %1376 = vst [vmem:[%s2431_s24 + $0x290] sm:$0xff] %v1235_v15  ;;  %v1044_v49 = vpop.f32.mrb[41].mxu0  ;;  %v1237_v57 = vpop.f32.mrb[41].mxu1 }
 0x2c4   : > { %1375 = vst [vmem:[%s2431_s24 + $0x288] sm:$0xff] %v1044_v49  ;;  %1377 = vst [vmem:[%s2431_s24 + $0x298] sm:$0xff] %v1237_v57  ;;  %v1046_v42 = vpop.f32.mrb[42].mxu0  ;;  %v1239_v41 = vpop.f32.mrb[42].mxu1 }
 0x2c5   : > { %1378 = vst [vmem:[%s2431_s24 + $0x2a0] sm:$0xff] %v1046_v42  ;;  %1380 = vst [vmem:[%s2431_s24 + $0x2b0] sm:$0xff] %v1239_v41  ;;  %v1048_v60 = vpop.f32.mrb[43].mxu0  ;;  %v1241_v18 = vpop.f32.mrb[43].mxu1 }
 0x2c6   : > { %1379 = vst [vmem:[%s2431_s24 + $0x2a8] sm:$0xff] %v1048_v60  ;;  %1381 = vst [vmem:[%s2431_s24 + $0x2b8] sm:$0xff] %v1241_v18 }
 0x2ca   : > { %v1052_v58 = vpop.f32.mrb[44].mxu0  ;;  %v1245_v29 = vpop.f32.mrb[44].mxu1 }
 0x2cb   : > { %1382 = vst [vmem:[%s2431_s24 + $0x2c0] sm:$0xff] %v1052_v58  ;;  %1384 = vst [vmem:[%s2431_s24 + $0x2d0] sm:$0xff] %v1245_v29  ;;  %v1054_v20 = vpop.f32.mrb[45].mxu0  ;;  %v1247_v54 = vpop.f32.mrb[45].mxu1 }
 0x2cc   : > { %1383 = vst [vmem:[%s2431_s24 + $0x2c8] sm:$0xff] %v1054_v20  ;;  %1385 = vst [vmem:[%s2431_s24 + $0x2d8] sm:$0xff] %v1247_v54  ;;  %v1056_v50 = vpop.f32.mrb[46].mxu0  ;;  %v1249_v53 = vpop.f32.mrb[46].mxu1 }
 0x2cd   : > { %1386 = vst [vmem:[%s2431_s24 + $0x2e0] sm:$0xff] %v1056_v50  ;;  %1388 = vst [vmem:[%s2431_s24 + $0x2f0] sm:$0xff] %v1249_v53  ;;  %v1058_v6 = vpop.f32.mrb[47].mxu0  ;;  %v1251_v61 = vpop.f32.mrb[47].mxu1 }
 0x2ce   : > { %1387 = vst [vmem:[%s2431_s24 + $0x2e8] sm:$0xff] %v1058_v6  ;;  %1389 = vst [vmem:[%s2431_s24 + $0x2f8] sm:$0xff] %v1251_v61 }
 0x2d2   : > { %v1062_v10 = vpop.f32.mrb[48].mxu0  ;;  %v1255_v1 = vpop.f32.mrb[48].mxu1 }
 0x2d3   : > { %1390 = vst [vmem:[%s2431_s24 + $0x300] sm:$0xff] %v1062_v10  ;;  %1392 = vst [vmem:[%s2431_s24 + $0x310] sm:$0xff] %v1255_v1  ;;  %v1064_v5 = vpop.f32.mrb[49].mxu0  ;;  %v1257_v19 = vpop.f32.mrb[49].mxu1 }
 0x2d4   : > { %1391 = vst [vmem:[%s2431_s24 + $0x308] sm:$0xff] %v1064_v5  ;;  %1393 = vst [vmem:[%s2431_s24 + $0x318] sm:$0xff] %v1257_v19  ;;  %v1066_v56 = vpop.f32.mrb[50].mxu0  ;;  %v1259_v2 = vpop.f32.mrb[50].mxu1 }
 0x2d5   : > { %1394 = vst [vmem:[%s2431_s24 + $0x320] sm:$0xff] %v1066_v56  ;;  %1396 = vst [vmem:[%s2431_s24 + $0x330] sm:$0xff] %v1259_v2  ;;  %v1068_v63 = vpop.f32.mrb[51].mxu0  ;;  %v1261_v4 = vpop.f32.mrb[51].mxu1 }
 0x2d6   : > { %1395 = vst [vmem:[%s2431_s24 + $0x328] sm:$0xff] %v1068_v63  ;;  %1397 = vst [vmem:[%s2431_s24 + $0x338] sm:$0xff] %v1261_v4 }
 0x2da   : > { %v1072_v35 = vpop.f32.mrb[52].mxu0  ;;  %v1265_v17 = vpop.f32.mrb[52].mxu1 }
 0x2db   : > { %1398 = vst [vmem:[%s2431_s24 + $0x340] sm:$0xff] %v1072_v35  ;;  %1400 = vst [vmem:[%s2431_s24 + $0x350] sm:$0xff] %v1265_v17  ;;  %v1074_v11 = vpop.f32.mrb[53].mxu0  ;;  %v1267_v21 = vpop.f32.mrb[53].mxu1 }
 0x2dc   : > { %1399 = vst [vmem:[%s2431_s24 + $0x348] sm:$0xff] %v1074_v11  ;;  %1401 = vst [vmem:[%s2431_s24 + $0x358] sm:$0xff] %v1267_v21  ;;  %v1076_v46 = vpop.f32.mrb[54].mxu0  ;;  %v1269_v24 = vpop.f32.mrb[54].mxu1 }
 0x2dd   : > { %1402 = vst [vmem:[%s2431_s24 + $0x360] sm:$0xff] %v1076_v46  ;;  %1404 = vst [vmem:[%s2431_s24 + $0x370] sm:$0xff] %v1269_v24  ;;  %v1078_v30 = vpop.f32.mrb[55].mxu0  ;;  %v1271_v33 = vpop.f32.mrb[55].mxu1 }
 0x2de   : > { %1403 = vst [vmem:[%s2431_s24 + $0x368] sm:$0xff] %v1078_v30  ;;  %1405 = vst [vmem:[%s2431_s24 + $0x378] sm:$0xff] %v1271_v33 }
 0x2e2   : > { %v1082_v31 = vpop.f32.mrb[56].mxu0  ;;  %v1275_v22 = vpop.f32.mrb[56].mxu1 }
 0x2e3   : > { %1406 = vst [vmem:[%s2431_s24 + $0x380] sm:$0xff] %v1082_v31  ;;  %1408 = vst [vmem:[%s2431_s24 + $0x390] sm:$0xff] %v1275_v22  ;;  %v1084_v48 = vpop.f32.mrb[57].mxu0  ;;  %v1277_v32 = vpop.f32.mrb[57].mxu1 }
 0x2e4   : > { %1407 = vst [vmem:[%s2431_s24 + $0x388] sm:$0xff] %v1084_v48  ;;  %1409 = vst [vmem:[%s2431_s24 + $0x398] sm:$0xff] %v1277_v32  ;;  %v1086_v27 = vpop.f32.mrb[58].mxu0  ;;  %v1279_v8 = vpop.f32.mrb[58].mxu1 }
 0x2e5   : > { %1410 = vst [vmem:[%s2431_s24 + $0x3a0] sm:$0xff] %v1086_v27  ;;  %1412 = vst [vmem:[%s2431_s24 + $0x3b0] sm:$0xff] %v1279_v8  ;;  %v1088_v37 = vpop.f32.mrb[59].mxu0  ;;  %v1281_v51 = vpop.f32.mrb[59].mxu1 }
 0x2e6   : > { %1411 = vst [vmem:[%s2431_s24 + $0x3a8] sm:$0xff] %v1088_v37  ;;  %1413 = vst [vmem:[%s2431_s24 + $0x3b8] sm:$0xff] %v1281_v51 }
 0x2ea   : > { %v1092_v28 = vpop.f32.mrb[60].mxu0  ;;  %v1285_v38 = vpop.f32.mrb[60].mxu1 }
 0x2eb   : > { %1414 = vst [vmem:[%s2431_s24 + $0x3c0] sm:$0xff] %v1092_v28  ;;  %1416 = vst [vmem:[%s2431_s24 + $0x3d0] sm:$0xff] %v1285_v38  ;;  %v1094_v59 = vpop.f32.mrb[61].mxu0  ;;  %v1287_v34 = vpop.f32.mrb[61].mxu1 }
 0x2ec   : > { %1415 = vst [vmem:[%s2431_s24 + $0x3c8] sm:$0xff] %v1094_v59  ;;  %1417 = vst [vmem:[%s2431_s24 + $0x3d8] sm:$0xff] %v1287_v34  ;;  %v1096_v3 = vpop.f32.mrb[62].mxu0  ;;  %v1289_v13 = vpop.f32.mrb[62].mxu1 }
 0x2ed   : > { %1418 = vst [vmem:[%s2431_s24 + $0x3e0] sm:$0xff] %v1096_v3  ;;  %1420 = vst [vmem:[%s2431_s24 + $0x3f0] sm:$0xff] %v1289_v13  ;;  %v1098_v14 = vpop.f32.mrb[63].mxu0  ;;  %v1291_v62 = vpop.f32.mrb[63].mxu1 }
 0x2ee   : > { %1419 = vst [vmem:[%s2431_s24 + $0x3e8] sm:$0xff] %v1098_v14  ;;  %1421 = vst [vmem:[%s2431_s24 + $0x3f8] sm:$0xff] %v1291_v62 }
 0x2ef   : > { %1761 = shalt.err (!%p1758_p5)
}
 0x2f0   : > { %s1762_s7 = scalar_lea.hbm %s2560_s6, 16384  ;;  %s1766_s14 = scalar_lea.hbm %s2622_s4, 32768 }
 0x2f1   : > { %p1763_p6 = scmp.ne.s32.totalorder %s2560_s6, %s1762_s7  ;;  %p1767_p10 = scmp.lt.u32.totalorder %s2560_s6, %s2622_s4 }
 0x2f2   : > { %p1768_p11 = scmp.lt.u32.totalorder %s1766_s14, %s1762_s7  ;;  %p1770_p13 = scmp.lt.u32.totalorder %s1762_s7, %s2560_s6 }
 0x2f3   : > { %p1764_p7 = pnand %p1763_p6, %p1897_p4 }
 0x2f4   : > { %p1769_p12 = por %p1768_p11, %p1767_p10 }
 0x2f5   : > { %p1765_p9 = pneg %p1764_p7 }
 0x2f6   : > { %p1771_p0 = por %p1770_p13, %p1769_p12 }
 0x2f8   : > { %p1772_p1 = pnand %p1771_p0, %p1765_p9 }
 0x2fa   : > { %1775 = shalt.err (!%p1772_p1)
}
 0x2fb   : > { %s1830_s24 = smov 512   ;;  %s1831_s26 = smov 32  }
 0x2fc   : > { %1578 = dma.vmem_to_hbm [thread:$0]  (%p1897_p4), %s2562_s29, 16384, %s2560_s6, %s2572_s18, %s1830_s24, %s1830_s24, %s1831_s26  }
 0x2fd PF: > { %p1584_p2 = scmp.ge.s32.totalorder %s1826_s20, 2  ;;  %s1454_s30 = sand.u32 1, %s1806_s15  }
 0x2fe   : > { %s1455_s5 = scalar_lea.sflag [#allocation3], %s1454_s30 }
 0x2ff   : > { %p1581_p3 = pnand %p1584_p2, %p1904_p8 }
 0x301   : > { %1801 = dma.done.wait (!%p1581_p3), %s1455_s5, 16384  }
 0x302   : > { %1803 = vsyncadd (!%p1581_p3), %s1455_s5, 4294950912  ;;  %s17_s20 = sadd.s32 1, %s1826_s20   ;;  %s2625_s15 = smov %s1810_s16 }
 0x303   : > { %p14_p5 = scmp.ge.s32.totalorder %s17_s20, 4   ;;  %s2626_s16 = smov %s1814_s17 }
 0x304   : > { %s2627_s17 = smov %s1910_s28  ;;  %s2628_s18 = smov %s1822_s19 }
 0x305   : > { %s2629_s19 = smov %s2631_s23  ;;  %16 = sbr.rel (!%p14_p5) target bundleno = 4 (0x4), region = 74 }
 0x30c   :  { %1460 = vsyncpa [#allocation3], 1 }
 0x30d   :  { %1462 = vsyncpa [#allocation3 + $0x1], 1 }

</bundles_post_ra>
